<compile_context>
chip_gen: v5e
topology: v5e:2x2
jax: 0.10.0
libtpu: 0.0.40
codegen_flags: <defaults>
</compile_context>

<pallas_src>
import functools

import numpy as np

import jax
import jax.numpy as jnp
from jax import lax
from jax.experimental import pallas as pl
from jax.experimental.pallas import tpu as pltpu


# ----------------------------------------------------------------------------------
# Static geometry implied by the module (fc1 in = 72*25  =>  input spatial = 28x28)
# ----------------------------------------------------------------------------------
W16 = 16                       # padded width of the 14x14 feature maps
NPIX1 = 14 * W16               # 224 flat output positions for conv1/conv2 (incl. garbage cols)
FLAT1 = 288                    # lanes of padded flat maps (>= 256 real, >= 34 + 224 slab reads)
W7 = 7                         # width of the 7x7 map feeding conv3
NPIX3 = 5 * W7                 # 35 flat output positions of conv3 (incl. garbage cols)
SEL_LANES = 56                 # lanes per selected 7x7 quadrant map (>= 16 + 35 slab reads)
QPAD = 48                      # per-quadrant sublane stride in the stacked conv3 input (36 -> 48)
SHIFTS16 = tuple(ky * W16 + kx for ky in range(3) for kx in range(3))
SHIFTS7 = tuple(ky * W7 + kx for ky in range(3) for kx in range(3))
QUAD_OFFSETS = ((0, 0), (1, 0), (0, 1), (1, 1))   # (dy, dx) for [first, second, third, fourth]


def _c0p(size):
    # conv1 input-channel count padded to a bf16 sublane tile (multiple of 16)
    return ((4 * size + 15) // 16) * 16


# ----------------------------------------------------------------------------------
# The fused Pallas kernel (runs once: no grid)
# ----------------------------------------------------------------------------------
def _fused_forward_kernel(x0_ref, mask_ref, w1_ref, b1_ref, w2_ref, b2_ref,
                          sel_ref, w3_ref, b3_ref, wf_ref, bf_ref,
                          out_ref, im_scr, a1_scr, z_scr, *, c0, c0p):
    f32 = jnp.float32
    bf16 = jnp.bfloat16

    # ---- conv1 (k=3, pad=1): im2col the 9 shifted slabs, then ONE K=9*c0p matmul ---
    im_scr[...] = jnp.zeros(im_scr.shape, im_scr.dtype)
    for k, s in enumerate(SHIFTS16):
        im_scr[k * c0p:k * c0p + c0, :] = x0_ref[:, s:s + NPIX1]
    y1 = jnp.dot(w1_ref[...], im_scr[...], preferred_element_type=f32)     # [154, 224]
    # bias, then zero the wrap-around garbage columns so conv2's padding ring is exact
    y1 = (y1 + b1_ref[...]) * mask_ref[...]

    # write conv1 output into the zero-padded flat layout for conv2
    a1_scr[...] = jnp.zeros(a1_scr.shape, a1_scr.dtype)
    a1_scr[:, W16 + 1:W16 + 1 + NPIX1] = y1.astype(a1_scr.dtype)

    # ---- conv2 (k=3, pad=1): 9 shifted MXU matmuls, K = 154 ------------------------
    y2 = jnp.zeros((w2_ref.shape[1], NPIX1), f32)                          # [36, 224]
    for k, s in enumerate(SHIFTS16):
        y2 = y2 + jnp.dot(w2_ref[k], a1_scr[:, s:s + NPIX1],
                          preferred_element_type=f32)
    y2 = (y2 + b2_ref[...]).astype(bf16)        # garbage lanes are never selected below

    # ---- second space-to-depth: ONE 0/1 selection matmul, then restack quadrants ---
    zb = jnp.dot(y2, sel_ref[...], preferred_element_type=f32).astype(bf16)  # [36, 224]
    z_scr[...] = jnp.zeros(z_scr.shape, z_scr.dtype)    # zero the alignment-pad rows
    for q in range(4):
        z_scr[q * QPAD:q * QPAD + 36, :] = zb[:, q * SEL_LANES:(q + 1) * SEL_LANES]

    # ---- conv3 (k=3, pad=0): 9 shifted matmuls with all 4 quadrants merged (K=192) -
    y3 = jnp.zeros((w3_ref.shape[1], NPIX3), f32)                          # [72, 35]
    for k, s in enumerate(SHIFTS7):
        y3 = y3 + jnp.dot(w3_ref[k], z_scr[:, s:s + NPIX3],
                          preferred_element_type=f32)
    y3 = y3 + b3_ref[...]

    # ---- fc1: per-output multiply+reduce (garbage lanes have zero fc weight), ------
    # ---- single lane-dense store of the whole output row ---------------------------
    n_out = out_ref.shape[1]
    vals = []
    for o in range(n_out):
        prod = y3 * wf_ref[o]                                              # [72, 35] f32
        t = jnp.sum(prod, axis=1, keepdims=True)                           # [72, 1]
        vals.append(jnp.sum(t, axis=0, keepdims=True))                     # [1, 1]
    out_ref[...] = jnp.concatenate(vals, axis=1) + bf_ref[...]


# ----------------------------------------------------------------------------------
# One-time parameter preparation (hoisted out of the per-call path)
# ----------------------------------------------------------------------------------
def prepare_params(params, num_classes, size):
    c0 = 4 * size
    c0p = _c0p(size)
    n_out = num_classes * size
    bf16 = jnp.bfloat16

    # conv1 weight in im2col layout: [154, 9*c0p], col = k*c0p + cin (zero pad cols)
    w1 = jnp.transpose(params["w1"], (2, 3, 0, 1)).reshape(9, 154, c0)
    w1 = jnp.pad(w1, ((0, 0), (0, 0), (0, c0p - c0)))
    w1 = jnp.transpose(w1, (1, 0, 2)).reshape(154, 9 * c0p).astype(bf16)

    # conv2 weight as per-(ky,kx) [Cout, Cin] matrices
    w2 = jnp.transpose(params["w2"], (2, 3, 0, 1)).reshape(9, 36, 154).astype(bf16)

    # conv3 weight per (ky,kx) with the 4 quadrants merged on K (36 -> 48 zero-padded)
    w3 = params["w3"].reshape(72, 4, 36, 3, 3)
    w3 = jnp.transpose(w3, (3, 4, 0, 1, 2)).reshape(9, 72, 4, 36)
    w3 = jnp.pad(w3, ((0, 0), (0, 0), (0, 0), (0, QPAD - 36)))
    w3 = w3.reshape(9, 72, 4 * QPAD).astype(bf16)

    # fc weight laid out to match the [72, 5*7] conv3 output (zeros on garbage cols)
    wf = params["wf"].reshape(n_out, 72, 5, 5)
    wf = jnp.pad(wf, ((0, 0), (0, 0), (0, 0), (0, W7 - 5)))
    wf = wf.reshape(n_out, 72, NPIX3).astype(jnp.float32)

    b1 = params["b1"].reshape(154, 1).astype(jnp.float32)
    b2 = params["b2"].reshape(36, 1).astype(jnp.float32)
    b3 = params["b3"].reshape(72, 1).astype(jnp.float32)
    bf = params["bf"].reshape(1, n_out).astype(jnp.float32)

    # valid-column mask for the flat [*, 14*16] conv outputs (cols 14,15 wrap -> garbage)
    mask = (np.arange(NPIX1) % W16 < 14).astype(np.float32).reshape(1, NPIX1)

    # single 0/1 selection matrix implementing the second space-to-depth on the MXU
    sel = np.zeros((NPIX1, 4 * SEL_LANES), np.float32)
    for q, (dy, dx) in enumerate(QUAD_OFFSETS):
        for u in range(7):
            for v in range(7):
                sel[(2 * u + dy) * W16 + (2 * v + dx), q * SEL_LANES + u * W7 + v] = 1.0

    return dict(w1=w1, b1=b1, w2=w2, b2=b2, w3=w3, b3=b3, wf=wf, bf=bf,
                mask=jnp.asarray(mask), sel=jnp.asarray(sel, bf16))


# ----------------------------------------------------------------------------------
# Per-call input prep + the fused pallas_call
# ----------------------------------------------------------------------------------
def _space_to_depth_input(x, size):
    # PyTorch: cat([x[:, ::2, ::2], x[:, 1::2, ::2], x[:, ::2, 1::2], x[:, 1::2, 1::2]], 0)
    # TODO(synk): the first space-to-depth (strided slicing of the HBM input) stays as a
    # tiny XLA prologue; an in-kernel version would need lane-strided loads or extra
    # selection constants for no latency gain.
    quads = [x[:, dy::2, dx::2] for (dy, dx) in QUAD_OFFSETS]
    xc = jnp.concatenate(quads, axis=0)                       # [4*size, 14, 14]
    xp = jnp.pad(xc, ((0, 0), (1, 1), (1, 1)))                # [4*size, 16, 16]
    xf = xp.reshape(4 * size, W16 * W16)                      # [4*size, 256] flat padded
    xf = jnp.pad(xf, ((0, 0), (0, FLAT1 - W16 * W16)))        # [4*size, 288]
    return xf.astype(jnp.bfloat16)


def forward_pallas(prepped, x, num_classes, size):
    c0 = 4 * size
    c0p = _c0p(size)
    n_out = num_classes * size
    x0 = _space_to_depth_input(x, size)

    flops = 2 * (154 * 9 * c0p * NPIX1           # conv1 (im2col matmul)
                 + 36 * 9 * 154 * NPIX1          # conv2
                 + 36 * NPIX1 * 4 * SEL_LANES    # space-to-depth selection matmul
                 + 72 * 4 * QPAD * NPIX3 * 9     # conv3 (quadrant-merged)
                 + n_out * 72 * NPIX3)           # fc1
    kernel = functools.partial(_fused_forward_kernel, c0=c0, c0p=c0p)
    out = pl.pallas_call(
        kernel,
        out_shape=jax.ShapeDtypeStruct((1, n_out), jnp.float32),
        scratch_shapes=[pltpu.VMEM((9 * c0p, NPIX1), jnp.bfloat16),   # conv1 im2col
                        pltpu.VMEM((154, FLAT1), jnp.bfloat16),       # conv1 out, padded
                        pltpu.VMEM((4 * QPAD, SEL_LANES), jnp.bfloat16)],  # conv3 input
        cost_estimate=pl.CostEstimate(flops=flops, transcendentals=0,
                                      bytes_accessed=700_000),
    )(x0, prepped["mask"], prepped["w1"], prepped["b1"],
      prepped["w2"], prepped["b2"], prepped["sel"], prepped["w3"],
      prepped["b3"], prepped["wf"], prepped["bf"])
    return out.reshape(size, num_classes)


# ----------------------------------------------------------------------------------
# Deterministic parameter init (PyTorch-style uniform bounds)
# ----------------------------------------------------------------------------------
def init_params(key, num_classes, size):
    ks = jax.random.split(key, 8)

    def u(k, shape, fan_in):
        bound = 1.0 / np.sqrt(float(fan_in))
        return jax.random.uniform(k, shape, jnp.float32, -bound, bound)

    p = {}
    p["w1"] = u(ks[0], (154, size * 4, 3, 3), size * 4 * 9)
    p["b1"] = u(ks[1], (154,), size * 4 * 9)
    p["w2"] = u(ks[2], (36, 154, 3, 3), 154 * 9)
    p["b2"] = u(ks[3], (36,), 154 * 9)
    p["w3"] = u(ks[4], (72, 144, 3, 3), 144 * 9)
    p["b3"] = u(ks[5], (72,), 144 * 9)
    p["wf"] = u(ks[6], (size * num_classes, 72 * 25), 72 * 25)
    p["bf"] = u(ks[7], (size * num_classes,), 72 * 25)
    return p


# ----------------------------------------------------------------------------------
# Pure-XLA reference (mirrors CustomModel.forward exactly, f32)
# ----------------------------------------------------------------------------------
def reference_forward(params, x, num_classes, size):
    dn = ("NCHW", "OIHW", "NCHW")
    quads = [x[:, dy::2, dx::2] for (dy, dx) in QUAD_OFFSETS]
    xc = jnp.concatenate(quads, axis=0)[None]                              # [1, 4s, 14, 14]
    y = lax.conv_general_dilated(xc, params["w1"], (1, 1), ((1, 1), (1, 1)),
                                 dimension_numbers=dn) + params["b1"][None, :, None, None]
    y = lax.conv_general_dilated(y, params["w2"], (1, 1), ((1, 1), (1, 1)),
                                 dimension_numbers=dn) + params["b2"][None, :, None, None]
    qs = [y[:, :, dy::2, dx::2] for (dy, dx) in QUAD_OFFSETS]
    z = jnp.concatenate(qs, axis=1)                                        # [1, 144, 7, 7]
    y = lax.conv_general_dilated(z, params["w3"], (1, 1), ((0, 0), (0, 0)),
                                 dimension_numbers=dn) + params["b3"][None, :, None, None]
    flat = y.reshape(1, -1)                                                # NCHW flatten
    out = flat @ params["wf"].T + params["bf"][None]
    return out.reshape(size, num_classes)


if __name__ == "__main__":
    num_classes = 3
    size = 4

    key = jax.random.PRNGKey(0)
    kx_, kp = jax.random.split(key)
    x = jax.random.normal(kx_, (size, 28, 28), dtype=jnp.float32)
    params = init_params(kp, num_classes, size)

    # one-time weight re-layout (hoisted out of the per-call path)
    prepped = prepare_params(params, num_classes, size)

    fwd = jax.jit(functools.partial(forward_pallas, num_classes=num_classes, size=size))
    out = jax.block_until_ready(fwd(prepped, x))

    ref = jax.block_until_ready(reference_forward(params, x, num_classes, size))

    assert out.shape == (size, num_classes)
    assert jnp.allclose(out, ref, atol=1e-2, rtol=1e-2), (out, ref)

    print("KERNEL_OK")
</pallas_src>

<mosaic_0001>
module attributes {stable_mosaic.version = 11 : i64} {
  func.func @_fused_forward_kernel(%arg0: memref<16x288xbf16, #tpu.memory_space<vmem>>, %arg1: memref<1x224xf32, #tpu.memory_space<vmem>>, %arg2: memref<154x144xbf16, #tpu.memory_space<vmem>>, %arg3: memref<154x1xf32, #tpu.memory_space<vmem>>, %arg4: memref<9x36x154xbf16, #tpu.memory_space<vmem>>, %arg5: memref<36x1xf32, #tpu.memory_space<vmem>>, %arg6: memref<224x224xbf16, #tpu.memory_space<vmem>>, %arg7: memref<9x72x192xbf16, #tpu.memory_space<vmem>>, %arg8: memref<72x1xf32, #tpu.memory_space<vmem>>, %arg9: memref<12x72x35xf32, #tpu.memory_space<vmem>>, %arg10: memref<1x12xf32, #tpu.memory_space<vmem>>, %arg11: memref<1x12xf32, #tpu.memory_space<vmem>>, %arg12: memref<144x224xbf16, #tpu.memory_space<vmem>>, %arg13: memref<154x288xbf16, #tpu.memory_space<vmem>>, %arg14: memref<192x56xbf16, #tpu.memory_space<vmem>>) attributes {dimension_semantics = [], scalar_prefetch = 0 : i64, scratch_operands = 3 : i64, tpu.core_type = #tpu.core_type<tc>} {
    %cst = arith.constant 0.000000e+00 : bf16
    %0 = vector.broadcast %cst : bf16 to vector<144x224xbf16>
    %c0 = arith.constant 0 : index
    %c0_0 = arith.constant 0 : index
    %1 = vector.load %arg12[%c0, %c0_0] : memref<144x224xbf16, #tpu.memory_space<vmem>>, vector<144x224xbf16>
    tpu.vector_store %arg12[%c0, %c0_0], %0 {strides = array<i32>} : memref<144x224xbf16, #tpu.memory_space<vmem>>, vector<144x224xbf16>,
    %c0_1 = arith.constant 0 : index
    %c0_2 = arith.constant 0 : index
    %2 = vector.load %arg0[%c0_1, %c0_2] : memref<16x288xbf16, #tpu.memory_space<vmem>>, vector<16x224xbf16>
    %c0_3 = arith.constant 0 : index
    %c0_4 = arith.constant 0 : index
    %3 = vector.load %arg12[%c0_3, %c0_4] : memref<144x224xbf16, #tpu.memory_space<vmem>>, vector<16x224xbf16>
    tpu.vector_store %arg12[%c0_3, %c0_4], %2 {strides = array<i32>} : memref<144x224xbf16, #tpu.memory_space<vmem>>, vector<16x224xbf16>,
    %c0_5 = arith.constant 0 : index
    %c1 = arith.constant 1 : index
    %4 = vector.load %arg0[%c0_5, %c1] : memref<16x288xbf16, #tpu.memory_space<vmem>>, vector<16x224xbf16>
    %c16 = arith.constant 16 : index
    %c0_6 = arith.constant 0 : index
    %5 = vector.load %arg12[%c16, %c0_6] : memref<144x224xbf16, #tpu.memory_space<vmem>>, vector<16x224xbf16>
    tpu.vector_store %arg12[%c16, %c0_6], %4 {strides = array<i32>} : memref<144x224xbf16, #tpu.memory_space<vmem>>, vector<16x224xbf16>,
    %c0_7 = arith.constant 0 : index
    %c2 = arith.constant 2 : index
    %6 = vector.load %arg0[%c0_7, %c2] : memref<16x288xbf16, #tpu.memory_space<vmem>>, vector<16x224xbf16>
    %c32 = arith.constant 32 : index
    %c0_8 = arith.constant 0 : index
    %7 = vector.load %arg12[%c32, %c0_8] : memref<144x224xbf16, #tpu.memory_space<vmem>>, vector<16x224xbf16>
    tpu.vector_store %arg12[%c32, %c0_8], %6 {strides = array<i32>} : memref<144x224xbf16, #tpu.memory_space<vmem>>, vector<16x224xbf16>,
    %c0_9 = arith.constant 0 : index
    %c16_10 = arith.constant 16 : index
    %8 = vector.load %arg0[%c0_9, %c16_10] : memref<16x288xbf16, #tpu.memory_space<vmem>>, vector<16x224xbf16>
    %c48 = arith.constant 48 : index
    %c0_11 = arith.constant 0 : index
    %9 = vector.load %arg12[%c48, %c0_11] : memref<144x224xbf16, #tpu.memory_space<vmem>>, vector<16x224xbf16>
    tpu.vector_store %arg12[%c48, %c0_11], %8 {strides = array<i32>} : memref<144x224xbf16, #tpu.memory_space<vmem>>, vector<16x224xbf16>,
    %c0_12 = arith.constant 0 : index
    %c17 = arith.constant 17 : index
    %10 = vector.load %arg0[%c0_12, %c17] : memref<16x288xbf16, #tpu.memory_space<vmem>>, vector<16x224xbf16>
    %c64 = arith.constant 64 : index
    %c0_13 = arith.constant 0 : index
    %11 = vector.load %arg12[%c64, %c0_13] : memref<144x224xbf16, #tpu.memory_space<vmem>>, vector<16x224xbf16>
    tpu.vector_store %arg12[%c64, %c0_13], %10 {strides = array<i32>} : memref<144x224xbf16, #tpu.memory_space<vmem>>, vector<16x224xbf16>,
    %c0_14 = arith.constant 0 : index
    %c18 = arith.constant 18 : index
    %12 = vector.load %arg0[%c0_14, %c18] : memref<16x288xbf16, #tpu.memory_space<vmem>>, vector<16x224xbf16>
    %c80 = arith.constant 80 : index
    %c0_15 = arith.constant 0 : index
    %13 = vector.load %arg12[%c80, %c0_15] : memref<144x224xbf16, #tpu.memory_space<vmem>>, vector<16x224xbf16>
    tpu.vector_store %arg12[%c80, %c0_15], %12 {strides = array<i32>} : memref<144x224xbf16, #tpu.memory_space<vmem>>, vector<16x224xbf16>,
    %c0_16 = arith.constant 0 : index
    %c32_17 = arith.constant 32 : index
    %14 = vector.load %arg0[%c0_16, %c32_17] : memref<16x288xbf16, #tpu.memory_space<vmem>>, vector<16x224xbf16>
    %c96 = arith.constant 96 : index
    %c0_18 = arith.constant 0 : index
    %15 = vector.load %arg12[%c96, %c0_18] : memref<144x224xbf16, #tpu.memory_space<vmem>>, vector<16x224xbf16>
    tpu.vector_store %arg12[%c96, %c0_18], %14 {strides = array<i32>} : memref<144x224xbf16, #tpu.memory_space<vmem>>, vector<16x224xbf16>,
    %c0_19 = arith.constant 0 : index
    %c33 = arith.constant 33 : index
    %16 = vector.load %arg0[%c0_19, %c33] : memref<16x288xbf16, #tpu.memory_space<vmem>>, vector<16x224xbf16>
    %c112 = arith.constant 112 : index
    %c0_20 = arith.constant 0 : index
    %17 = vector.load %arg12[%c112, %c0_20] : memref<144x224xbf16, #tpu.memory_space<vmem>>, vector<16x224xbf16>
    tpu.vector_store %arg12[%c112, %c0_20], %16 {strides = array<i32>} : memref<144x224xbf16, #tpu.memory_space<vmem>>, vector<16x224xbf16>,
    %c0_21 = arith.constant 0 : index
    %c34 = arith.constant 34 : index
    %18 = vector.load %arg0[%c0_21, %c34] : memref<16x288xbf16, #tpu.memory_space<vmem>>, vector<16x224xbf16>
    %c128 = arith.constant 128 : index
    %c0_22 = arith.constant 0 : index
    %19 = vector.load %arg12[%c128, %c0_22] : memref<144x224xbf16, #tpu.memory_space<vmem>>, vector<16x224xbf16>
    tpu.vector_store %arg12[%c128, %c0_22], %18 {strides = array<i32>} : memref<144x224xbf16, #tpu.memory_space<vmem>>, vector<16x224xbf16>,
    %c0_23 = arith.constant 0 : index
    %c0_24 = arith.constant 0 : index
    %20 = vector.load %arg2[%c0_23, %c0_24] : memref<154x144xbf16, #tpu.memory_space<vmem>>, vector<154x144xbf16>
    %c0_25 = arith.constant 0 : index
    %c0_26 = arith.constant 0 : index
    %21 = vector.load %arg12[%c0_25, %c0_26] : memref<144x224xbf16, #tpu.memory_space<vmem>>, vector<144x224xbf16>
    %cst_27 = arith.constant dense<0.000000e+00> : vector<154x224xf32>
    %22 = tpu.matmul %20, %21, %cst_27 {dimension_numbers = #tpu.dot_dimension_numbers<[1], [0], [0], [1], [0, 0, 1, 1], [], []>} : vector<154x144xbf16>, vector<144x224xbf16>, vector<154x224xf32> -> vector<154x224xf32>
    %c0_28 = arith.constant 0 : index
    %c0_29 = arith.constant 0 : index
    %23 = vector.load %arg3[%c0_28, %c0_29] : memref<154x1xf32, #tpu.memory_space<vmem>>, vector<154x1xf32>
    %24 = vector.broadcast %23 : vector<154x1xf32> to vector<154x224xf32>
    %25 = arith.addf %22, %24 : vector<154x224xf32>
    %c0_30 = arith.constant 0 : index
    %c0_31 = arith.constant 0 : index
    %26 = vector.load %arg1[%c0_30, %c0_31] : memref<1x224xf32, #tpu.memory_space<vmem>>, vector<1x224xf32>
    %27 = vector.broadcast %26 : vector<1x224xf32> to vector<154x224xf32>
    %28 = arith.mulf %25, %27 : vector<154x224xf32>
    %cst_32 = arith.constant 0.000000e+00 : bf16
    %29 = vector.broadcast %cst_32 : bf16 to vector<154x288xbf16>
    %c0_33 = arith.constant 0 : index
    %c0_34 = arith.constant 0 : index
    %30 = vector.load %arg13[%c0_33, %c0_34] : memref<154x288xbf16, #tpu.memory_space<vmem>>, vector<154x288xbf16>
    tpu.vector_store %arg13[%c0_33, %c0_34], %29 {strides = array<i32>} : memref<154x288xbf16, #tpu.memory_space<vmem>>, vector<154x288xbf16>,
    %31 = arith.truncf %28 : vector<154x224xf32> to vector<154x224xbf16>
    %c0_35 = arith.constant 0 : index
    %c17_36 = arith.constant 17 : index
    %32 = vector.load %arg13[%c0_35, %c17_36] : memref<154x288xbf16, #tpu.memory_space<vmem>>, vector<154x224xbf16>
    tpu.vector_store %arg13[%c0_35, %c17_36], %31 {strides = array<i32>} : memref<154x288xbf16, #tpu.memory_space<vmem>>, vector<154x224xbf16>,
    %cst_37 = arith.constant 0.000000e+00 : f32
    %33 = vector.broadcast %cst_37 : f32 to vector<36x224xf32>
    %c0_38 = arith.constant 0 : index
    %c0_39 = arith.constant 0 : index
    %c0_40 = arith.constant 0 : index
    %34 = vector.load %arg4[%c0_38, %c0_39, %c0_40] : memref<9x36x154xbf16, #tpu.memory_space<vmem>>, vector<1x36x154xbf16>
    %35 = vector.shape_cast %34 : vector<1x36x154xbf16> to vector<36x154xbf16>
    %c0_41 = arith.constant 0 : index
    %c0_42 = arith.constant 0 : index
    %36 = vector.load %arg13[%c0_41, %c0_42] : memref<154x288xbf16, #tpu.memory_space<vmem>>, vector<154x224xbf16>
    %cst_43 = arith.constant dense<0.000000e+00> : vector<36x224xf32>
    %37 = tpu.matmul %35, %36, %cst_43 {dimension_numbers = #tpu.dot_dimension_numbers<[1], [0], [0], [1], [0, 0, 1, 1], [], []>} : vector<36x154xbf16>, vector<154x224xbf16>, vector<36x224xf32> -> vector<36x224xf32>
    %38 = arith.addf %33, %37 : vector<36x224xf32>
    %c1_44 = arith.constant 1 : index
    %c0_45 = arith.constant 0 : index
    %c0_46 = arith.constant 0 : index
    %39 = vector.load %arg4[%c1_44, %c0_45, %c0_46] : memref<9x36x154xbf16, #tpu.memory_space<vmem>>, vector<1x36x154xbf16>
    %40 = vector.shape_cast %39 : vector<1x36x154xbf16> to vector<36x154xbf16>
    %c0_47 = arith.constant 0 : index
    %c1_48 = arith.constant 1 : index
    %41 = vector.load %arg13[%c0_47, %c1_48] : memref<154x288xbf16, #tpu.memory_space<vmem>>, vector<154x224xbf16>
    %cst_49 = arith.constant dense<0.000000e+00> : vector<36x224xf32>
    %42 = tpu.matmul %40, %41, %cst_49 {dimension_numbers = #tpu.dot_dimension_numbers<[1], [0], [0], [1], [0, 0, 1, 1], [], []>} : vector<36x154xbf16>, vector<154x224xbf16>, vector<36x224xf32> -> vector<36x224xf32>
    %43 = arith.addf %38, %42 : vector<36x224xf32>
    %c2_50 = arith.constant 2 : index
    %c0_51 = arith.constant 0 : index
    %c0_52 = arith.constant 0 : index
    %44 = vector.load %arg4[%c2_50, %c0_51, %c0_52] : memref<9x36x154xbf16, #tpu.memory_space<vmem>>, vector<1x36x154xbf16>
    %45 = vector.shape_cast %44 : vector<1x36x154xbf16> to vector<36x154xbf16>
    %c0_53 = arith.constant 0 : index
    %c2_54 = arith.constant 2 : index
    %46 = vector.load %arg13[%c0_53, %c2_54] : memref<154x288xbf16, #tpu.memory_space<vmem>>, vector<154x224xbf16>
    %cst_55 = arith.constant dense<0.000000e+00> : vector<36x224xf32>
    %47 = tpu.matmul %45, %46, %cst_55 {dimension_numbers = #tpu.dot_dimension_numbers<[1], [0], [0], [1], [0, 0, 1, 1], [], []>} : vector<36x154xbf16>, vector<154x224xbf16>, vector<36x224xf32> -> vector<36x224xf32>
    %48 = arith.addf %43, %47 : vector<36x224xf32>
    %c3 = arith.constant 3 : index
    %c0_56 = arith.constant 0 : index
    %c0_57 = arith.constant 0 : index
    %49 = vector.load %arg4[%c3, %c0_56, %c0_57] : memref<9x36x154xbf16, #tpu.memory_space<vmem>>, vector<1x36x154xbf16>
    %50 = vector.shape_cast %49 : vector<1x36x154xbf16> to vector<36x154xbf16>
    %c0_58 = arith.constant 0 : index
    %c16_59 = arith.constant 16 : index
    %51 = vector.load %arg13[%c0_58, %c16_59] : memref<154x288xbf16, #tpu.memory_space<vmem>>, vector<154x224xbf16>
    %cst_60 = arith.constant dense<0.000000e+00> : vector<36x224xf32>
    %52 = tpu.matmul %50, %51, %cst_60 {dimension_numbers = #tpu.dot_dimension_numbers<[1], [0], [0], [1], [0, 0, 1, 1], [], []>} : vector<36x154xbf16>, vector<154x224xbf16>, vector<36x224xf32> -> vector<36x224xf32>
    %53 = arith.addf %48, %52 : vector<36x224xf32>
    %c4 = arith.constant 4 : index
    %c0_61 = arith.constant 0 : index
    %c0_62 = arith.constant 0 : index
    %54 = vector.load %arg4[%c4, %c0_61, %c0_62] : memref<9x36x154xbf16, #tpu.memory_space<vmem>>, vector<1x36x154xbf16>
    %55 = vector.shape_cast %54 : vector<1x36x154xbf16> to vector<36x154xbf16>
    %c0_63 = arith.constant 0 : index
    %c17_64 = arith.constant 17 : index
    %56 = vector.load %arg13[%c0_63, %c17_64] : memref<154x288xbf16, #tpu.memory_space<vmem>>, vector<154x224xbf16>
    %cst_65 = arith.constant dense<0.000000e+00> : vector<36x224xf32>
    %57 = tpu.matmul %55, %56, %cst_65 {dimension_numbers = #tpu.dot_dimension_numbers<[1], [0], [0], [1], [0, 0, 1, 1], [], []>} : vector<36x154xbf16>, vector<154x224xbf16>, vector<36x224xf32> -> vector<36x224xf32>
    %58 = arith.addf %53, %57 : vector<36x224xf32>
    %c5 = arith.constant 5 : index
    %c0_66 = arith.constant 0 : index
    %c0_67 = arith.constant 0 : index
    %59 = vector.load %arg4[%c5, %c0_66, %c0_67] : memref<9x36x154xbf16, #tpu.memory_space<vmem>>, vector<1x36x154xbf16>
    %60 = vector.shape_cast %59 : vector<1x36x154xbf16> to vector<36x154xbf16>
    %c0_68 = arith.constant 0 : index
    %c18_69 = arith.constant 18 : index
    %61 = vector.load %arg13[%c0_68, %c18_69] : memref<154x288xbf16, #tpu.memory_space<vmem>>, vector<154x224xbf16>
    %cst_70 = arith.constant dense<0.000000e+00> : vector<36x224xf32>
    %62 = tpu.matmul %60, %61, %cst_70 {dimension_numbers = #tpu.dot_dimension_numbers<[1], [0], [0], [1], [0, 0, 1, 1], [], []>} : vector<36x154xbf16>, vector<154x224xbf16>, vector<36x224xf32> -> vector<36x224xf32>
    %63 = arith.addf %58, %62 : vector<36x224xf32>
    %c6 = arith.constant 6 : index
    %c0_71 = arith.constant 0 : index
    %c0_72 = arith.constant 0 : index
    %64 = vector.load %arg4[%c6, %c0_71, %c0_72] : memref<9x36x154xbf16, #tpu.memory_space<vmem>>, vector<1x36x154xbf16>
    %65 = vector.shape_cast %64 : vector<1x36x154xbf16> to vector<36x154xbf16>
    %c0_73 = arith.constant 0 : index
    %c32_74 = arith.constant 32 : index
    %66 = vector.load %arg13[%c0_73, %c32_74] : memref<154x288xbf16, #tpu.memory_space<vmem>>, vector<154x224xbf16>
    %cst_75 = arith.constant dense<0.000000e+00> : vector<36x224xf32>
    %67 = tpu.matmul %65, %66, %cst_75 {dimension_numbers = #tpu.dot_dimension_numbers<[1], [0], [0], [1], [0, 0, 1, 1], [], []>} : vector<36x154xbf16>, vector<154x224xbf16>, vector<36x224xf32> -> vector<36x224xf32>
    %68 = arith.addf %63, %67 : vector<36x224xf32>
    %c7 = arith.constant 7 : index
    %c0_76 = arith.constant 0 : index
    %c0_77 = arith.constant 0 : index
    %69 = vector.load %arg4[%c7, %c0_76, %c0_77] : memref<9x36x154xbf16, #tpu.memory_space<vmem>>, vector<1x36x154xbf16>
    %70 = vector.shape_cast %69 : vector<1x36x154xbf16> to vector<36x154xbf16>
    %c0_78 = arith.constant 0 : index
    %c33_79 = arith.constant 33 : index
    %71 = vector.load %arg13[%c0_78, %c33_79] : memref<154x288xbf16, #tpu.memory_space<vmem>>, vector<154x224xbf16>
    %cst_80 = arith.constant dense<0.000000e+00> : vector<36x224xf32>
    %72 = tpu.matmul %70, %71, %cst_80 {dimension_numbers = #tpu.dot_dimension_numbers<[1], [0], [0], [1], [0, 0, 1, 1], [], []>} : vector<36x154xbf16>, vector<154x224xbf16>, vector<36x224xf32> -> vector<36x224xf32>
    %73 = arith.addf %68, %72 : vector<36x224xf32>
    %c8 = arith.constant 8 : index
    %c0_81 = arith.constant 0 : index
    %c0_82 = arith.constant 0 : index
    %74 = vector.load %arg4[%c8, %c0_81, %c0_82] : memref<9x36x154xbf16, #tpu.memory_space<vmem>>, vector<1x36x154xbf16>
    %75 = vector.shape_cast %74 : vector<1x36x154xbf16> to vector<36x154xbf16>
    %c0_83 = arith.constant 0 : index
    %c34_84 = arith.constant 34 : index
    %76 = vector.load %arg13[%c0_83, %c34_84] : memref<154x288xbf16, #tpu.memory_space<vmem>>, vector<154x224xbf16>
    %cst_85 = arith.constant dense<0.000000e+00> : vector<36x224xf32>
    %77 = tpu.matmul %75, %76, %cst_85 {dimension_numbers = #tpu.dot_dimension_numbers<[1], [0], [0], [1], [0, 0, 1, 1], [], []>} : vector<36x154xbf16>, vector<154x224xbf16>, vector<36x224xf32> -> vector<36x224xf32>
    %78 = arith.addf %73, %77 : vector<36x224xf32>
    %c0_86 = arith.constant 0 : index
    %c0_87 = arith.constant 0 : index
    %79 = vector.load %arg5[%c0_86, %c0_87] : memref<36x1xf32, #tpu.memory_space<vmem>>, vector<36x1xf32>
    %80 = vector.broadcast %79 : vector<36x1xf32> to vector<36x224xf32>
    %81 = arith.addf %78, %80 : vector<36x224xf32>
    %82 = arith.truncf %81 : vector<36x224xf32> to vector<36x224xbf16>
    %c0_88 = arith.constant 0 : index
    %c0_89 = arith.constant 0 : index
    %83 = vector.load %arg6[%c0_88, %c0_89] : memref<224x224xbf16, #tpu.memory_space<vmem>>, vector<224x224xbf16>
    %cst_90 = arith.constant dense<0.000000e+00> : vector<36x224xf32>
    %84 = tpu.matmul %82, %83, %cst_90 {dimension_numbers = #tpu.dot_dimension_numbers<[1], [0], [0], [1], [0, 0, 1, 1], [], []>} : vector<36x224xbf16>, vector<224x224xbf16>, vector<36x224xf32> -> vector<36x224xf32>
    %85 = arith.truncf %84 : vector<36x224xf32> to vector<36x224xbf16>
    %cst_91 = arith.constant 0.000000e+00 : bf16
    %86 = vector.broadcast %cst_91 : bf16 to vector<192x56xbf16>
    %c0_92 = arith.constant 0 : index
    %c0_93 = arith.constant 0 : index
    %87 = vector.load %arg14[%c0_92, %c0_93] : memref<192x56xbf16, #tpu.memory_space<vmem>>, vector<192x56xbf16>
    tpu.vector_store %arg14[%c0_92, %c0_93], %86 {strides = array<i32>} : memref<192x56xbf16, #tpu.memory_space<vmem>>, vector<192x56xbf16>,
    %88 = vector.extract_strided_slice %85 {offsets = [0, 0], sizes = [36, 56], strides = [1, 1]} : vector<36x224xbf16> to vector<36x56xbf16>
    %c0_94 = arith.constant 0 : index
    %c0_95 = arith.constant 0 : index
    %89 = vector.load %arg14[%c0_94, %c0_95] : memref<192x56xbf16, #tpu.memory_space<vmem>>, vector<36x56xbf16>
    tpu.vector_store %arg14[%c0_94, %c0_95], %88 {strides = array<i32>} : memref<192x56xbf16, #tpu.memory_space<vmem>>, vector<36x56xbf16>,
    %90 = vector.extract_strided_slice %85 {offsets = [0, 56], sizes = [36, 56], strides = [1, 1]} : vector<36x224xbf16> to vector<36x56xbf16>
    %c48_96 = arith.constant 48 : index
    %c0_97 = arith.constant 0 : index
    %91 = vector.load %arg14[%c48_96, %c0_97] : memref<192x56xbf16, #tpu.memory_space<vmem>>, vector<36x56xbf16>
    tpu.vector_store %arg14[%c48_96, %c0_97], %90 {strides = array<i32>} : memref<192x56xbf16, #tpu.memory_space<vmem>>, vector<36x56xbf16>,
    %92 = vector.extract_strided_slice %85 {offsets = [0, 112], sizes = [36, 56], strides = [1, 1]} : vector<36x224xbf16> to vector<36x56xbf16>
    %c96_98 = arith.constant 96 : index
    %c0_99 = arith.constant 0 : index
    %93 = vector.load %arg14[%c96_98, %c0_99] : memref<192x56xbf16, #tpu.memory_space<vmem>>, vector<36x56xbf16>
    tpu.vector_store %arg14[%c96_98, %c0_99], %92 {strides = array<i32>} : memref<192x56xbf16, #tpu.memory_space<vmem>>, vector<36x56xbf16>,
    %94 = vector.extract_strided_slice %85 {offsets = [0, 168], sizes = [36, 56], strides = [1, 1]} : vector<36x224xbf16> to vector<36x56xbf16>
    %c144 = arith.constant 144 : index
    %c0_100 = arith.constant 0 : index
    %95 = vector.load %arg14[%c144, %c0_100] : memref<192x56xbf16, #tpu.memory_space<vmem>>, vector<36x56xbf16>
    tpu.vector_store %arg14[%c144, %c0_100], %94 {strides = array<i32>} : memref<192x56xbf16, #tpu.memory_space<vmem>>, vector<36x56xbf16>,
    %cst_101 = arith.constant 0.000000e+00 : f32
    %96 = vector.broadcast %cst_101 : f32 to vector<72x35xf32>
    %c0_102 = arith.constant 0 : index
    %c0_103 = arith.constant 0 : index
    %c0_104 = arith.constant 0 : index
    %97 = vector.load %arg7[%c0_102, %c0_103, %c0_104] : memref<9x72x192xbf16, #tpu.memory_space<vmem>>, vector<1x72x192xbf16>
    %98 = vector.shape_cast %97 : vector<1x72x192xbf16> to vector<72x192xbf16>
    %c0_105 = arith.constant 0 : index
    %c0_106 = arith.constant 0 : index
    %99 = vector.load %arg14[%c0_105, %c0_106] : memref<192x56xbf16, #tpu.memory_space<vmem>>, vector<192x35xbf16>
    %cst_107 = arith.constant dense<0.000000e+00> : vector<72x35xf32>
    %100 = tpu.matmul %98, %99, %cst_107 {dimension_numbers = #tpu.dot_dimension_numbers<[1], [0], [0], [1], [0, 0, 1, 1], [], []>} : vector<72x192xbf16>, vector<192x35xbf16>, vector<72x35xf32> -> vector<72x35xf32>
    %101 = arith.addf %96, %100 : vector<72x35xf32>
    %c1_108 = arith.constant 1 : index
    %c0_109 = arith.constant 0 : index
    %c0_110 = arith.constant 0 : index
    %102 = vector.load %arg7[%c1_108, %c0_109, %c0_110] : memref<9x72x192xbf16, #tpu.memory_space<vmem>>, vector<1x72x192xbf16>
    %103 = vector.shape_cast %102 : vector<1x72x192xbf16> to vector<72x192xbf16>
    %c0_111 = arith.constant 0 : index
    %c1_112 = arith.constant 1 : index
    %104 = vector.load %arg14[%c0_111, %c1_112] : memref<192x56xbf16, #tpu.memory_space<vmem>>, vector<192x35xbf16>
    %cst_113 = arith.constant dense<0.000000e+00> : vector<72x35xf32>
    %105 = tpu.matmul %103, %104, %cst_113 {dimension_numbers = #tpu.dot_dimension_numbers<[1], [0], [0], [1], [0, 0, 1, 1], [], []>} : vector<72x192xbf16>, vector<192x35xbf16>, vector<72x35xf32> -> vector<72x35xf32>
    %106 = arith.addf %101, %105 : vector<72x35xf32>
    %c2_114 = arith.constant 2 : index
    %c0_115 = arith.constant 0 : index
    %c0_116 = arith.constant 0 : index
    %107 = vector.load %arg7[%c2_114, %c0_115, %c0_116] : memref<9x72x192xbf16, #tpu.memory_space<vmem>>, vector<1x72x192xbf16>
    %108 = vector.shape_cast %107 : vector<1x72x192xbf16> to vector<72x192xbf16>
    %c0_117 = arith.constant 0 : index
    %c2_118 = arith.constant 2 : index
    %109 = vector.load %arg14[%c0_117, %c2_118] : memref<192x56xbf16, #tpu.memory_space<vmem>>, vector<192x35xbf16>
    %cst_119 = arith.constant dense<0.000000e+00> : vector<72x35xf32>
    %110 = tpu.matmul %108, %109, %cst_119 {dimension_numbers = #tpu.dot_dimension_numbers<[1], [0], [0], [1], [0, 0, 1, 1], [], []>} : vector<72x192xbf16>, vector<192x35xbf16>, vector<72x35xf32> -> vector<72x35xf32>
    %111 = arith.addf %106, %110 : vector<72x35xf32>
    %c3_120 = arith.constant 3 : index
    %c0_121 = arith.constant 0 : index
    %c0_122 = arith.constant 0 : index
    %112 = vector.load %arg7[%c3_120, %c0_121, %c0_122] : memref<9x72x192xbf16, #tpu.memory_space<vmem>>, vector<1x72x192xbf16>
    %113 = vector.shape_cast %112 : vector<1x72x192xbf16> to vector<72x192xbf16>
    %c0_123 = arith.constant 0 : index
    %c7_124 = arith.constant 7 : index
    %114 = vector.load %arg14[%c0_123, %c7_124] : memref<192x56xbf16, #tpu.memory_space<vmem>>, vector<192x35xbf16>
    %cst_125 = arith.constant dense<0.000000e+00> : vector<72x35xf32>
    %115 = tpu.matmul %113, %114, %cst_125 {dimension_numbers = #tpu.dot_dimension_numbers<[1], [0], [0], [1], [0, 0, 1, 1], [], []>} : vector<72x192xbf16>, vector<192x35xbf16>, vector<72x35xf32> -> vector<72x35xf32>
    %116 = arith.addf %111, %115 : vector<72x35xf32>
    %c4_126 = arith.constant 4 : index
    %c0_127 = arith.constant 0 : index
    %c0_128 = arith.constant 0 : index
    %117 = vector.load %arg7[%c4_126, %c0_127, %c0_128] : memref<9x72x192xbf16, #tpu.memory_space<vmem>>, vector<1x72x192xbf16>
    %118 = vector.shape_cast %117 : vector<1x72x192xbf16> to vector<72x192xbf16>
    %c0_129 = arith.constant 0 : index
    %c8_130 = arith.constant 8 : index
    %119 = vector.load %arg14[%c0_129, %c8_130] : memref<192x56xbf16, #tpu.memory_space<vmem>>, vector<192x35xbf16>
    %cst_131 = arith.constant dense<0.000000e+00> : vector<72x35xf32>
    %120 = tpu.matmul %118, %119, %cst_131 {dimension_numbers = #tpu.dot_dimension_numbers<[1], [0], [0], [1], [0, 0, 1, 1], [], []>} : vector<72x192xbf16>, vector<192x35xbf16>, vector<72x35xf32> -> vector<72x35xf32>
    %121 = arith.addf %116, %120 : vector<72x35xf32>
    %c5_132 = arith.constant 5 : index
    %c0_133 = arith.constant 0 : index
    %c0_134 = arith.constant 0 : index
    %122 = vector.load %arg7[%c5_132, %c0_133, %c0_134] : memref<9x72x192xbf16, #tpu.memory_space<vmem>>, vector<1x72x192xbf16>
    %123 = vector.shape_cast %122 : vector<1x72x192xbf16> to vector<72x192xbf16>
    %c0_135 = arith.constant 0 : index
    %c9 = arith.constant 9 : index
    %124 = vector.load %arg14[%c0_135, %c9] : memref<192x56xbf16, #tpu.memory_space<vmem>>, vector<192x35xbf16>
    %cst_136 = arith.constant dense<0.000000e+00> : vector<72x35xf32>
    %125 = tpu.matmul %123, %124, %cst_136 {dimension_numbers = #tpu.dot_dimension_numbers<[1], [0], [0], [1], [0, 0, 1, 1], [], []>} : vector<72x192xbf16>, vector<192x35xbf16>, vector<72x35xf32> -> vector<72x35xf32>
    %126 = arith.addf %121, %125 : vector<72x35xf32>
    %c6_137 = arith.constant 6 : index
    %c0_138 = arith.constant 0 : index
    %c0_139 = arith.constant 0 : index
    %127 = vector.load %arg7[%c6_137, %c0_138, %c0_139] : memref<9x72x192xbf16, #tpu.memory_space<vmem>>, vector<1x72x192xbf16>
    %128 = vector.shape_cast %127 : vector<1x72x192xbf16> to vector<72x192xbf16>
    %c0_140 = arith.constant 0 : index
    %c14 = arith.constant 14 : index
    %129 = vector.load %arg14[%c0_140, %c14] : memref<192x56xbf16, #tpu.memory_space<vmem>>, vector<192x35xbf16>
    %cst_141 = arith.constant dense<0.000000e+00> : vector<72x35xf32>
    %130 = tpu.matmul %128, %129, %cst_141 {dimension_numbers = #tpu.dot_dimension_numbers<[1], [0], [0], [1], [0, 0, 1, 1], [], []>} : vector<72x192xbf16>, vector<192x35xbf16>, vector<72x35xf32> -> vector<72x35xf32>
    %131 = arith.addf %126, %130 : vector<72x35xf32>
    %c7_142 = arith.constant 7 : index
    %c0_143 = arith.constant 0 : index
    %c0_144 = arith.constant 0 : index
    %132 = vector.load %arg7[%c7_142, %c0_143, %c0_144] : memref<9x72x192xbf16, #tpu.memory_space<vmem>>, vector<1x72x192xbf16>
    %133 = vector.shape_cast %132 : vector<1x72x192xbf16> to vector<72x192xbf16>
    %c0_145 = arith.constant 0 : index
    %c15 = arith.constant 15 : index
    %134 = vector.load %arg14[%c0_145, %c15] : memref<192x56xbf16, #tpu.memory_space<vmem>>, vector<192x35xbf16>
    %cst_146 = arith.constant dense<0.000000e+00> : vector<72x35xf32>
    %135 = tpu.matmul %133, %134, %cst_146 {dimension_numbers = #tpu.dot_dimension_numbers<[1], [0], [0], [1], [0, 0, 1, 1], [], []>} : vector<72x192xbf16>, vector<192x35xbf16>, vector<72x35xf32> -> vector<72x35xf32>
    %136 = arith.addf %131, %135 : vector<72x35xf32>
    %c8_147 = arith.constant 8 : index
    %c0_148 = arith.constant 0 : index
    %c0_149 = arith.constant 0 : index
    %137 = vector.load %arg7[%c8_147, %c0_148, %c0_149] : memref<9x72x192xbf16, #tpu.memory_space<vmem>>, vector<1x72x192xbf16>
    %138 = vector.shape_cast %137 : vector<1x72x192xbf16> to vector<72x192xbf16>
    %c0_150 = arith.constant 0 : index
    %c16_151 = arith.constant 16 : index
    %139 = vector.load %arg14[%c0_150, %c16_151] : memref<192x56xbf16, #tpu.memory_space<vmem>>, vector<192x35xbf16>
    %cst_152 = arith.constant dense<0.000000e+00> : vector<72x35xf32>
    %140 = tpu.matmul %138, %139, %cst_152 {dimension_numbers = #tpu.dot_dimension_numbers<[1], [0], [0], [1], [0, 0, 1, 1], [], []>} : vector<72x192xbf16>, vector<192x35xbf16>, vector<72x35xf32> -> vector<72x35xf32>
    %141 = arith.addf %136, %140 : vector<72x35xf32>
    %c0_153 = arith.constant 0 : index
    %c0_154 = arith.constant 0 : index
    %142 = vector.load %arg8[%c0_153, %c0_154] : memref<72x1xf32, #tpu.memory_space<vmem>>, vector<72x1xf32>
    %143 = vector.broadcast %142 : vector<72x1xf32> to vector<72x35xf32>
    %144 = arith.addf %141, %143 : vector<72x35xf32>
    %c0_155 = arith.constant 0 : index
    %c0_156 = arith.constant 0 : index
    %c0_157 = arith.constant 0 : index
    %145 = vector.load %arg9[%c0_155, %c0_156, %c0_157] : memref<12x72x35xf32, #tpu.memory_space<vmem>>, vector<1x72x35xf32>
    %146 = vector.shape_cast %145 : vector<1x72x35xf32> to vector<72x35xf32>
    %147 = arith.mulf %144, %146 : vector<72x35xf32>
    %cst_158 = arith.constant dense<0.000000e+00> : vector<72xf32>
    %148 = vector.multi_reduction <add>, %147, %cst_158 [1] : vector<72x35xf32> to vector<72xf32>
    %149 = vector.shape_cast %148 : vector<72xf32> to vector<72x1xf32>
    %cst_159 = arith.constant dense<0.000000e+00> : vector<1xf32>
    %150 = vector.multi_reduction <add>, %149, %cst_159 [0] : vector<72x1xf32> to vector<1xf32>
    %151 = vector.shape_cast %150 : vector<1xf32> to vector<1x1xf32>
    %c1_160 = arith.constant 1 : index
    %c0_161 = arith.constant 0 : index
    %c0_162 = arith.constant 0 : index
    %152 = vector.load %arg9[%c1_160, %c0_161, %c0_162] : memref<12x72x35xf32, #tpu.memory_space<vmem>>, vector<1x72x35xf32>
    %153 = vector.shape_cast %152 : vector<1x72x35xf32> to vector<72x35xf32>
    %154 = arith.mulf %144, %153 : vector<72x35xf32>
    %cst_163 = arith.constant dense<0.000000e+00> : vector<72xf32>
    %155 = vector.multi_reduction <add>, %154, %cst_163 [1] : vector<72x35xf32> to vector<72xf32>
    %156 = vector.shape_cast %155 : vector<72xf32> to vector<72x1xf32>
    %cst_164 = arith.constant dense<0.000000e+00> : vector<1xf32>
    %157 = vector.multi_reduction <add>, %156, %cst_164 [0] : vector<72x1xf32> to vector<1xf32>
    %158 = vector.shape_cast %157 : vector<1xf32> to vector<1x1xf32>
    %c2_165 = arith.constant 2 : index
    %c0_166 = arith.constant 0 : index
    %c0_167 = arith.constant 0 : index
    %159 = vector.load %arg9[%c2_165, %c0_166, %c0_167] : memref<12x72x35xf32, #tpu.memory_space<vmem>>, vector<1x72x35xf32>
    %160 = vector.shape_cast %159 : vector<1x72x35xf32> to vector<72x35xf32>
    %161 = arith.mulf %144, %160 : vector<72x35xf32>
    %cst_168 = arith.constant dense<0.000000e+00> : vector<72xf32>
    %162 = vector.multi_reduction <add>, %161, %cst_168 [1] : vector<72x35xf32> to vector<72xf32>
    %163 = vector.shape_cast %162 : vector<72xf32> to vector<72x1xf32>
    %cst_169 = arith.constant dense<0.000000e+00> : vector<1xf32>
    %164 = vector.multi_reduction <add>, %163, %cst_169 [0] : vector<72x1xf32> to vector<1xf32>
    %165 = vector.shape_cast %164 : vector<1xf32> to vector<1x1xf32>
    %c3_170 = arith.constant 3 : index
    %c0_171 = arith.constant 0 : index
    %c0_172 = arith.constant 0 : index
    %166 = vector.load %arg9[%c3_170, %c0_171, %c0_172] : memref<12x72x35xf32, #tpu.memory_space<vmem>>, vector<1x72x35xf32>
    %167 = vector.shape_cast %166 : vector<1x72x35xf32> to vector<72x35xf32>
    %168 = arith.mulf %144, %167 : vector<72x35xf32>
    %cst_173 = arith.constant dense<0.000000e+00> : vector<72xf32>
    %169 = vector.multi_reduction <add>, %168, %cst_173 [1] : vector<72x35xf32> to vector<72xf32>
    %170 = vector.shape_cast %169 : vector<72xf32> to vector<72x1xf32>
    %cst_174 = arith.constant dense<0.000000e+00> : vector<1xf32>
    %171 = vector.multi_reduction <add>, %170, %cst_174 [0] : vector<72x1xf32> to vector<1xf32>
    %172 = vector.shape_cast %171 : vector<1xf32> to vector<1x1xf32>
    %c4_175 = arith.constant 4 : index
    %c0_176 = arith.constant 0 : index
    %c0_177 = arith.constant 0 : index
    %173 = vector.load %arg9[%c4_175, %c0_176, %c0_177] : memref<12x72x35xf32, #tpu.memory_space<vmem>>, vector<1x72x35xf32>
    %174 = vector.shape_cast %173 : vector<1x72x35xf32> to vector<72x35xf32>
    %175 = arith.mulf %144, %174 : vector<72x35xf32>
    %cst_178 = arith.constant dense<0.000000e+00> : vector<72xf32>
    %176 = vector.multi_reduction <add>, %175, %cst_178 [1] : vector<72x35xf32> to vector<72xf32>
    %177 = vector.shape_cast %176 : vector<72xf32> to vector<72x1xf32>
    %cst_179 = arith.constant dense<0.000000e+00> : vector<1xf32>
    %178 = vector.multi_reduction <add>, %177, %cst_179 [0] : vector<72x1xf32> to vector<1xf32>
    %179 = vector.shape_cast %178 : vector<1xf32> to vector<1x1xf32>
    %c5_180 = arith.constant 5 : index
    %c0_181 = arith.constant 0 : index
    %c0_182 = arith.constant 0 : index
    %180 = vector.load %arg9[%c5_180, %c0_181, %c0_182] : memref<12x72x35xf32, #tpu.memory_space<vmem>>, vector<1x72x35xf32>
    %181 = vector.shape_cast %180 : vector<1x72x35xf32> to vector<72x35xf32>
    %182 = arith.mulf %144, %181 : vector<72x35xf32>
    %cst_183 = arith.constant dense<0.000000e+00> : vector<72xf32>
    %183 = vector.multi_reduction <add>, %182, %cst_183 [1] : vector<72x35xf32> to vector<72xf32>
    %184 = vector.shape_cast %183 : vector<72xf32> to vector<72x1xf32>
    %cst_184 = arith.constant dense<0.000000e+00> : vector<1xf32>
    %185 = vector.multi_reduction <add>, %184, %cst_184 [0] : vector<72x1xf32> to vector<1xf32>
    %186 = vector.shape_cast %185 : vector<1xf32> to vector<1x1xf32>
    %c6_185 = arith.constant 6 : index
    %c0_186 = arith.constant 0 : index
    %c0_187 = arith.constant 0 : index
    %187 = vector.load %arg9[%c6_185, %c0_186, %c0_187] : memref<12x72x35xf32, #tpu.memory_space<vmem>>, vector<1x72x35xf32>
    %188 = vector.shape_cast %187 : vector<1x72x35xf32> to vector<72x35xf32>
    %189 = arith.mulf %144, %188 : vector<72x35xf32>
    %cst_188 = arith.constant dense<0.000000e+00> : vector<72xf32>
    %190 = vector.multi_reduction <add>, %189, %cst_188 [1] : vector<72x35xf32> to vector<72xf32>
    %191 = vector.shape_cast %190 : vector<72xf32> to vector<72x1xf32>
    %cst_189 = arith.constant dense<0.000000e+00> : vector<1xf32>
    %192 = vector.multi_reduction <add>, %191, %cst_189 [0] : vector<72x1xf32> to vector<1xf32>
    %193 = vector.shape_cast %192 : vector<1xf32> to vector<1x1xf32>
    %c7_190 = arith.constant 7 : index
    %c0_191 = arith.constant 0 : index
    %c0_192 = arith.constant 0 : index
    %194 = vector.load %arg9[%c7_190, %c0_191, %c0_192] : memref<12x72x35xf32, #tpu.memory_space<vmem>>, vector<1x72x35xf32>
    %195 = vector.shape_cast %194 : vector<1x72x35xf32> to vector<72x35xf32>
    %196 = arith.mulf %144, %195 : vector<72x35xf32>
    %cst_193 = arith.constant dense<0.000000e+00> : vector<72xf32>
    %197 = vector.multi_reduction <add>, %196, %cst_193 [1] : vector<72x35xf32> to vector<72xf32>
    %198 = vector.shape_cast %197 : vector<72xf32> to vector<72x1xf32>
    %cst_194 = arith.constant dense<0.000000e+00> : vector<1xf32>
    %199 = vector.multi_reduction <add>, %198, %cst_194 [0] : vector<72x1xf32> to vector<1xf32>
    %200 = vector.shape_cast %199 : vector<1xf32> to vector<1x1xf32>
    %c8_195 = arith.constant 8 : index
    %c0_196 = arith.constant 0 : index
    %c0_197 = arith.constant 0 : index
    %201 = vector.load %arg9[%c8_195, %c0_196, %c0_197] : memref<12x72x35xf32, #tpu.memory_space<vmem>>, vector<1x72x35xf32>
    %202 = vector.shape_cast %201 : vector<1x72x35xf32> to vector<72x35xf32>
    %203 = arith.mulf %144, %202 : vector<72x35xf32>
    %cst_198 = arith.constant dense<0.000000e+00> : vector<72xf32>
    %204 = vector.multi_reduction <add>, %203, %cst_198 [1] : vector<72x35xf32> to vector<72xf32>
    %205 = vector.shape_cast %204 : vector<72xf32> to vector<72x1xf32>
    %cst_199 = arith.constant dense<0.000000e+00> : vector<1xf32>
    %206 = vector.multi_reduction <add>, %205, %cst_199 [0] : vector<72x1xf32> to vector<1xf32>
    %207 = vector.shape_cast %206 : vector<1xf32> to vector<1x1xf32>
    %c9_200 = arith.constant 9 : index
    %c0_201 = arith.constant 0 : index
    %c0_202 = arith.constant 0 : index
    %208 = vector.load %arg9[%c9_200, %c0_201, %c0_202] : memref<12x72x35xf32, #tpu.memory_space<vmem>>, vector<1x72x35xf32>
    %209 = vector.shape_cast %208 : vector<1x72x35xf32> to vector<72x35xf32>
    %210 = arith.mulf %144, %209 : vector<72x35xf32>
    %cst_203 = arith.constant dense<0.000000e+00> : vector<72xf32>
    %211 = vector.multi_reduction <add>, %210, %cst_203 [1] : vector<72x35xf32> to vector<72xf32>
    %212 = vector.shape_cast %211 : vector<72xf32> to vector<72x1xf32>
    %cst_204 = arith.constant dense<0.000000e+00> : vector<1xf32>
    %213 = vector.multi_reduction <add>, %212, %cst_204 [0] : vector<72x1xf32> to vector<1xf32>
    %214 = vector.shape_cast %213 : vector<1xf32> to vector<1x1xf32>
    %c10 = arith.constant 10 : index
    %c0_205 = arith.constant 0 : index
    %c0_206 = arith.constant 0 : index
    %215 = vector.load %arg9[%c10, %c0_205, %c0_206] : memref<12x72x35xf32, #tpu.memory_space<vmem>>, vector<1x72x35xf32>
    %216 = vector.shape_cast %215 : vector<1x72x35xf32> to vector<72x35xf32>
    %217 = arith.mulf %144, %216 : vector<72x35xf32>
    %cst_207 = arith.constant dense<0.000000e+00> : vector<72xf32>
    %218 = vector.multi_reduction <add>, %217, %cst_207 [1] : vector<72x35xf32> to vector<72xf32>
    %219 = vector.shape_cast %218 : vector<72xf32> to vector<72x1xf32>
    %cst_208 = arith.constant dense<0.000000e+00> : vector<1xf32>
    %220 = vector.multi_reduction <add>, %219, %cst_208 [0] : vector<72x1xf32> to vector<1xf32>
    %221 = vector.shape_cast %220 : vector<1xf32> to vector<1x1xf32>
    %c11 = arith.constant 11 : index
    %c0_209 = arith.constant 0 : index
    %c0_210 = arith.constant 0 : index
    %222 = vector.load %arg9[%c11, %c0_209, %c0_210] : memref<12x72x35xf32, #tpu.memory_space<vmem>>, vector<1x72x35xf32>
    %223 = vector.shape_cast %222 : vector<1x72x35xf32> to vector<72x35xf32>
    %224 = arith.mulf %144, %223 : vector<72x35xf32>
    %cst_211 = arith.constant dense<0.000000e+00> : vector<72xf32>
    %225 = vector.multi_reduction <add>, %224, %cst_211 [1] : vector<72x35xf32> to vector<72xf32>
    %226 = vector.shape_cast %225 : vector<72xf32> to vector<72x1xf32>
    %cst_212 = arith.constant dense<0.000000e+00> : vector<1xf32>
    %227 = vector.multi_reduction <add>, %226, %cst_212 [0] : vector<72x1xf32> to vector<1xf32>
    %228 = vector.shape_cast %227 : vector<1xf32> to vector<1x1xf32>
    %229 = tpu.concatenate %151, %158, %165, %172, %179, %186, %193, %200, %207, %214, %221, %228 in 1 : vector<1x1xf32>, vector<1x1xf32>, vector<1x1xf32>, vector<1x1xf32>, vector<1x1xf32>, vector<1x1xf32>, vector<1x1xf32>, vector<1x1xf32>, vector<1x1xf32>, vector<1x1xf32>, vector<1x1xf32>, vector<1x1xf32> -> vector<1x12xf32>
    %c0_213 = arith.constant 0 : index
    %c0_214 = arith.constant 0 : index
    %230 = vector.load %arg10[%c0_213, %c0_214] : memref<1x12xf32, #tpu.memory_space<vmem>>, vector<1x12xf32>
    %231 = arith.addf %229, %230 : vector<1x12xf32>
    %c0_215 = arith.constant 0 : index
    %c0_216 = arith.constant 0 : index
    %232 = vector.load %arg11[%c0_215, %c0_216] : memref<1x12xf32, #tpu.memory_space<vmem>>, vector<1x12xf32>
    tpu.vector_store %arg11[%c0_215, %c0_216], %231 {strides = array<i32>} : memref<1x12xf32, #tpu.memory_space<vmem>>, vector<1x12xf32>,
    return
  }
}

</mosaic_0001>

<bundles_post_ra>
// kernel: forward_pallas.1
= control target key start
LH: loop header
LB: loop body
LE: loop exit
PB: predicated region body
PF: predicated region fallthrough
CT: control target
= control target key end

     0   :  { %s7718_s21 = smov 95   ;;  %s7719_s22 = smov 96   ;;  %vm39_vm0 = vcmask 1043456   ;;  %vm40_vm1 = vcmask 785412   ;;  %v12098_v5 = vmov 0   ;;  %vm159_vm3 = vcmask 785408   ;;  %s12086_s0 = inlined_call_operand.vmem [shape: bf16[16,288], index: 0, kind: input, shape index: {}]   ;;  %s12087_s3 = inlined_call_operand.vmem [shape: f32[154,1], index: 3, kind: input, shape index: {}]   ;;  %s12088_s2 = inlined_call_operand.vmem [shape: bf16[154,144], index: 2, kind: input, shape index: {}]   ;;  %s12089_s1 = inlined_call_operand.vmem [shape: f32[1,224], index: 1, kind: input, shape index: {}]   ;;  %s12090_s4 = inlined_call_operand.vmem [shape: bf16[9,36,154], index: 4, kind: input, shape index: {}]   ;;  %s12091_s5 = inlined_call_operand.vmem [shape: f32[36,1], index: 5, kind: input, shape index: {}]   ;;  %s12092_s6 = inlined_call_operand.vmem [shape: bf16[224,224], index: 6, kind: input, shape index: {}]   ;;  %s12093_s7 = inlined_call_operand.vmem [shape: bf16[9,72,192], index: 7, kind: input, shape index: {}]   ;;  %s12094_s8 = inlined_call_operand.vmem [shape: f32[72,1], index: 8, kind: input, shape index: {}]   ;;  %s12095_s9 = inlined_call_operand.vmem [shape: f32[12,72,35], index: 9, kind: input, shape index: {}]   ;;  %s12096_s10 = inlined_call_operand.vmem [shape: f32[1,12], index: 10, kind: input, shape index: {}]   ;;  %s12097_s11 = inlined_call_operand.vmem [shape: f32[1,12], index: 11, kind: output, shape index: {}]  }
   0x1   :  { %v7799_v0 = vld [vmem:[%s12086_s0 + $0xc] sm:$0xff]  ;;  %v7804_v1 = vld [vmem:[%s12086_s0] sm:$0xff]  ;;  %v169_v2 = vld [vmem:[%s12086_s0 + $0x14] sm:$0xf]  ;;  %s7720_s27 = smov 110   ;;  %s7721_s28 = smov 111   ;;  %7717 = vset.pattern.permute.xlu1 %v12098_v5  ;;  %7716 = vset.pattern.permute.xlu0 %v12098_v5 }
   0x2   :  { %178 = vrot.lane.b32.xlu1 %v7799_v0, %s7718_s21  ;;  %174 = vrot.lane.b32.xlu0 %v7804_v1, %s7718_s21  ;;  %v167_v3 = vld [vmem:[%s12086_s0 + $0x8] sm:$0xf]  ;;  %vm7829_vm2 = vmor %vm40_vm1, %vm39_vm0  ;;  %876 = vst [vmem:[#allocation3] sm:$0xff] %v12098_v5  ;;  %s7723_s29 = smov 112   ;;  %s7724_s30 = smov 126   ;;  %vm125_vm4 = vcmask 908288  }
   0x3   :  { %153 = vrot.lane.b32.xlu2 %v7804_v1, %s7719_s22  ;;  %54 = vst.msk [vmem:[#allocation2 + $0x60] sm:$0xff] %vm7829_vm2, %v12098_v5  ;;  %s7725_s12 = smov 127   ;;  %v197_v6 = vld [vmem:[%s12086_s0 + $0x8] sm:$0xf]  ;;  %s7726_s15 = smov 94   ;;  %vm108_vm5 = vcmask 916480  }
   0x4   :  { %7715 = vset.pattern.permute.xlu2 %v12098_v5  ;;  %42 = vst.msk [vmem:[#allocation2] sm:$0xff] %vm7829_vm2, %v12098_v5  ;;  %v199_v7 = vld [vmem:[%s12086_s0 + $0x14] sm:$0xf]  ;;  %vm188_vm6 = vcmask 777216   ;;  %vm74_vm7 = vcmask 1039360   ;;  %v275_v30 = vld [vmem:[%s12087_s3 + $0x60] sm:$0xff] }
   0x5   :  { %43 = vst.msk [vmem:[#allocation2 + $0x8] sm:$0xff] %vm7829_vm2, %v12098_v5  ;;  %v281_v20 = vld [vmem:[%s12087_s3 + $0x90] sm:$0xff]  ;;  %v278_v31 = vld [vmem:[%s12087_s3 + $0x78] sm:$0xff]  ;;  %vm142_vm8 = vcmask 900096   ;;  %v280_v42 = vld [vmem:[%s12087_s3 + $0x88] sm:$0xff]  ;;  %vm91_vm9 = vcmask 1031168  }
   0x6   :  { %44 = vst.msk [vmem:[#allocation2 + $0x10] sm:$0xff] %vm7829_vm2, %v12098_v5  ;;  %v279_v43 = vld [vmem:[%s12087_s3 + $0x80] sm:$0xff]  ;;  %v274_v57 = vld [vmem:[%s12087_s3 + $0x58] sm:$0xff]  ;;  %vm217_vm10 = vcmask 769024   ;;  %vm563_vm11 = vcmask 130048   ;;  %vm1059_vm12 = vcmask 1043592  }
   0x7   :  { %45 = vst.msk [vmem:[#allocation2 + $0x18] sm:$0xff] %vm7829_vm2, %v12098_v5  ;;  %v271_v56 = vld [vmem:[%s12087_s3 + $0x40] sm:$0xff]  ;;  %vm1060_vm13 = vcmask 924676   ;;  %vm1018_vm14 = vcmask 138240   ;;  %vm1082_vm1 = vcmask 921604   ;;  %s7729_s24 = smov 16  }
   0x8   :  { %46 = vst.msk [vmem:[#allocation2 + $0x20] sm:$0xff] %vm7829_vm2, %v12098_v5  ;;  %v7451_v4 = vld [vmem:[%s12088_s2 + $0x4] sm:$0xf]  ;;  %vm8318_vm15 = vmor %vm1060_vm13, %vm1059_vm12  ;;  %vm1298_vm12 = vcmask 1044480   ;;  %vm1288_vm13 = vcmask 211968   ;;  %s7732_s25 = smov 120  }
   0x9   :  { %47 = vst.msk [vmem:[#allocation2 + $0x28] sm:$0xff] %vm7829_vm2, %v12098_v5  ;;  %s7734_s16 = smov 114   ;;  %s7735_s14 = smov 113  }
   0xa   :  { %180 = vrot.lane.b32.xlu1 %v169_v2, %s7718_s21  ;;  %176 = vrot.lane.b32.xlu0 %v167_v3, %s7718_s21  ;;  %48 = vst.msk [vmem:[#allocation2 + $0x30] sm:$0xff] %vm7829_vm2, %v12098_v5 }
   0xb   :  { %155 = vrot.lane.b32.xlu2 %v7799_v0, %s7719_s22  ;;  %49 = vst.msk [vmem:[#allocation2 + $0x38] sm:$0xff] %vm7829_vm2, %v12098_v5 }
   0xc   :  { %50 = vst.msk [vmem:[#allocation2 + $0x40] sm:$0xff] %vm7829_vm2, %v12098_v5 }
   0xd   :  { %51 = vst.msk [vmem:[#allocation2 + $0x48] sm:$0xff] %vm7829_vm2, %v12098_v5 }
   0xe   :  { %52 = vst.msk [vmem:[#allocation2 + $0x50] sm:$0xff] %vm7829_vm2, %v12098_v5 }
   0xf   :  { %53 = vst.msk [vmem:[#allocation2 + $0x58] sm:$0xff] %vm7829_vm2, %v12098_v5 }
  0x10   :  { %55 = vst.msk [vmem:[#allocation2 + $0x68] sm:$0xff] %vm7829_vm2, %v12098_v5 }
  0x11   :  { %56 = vst.msk [vmem:[#allocation2 + $0x70] sm:$0xff] %vm7829_vm2, %v12098_v5 }
  0x12   :  { %138 = vrot.lane.b32.xlu1 %v7799_v0, %s7720_s27  ;;  %136 = vrot.lane.b32.xlu0 %v7804_v1, %s7720_s27  ;;  %57 = vst.msk [vmem:[#allocation2 + $0x78] sm:$0xff] %vm7829_vm2, %v12098_v5 }
  0x13   :  { %119 = vrot.lane.b32.xlu2 %v7804_v1, %s7721_s28  ;;  %58 = vst.msk [vmem:[#allocation2 + $0x80] sm:$0xff] %vm7829_vm2, %v12098_v5 }
  0x14   :  { %59 = vst.msk [vmem:[#allocation2 + $0x88] sm:$0xff] %vm7829_vm2, %v12098_v5 }
  0x15   :  { %879 = vst [vmem:[#allocation3 + $0xc] sm:$0xff] %v12098_v5 }
  0x16   :  { %881 = vst [vmem:[#allocation3 + $0x18] sm:$0xff] %v12098_v5 }
  0x17   :  { %883 = vst [vmem:[#allocation3 + $0x24] sm:$0xff] %v12098_v5 }
  0x18   :  { %885 = vst [vmem:[#allocation3 + $0x30] sm:$0xff] %v12098_v5 }
  0x19   :  { %887 = vst [vmem:[#allocation3 + $0x3c] sm:$0xff] %v12098_v5 }
  0x1a   :  { %121 = vrot.lane.b32.xlu0 %v7799_v0, %s7721_s28  ;;  %102 = vrot.lane.b32.xlu1 %v7804_v1, %s7723_s29  ;;  %889 = vst [vmem:[#allocation3 + $0x48] sm:$0xff] %v12098_v5 }
  0x1b   :  { %104 = vrot.lane.b32.xlu2 %v7799_v0, %s7723_s29  ;;  %891 = vst [vmem:[#allocation3 + $0x54] sm:$0xff] %v12098_v5 }
  0x1c   :  { %893 = vst [vmem:[#allocation3 + $0x60] sm:$0xff] %v12098_v5 }
  0x1d   :  { %895 = vst [vmem:[#allocation3 + $0x6c] sm:$0xff] %v12098_v5 }
  0x1e   :  { %897 = vst [vmem:[#allocation3 + $0x78] sm:$0xff] %v12098_v5 }
  0x1f   :  { %899 = vst [vmem:[#allocation3 + $0x84] sm:$0xff] %v12098_v5 }
  0x20   :  { %901 = vst [vmem:[#allocation3 + $0x90] sm:$0xff] %v12098_v5 }
  0x21   :  { %903 = vst [vmem:[#allocation3 + $0x9c] sm:$0xff] %v12098_v5 }
  0x22   :  { %87 = vrot.lane.b32.xlu1 %v7799_v0, %s7724_s30  ;;  %85 = vrot.lane.b32.xlu0 %v7804_v1, %s7724_s30  ;;  %905 = vst [vmem:[#allocation3 + $0xa8] sm:$0xff] %v12098_v5 }
  0x23   :  { %68 = vrot.lane.b32.xlu2 %v7804_v1, %s7725_s12  ;;  %907 = vst [vmem:[#allocation3 + $0xb4] sm:$0xff] %v12098_v5 }
  0x24   :  { %909 = vst [vmem:[#allocation3 + $0xc0] sm:$0xff] %v12098_v5 }
  0x25   :  { %911 = vst [vmem:[#allocation3 + $0xcc] sm:$0xff] %v12098_v5 }
  0x26   :  { %913 = vst [vmem:[#allocation3 + $0xd8] sm:$0xff] %v12098_v5 }
  0x27   :  { %915 = vst [vmem:[#allocation3 + $0xe4] sm:$0x11] %v12098_v5 }
  0x28   :  { %62 = vst.msk [vmem:[#allocation2] sm:$0xff] %vm7829_vm2, %v7804_v1 }
  0x29   :  { %63 = vst.msk [vmem:[#allocation2 + $0x8] sm:$0xff] %vm7829_vm2, %v7799_v0 }
  0x2a   :  { %204 = vrot.lane.b32.xlu1 %v7804_v1, %s7726_s15  ;;  %70 = vrot.lane.b32.xlu0 %v7799_v0, %s7725_s12 }
  0x2b   :  { %206 = vrot.lane.b32.xlu2 %v197_v6, %s7726_s15 }
  0x32   :  { %210 = vrot.lane.b32.xlu1 %v199_v7, %s7726_s15  ;;  %208 = vrot.lane.b32.xlu0 %v7799_v0, %s7726_s15 }
  0x3a   :  { %375 = vperm.xlu1 %7717, %v281_v20   ;;  %360 = vperm.xlu0 %7716, %v278_v31  }
  0x42   :  { %345 = vperm.xlu1 %7717, %v275_v30   ;;  %365 = vperm.xlu0 %7716, %v279_v43  }
  0x4a   :  { %370 = vperm.xlu1 %7717, %v280_v42   ;;  %340 = vperm.xlu0 %7716, %v274_v57   ;;  %v6253_v57 = vld [vmem:[#allocation2] sm:$0xf] }
  0x52   :  { %325 = vperm.xlu1 %7717, %v271_v56  }
  0x5d   :  { %v154_v8 = vpop.permute.xlu2 %153 }
  0x5e   :  { %v157_v9 = vrot.slane %v154_v8, 4 }
  0x60   :  { %v160_v10 = vsel %vm159_vm3, %v154_v8, %v157_v9 }
  0x61   :  { %164 = vst.msk [vmem:[#allocation2 + $0x60] sm:$0xff] %vm7829_vm2, %v160_v10  ;;  %v270_v10 = vld [vmem:[%s12087_s3 + $0x38] sm:$0xff] }
  0x62   :  { %320 = vperm.xlu1 %7717, %v270_v10  }
  0x65   :  { %v156_v11 = vpop.permute.xlu2 %155 }
  0x66   :  { %v158_v12 = vrot.slane %v156_v11, 4 }
  0x68   :  { %v161_v13 = vsel %vm159_vm3, %v156_v11, %v158_v12  ;;  %v6301_v52 = vld [vmem:[#allocation2 + $0x60] sm:$0xf]  ;;  %v7483_v54 = vld [vmem:[#allocation2 + $0x64] sm:$0xf]  ;;  %v269_v11 = vld [vmem:[%s12087_s3 + $0x30] sm:$0xff] }
  0x69   :  { %165 = vst.msk [vmem:[#allocation2 + $0x68] sm:$0xff] %vm7829_vm2, %v161_v13  ;;  %315 = vperm.xlu0 %7716, %v269_v11  }
  0x6d   :  { %v120_v14 = vpop.permute.xlu2 %119 }
  0x6e   :  { %v123_v15 = vrot.slane %v120_v14, 4 }
  0x70   :  { %v126_v16 = vsel %vm125_vm4, %v120_v14, %v123_v15  ;;  %v7484_v53 = vld [vmem:[#allocation2 + $0x64] sm:$0xf0]  ;;  %v6303_v55 = vld [vmem:[#allocation2 + $0x68] sm:$0xf0] }
  0x71   :  { %130 = vst.msk [vmem:[#allocation2 + $0x40] sm:$0xff] %vm7829_vm2, %v126_v16  ;;  %v6302_v62 = vor.u32 %v7484_v53, %v6301_v52  ;;  %v6306_v63 = vor.u32 %v7483_v54, %v6303_v55  ;;  %v263_v52 = vld [vmem:[%s12087_s3] sm:$0xff] }
  0x74   :  { %v179_v17 = vpop.permute.xlu1 %178  ;;  %v175_v18 = vpop.permute.xlu0 %174 }
  0x75   :  { %v105_v19 = vpop.permute.xlu2 %104  ;;  %v184_v23 = vrot.slane %v179_v17, 4  ;;  %v182_v26 = vrot.slane %v175_v18, 4 }
  0x76   :  { %v107_v21 = vrot.slane %v105_v19, 4 }
  0x78   :  { %v110_v22 = vsel %vm108_vm5, %v105_v19, %v107_v21  ;;  %v6285_v16 = vld [vmem:[#allocation2 + $0x40] sm:$0xf]  ;;  %v7479_v21 = vld [vmem:[#allocation2 + $0x44] sm:$0xf] }
  0x79   :  { %114 = vst.msk [vmem:[#allocation2 + $0x38] sm:$0xff] %vm7829_vm2, %v110_v22 }
  0x7c   :  { %v181_v24 = vpop.permute.xlu1 %180  ;;  %v177_v25 = vpop.permute.xlu0 %176 }
  0x7d   :  { %v185_v27 = vrot.slane %v181_v24, 4  ;;  %v183_v28 = vrot.slane %v177_v25, 4  ;;  %v69_v29 = vpop.permute.xlu2 %68 }
  0x7e   :  { %v72_v32 = vrot.slane %v69_v29, 4 }
  0x7f   :  { %v190_v33 = vsel %vm39_vm0, %v184_v23, %v185_v27  ;;  %v187_v34 = vsel %vm39_vm0, %v182_v26, %v183_v28 }
  0x80   :  { %v191_v35 = vsel %vm188_vm6, %v179_v17, %v190_v33  ;;  %v189_v36 = vsel %vm188_vm6, %v175_v18, %v187_v34  ;;  %v75_v37 = vsel %vm74_vm7, %v69_v29, %v72_v32  ;;  %v277_v17 = vld [vmem:[%s12087_s3 + $0x70] sm:$0xff]  ;;  %v7478_v26 = vld [vmem:[#allocation2 + $0x34] sm:$0xf0]  ;;  %v6279_v27 = vld [vmem:[#allocation2 + $0x38] sm:$0xf0] }
  0x81   :  { %195 = vst.msk [vmem:[#allocation2 + $0x78] sm:$0xff] %vm7829_vm2, %v191_v35  ;;  %355 = vperm.xlu2 %7715, %v277_v17   ;;  %v265_v35 = vld [vmem:[%s12087_s3 + $0x10] sm:$0xff] }
  0x82   :  { %194 = vst.msk [vmem:[#allocation2 + $0x70] sm:$0xff] %vm7829_vm2, %v189_v36  ;;  %v268_v36 = vld [vmem:[%s12087_s3 + $0x28] sm:$0xff]  ;;  %295 = vperm.xlu1 %7717, %v265_v35   ;;  %v6197_v35 = vld [vmem:[%s12088_s2 + $0x30] sm:$0xf] }
  0x83   :  { %79 = vst.msk [vmem:[#allocation2 + $0x10] sm:$0xff] %vm7829_vm2, %v75_v37  ;;  %310 = vperm.xlu0 %7716, %v268_v36   ;;  %v7458_v36 = vld [vmem:[%s12088_s2 + $0x34] sm:$0xf0] }
  0x84   :  { %v139_v38 = vpop.permute.xlu1 %138  ;;  %v137_v39 = vpop.permute.xlu0 %136 }
  0x85   :  { %v141_v40 = vrot.slane %v139_v38, 4  ;;  %v140_v41 = vrot.slane %v137_v39, 4  ;;  %v207_v25 = vpop.permute.xlu2 %206 }
  0x86   :  { %v213_v30 = vrot.slane %v207_v25, 4  ;;  %v6183_v25 = vld [vmem:[%s12088_s2 + $0x18] sm:$0xf0] }
  0x87   :  { %v144_v44 = vsel %vm142_vm8, %v139_v38, %v141_v40  ;;  %v143_v45 = vsel %vm142_vm8, %v137_v39, %v140_v41 }
  0x88   :  { %148 = vst.msk [vmem:[#allocation2 + $0x58] sm:$0xff] %vm7829_vm2, %v144_v44  ;;  %v7486_v46 = vld [vmem:[#allocation2 + $0x74] sm:$0xf0]  ;;  %v6311_v47 = vld [vmem:[#allocation2 + $0x78] sm:$0xf0] }
  0x89   :  { %147 = vst.msk [vmem:[#allocation2 + $0x50] sm:$0xff] %vm7829_vm2, %v143_v45  ;;  %v6309_v48 = vld [vmem:[#allocation2 + $0x70] sm:$0xf]  ;;  %v7485_v49 = vld [vmem:[#allocation2 + $0x74] sm:$0xf] }
  0x8a   :  { %v6310_v50 = vor.u32 %v7486_v46, %v6309_v48  ;;  %v6314_v51 = vor.u32 %v7485_v49, %v6311_v47  ;;  %v282_v48 = vld [vmem:[%s12087_s3 + $0x98] sm:$0x3]  ;;  %v6261_v55 = vld [vmem:[#allocation2 + $0x10] sm:$0xf]  ;;  %v7473_v56 = vld [vmem:[#allocation2 + $0x14] sm:$0xf] }
  0x8b   :  { %380 = vperm.xlu2 %7715, %v282_v48   ;;  %285 = vperm.xlu0 %7716, %v263_v52   ;;  %v7462_v48 = vld [vmem:[%s12088_s2 + $0x54] sm:$0xf0]  ;;  %v6215_v52 = vld [vmem:[%s12088_s2 + $0x58] sm:$0xf0] }
  0x8c   :  { %594 = vmatpush.bf16.msra.mxu0 %v6310_v50  ;;  %712 = vmatpush.bf16.msra.mxu2 %v6314_v51  ;;  %v122_v58 = vpop.permute.xlu0 %121  ;;  %v103_v59 = vpop.permute.xlu1 %102  ;;  %v264_v51 = vld [vmem:[%s12087_s3 + $0x8] sm:$0xff] }
  0x8d   :  { %v124_v60 = vrot.slane %v122_v58, 4  ;;  %v106_v61 = vrot.slane %v103_v59, 4  ;;  %290 = vperm.xlu1 %7717, %v264_v51   ;;  %v7461_v51 = vld [vmem:[%s12088_s2 + $0x54] sm:$0xf] }
  0x8f   :  { %v127_v0 = vsel %vm125_vm4, %v122_v58, %v124_v60  ;;  %v109_v1 = vsel %vm108_vm5, %v103_v59, %v106_v61  ;;  %v7482_v2 = vld [vmem:[#allocation2 + $0x54] sm:$0xf0]  ;;  %v6295_v3 = vld [vmem:[#allocation2 + $0x58] sm:$0xf0]  ;;  %v7472_v58 = vld [vmem:[#allocation2 + $0x4] sm:$0xf0] }
  0x90   :  { %131 = vst.msk [vmem:[#allocation2 + $0x48] sm:$0xff] %vm7829_vm2, %v127_v0  ;;  %595 = vmatpush.bf16.msra.mxu0 %v6302_v62  ;;  %713 = vmatpush.bf16.msra.mxu2 %v6306_v63  ;;  %v6293_v6 = vld [vmem:[#allocation2 + $0x50] sm:$0xf]  ;;  %v7481_v7 = vld [vmem:[#allocation2 + $0x54] sm:$0xf] }
  0x91   :  { %113 = vst.msk [vmem:[#allocation2 + $0x30] sm:$0xff] %vm7829_vm2, %v109_v1  ;;  %v6294_v8 = vor.u32 %v7482_v2, %v6293_v6  ;;  %v6298_v9 = vor.u32 %v7481_v7, %v6295_v3  ;;  %v7471_v59 = vld [vmem:[#allocation2 + $0x4] sm:$0xf]  ;;  %v6255_v63 = vld [vmem:[#allocation2 + $0x8] sm:$0xf0]  ;;  %v6254_v6 = vor.u32 %v7472_v58, %v6253_v57 }
  0x92   :  { %v276_v3 = vld [vmem:[%s12087_s3 + $0x68] sm:$0xff]  ;;  %v6258_v7 = vor.u32 %v7471_v59, %v6255_v63  ;;  %v7463_v59 = vld [vmem:[%s12088_s2 + $0x64] sm:$0xf] }
  0x93   :  { %350 = vperm.xlu2 %7715, %v276_v3   ;;  %v6229_v3 = vld [vmem:[%s12088_s2 + $0x70] sm:$0xf] }
  0x94   :  { %596 = vmatpush.bf16.msra.mxu0 %v6294_v8  ;;  %714 = vmatpush.bf16.msra.mxu2 %v6298_v9  ;;  %v88_v12 = vpop.permute.xlu1 %87  ;;  %v86_v13 = vpop.permute.xlu0 %85  ;;  %v6173_v8 = vld [vmem:[%s12088_s2] sm:$0xf]  ;;  %v7452_v9 = vld [vmem:[%s12088_s2 + $0x4] sm:$0xf0] }
  0x95   :  { %v90_v14 = vrot.slane %v88_v12, 4  ;;  %v89_v15 = vrot.slane %v86_v13, 4  ;;  %v6174_v10 = vor.u32 %v7452_v9, %v6173_v8  ;;  %v7465_v8 = vld [vmem:[%s12088_s2 + $0x74] sm:$0xf]  ;;  %v6231_v9 = vld [vmem:[%s12088_s2 + $0x78] sm:$0xf0] }
  0x97   :  { %v93_v18 = vsel %vm91_vm9, %v88_v12, %v90_v14  ;;  %v92_v19 = vsel %vm91_vm9, %v86_v13, %v89_v15  ;;  %v7480_v20 = vld [vmem:[#allocation2 + $0x44] sm:$0xf0]  ;;  %v6287_v22 = vld [vmem:[#allocation2 + $0x48] sm:$0xf0] }
  0x98   :  { %97 = vst.msk [vmem:[#allocation2 + $0x28] sm:$0xff] %vm7829_vm2, %v93_v18  ;;  %v6286_v23 = vor.u32 %v7480_v20, %v6285_v16  ;;  %v6290_v24 = vor.u32 %v7479_v21, %v6287_v22  ;;  %v6277_v28 = vld [vmem:[#allocation2 + $0x30] sm:$0xf]  ;;  %v7477_v29 = vld [vmem:[#allocation2 + $0x34] sm:$0xf]  ;;  %v272_v20 = vld [vmem:[%s12087_s3 + $0x48] sm:$0xff] }
  0x99   :  { %96 = vst.msk [vmem:[#allocation2 + $0x20] sm:$0xff] %vm7829_vm2, %v92_v19  ;;  %v6278_v33 = vor.u32 %v7478_v26, %v6277_v28  ;;  %v6282_v34 = vor.u32 %v7477_v29, %v6279_v27  ;;  %v6175_v12 = vld [vmem:[%s12088_s2 + $0x8] sm:$0xf0]  ;;  %v273_v18 = vld [vmem:[%s12087_s3 + $0x50] sm:$0xff]  ;;  %v7454_v22 = vld [vmem:[%s12088_s2 + $0x14] sm:$0xf0] }
  0x9a   :  { %597 = vmatpush.bf16.msra.mxu0 %v6286_v23  ;;  %715 = vmatpush.bf16.msra.mxu2 %v6290_v24  ;;  %v6178_v19 = vor.u32 %v7451_v4, %v6175_v12  ;;  %v6181_v21 = vld [vmem:[%s12088_s2 + $0x10] sm:$0xf]  ;;  %v7453_v24 = vld [vmem:[%s12088_s2 + $0x14] sm:$0xf]  ;;  %v267_v26 = vld [vmem:[%s12087_s3 + $0x20] sm:$0xff] }
  0x9b   :  { %335 = vperm.xlu2 %7715, %v273_v18   ;;  %v6182_v23 = vor.u32 %v7454_v22, %v6181_v21  ;;  %v6186_v27 = vor.u32 %v7453_v24, %v6183_v25  ;;  %v266_v28 = vld [vmem:[%s12087_s3 + $0x18] sm:$0xff]  ;;  %v6189_v29 = vld [vmem:[%s12088_s2 + $0x20] sm:$0xf]  ;;  %v6239_v21 = vld [vmem:[%s12088_s2 + $0x88] sm:$0xf0] }
  0x9c   :  { %v205_v31 = vpop.permute.xlu1 %204  ;;  %v71_v32 = vpop.permute.xlu0 %70  ;;  %v830_v25 = vld [vmem:[%s12089_s1] sm:$0x3] }
  0x9d   :  { %v212_v37 = vrot.slane %v205_v31, 4  ;;  %v73_v38 = vrot.slane %v71_v32, 4 }
  0x9e   :  { %598 = vmatpush.bf16.msra.mxu0 %v6278_v33  ;;  %716 = vmatpush.bf16.msra.mxu2 %v6282_v34  ;;  %v6191_v33 = vld [vmem:[%s12088_s2 + $0x28] sm:$0xf0] }
  0x9f   :  { %v76_v39 = vsel %vm74_vm7, %v71_v32, %v73_v38  ;;  %v216_v40 = vsel %vm39_vm0, %v212_v37, %v213_v30  ;;  %v7476_v41 = vld [vmem:[#allocation2 + $0x24] sm:$0xf0]  ;;  %v6271_v42 = vld [vmem:[#allocation2 + $0x28] sm:$0xf0]  ;;  %v7455_v32 = vld [vmem:[%s12088_s2 + $0x24] sm:$0xf]  ;;  %v6198_v37 = vor.u32 %v7458_v36, %v6197_v35 }
  0xa0   :  { %80 = vst.msk [vmem:[#allocation2 + $0x18] sm:$0xff] %vm7829_vm2, %v76_v39  ;;  %v218_v43 = vsel %vm217_vm10, %v205_v31, %v216_v40  ;;  %v6269_v44 = vld [vmem:[#allocation2 + $0x20] sm:$0xf]  ;;  %v7475_v45 = vld [vmem:[#allocation2 + $0x24] sm:$0xf]  ;;  %v6194_v34 = vor.u32 %v7455_v32, %v6191_v33  ;;  %v8217_v33 = vperm.slane %v830_v25, 1 }
  0xa1   :  { %223 = vst.msk [vmem:[#allocation2 + $0x80] sm:$0xff] %vm7829_vm2, %v218_v43  ;;  %v6270_v46 = vor.u32 %v7476_v41, %v6269_v44  ;;  %v6274_v47 = vor.u32 %v7475_v45, %v6271_v42  ;;  %v7456_v30 = vld [vmem:[%s12088_s2 + $0x24] sm:$0xf0]  ;;  %v7457_v38 = vld [vmem:[%s12088_s2 + $0x34] sm:$0xf] }
  0xa2   :  { %v6190_v31 = vor.u32 %v7456_v30, %v6189_v29  ;;  %v6199_v39 = vld [vmem:[%s12088_s2 + $0x38] sm:$0xf0]  ;;  %v6205_v41 = vld [vmem:[%s12088_s2 + $0x40] sm:$0xf]  ;;  %v7460_v42 = vld [vmem:[%s12088_s2 + $0x44] sm:$0xf0] }
  0xa3   :  { %599 = vmatpush.bf16.msra.mxu0 %v6270_v46  ;;  %717 = vmatpush.bf16.msra.mxu2 %v6274_v47  ;;  %v6202_v40 = vor.u32 %v7457_v38, %v6199_v39  ;;  %v6206_v43 = vor.u32 %v7460_v42, %v6205_v41  ;;  %v7459_v44 = vld [vmem:[%s12088_s2 + $0x44] sm:$0xf]  ;;  %v6207_v45 = vld [vmem:[%s12088_s2 + $0x48] sm:$0xf0]  ;;  %v6213_v47 = vld [vmem:[%s12088_s2 + $0x50] sm:$0xf] }
  0xa4   :  { %v211_v49 = vpop.permute.xlu1 %210  ;;  %v209_v50 = vpop.permute.xlu0 %208  ;;  %330 = vperm.xlu2 %7715, %v272_v20   ;;  %v6210_v46 = vor.u32 %v7459_v44, %v6207_v45  ;;  %v7467_v20 = vld [vmem:[%s12088_s2 + $0x84] sm:$0xf]  ;;  %v6245_v36 = vld [vmem:[%s12088_s2 + $0x90] sm:$0xf]  ;;  %v7469_v45 = vld [vmem:[%s12088_s2 + $0x94] sm:$0xf] }
  0xa5   :  { %v215_v53 = vrot.slane %v211_v49, 4  ;;  %v214_v54 = vrot.slane %v209_v50, 4 }
  0xa7   :  { %v219_v60 = vsel %vm39_vm0, %v214_v54, %v215_v53  ;;  %v7474_v61 = vld [vmem:[#allocation2 + $0x14] sm:$0xf0]  ;;  %v6263_v62 = vld [vmem:[#allocation2 + $0x18] sm:$0xf0]  ;;  %v6218_v53 = vor.u32 %v7461_v51, %v6215_v52  ;;  %vm1081_vm0 = vcmask 1040520  }
  0xa8   :  { %v220_v0 = vsel %vm217_vm10, %v209_v50, %v219_v60  ;;  %v6262_v1 = vor.u32 %v7474_v61, %v6261_v55  ;;  %v6266_v2 = vor.u32 %v7473_v56, %v6263_v62  ;;  %v6317_v11 = vld [vmem:[#allocation2 + $0x80] sm:$0xf]  ;;  %v7487_v14 = vld [vmem:[#allocation2 + $0x84] sm:$0xf]  ;;  %v6214_v50 = vor.u32 %v7462_v48, %v6213_v47  ;;  %v7464_v56 = vld [vmem:[%s12088_s2 + $0x64] sm:$0xf0] }
  0xa9   :  { %224 = vst.msk [vmem:[#allocation2 + $0x88] sm:$0xff] %vm7829_vm2, %v220_v0  ;;  %v6221_v55 = vld [vmem:[%s12088_s2 + $0x60] sm:$0xf]  ;;  %v6223_v60 = vld [vmem:[%s12088_s2 + $0x68] sm:$0xf0]  ;;  %vm1083_vm2 = vmor %vm1082_vm1, %vm1081_vm0  ;;  %vm6151_vm0 = vcmask 48128  }
  0xaa   :  { %600 = vmatpush.bf16.msra.mxu0 %v6262_v1  ;;  %718 = vmatpush.bf16.msra.mxu2 %v6266_v2  ;;  %v6222_v57 = vor.u32 %v7464_v56, %v6221_v55  ;;  %v6226_v63 = vor.u32 %v7463_v59, %v6223_v60  ;;  %vm6153_vm1 = vcmask 56320  }
  0xac   :  { %305 = vperm.xlu2 %7715, %v267_v26   ;;  %v8130_v49 = vpop.permute.xlu0 %360  ;;  %v8148_v58 = vpop.permute.xlu1 %375 }
  0xae   :  { %601 = vmatpush.bf16.msra.mxu0 %v6254_v6  ;;  %719 = vmatpush.bf16.msra.mxu2 %v6258_v7  ;;  %v7466_v6 = vld [vmem:[%s12088_s2 + $0x74] sm:$0xf0] }
  0xaf   :  { %v6230_v7 = vor.u32 %v7466_v6, %v6229_v3 }
  0xb0   :  { %v7488_v13 = vld [vmem:[#allocation2 + $0x84] sm:$0xf0]  ;;  %v6319_v15 = vld [vmem:[#allocation2 + $0x88] sm:$0xf0] }
  0xb1   :  { %602 = vmatmul.bf16.vlgmr.msra.gmra.mxu0 %v6174_v10  ;;  %720 = vmatmul.bf16.vlgmr.msra.gmra.mxu2 %v6174_v10  ;;  %v6318_v16 = vor.u32 %v7488_v13, %v6317_v11  ;;  %v6322_v17 = vor.u32 %v7487_v14, %v6319_v15  ;;  %v6234_v11 = vor.u32 %v7465_v8, %v6231_v9  ;;  %v6237_v13 = vld [vmem:[%s12088_s2 + $0x80] sm:$0xf]  ;;  %v7468_v14 = vld [vmem:[%s12088_s2 + $0x84] sm:$0xf0] }
  0xb3   :  { %660 = vmatpush.bf16.msra.mxu1 %v6318_v16  ;;  %778 = vmatpush.bf16.msra.mxu3 %v6322_v17  ;;  %v6238_v17 = vor.u32 %v7468_v14, %v6237_v13 }
  0xb4   :  { %300 = vperm.xlu2 %7715, %v266_v28   ;;  %v8138_v54 = vpop.permute.xlu0 %365  ;;  %v8162_v0 = vpop.permute.xlu1 %345 }
  0xb6   :  { %6323 = vmatmul.msk.bf16.vlgmr.msra.gmra.mxu1 %vm563_vm11, %v6178_v19  ;;  %6333 = vmatmul.msk.bf16.vlgmr.msra.gmra.mxu3 %vm563_vm11, %v6178_v19 }
  0xbc   :  { %v8158_v62 = vpop.permute.xlu0 %340  ;;  %v8180_v10 = vpop.permute.xlu1 %370 }
  0xc1   :  { %607 = vmatmul.bf16.gmra.mxu0 %v6182_v23  ;;  %725 = vmatmul.bf16.gmra.mxu2 %v6182_v23  ;;  %v6242_v23 = vor.u32 %v7467_v20, %v6239_v21 }
  0xc4   :  { %v8194_v15 = vpop.permute.xlu1 %325 }
  0xc6   :  { %6324 = vmatmul.msk.bf16.gmra.mxu1 %vm563_vm11, %v6186_v27  ;;  %6334 = vmatmul.msk.bf16.gmra.mxu3 %vm563_vm11, %v6186_v27 }
  0xd1   :  { %612 = vmatmul.bf16.gmra.mxu0 %v6190_v31  ;;  %730 = vmatmul.bf16.gmra.mxu2 %v6190_v31  ;;  %v8213_v31 = vperm.slane %v830_v25, 0 }
  0xd4   :  { %v8207_v28 = vpop.permute.xlu1 %320 }
  0xd6   :  { %6325 = vmatmul.msk.bf16.gmra.mxu1 %vm563_vm11, %v6194_v34  ;;  %6335 = vmatmul.msk.bf16.gmra.mxu3 %vm563_vm11, %v6194_v34 }
  0xdb   :  { %v8156_v61 = vpop.permute.xlu2 %355  ;;  %v8166_v2 = vpop.permute.xlu0 %315 }
  0xe1   :  { %617 = vmatmul.bf16.gmra.mxu0 %v6198_v37  ;;  %735 = vmatmul.bf16.gmra.mxu2 %v6198_v37  ;;  %v7470_v37 = vld [vmem:[%s12088_s2 + $0x94] sm:$0x10] }
  0xe2   :  { %v6246_v42 = vor.u32 %v7470_v37, %v6245_v36 }
  0xe5   :  { %v8164_v1 = vpop.permute.xlu2 %380 }
  0xe6   :  { %6326 = vmatmul.msk.bf16.gmra.mxu1 %vm563_vm11, %v6202_v40  ;;  %6336 = vmatmul.msk.bf16.gmra.mxu3 %vm563_vm11, %v6202_v40 }
  0xed   :  { %v8182_v4 = vpop.permute.xlu2 %350 }
  0xf1   :  { %622 = vmatmul.bf16.gmra.mxu0 %v6206_v43  ;;  %740 = vmatmul.bf16.gmra.mxu2 %v6206_v43 }
  0xf4   :  { %v296_v47 = vpop.permute.xlu1 %295 }
  0xf5   :  { %v8184_v12 = vpop.permute.xlu0 %310  ;;  %v8196_v16 = vpop.permute.xlu2 %335 }
  0xf6   :  { %6327 = vmatmul.msk.bf16.gmra.mxu1 %vm563_vm11, %v6210_v46  ;;  %6337 = vmatmul.msk.bf16.gmra.mxu3 %vm563_vm11, %v6210_v46  ;;  %v6247_v46 = vld [vmem:[%s12088_s2 + $0x98] sm:$0x10]  ;;  %s7727_s2 = smov 17  }
  0xf7   :  { %v6250_v52 = vor.u32 %v7469_v45, %v6247_v46 }
  0xfd   :  { %v286_v18 = vpop.permute.xlu0 %285 }
  0xfe   :  { %v8215_v32 = vpop.permute.xlu2 %330 }
 0x101   :  { %627 = vmatmul.bf16.gmra.mxu0 %v6214_v50  ;;  %745 = vmatmul.bf16.gmra.mxu2 %v6214_v50 }
 0x106   :  { %6328 = vmatmul.msk.bf16.gmra.mxu1 %vm563_vm11, %v6218_v53  ;;  %6338 = vmatmul.msk.bf16.gmra.mxu3 %vm563_vm11, %v6218_v53  ;;  %v306_v48 = vpop.permute.xlu2 %305 }
 0x10e   :  { %v301_v6 = vpop.permute.xlu2 %300 }
 0x111   :  { %632 = vmatmul.bf16.gmra.mxu0 %v6222_v57  ;;  %750 = vmatmul.bf16.gmra.mxu2 %v6222_v57 }
 0x116   :  { %6329 = vmatmul.msk.bf16.gmra.mxu1 %vm563_vm11, %v6226_v63  ;;  %6339 = vmatmul.msk.bf16.gmra.mxu3 %vm563_vm11, %v6226_v63 }
 0x121   :  { %637 = vmatmul.bf16.gmra.mxu0 %v6230_v7  ;;  %755 = vmatmul.bf16.gmra.mxu2 %v6230_v7 }
 0x126   :  { %6330 = vmatmul.msk.bf16.gmra.mxu1 %vm563_vm11, %v6234_v11  ;;  %6340 = vmatmul.msk.bf16.gmra.mxu3 %vm563_vm11, %v6234_v11 }
 0x12e   :  { %v603_v19 = vpop.f32.mrf.mxu0 }
 0x12f   :  { %v604_v22 = vadd.f32 %v603_v19, %v286_v18 }
 0x131   :  { %642 = vmatmul.bf16.gmra.mxu0 %v6238_v17  ;;  %760 = vmatmul.bf16.gmra.mxu2 %v6238_v17 }
 0x133   :  { %v662_v24 = vpop.f32.mrf.mxu1 }
 0x134   :  { %v721_v26 = vpop.f32.mrf.mxu2  ;;  %v663_v27 = vadd.f32 %v662_v24, %v604_v22 }
 0x135   :  { %v722_v30 = vadd.f32 %v721_v26, %v286_v18 }
 0x136   :  { %v8209_v29 = vpop.f32.mrf.mxu0  ;;  %6331 = vmatmul.msk.bf16.gmra.mxu1 %vm563_vm11, %v6242_v23  ;;  %6341 = vmatmul.msk.bf16.gmra.mxu3 %vm563_vm11, %v6242_v23  ;;  %v8226_v38 = vmul.f32 %v8213_v31, %v663_v27 }
 0x139   :  { %v780_v34 = vpop.f32.mrf.mxu3 }
 0x13a   :  { %v781_v35 = vadd.f32 %v780_v34, %v722_v30 }
 0x13b   :  { %v8228_v39 = vpop.f32.mrf.mxu1 }
 0x13c   :  { %v8231_v40 = vmul.f32 %v8217_v33, %v781_v35  ;;  %v8233_v41 = vpop.f32.mrf.mxu2 }
 0x13e   :  { %v608_v43 = vpop.f32.mrf.mxu0  ;;  %v918_v44 = vpack.c.bf16 %v8231_v40, %v8226_v38 }
 0x13f   :  { %v609_v51 = vadd.f32 %v608_v43, %v296_v47 }
 0x141   :  { %647 = vmatmul.bf16.gmra.mxu0 %v6246_v42  ;;  %765 = vmatmul.bf16.gmra.mxu2 %v6246_v42  ;;  %v8243_v50 = vpop.f32.mrf.mxu3 }
 0x143   :  { %v667_v53 = vpop.f32.mrf.mxu1 }
 0x144   :  { %v726_v55 = vpop.f32.mrf.mxu2  ;;  %v668_v56 = vadd.f32 %v667_v53, %v609_v51 }
 0x145   :  { %v727_v57 = vadd.f32 %v726_v55, %v296_v47 }
 0x146   :  { %v610_v59 = vpop.f32.mrf.mxu0  ;;  %6332 = vmatmul.msk.bf16.gmra.mxu1 %vm563_vm11, %v6250_v52  ;;  %6342 = vmatmul.msk.bf16.gmra.mxu3 %vm563_vm11, %v6250_v52  ;;  %v840_v63 = vmul.f32 %v8213_v31, %v668_v56 }
 0x147   :  { %v611_v11 = vadd.f32 %v610_v59, %v301_v6 }
 0x149   :  { %v785_v60 = vpop.f32.mrf.mxu3 }
 0x14a   :  { %v786_v3 = vadd.f32 %v785_v60, %v727_v57 }
 0x14b   :  { %v669_v7 = vpop.f32.mrf.mxu1 }
 0x14c   :  { %v841_v8 = vmul.f32 %v8217_v33, %v786_v3  ;;  %v728_v9 = vpop.f32.mrf.mxu2  ;;  %v670_v17 = vadd.f32 %v669_v7, %v611_v11 }
 0x14d   :  { %v729_v18 = vadd.f32 %v728_v9, %v301_v6 }
 0x14e   :  { %v613_v13 = vpop.f32.mrf.mxu0  ;;  %v920_v14 = vpack.c.bf16 %v841_v8, %v840_v63  ;;  %v842_v23 = vmul.f32 %v8213_v31, %v670_v17 }
 0x14f   :  { %v614_v20 = vadd.f32 %v613_v13, %v306_v48 }
 0x150   :  { %962 = vrot.lane.b32.xlu0 %v920_v14, %s7727_s2 }
 0x151   :  { %v787_v19 = vpop.f32.mrf.mxu3 }
 0x152   :  { %v788_v21 = vadd.f32 %v787_v19, %v729_v18 }
 0x153   :  { %v672_v22 = vpop.f32.mrf.mxu1 }
 0x154   :  { %v843_v24 = vmul.f32 %v8217_v33, %v788_v21  ;;  %v731_v25 = vpop.f32.mrf.mxu2  ;;  %v673_v26 = vadd.f32 %v672_v22, %v614_v20 }
 0x155   :  { %v732_v27 = vadd.f32 %v731_v25, %v306_v48 }
 0x156   :  { %v615_v30 = vpop.f32.mrf.mxu0  ;;  %v921_v34 = vpack.c.bf16 %v843_v24, %v842_v23  ;;  %v844_v36 = vmul.f32 %v8213_v31, %v673_v26 }
 0x157   :  { %v616_v46 = vadd.f32 %v615_v30, %v8184_v12 }
 0x158   :  { %964 = vrot.lane.b32.xlu1 %v921_v34, %s7727_s2 }
 0x159   :  { %v790_v35 = vpop.f32.mrf.mxu3 }
 0x15a   :  { %v791_v37 = vadd.f32 %v790_v35, %v732_v27 }
 0x15b   :  { %v674_v42 = vpop.f32.mrf.mxu1 }
 0x15c   :  { %v845_v43 = vmul.f32 %v8217_v33, %v791_v37  ;;  %v733_v45 = vpop.f32.mrf.mxu2  ;;  %v675_v52 = vadd.f32 %v674_v42, %v616_v46 }
 0x15d   :  { %v734_v53 = vadd.f32 %v733_v45, %v8184_v12 }
 0x15e   :  { %v618_v47 = vpop.f32.mrf.mxu0  ;;  %v922_v51 = vpack.c.bf16 %v845_v43, %v844_v36  ;;  %v846_v59 = vmul.f32 %v8213_v31, %v675_v52 }
 0x15f   :  { %v619_v55 = vadd.f32 %v618_v47, %v8166_v2 }
 0x160   :  { %966 = vrot.lane.b32.xlu1 %v922_v51, %s7727_s2 }
 0x161   :  { %v792_v48 = vpop.f32.mrf.mxu3 }
 0x162   :  { %v793_v56 = vadd.f32 %v792_v48, %v734_v53 }
 0x163   :  { %v677_v57 = vpop.f32.mrf.mxu1 }
 0x164   :  { %v847_v60 = vmul.f32 %v8217_v33, %v793_v56  ;;  %v736_v63 = vpop.f32.mrf.mxu2  ;;  %v678_v3 = vadd.f32 %v677_v57, %v619_v55 }
 0x165   :  { %v737_v6 = vadd.f32 %v736_v63, %v8166_v2 }
 0x166   :  { %v620_v7 = vpop.f32.mrf.mxu0  ;;  %v923_v8 = vpack.c.bf16 %v847_v60, %v846_v59  ;;  %v848_v9 = vmul.f32 %v8213_v31, %v678_v3 }
 0x167   :  { %v621_v18 = vadd.f32 %v620_v7, %v8207_v28 }
 0x168   :  { %968 = vrot.lane.b32.xlu2 %v923_v8, %s7727_s2 }
 0x169   :  { %v795_v12 = vpop.f32.mrf.mxu3 }
 0x16a   :  { %v796_v11 = vadd.f32 %v795_v12, %v737_v6 }
 0x16b   :  { %v679_v13 = vpop.f32.mrf.mxu1 }
 0x16c   :  { %v849_v14 = vmul.f32 %v8217_v33, %v796_v11  ;;  %v738_v17 = vpop.f32.mrf.mxu2  ;;  %v680_v21 = vadd.f32 %v679_v13, %v621_v18 }
 0x16d   :  { %v739_v22 = vadd.f32 %v738_v17, %v8207_v28 }
 0x16e   :  { %v623_v19 = vpop.f32.mrf.mxu0  ;;  %v924_v20 = vpack.c.bf16 %v849_v14, %v848_v9  ;;  %v850_v25 = vmul.f32 %v8213_v31, %v680_v21 }
 0x16f   :  { %v624_v26 = vadd.f32 %v623_v19, %v8194_v15 }
 0x170   :  { %970 = vrot.lane.b32.xlu2 %v924_v20, %s7727_s2 }
 0x171   :  { %v797_v2 = vpop.f32.mrf.mxu3 }
 0x172   :  { %v798_v23 = vadd.f32 %v797_v2, %v739_v22 }
 0x173   :  { %v682_v24 = vpop.f32.mrf.mxu1 }
 0x174   :  { %v851_v27 = vmul.f32 %v8217_v33, %v798_v23  ;;  %v741_v30 = vpop.f32.mrf.mxu2  ;;  %v683_v36 = vadd.f32 %v682_v24, %v624_v26 }
 0x175   :  { %v742_v37 = vadd.f32 %v741_v30, %v8194_v15 }
 0x176   :  { %v625_v34 = vpop.f32.mrf.mxu0  ;;  %v925_v35 = vpack.c.bf16 %v851_v27, %v850_v25  ;;  %v852_v45 = vmul.f32 %v8213_v31, %v683_v36 }
 0x177   :  { %v626_v51 = vadd.f32 %v625_v34, %v8215_v32 }
 0x178   :  { %972 = vrot.lane.b32.xlu0 %v925_v35, %s7727_s2 }
 0x179   :  { %v800_v28 = vpop.f32.mrf.mxu3 }
 0x17a   :  { %v801_v42 = vadd.f32 %v800_v28, %v742_v37 }
 0x17b   :  { %v684_v43 = vpop.f32.mrf.mxu1 }
 0x17c   :  { %v853_v46 = vmul.f32 %v8217_v33, %v801_v42  ;;  %v743_v47 = vpop.f32.mrf.mxu2  ;;  %v685_v48 = vadd.f32 %v684_v43, %v626_v51 }
 0x17d   :  { %v744_v55 = vadd.f32 %v743_v47, %v8215_v32 }
 0x17e   :  { %v628_v52 = vpop.f32.mrf.mxu0  ;;  %v926_v53 = vpack.c.bf16 %v853_v46, %v852_v45  ;;  %v854_v59 = vmul.f32 %v8213_v31, %v685_v48 }
 0x17f   :  { %v629_v3 = vadd.f32 %v628_v52, %v8196_v16 }
 0x180   :  { %974 = vrot.lane.b32.xlu0 %v926_v53, %s7727_s2 }
 0x181   :  { %v802_v15 = vpop.f32.mrf.mxu3 }
 0x182   :  { %v803_v56 = vadd.f32 %v802_v15, %v744_v55 }
 0x183   :  { %v687_v57 = vpop.f32.mrf.mxu1 }
 0x184   :  { %v855_v60 = vmul.f32 %v8217_v33, %v803_v56  ;;  %v746_v63 = vpop.f32.mrf.mxu2  ;;  %v688_v8 = vadd.f32 %v687_v57, %v629_v3 }
 0x185   :  { %v747_v12 = vadd.f32 %v746_v63, %v8196_v16 }
 0x186   :  { %v630_v6 = vpop.f32.mrf.mxu0  ;;  %v927_v7 = vpack.c.bf16 %v855_v60, %v854_v59  ;;  %v856_v13 = vmul.f32 %v8213_v31, %v688_v8 }
 0x187   :  { %v631_v18 = vadd.f32 %v630_v6, %v8158_v62 }
 0x188   :  { %976 = vrot.lane.b32.xlu1 %v927_v7, %s7727_s2 }
 0x189   :  { %v805_v32 = vpop.f32.mrf.mxu3 }
 0x18a   :  { %v806_v9 = vadd.f32 %v805_v32, %v747_v12 }
 0x18b   :  { %v689_v11 = vpop.f32.mrf.mxu1 }
 0x18c   :  { %v857_v14 = vmul.f32 %v8217_v33, %v806_v9  ;;  %v748_v17 = vpop.f32.mrf.mxu2  ;;  %v690_v21 = vadd.f32 %v689_v11, %v631_v18 }
 0x18d   :  { %v749_v22 = vadd.f32 %v748_v17, %v8158_v62 }
 0x18e   :  { %v633_v19 = vpop.f32.mrf.mxu0  ;;  %v928_v20 = vpack.c.bf16 %v857_v14, %v856_v13  ;;  %v858_v24 = vmul.f32 %v8213_v31, %v690_v21 }
 0x18f   :  { %v634_v27 = vadd.f32 %v633_v19, %v8162_v0 }
 0x190   :  { %978 = vrot.lane.b32.xlu1 %v928_v20, %s7727_s2 }
 0x191   :  { %v807_v16 = vpop.f32.mrf.mxu3 }
 0x192   :  { %v808_v2 = vadd.f32 %v807_v16, %v749_v22 }
 0x193   :  { %v692_v23 = vpop.f32.mrf.mxu1 }
 0x194   :  { %v859_v25 = vmul.f32 %v8217_v33, %v808_v2  ;;  %v751_v26 = vpop.f32.mrf.mxu2  ;;  %v693_v35 = vadd.f32 %v692_v23, %v634_v27 }
 0x195   :  { %v752_v36 = vadd.f32 %v751_v26, %v8162_v0 }
 0x196   :  { %v635_v30 = vpop.f32.mrf.mxu0  ;;  %v929_v34 = vpack.c.bf16 %v859_v25, %v858_v24  ;;  %v860_v42 = vmul.f32 %v8213_v31, %v693_v35 }
 0x197   :  { %v636_v46 = vadd.f32 %v635_v30, %v8182_v4 }
 0x198   :  { %980 = vrot.lane.b32.xlu2 %v929_v34, %s7727_s2 }
 0x199   :  { %v810_v62 = vpop.f32.mrf.mxu3 }
 0x19a   :  { %v811_v37 = vadd.f32 %v810_v62, %v752_v36 }
 0x19b   :  { %v694_v28 = vpop.f32.mrf.mxu1 }
 0x19c   :  { %v861_v43 = vmul.f32 %v8217_v33, %v811_v37  ;;  %v753_v45 = vpop.f32.mrf.mxu2  ;;  %v695_v52 = vadd.f32 %v694_v28, %v636_v46  ;;  %v291_v28 = vpop.permute.xlu1 %290 }
 0x19d   :  { %v754_v53 = vadd.f32 %v753_v45, %v8182_v4 }
 0x19e   :  { %v638_v47 = vpop.f32.mrf.mxu0  ;;  %v930_v51 = vpack.c.bf16 %v861_v43, %v860_v42  ;;  %v862_v15 = vmul.f32 %v8213_v31, %v695_v52 }
 0x19f   :  { %v639_v59 = vadd.f32 %v638_v47, %v8156_v61 }
 0x1a0   :  { %982 = vrot.lane.b32.xlu0 %v930_v51, %s7727_s2 }
 0x1a1   :  { %v812_v0 = vpop.f32.mrf.mxu3 }
 0x1a2   :  { %v813_v48 = vadd.f32 %v812_v0, %v754_v53 }
 0x1a3   :  { %v697_v55 = vpop.f32.mrf.mxu1 }
 0x1a4   :  { %v863_v56 = vmul.f32 %v8217_v33, %v813_v48  ;;  %v756_v57 = vpop.f32.mrf.mxu2  ;;  %v698_v3 = vadd.f32 %v697_v55, %v639_v59  ;;  %v724_v55 = vadd.f32 %v8233_v41, %v291_v28 }
 0x1a5   :  { %v757_v6 = vadd.f32 %v756_v57, %v8156_v61 }
 0x1a6   :  { %v640_v60 = vpop.f32.mrf.mxu0  ;;  %v931_v63 = vpack.c.bf16 %v863_v56, %v862_v15  ;;  %v864_v12 = vmul.f32 %v8213_v31, %v698_v3 }
 0x1a7   :  { %v641_v11 = vadd.f32 %v640_v60, %v8130_v49  ;;  %v606_v60 = vadd.f32 %v8209_v29, %v291_v28 }
 0x1a8   :  { %984 = vrot.lane.b32.xlu1 %v931_v63, %s7727_s2  ;;  %v783_v63 = vadd.f32 %v8243_v50, %v724_v55 }
 0x1a9   :  { %v815_v4 = vpop.f32.mrf.mxu3  ;;  %v665_v41 = vadd.f32 %v8228_v39, %v606_v60 }
 0x1aa   :  { %v816_v7 = vadd.f32 %v815_v4, %v757_v6  ;;  %v839_v29 = vmul.f32 %v8217_v33, %v783_v63 }
 0x1ab   :  { %v699_v8 = vpop.f32.mrf.mxu1 }
 0x1ac   :  { %v865_v32 = vmul.f32 %v8217_v33, %v816_v7  ;;  %v758_v9 = vpop.f32.mrf.mxu2  ;;  %v700_v17 = vadd.f32 %v699_v8, %v641_v11 }
 0x1ad   :  { %v759_v18 = vadd.f32 %v758_v9, %v8130_v49 }
 0x1ae   :  { %v643_v13 = vpop.f32.mrf.mxu0  ;;  %v932_v14 = vpack.c.bf16 %v865_v32, %v864_v12  ;;  %v866_v21 = vmul.f32 %v8213_v31, %v700_v17 }
 0x1af   :  { %v644_v2 = vadd.f32 %v643_v13, %v8138_v54 }
 0x1b0   :  { %986 = vrot.lane.b32.xlu2 %v932_v14, %s7727_s2  ;;  %v838_v14 = vmul.f32 %v8213_v31, %v665_v41 }
 0x1b1   :  { %v817_v61 = vpop.f32.mrf.mxu3 }
 0x1b2   :  { %v818_v19 = vadd.f32 %v817_v61, %v759_v18 }
 0x1b3   :  { %v702_v20 = vpop.f32.mrf.mxu1 }
 0x1b4   :  { %v867_v22 = vmul.f32 %v8217_v33, %v818_v19  ;;  %v761_v16 = vpop.f32.mrf.mxu2  ;;  %v703_v25 = vadd.f32 %v702_v20, %v644_v2 }
 0x1b5   :  { %v762_v26 = vadd.f32 %v761_v16, %v8138_v54 }
 0x1b6   :  { %v933_v23 = vpack.c.bf16 %v867_v22, %v866_v21  ;;  %v645_v24 = vpop.f32.mrf.mxu0  ;;  %v868_v34 = vmul.f32 %v8213_v31, %v703_v25  ;;  %v919_v22 = vpack.c.bf16 %v839_v29, %v838_v14 }
 0x1b7   :  { %v646_v62 = vadd.f32 %v645_v24, %v8180_v10 }
 0x1b8   :  { %988 = vrot.lane.b32.xlu0 %v933_v23, %s7727_s2 }
 0x1b9   :  { %v820_v49 = vpop.f32.mrf.mxu3 }
 0x1ba   :  { %v821_v27 = vadd.f32 %v820_v49, %v762_v26 }
 0x1bb   :  { %v704_v30 = vpop.f32.mrf.mxu1 }
 0x1bc   :  { %v869_v35 = vmul.f32 %v8217_v33, %v821_v27  ;;  %v763_v36 = vpop.f32.mrf.mxu2  ;;  %v705_v42 = vadd.f32 %v704_v30, %v646_v62 }
 0x1bd   :  { %v764_v43 = vadd.f32 %v763_v36, %v8180_v10 }
 0x1be   :  { %v934_v37 = vpack.c.bf16 %v869_v35, %v868_v34  ;;  %v648_v54 = vpop.f32.mrf.mxu0  ;;  %v870_v10 = vmul.f32 %v8213_v31, %v705_v42 }
 0x1bf   :  { %v649_v3 = vadd.f32 %v648_v54, %v8148_v58 }
 0x1c0   :  { %990 = vrot.lane.b32.xlu2 %v934_v37, %s7727_s2 }
 0x1c1   :  { %v822_v45 = vpop.f32.mrf.mxu3 }
 0x1c2   :  { %v823_v46 = vadd.f32 %v822_v45, %v764_v43  ;;  %v969_v47 = vpop.permute.xlu2 %968  ;;  %v963_v51 = vpop.permute.xlu0 %962 }
 0x1c3   :  { %v1003_v53 = vrot.slane %v969_v47, 4  ;;  %v1000_v0 = vrot.slane %v963_v51, 4  ;;  %v707_v48 = vpop.f32.mrf.mxu1 }
 0x1c4   :  { %v871_v15 = vmul.f32 %v8217_v33, %v823_v46  ;;  %v766_v56 = vpop.f32.mrf.mxu2  ;;  %v708_v4 = vadd.f32 %v707_v48, %v649_v3 }
 0x1c5   :  { %v1024_v57 = vsel %vm1018_vm14, %v1003_v53, %v969_v47  ;;  %v1021_v59 = vsel %vm1018_vm14, %v1000_v0, %v963_v51  ;;  %v767_v7 = vadd.f32 %v766_v56, %v8148_v58 }
 0x1c6   :  { %1067 = vst.msk [vmem:[#allocation3 + $0x3c] sm:$0xff] %vm8318_vm15, %v1024_v57  ;;  %v935_v6 = vpack.c.bf16 %v871_v15, %v870_v10  ;;  %v650_v9 = vpop.f32.mrf.mxu0  ;;  %v872_v17 = vmul.f32 %v8213_v31, %v708_v4 }
 0x1c7   :  { %1064 = vst.msk [vmem:[#allocation3 + $0x18] sm:$0xff] %vm8318_vm15, %v1021_v59  ;;  %v651_v20 = vadd.f32 %v650_v9, %v8164_v1 }
 0x1c8   :  { %992 = vrot.lane.b32.xlu0 %v935_v6, %s7727_s2 }
 0x1c9   :  { %v825_v8 = vpop.f32.mrf.mxu3 }
 0x1ca   :  { %v826_v50 = vadd.f32 %v825_v8, %v767_v7  ;;  %v971_v12 = vpop.permute.xlu2 %970  ;;  %v965_v32 = vpop.permute.xlu1 %964 }
 0x1cb   :  { %v1004_v11 = vrot.slane %v971_v12, 4  ;;  %v1001_v13 = vrot.slane %v965_v32, 4  ;;  %v709_v61 = vpop.f32.mrf.mxu1 }
 0x1cc   :  { %v873_v39 = vmul.f32 %v8217_v33, %v826_v50  ;;  %v768_v19 = vpop.f32.mrf.mxu2  ;;  %v710_v16 = vadd.f32 %v709_v61, %v651_v20 }
 0x1cd   :  { %v1025_v18 = vsel %vm1018_vm14, %v1004_v11, %v971_v12  ;;  %v1022_v58 = vsel %vm1018_vm14, %v1001_v13, %v965_v32  ;;  %v769_v2 = vadd.f32 %v768_v19, %v8164_v1  ;;  %v6384_v1 = vld [vmem:[#allocation3 + $0x3c] sm:$0xf0]  ;;  %v7498_v62 = vld [vmem:[#allocation3 + $0x38] sm:$0xf0] }
 0x1ce   :  { %1068 = vst.msk [vmem:[#allocation3 + $0x48] sm:$0xff] %vm8318_vm15, %v1025_v18  ;;  %v936_v21 = vpack.c.bf16 %v873_v39, %v872_v17  ;;  %v874_v49 = vmul.f32 %v8213_v31, %v710_v16 }
 0x1cf   :  { %1065 = vst.msk [vmem:[#allocation3 + $0x24] sm:$0xff] %vm8318_vm15, %v1022_v58 }
 0x1d0   :  { %994 = vrot.lane.b32.xlu1 %v936_v21, %s7727_s2  ;;  %960 = vrot.lane.b32.xlu0 %v919_v22, %s7727_s2 }
 0x1d1   :  { %v827_v23 = vpop.f32.mrf.mxu3 }
 0x1d2   :  { %v828_v24 = vadd.f32 %v827_v23, %v769_v2  ;;  %v967_v25 = vpop.permute.xlu1 %966 }
 0x1d3   :  { %v1002_v26 = vrot.slane %v967_v25, 4 }
 0x1d4   :  { %v875_v27 = vmul.f32 %v8217_v33, %v828_v24  ;;  %v6374_v33 = vld [vmem:[#allocation3 + $0x18] sm:$0xf] }
 0x1d5   :  { %v1023_v30 = vsel %vm1018_vm14, %v1002_v26, %v967_v25  ;;  %v6390_v38 = vld [vmem:[#allocation3 + $0x48] sm:$0xf]  ;;  %v7499_v48 = vld [vmem:[#allocation3 + $0x4c] sm:$0xf] }
 0x1d6   :  { %1066 = vst.msk [vmem:[#allocation3 + $0x30] sm:$0xff] %vm8318_vm15, %v1023_v30  ;;  %v937_v34 = vpack.c.bf16 %v875_v27, %v874_v49  ;;  %v7496_v31 = vld [vmem:[#allocation3 + $0x20] sm:$0xf0]  ;;  %v6376_v52 = vld [vmem:[#allocation3 + $0x24] sm:$0xf0] }
 0x1d7   :  { %v8369_v42 = vor.u32 %v7496_v31, %v6374_v33 }
 0x1d8   :  { %996 = vrot.lane.b32.xlu2 %v937_v34, %s7727_s2 }
 0x1dd   :  { %v7497_v35 = vld [vmem:[#allocation3 + $0x34] sm:$0xf]  ;;  %v6382_v36 = vld [vmem:[#allocation3 + $0x30] sm:$0xf] }
 0x1de   :  { %v8357_v37 = vor.u32 %v7497_v35, %v6384_v1  ;;  %v8359_v28 = vor.u32 %v7498_v62, %v6382_v36 }
 0x1e0   :  { %1230 = vrot.lane.b32.xlu1 %v8357_v37, %s7725_s12  ;;  %1228 = vrot.lane.b32.xlu0 %v8359_v28, %s7725_s12 }
 0x1e1   :  { %958 = vrot.lane.b32.xlu2 %v918_v44, %s7727_s2 }
 0x1e9   :  { %1224 = vrot.lane.b32.xlu2 %v8369_v42, %s7725_s12 }
 0x1ea   :  { %v973_v43 = vpop.permute.xlu0 %972 }
 0x1eb   :  { %v1005_v54 = vrot.slane %v973_v43, 4 }
 0x1ed   :  { %v1026_v45 = vsel %vm1018_vm14, %v1005_v54, %v973_v43 }
 0x1ee   :  { %1069 = vst.msk [vmem:[#allocation3 + $0x54] sm:$0xff] %vm8318_vm15, %v1026_v45 }
 0x1f2   :  { %v981_v46 = vpop.permute.xlu2 %980  ;;  %v975_v47 = vpop.permute.xlu0 %974 }
 0x1f3   :  { %v1009_v51 = vrot.slane %v981_v46, 4  ;;  %v1006_v53 = vrot.slane %v975_v47, 4 }
 0x1f5   :  { %v1030_v40 = vsel %vm1018_vm14, %v1009_v51, %v981_v46  ;;  %v1027_v44 = vsel %vm1018_vm14, %v1006_v53, %v975_v47  ;;  %v7500_v0 = vld [vmem:[#allocation3 + $0x50] sm:$0xf0]  ;;  %v6392_v55 = vld [vmem:[#allocation3 + $0x54] sm:$0xf0] }
 0x1f6   :  { %1073 = vst.msk [vmem:[#allocation3 + $0x84] sm:$0xff] %vm8318_vm15, %v1030_v40  ;;  %v8380_v10 = vor.u32 %v7500_v0, %v6390_v38  ;;  %v8382_v15 = vor.u32 %v7499_v48, %v6392_v55 }
 0x1f7   :  { %1070 = vst.msk [vmem:[#allocation3 + $0x60] sm:$0xff] %vm8318_vm15, %v1027_v44 }
 0x1f8   :  { %1232 = vrot.lane.b32.xlu1 %v8380_v10, %s7725_s12  ;;  %1234 = vrot.lane.b32.xlu2 %v8382_v15, %s7725_s12 }
 0x1fa   :  { %v977_v56 = vpop.permute.xlu1 %976 }
 0x1fb   :  { %v1007_v57 = vrot.slane %v977_v56, 4 }
 0x1fd   :  { %v1028_v59 = vsel %vm1018_vm14, %v1007_v57, %v977_v56  ;;  %v6408_v32 = vld [vmem:[#allocation3 + $0x84] sm:$0xf0]  ;;  %v7504_v14 = vld [vmem:[#allocation3 + $0x80] sm:$0xf0] }
 0x1fe   :  { %1071 = vst.msk [vmem:[#allocation3 + $0x6c] sm:$0xff] %vm8318_vm15, %v1028_v59  ;;  %v7501_v3 = vld [vmem:[#allocation3 + $0x64] sm:$0xf]  ;;  %v6398_v4 = vld [vmem:[#allocation3 + $0x60] sm:$0xf] }
 0x202   :  { %v979_v60 = vpop.permute.xlu1 %978 }
 0x203   :  { %v1008_v63 = vrot.slane %v979_v60, 4 }
 0x205   :  { %v1029_v6 = vsel %vm1018_vm14, %v1008_v63, %v979_v60  ;;  %v6400_v41 = vld [vmem:[#allocation3 + $0x6c] sm:$0xf0]  ;;  %v7502_v7 = vld [vmem:[#allocation3 + $0x68] sm:$0xf0] }
 0x206   :  { %1072 = vst.msk [vmem:[#allocation3 + $0x78] sm:$0xff] %vm8318_vm15, %v1029_v6  ;;  %v8396_v8 = vor.u32 %v7501_v3, %v6400_v41  ;;  %v8398_v29 = vor.u32 %v7502_v7, %v6398_v4 }
 0x208   :  { %1238 = vrot.lane.b32.xlu0 %v8396_v8, %s7725_s12  ;;  %1236 = vrot.lane.b32.xlu2 %v8398_v29, %s7725_s12 }
 0x20a   :  { %v987_v50 = vpop.permute.xlu2 %986 }
 0x20b   :  { %v1012_v12 = vrot.slane %v987_v50, 4 }
 0x20d   :  { %v1033_v9 = vsel %vm1018_vm14, %v1012_v12, %v987_v50  ;;  %v7503_v11 = vld [vmem:[#allocation3 + $0x7c] sm:$0xf]  ;;  %v6406_v13 = vld [vmem:[#allocation3 + $0x78] sm:$0xf] }
 0x20e   :  { %1076 = vst.msk [vmem:[#allocation3 + $0xa8] sm:$0xff] %vm8318_vm15, %v1033_v9  ;;  %v8407_v17 = vor.u32 %v7503_v11, %v6408_v32  ;;  %v8409_v39 = vor.u32 %v7504_v14, %v6406_v13 }
 0x210   :  { %1242 = vrot.lane.b32.xlu1 %v8407_v17, %s7725_s12  ;;  %1240 = vrot.lane.b32.xlu0 %v8409_v39, %s7725_s12 }
 0x212   :  { %v983_v18 = vpop.permute.xlu0 %982 }
 0x213   :  { %v1010_v58 = vrot.slane %v983_v18, 4 }
 0x215   :  { %v1031_v61 = vsel %vm1018_vm14, %v1010_v58, %v983_v18  ;;  %v6422_v62 = vld [vmem:[#allocation3 + $0xa8] sm:$0xf]  ;;  %v7507_v43 = vld [vmem:[#allocation3 + $0xac] sm:$0xf] }
 0x216   :  { %1074 = vst.msk [vmem:[#allocation3 + $0x90] sm:$0xff] %vm8318_vm15, %v1031_v61  ;;  %v7495_v61 = vld [vmem:[#allocation3 + $0x1c] sm:$0xf] }
 0x21a   :  { %v991_v19 = vpop.permute.xlu2 %990  ;;  %v985_v20 = vpop.permute.xlu1 %984 }
 0x21b   :  { %v1014_v21 = vrot.slane %v991_v19, 4  ;;  %v1011_v22 = vrot.slane %v985_v20, 4 }
 0x21d   :  { %v1035_v16 = vsel %vm1018_vm14, %v1014_v21, %v991_v19  ;;  %v1032_v2 = vsel %vm1018_vm14, %v1011_v22, %v985_v20  ;;  %v7505_v23 = vld [vmem:[#allocation3 + $0x94] sm:$0xf]  ;;  %v6414_v25 = vld [vmem:[#allocation3 + $0x90] sm:$0xf]  ;;  %v8476_v20 = vor.u32 %v7495_v61, %v6376_v52 }
 0x21e   :  { %1078 = vst.msk [vmem:[#allocation3 + $0xc0] sm:$0xff] %vm8318_vm15, %v1035_v16 }
 0x21f   :  { %1075 = vst.msk [vmem:[#allocation3 + $0x9c] sm:$0xff] %vm8318_vm15, %v1032_v2 }
 0x225   :  { %v6430_v57 = vld [vmem:[#allocation3 + $0xc0] sm:$0xf]  ;;  %v7509_v3 = vld [vmem:[#allocation3 + $0xc4] sm:$0xf] }
 0x226   :  { %v6416_v24 = vld [vmem:[#allocation3 + $0x9c] sm:$0xf0]  ;;  %v7506_v26 = vld [vmem:[#allocation3 + $0x98] sm:$0xf0] }
 0x227   :  { %v8424_v49 = vor.u32 %v7505_v23, %v6416_v24  ;;  %v8426_v27 = vor.u32 %v7506_v26, %v6414_v25 }
 0x229   :  { %1246 = vrot.lane.b32.xlu0 %v8424_v49, %s7725_s12  ;;  %1244 = vrot.lane.b32.xlu2 %v8426_v27, %s7725_s12 }
 0x22a   :  { %v989_v30 = vpop.permute.xlu0 %988 }
 0x22b   :  { %v1013_v34 = vrot.slane %v989_v30, 4 }
 0x22d   :  { %v1034_v1 = vsel %vm1018_vm14, %v1013_v34, %v989_v30 }
 0x22e   :  { %1077 = vst.msk [vmem:[#allocation3 + $0xb4] sm:$0xff] %vm8318_vm15, %v1034_v1 }
 0x232   :  { %v997_v35 = vpop.permute.xlu2 %996 }
 0x233   :  { %v1017_v36 = vrot.slane %v997_v35, 4 }
 0x235   :  { %v1038_v31 = vsel %vm1018_vm14, %v1017_v36, %v997_v35  ;;  %v7508_v33 = vld [vmem:[#allocation3 + $0xb0] sm:$0xf0]  ;;  %v6424_v54 = vld [vmem:[#allocation3 + $0xb4] sm:$0xf0] }
 0x236   :  { %1084 = vst.msk [vmem:[#allocation3 + $0xe4] sm:$0x11] %vm1083_vm2, %v1038_v31  ;;  %v8436_v45 = vor.u32 %v7508_v33, %v6422_v62  ;;  %v8438_v46 = vor.u32 %v7507_v43, %v6424_v54  ;;  %vm6155_vm2 = vcmask 64512  }
 0x238   :  { %1248 = vrot.lane.b32.xlu1 %v8436_v45, %s7725_s12  ;;  %1250 = vrot.lane.b32.xlu2 %v8438_v46, %s7725_s12 }
 0x23a   :  { %v993_v47 = vpop.permute.xlu0 %992 }
 0x23b   :  { %v1015_v51 = vrot.slane %v993_v47, 4  ;;  %v959_v53 = vpop.permute.xlu2 %958 }
 0x23c   :  { %v998_v38 = vrot.slane %v959_v53, 4 }
 0x23d   :  { %v1036_v40 = vsel %vm1018_vm14, %v1015_v51, %v993_v47  ;;  %v6440_v7 = vld [vmem:[#allocation3 + $0xe4] sm:$0x10]  ;;  %v7512_v32 = vld [vmem:[#allocation3 + $0xe0] sm:$0x10] }
 0x23e   :  { %1079 = vst.msk [vmem:[#allocation3 + $0xcc] sm:$0xff] %vm8318_vm15, %v1036_v40  ;;  %v1019_v44 = vsel %vm1018_vm14, %v998_v38, %v959_v53 }
 0x23f   :  { %1062 = vst.msk [vmem:[#allocation3] sm:$0xff] %vm8318_vm15, %v1019_v44 }
 0x242   :  { %v995_v0 = vpop.permute.xlu1 %994  ;;  %v961_v48 = vpop.permute.xlu0 %960 }
 0x243   :  { %v1016_v55 = vrot.slane %v995_v0, 4  ;;  %v999_v56 = vrot.slane %v961_v48, 4  ;;  %v8510_v22 = vpop.permute.xlu2 %1224 }
 0x245   :  { %v1037_v59 = vsel %vm1018_vm14, %v1016_v55, %v995_v0  ;;  %v1020_v60 = vsel %vm1018_vm14, %v999_v56, %v961_v48  ;;  %v7510_v63 = vld [vmem:[#allocation3 + $0xc8] sm:$0xf0]  ;;  %v6432_v6 = vld [vmem:[#allocation3 + $0xcc] sm:$0xf0]  ;;  %v8601_v56 = vld [vmem:[%s12090_s4 + $0x48] sm:$0x33] }
 0x246   :  { %1080 = vst.msk [vmem:[#allocation3 + $0xd8] sm:$0xff] %vm8318_vm15, %v1037_v59  ;;  %v8454_v41 = vor.u32 %v7510_v63, %v6430_v57  ;;  %v8456_v4 = vor.u32 %v7509_v3, %v6432_v6  ;;  %v7493_v13 = vld [vmem:[#allocation3 + $0x4] sm:$0xf]  ;;  %v6366_v19 = vld [vmem:[#allocation3] sm:$0xf]  ;;  %v1130_v63 = vunpack.c.h.b16 %v8601_v56  ;;  %vm6147_vm14 = vcmask 31744  }
 0x247   :  { %1063 = vst.msk [vmem:[#allocation3 + $0xc] sm:$0xff] %vm8318_vm15, %v1020_v60  ;;  %v7513_v3 = vld [vmem:[%s12090_s4 + $0x2c] sm:$0xf]  ;;  %v6352_v6 = vld [vmem:[%s12090_s4 + $0x30] sm:$0xf0]  ;;  %vm6149_vm15 = vcmask 39936  }
 0x248   :  { %1252 = vrot.lane.b32.xlu1 %v8454_v41, %s7725_s12  ;;  %1254 = vrot.lane.b32.xlu2 %v8456_v4, %s7725_s12 }
 0x24d   :  { %v7511_v50 = vld [vmem:[#allocation3 + $0xdc] sm:$0xf]  ;;  %v6438_v12 = vld [vmem:[#allocation3 + $0xd8] sm:$0xf] }
 0x24e   :  { %v8464_v9 = vor.u32 %v7511_v50, %v6440_v7  ;;  %v8466_v11 = vor.u32 %v7512_v32, %v6438_v12  ;;  %v6368_v14 = vld [vmem:[#allocation3 + $0xc] sm:$0xf0]  ;;  %v7494_v58 = vld [vmem:[#allocation3 + $0x8] sm:$0xf0]  ;;  %v8623_v12 = vor.u32 %v7513_v3, %v6352_v6  ;;  %v8625_v32 = vpack.c.b16 %v1130_v63, %v1130_v63  ;;  %v7491_v63 = vld [vmem:[%s12090_s4 + $0x14] sm:$0xf] }
 0x24f   :  { %v8468_v18 = vor.u32 %v7493_v13, %v6368_v14  ;;  %v8478_v21 = vor.u32 %v7494_v58, %v6366_v19  ;;  %v6350_v19 = vld [vmem:[%s12090_s4 + $0x28] sm:$0xf]  ;;  %v6462_v3 = vld [vmem:[%s12090_s4 + $0x18] sm:$0xf0] }
 0x250   :  { %1258 = vrot.lane.b32.xlu1 %v8464_v9, %s7725_s12  ;;  %1256 = vrot.lane.b32.xlu0 %v8466_v11, %s7725_s12  ;;  %v1449_v52 = vsel %vm1298_vm12, %v8466_v11, 0 }
 0x251   :  { %1222 = vrot.lane.b32.xlu2 %v8468_v18, %s7725_s12 }
 0x252   :  { %v8518_v16 = vpop.permute.xlu2 %1234  ;;  %v8532_v23 = vpop.permute.xlu1 %1230 }
 0x253   :  { %v1229_v25 = vpop.permute.xlu0 %1228 }
 0x254   :  { %v1262_v0 = vsel %vm74_vm7, %v1229_v25, %v8532_v23  ;;  %v7516_v25 = vld [vmem:[%s12090_s4 + $0x3c] sm:$0xf0] }
 0x258   :  { %1226 = vrot.lane.b32.xlu0 %v8476_v20, %s7725_s12  ;;  %1220 = vrot.lane.b32.xlu1 %v8478_v21, %s7725_s12 }
 0x259   :  { %1604 = vrot.lane.b32.xlu2 %v8436_v45, %s7724_s30 }
 0x260   :  { %1606 = vrot.lane.b32.xlu0 %v8438_v46, %s7724_s30  ;;  %1602 = vrot.lane.b32.xlu1 %v8424_v49, %s7724_s30 }
 0x261   :  { %1594 = vrot.lane.b32.xlu2 %v8396_v8, %s7724_s30 }
 0x262   :  { %v1237_v2 = vpop.permute.xlu2 %1236 }
 0x268   :  { %1598 = vrot.lane.b32.xlu0 %v8407_v17, %s7724_s30  ;;  %1600 = vrot.lane.b32.xlu1 %v8426_v27, %s7724_s30 }
 0x269   :  { %1592 = vrot.lane.b32.xlu2 %v8398_v29, %s7724_s30 }
 0x26a   :  { %v1233_v26 = vpop.permute.xlu1 %1232 }
 0x26b   :  { %v1263_v44 = vsel %vm74_vm7, %v1233_v26, %v8518_v16 }
 0x270   :  { %1596 = vrot.lane.b32.xlu0 %v8409_v39, %s7724_s30  ;;  %1590 = vrot.lane.b32.xlu1 %v8382_v15, %s7724_s30 }
 0x271   :  { %1588 = vrot.lane.b32.xlu2 %v8380_v10, %s7724_s30 }
 0x278   :  { %1610 = vrot.lane.b32.xlu0 %v8456_v4, %s7724_s30  ;;  %1586 = vrot.lane.b32.xlu1 %v8357_v37, %s7724_s30 }
 0x279   :  { %1582 = vrot.lane.b32.xlu2 %v8476_v20, %s7724_s30 }
 0x27a   :  { %v8542_v34 = vpop.permute.xlu0 %1238 }
 0x27b   :  { %v1264_v53 = vsel %vm74_vm7, %v1237_v2, %v8542_v34  ;;  %v7514_v2 = vld [vmem:[%s12090_s4 + $0x2c] sm:$0xf0] }
 0x280   :  { %1584 = vrot.lane.b32.xlu0 %v8359_v28, %s7724_s30  ;;  %1608 = vrot.lane.b32.xlu1 %v8454_v41, %s7724_s30 }
 0x281   :  { %1578 = vrot.lane.b32.xlu2 %v8468_v18, %s7724_s30 }
 0x282   :  { %v8550_v1 = vpop.permute.xlu1 %1242  ;;  %v1241_v36 = vpop.permute.xlu0 %1240 }
 0x283   :  { %v1245_v24 = vpop.permute.xlu2 %1244  ;;  %v1265_v51 = vsel %vm74_vm7, %v1241_v36, %v8550_v1 }
 0x288   :  { %1580 = vrot.lane.b32.xlu0 %v8369_v42, %s7724_s30  ;;  %1576 = vrot.lane.b32.xlu1 %v8478_v21, %s7724_s30 }
 0x289   :  { %1821 = vrot.lane.b32.xlu2 %v8438_v46, %s7723_s29 }
 0x290   :  { %1817 = vrot.lane.b32.xlu0 %v8424_v49, %s7723_s29  ;;  %1819 = vrot.lane.b32.xlu1 %v8436_v45, %s7723_s29 }
 0x291   :  { %1813 = vrot.lane.b32.xlu2 %v8407_v17, %s7723_s29 }
 0x292   :  { %v8540_v30 = vpop.permute.xlu2 %1250 }
 0x298   :  { %1815 = vrot.lane.b32.xlu0 %v8426_v27, %s7723_s29  ;;  %1809 = vrot.lane.b32.xlu1 %v8396_v8, %s7723_s29 }
 0x299   :  { %1811 = vrot.lane.b32.xlu2 %v8409_v39, %s7723_s29 }
 0x29b   :  { %v8564_v43 = vpop.permute.xlu0 %1246 }
 0x29c   :  { %v1266_v54 = vsel %vm74_vm7, %v1245_v24, %v8564_v43  ;;  %v6358_v24 = vld [vmem:[%s12090_s4 + $0x38] sm:$0xf] }
 0x29d   :  { %v8666_v36 = vor.u32 %v7516_v25, %v6358_v24  ;;  %v1089_v24 = vld [vmem:[%s12090_s4 + $0x20] sm:$0x33] }
 0x2a0   :  { %1805 = vrot.lane.b32.xlu0 %v8382_v15, %s7723_s29  ;;  %1807 = vrot.lane.b32.xlu1 %v8398_v29, %s7723_s29 }
 0x2a1   :  { %1825 = vrot.lane.b32.xlu2 %v8456_v4, %s7723_s29 }
 0x2a2   :  { %v8552_v35 = vpop.permute.xlu2 %1254 }
 0x2a8   :  { %1801 = vrot.lane.b32.xlu0 %v8357_v37, %s7723_s29  ;;  %1803 = vrot.lane.b32.xlu1 %v8380_v10, %s7723_s29 }
 0x2a9   :  { %1799 = vrot.lane.b32.xlu2 %v8359_v28, %s7723_s29 }
 0x2aa   :  { %v1249_v62 = vpop.permute.xlu1 %1248 }
 0x2ab   :  { %v8560_v31 = vpop.permute.xlu2 %1222  ;;  %v1267_v33 = vsel %vm74_vm7, %v1249_v62, %v8540_v30 }
 0x2ac   :  { %1305 = vmatpush.bf16.msrb.mxu0 %v1267_v33  ;;  %7687 = vmatpush.bf16.msrb.mxu1 %v1267_v33 }
 0x2b0   :  { %1823 = vrot.lane.b32.xlu0 %v8454_v41, %s7723_s29  ;;  %1797 = vrot.lane.b32.xlu1 %v8476_v20, %s7723_s29 }
 0x2b1   :  { %1795 = vrot.lane.b32.xlu2 %v8369_v42, %s7723_s29  ;;  %1306 = vmatpush.bf16.msrb.mxu0 %v1266_v54 }
 0x2b2   :  { %7688 = vmatpush.bf16.msrb.mxu1 %v1266_v54 }
 0x2b3   :  { %v8574_v47 = vpop.permute.xlu2 %1604 }
 0x2b5   :  { %1307 = vmatpush.bf16.msrb.mxu0 %v1265_v51 }
 0x2b6   :  { %7689 = vmatpush.bf16.msrb.mxu1 %v1265_v51  ;;  %v7515_v51 = vld [vmem:[%s12090_s4 + $0x3c] sm:$0xf] }
 0x2b8   :  { %1791 = vrot.lane.b32.xlu0 %v8478_v21, %s7723_s29  ;;  %1793 = vrot.lane.b32.xlu1 %v8468_v18, %s7723_s29 }
 0x2b9   :  { %2032 = vrot.lane.b32.xlu2 %v8424_v49, %s7721_s28  ;;  %1308 = vmatpush.bf16.msrb.mxu0 %v1264_v53 }
 0x2ba   :  { %7690 = vmatpush.bf16.msrb.mxu1 %v1264_v53  ;;  %v1253_v38 = vpop.permute.xlu1 %1252  ;;  %v7489_v53 = vld [vmem:[%s12090_s4 + $0x4] sm:$0xf] }
 0x2bb   :  { %v8586_v40 = vpop.permute.xlu2 %1594  ;;  %v1268_v7 = vsel %vm74_vm7, %v1253_v38, %v8552_v35  ;;  %v6454_v38 = vld [vmem:[%s12090_s4 + $0x8] sm:$0xf0] }
 0x2bd   :  { %1309 = vmatpush.bf16.msrb.mxu0 %v1263_v44 }
 0x2be   :  { %7691 = vmatpush.bf16.msrb.mxu1 %v1263_v44  ;;  %v8701_v44 = vor.u32 %v7489_v53, %v6454_v38  ;;  %v7492_v53 = vld [vmem:[%s12090_s4 + $0x14] sm:$0xf0] }
 0x2c0   :  { %2034 = vrot.lane.b32.xlu0 %v8436_v45, %s7721_s28  ;;  %2036 = vrot.lane.b32.xlu1 %v8438_v46, %s7721_s28 }
 0x2c1   :  { %2030 = vrot.lane.b32.xlu2 %v8426_v27, %s7721_s28  ;;  %1310 = vmatpush.bf16.msrb.mxu0 %v1262_v0 }
 0x2c2   :  { %7692 = vmatpush.bf16.msrb.mxu1 %v1262_v0  ;;  %v1259_v48 = vpop.permute.xlu1 %1258  ;;  %v1257_v55 = vpop.permute.xlu0 %1256 }
 0x2c3   :  { %v8603_v57 = vpop.permute.xlu2 %1592  ;;  %v1269_v59 = vsel %vm74_vm7, %v1257_v55, %v1259_v48  ;;  %v1303_v50 = vsel %vm1298_vm12, %v1259_v48, 0 }
 0x2c4   :  { %v1300_v60 = vsel %vm1298_vm12, %v1269_v59, 0  ;;  %v1129_v59 = vunpack.c.l.b16 %v8601_v56  ;;  %v1620_v25 = vsel %vm91_vm9, %v8603_v57, %v8586_v40 }
 0x2c5   :  { %1334 = vmatpush.bf16.msrb.mxu2 %v1300_v60  ;;  %7695 = vmatpush.bf16.msrb.mxu3 %v1300_v60 }
 0x2c8   :  { %2024 = vrot.lane.b32.xlu0 %v8396_v8, %s7721_s28  ;;  %2028 = vrot.lane.b32.xlu1 %v8407_v17, %s7721_s28 }
 0x2c9   :  { %2020 = vrot.lane.b32.xlu2 %v8382_v15, %s7721_s28  ;;  %1335 = vmatpush.bf16.msrb.mxu2 %v1268_v7 }
 0x2ca   :  { %7696 = vmatpush.bf16.msrb.mxu3 %v1268_v7  ;;  %v8627_v13 = vpop.permute.xlu0 %1226  ;;  %v1221_v14 = vpop.permute.xlu1 %1220 }
 0x2cb   :  { %v8631_v58 = vpop.permute.xlu2 %1588  ;;  %v1261_v61 = vsel %vm74_vm7, %v8510_v22, %v8627_v13  ;;  %v1452_v22 = vsel %vm1298_vm12, %v8464_v9, 0  ;;  %v1260_v26 = vsel %vm74_vm7, %v1221_v14, %v8560_v31  ;;  %vm877_vm7 = vcmask 257024  }
 0x2cc   :  { %1311 = vmatpush.bf16.msrb.mxu0 %v1261_v61  ;;  %7693 = vmatpush.bf16.msrb.mxu1 %v1261_v61  ;;  %906 = vst.msk [vmem:[#allocation3 + $0xb0] sm:$0xf] %vm877_vm7, %v12098_v5 }
 0x2cd   :  { %1380 = vmatpush.bf16.msra.mxu2 %v1303_v50  ;;  %6446 = vmatmul.msk.bf16.vlgmr.msrb.gmra.mxu3 %vm1288_vm13, %v8625_v32  ;;  %v6452_v50 = vld [vmem:[%s12090_s4] sm:$0xf]  ;;  %908 = vst.msk [vmem:[#allocation3 + $0xbc] sm:$0xf] %vm877_vm7, %v12098_v5 }
 0x2ce   :  { %1483 = vmatpush.bf16.msra.mxu3 %v1449_v52  ;;  %6444 = vmatmul.msk.bf16.vlgmr.msrb.gmra.mxu2 %vm1288_vm13, %v8623_v12  ;;  %878 = vst.msk [vmem:[#allocation3 + $0x8] sm:$0xf] %vm877_vm7, %v12098_v5 }
 0x2cf   :  { %880 = vst.msk [vmem:[#allocation3 + $0x14] sm:$0xf] %vm877_vm7, %v12098_v5 }
 0x2d0   :  { %2022 = vrot.lane.b32.xlu0 %v8398_v29, %s7721_s28  ;;  %2026 = vrot.lane.b32.xlu1 %v8409_v39, %s7721_s28  ;;  %882 = vst.msk [vmem:[#allocation3 + $0x20] sm:$0xf] %vm877_vm7, %v12098_v5 }
 0x2d1   :  { %1381 = vmatpush.bf16.msra.mxu2 %v8552_v35  ;;  %v8662_v35 = vor.u32 %v7514_v2, %v6350_v19  ;;  %2016 = vrot.lane.b32.xlu2 %v8357_v37, %s7721_s28  ;;  %884 = vst.msk [vmem:[#allocation3 + $0x2c] sm:$0xf] %vm877_vm7, %v12098_v5 }
 0x2d2   :  { %1484 = vmatpush.bf16.msra.mxu3 %v8454_v41  ;;  %1312 = vmatpush.bf16.msrb.mxu0 %v1260_v26  ;;  %v8669_v62 = vpop.permute.xlu0 %1606  ;;  %v8671_v33 = vpop.permute.xlu1 %1602  ;;  %886 = vst.msk [vmem:[#allocation3 + $0x38] sm:$0xf] %vm877_vm7, %v12098_v5 }
 0x2d3   :  { %7694 = vmatpush.bf16.msrb.mxu1 %v1260_v26  ;;  %v8674_v54 = vpop.permute.xlu2 %1582  ;;  %888 = vst.msk [vmem:[#allocation3 + $0x44] sm:$0xf] %vm877_vm7, %v12098_v5 }
 0x2d4   :  { %890 = vst.msk [vmem:[#allocation3 + $0x50] sm:$0xf] %vm877_vm7, %v12098_v5 }
 0x2d5   :  { %1529 = vmatpush.bf16.msrb.mxu2 %v1452_v22  ;;  %1313 = vmatmul.bf16.vlgmr.msrb.gmra.mxu0 %v8662_v35  ;;  %892 = vst.msk [vmem:[#allocation3 + $0x5c] sm:$0xf] %vm877_vm7, %v12098_v5 }
 0x2d6   :  { %1351 = vmatpush.bf16.msra.mxu0 %v8540_v30  ;;  %1318 = vmatmul.bf16.vlgmr.msrb.gmra.mxu1 %v8666_v36  ;;  %v6360_v30 = vld [vmem:[%s12090_s4 + $0x40] sm:$0xf0]  ;;  %894 = vst.msk [vmem:[#allocation3 + $0x68] sm:$0xf] %vm877_vm7, %v12098_v5 }
 0x2d7   :  { %1454 = vmatpush.bf16.msra.mxu1 %v8436_v45  ;;  %896 = vst.msk [vmem:[#allocation3 + $0x74] sm:$0xf] %vm877_vm7, %v12098_v5 }
 0x2d8   :  { %1614 = vrot.lane.b32.xlu0 %v8464_v9, %s7724_s30  ;;  %1612 = vrot.lane.b32.xlu1 %v8466_v11, %s7724_s30  ;;  %898 = vst.msk [vmem:[#allocation3 + $0x80] sm:$0xf] %vm877_vm7, %v12098_v5 }
 0x2d9   :  { %1530 = vmatpush.bf16.msrb.mxu2 %v8456_v4  ;;  %2038 = vrot.lane.b32.xlu2 %v8454_v41, %s7721_s28  ;;  %900 = vst.msk [vmem:[#allocation3 + $0x8c] sm:$0xf] %vm877_vm7, %v12098_v5 }
 0x2da   :  { %1352 = vmatpush.bf16.msra.mxu0 %v8564_v43  ;;  %v8699_v43 = vor.u32 %v7515_v51, %v6360_v30  ;;  %v8704_v0 = vpop.permute.xlu0 %1598  ;;  %v1601_v48 = vpop.permute.xlu1 %1600  ;;  %v6460_v30 = vld [vmem:[%s12090_s4 + $0x10] sm:$0xf]  ;;  %902 = vst.msk [vmem:[#allocation3 + $0x98] sm:$0xf] %vm877_vm7, %v12098_v5 }
 0x2db   :  { %1455 = vmatpush.bf16.msra.mxu1 %v8426_v27  ;;  %v8707_v55 = vpop.permute.xlu2 %1578  ;;  %v8828_v38 = vor.u32 %v7492_v53, %v6460_v30  ;;  %904 = vst.msk [vmem:[#allocation3 + $0xa4] sm:$0xf] %vm877_vm7, %v12098_v5 }
 0x2dc   :  { %910 = vst.msk [vmem:[#allocation3 + $0xc8] sm:$0xf] %vm877_vm7, %v12098_v5 }
 0x2dd   :  { %6466 = vmatmul.msk.bf16.vlgmr.msra.gmra.mxu3 %vm1288_vm13, %v8701_v44  ;;  %912 = vst.msk [vmem:[#allocation3 + $0xd4] sm:$0xf] %vm877_vm7, %v12098_v5 }
 0x2de   :  { %1353 = vmatpush.bf16.msra.mxu0 %v8550_v1  ;;  %6445 = vmatmul.msk.bf16.gmra.mxu2 %vm1288_vm13, %v8699_v43  ;;  %v8722_v1 = vpack.c.b16 %v1129_v59, %v1129_v59  ;;  %914 = vst.msk [vmem:[#allocation3 + $0xe0] sm:$0xf] %vm877_vm7, %v12098_v5  ;;  %vm6161_vm7 = vcmask 89088  }
 0x2df   :  { %1456 = vmatpush.bf16.msra.mxu1 %v8409_v39 }
 0x2e0   :  { %2018 = vrot.lane.b32.xlu0 %v8380_v10, %s7721_s28  ;;  %2040 = vrot.lane.b32.xlu1 %v8456_v4, %s7721_s28 }
 0x2e1   :  { %2006 = vrot.lane.b32.xlu2 %v8478_v21, %s7721_s28 }
 0x2e2   :  { %1354 = vmatpush.bf16.msra.mxu0 %v8542_v34  ;;  %v1597_v56 = vpop.permute.xlu0 %1596  ;;  %v8725_v60 = vpop.permute.xlu1 %1590 }
 0x2e3   :  { %1457 = vmatpush.bf16.msra.mxu1 %v8398_v29  ;;  %v8728_v34 = vpop.permute.xlu2 %1821  ;;  %v1621_v19 = vsel %vm91_vm9, %v1597_v56, %v8704_v0  ;;  %v1619_v57 = vsel %vm91_vm9, %v8631_v58, %v8725_v60 }
 0x2e6   :  { %1355 = vmatpush.bf16.msra.mxu0 %v8518_v16  ;;  %1323 = vmatmul.bf16.gmra.mxu1 %v8722_v1  ;;  %v8745_v16 = vor.u32 %v7491_v63, %v6462_v3 }
 0x2e7   :  { %1458 = vmatpush.bf16.msra.mxu1 %v8380_v10 }
 0x2e8   :  { %2012 = vrot.lane.b32.xlu0 %v8476_v20, %s7721_s28  ;;  %2014 = vrot.lane.b32.xlu1 %v8359_v28, %s7721_s28 }
 0x2e9   :  { %2249 = vrot.lane.b32.xlu2 %v8436_v45, %s7720_s27 }
 0x2ea   :  { %1356 = vmatpush.bf16.msra.mxu0 %v8532_v23  ;;  %v8748_v23 = vpop.permute.xlu0 %1610  ;;  %v8750_v6 = vpop.permute.xlu1 %1586 }
 0x2eb   :  { %1459 = vmatpush.bf16.msra.mxu1 %v8359_v28  ;;  %v8753_v7 = vpop.permute.xlu2 %1813 }
 0x2ed   :  { %6467 = vmatmul.msk.bf16.gmra.mxu3 %vm1288_vm13, %v8745_v16 }
 0x2ee   :  { %1357 = vmatpush.bf16.msra.mxu0 %v8627_v13  ;;  %6447 = vmatmul.msk.bf16.vlgmr.msra.gmra.mxu2 %vm1288_vm13, %v8623_v12  ;;  %v7490_v13 = vld [vmem:[%s12090_s4 + $0x4] sm:$0xf0]  ;;  %v1623_v12 = vsel %vm91_vm9, %v8574_v47, %v8669_v62  ;;  %v1622_v47 = vsel %vm91_vm9, %v1601_v48, %v8671_v33 }
 0x2ef   :  { %1460 = vmatpush.bf16.msra.mxu1 %v8369_v42 }
 0x2f0   :  { %2008 = vrot.lane.b32.xlu0 %v8468_v18, %s7721_s28  ;;  %2010 = vrot.lane.b32.xlu1 %v8369_v42, %s7721_s28 }
 0x2f1   :  { %2239 = vrot.lane.b32.xlu2 %v8396_v8, %s7720_s27 }
 0x2f2   :  { %1358 = vmatpush.bf16.msra.mxu0 %v8560_v31  ;;  %v8777_v31 = vor.u32 %v7490_v13, %v6452_v50  ;;  %v1585_v14 = vpop.permute.xlu0 %1584  ;;  %v8780_v52 = vpop.permute.xlu1 %1608 }
 0x2f3   :  { %1461 = vmatpush.bf16.msra.mxu1 %v8478_v21  ;;  %v8785_v61 = vpop.permute.xlu2 %1811  ;;  %v1618_v48 = vsel %vm91_vm9, %v1585_v14, %v8750_v6 }
 0x2f5   :  { %1359 = vmatmul.bf16.vlgmr.msra.gmra.mxu0 %v8662_v35  ;;  %v1411_v35 = vunpack.c.h.b16 %v1089_v24 }
 0x2f6   :  { %1500 = vmatpush.bf16.msrb.mxu0 %v8438_v46  ;;  %1462 = vmatmul.bf16.vlgmr.msra.gmra.mxu1 %v8777_v31 }
 0x2f7   :  { %1659 = vmatpush.bf16.msrb.mxu1 %v1623_v12  ;;  %v8808_v51 = vpack.c.b16 %v1411_v35, %v1411_v35  ;;  %v1410_v12 = vunpack.c.l.b16 %v1089_v24  ;;  %v7518_v24 = vld [vmem:[%s12090_s4 + $0x54] sm:$0xf0] }
 0x2f8   :  { %2251 = vrot.lane.b32.xlu0 %v8438_v46, %s7720_s27  ;;  %2247 = vrot.lane.b32.xlu1 %v8424_v49, %s7720_s27 }
 0x2f9   :  { %1829 = vrot.lane.b32.xlu2 %v8464_v9, %s7723_s29 }
 0x2fa   :  { %1501 = vmatpush.bf16.msrb.mxu0 %v8424_v49  ;;  %v1581_v2 = vpop.permute.xlu0 %1580  ;;  %v1577_v22 = vpop.permute.xlu1 %1576 }
 0x2fb   :  { %1660 = vmatpush.bf16.msrb.mxu1 %v1622_v47  ;;  %v8804_v26 = vpop.permute.xlu2 %1825  ;;  %v1617_v56 = vsel %vm91_vm9, %v1581_v2, %v8674_v54  ;;  %v1616_v3 = vsel %vm91_vm9, %v1577_v22, %v8707_v55  ;;  %v8868_v47 = vpack.c.b16 %v1410_v12, %v1410_v12  ;;  %v6479_v22 = vld [vmem:[%s12090_s4 + $0x50] sm:$0xf]  ;;  %v7522_v12 = vld [vmem:[%s12090_s4 + $0x7c] sm:$0xf0] }
 0x2fd   :  { %6468 = vmatmul.msk.bf16.gmra.mxu3 %vm1288_vm13, %v8808_v51 }
 0x2fe   :  { %1502 = vmatpush.bf16.msrb.mxu0 %v8407_v17  ;;  %6448 = vmatmul.msk.bf16.gmra.mxu2 %vm1288_vm13, %v8699_v43 }
 0x2ff   :  { %1661 = vmatpush.bf16.msrb.mxu1 %v1621_v19  ;;  %v1836_v19 = vsel %vm108_vm5, %v8785_v61, %v8753_v7 }
 0x300   :  { %2243 = vrot.lane.b32.xlu0 %v8407_v17, %s7720_s27  ;;  %2245 = vrot.lane.b32.xlu1 %v8426_v27, %s7720_s27 }
 0x301   :  { %2237 = vrot.lane.b32.xlu2 %v8398_v29, %s7720_s27 }
 0x302   :  { %1503 = vmatpush.bf16.msrb.mxu0 %v8396_v8  ;;  %v8831_v43 = vpop.permute.xlu0 %1817  ;;  %v1820_v58 = vpop.permute.xlu1 %1819 }
 0x303   :  { %1662 = vmatpush.bf16.msrb.mxu1 %v1620_v25  ;;  %v1800_v59 = vpop.permute.xlu2 %1799  ;;  %v1838_v13 = vsel %vm108_vm5, %v1820_v58, %v8728_v34 }
 0x305   :  { %1364 = vmatmul.bf16.gmra.mxu0 %v8666_v36 }
 0x306   :  { %1504 = vmatpush.bf16.msrb.mxu0 %v8382_v15  ;;  %1467 = vmatmul.bf16.gmra.mxu1 %v8828_v38 }
 0x307   :  { %1663 = vmatpush.bf16.msrb.mxu1 %v1619_v57 }
 0x308   :  { %1827 = vrot.lane.b32.xlu0 %v8466_v11, %s7723_s29  ;;  %2235 = vrot.lane.b32.xlu1 %v8382_v15, %s7720_s27 }
 0x309   :  { %2233 = vrot.lane.b32.xlu2 %v8380_v10, %s7720_s27 }
 0x30a   :  { %1505 = vmatpush.bf16.msrb.mxu0 %v8357_v37  ;;  %v1816_v36 = vpop.permute.xlu0 %1815  ;;  %v8846_v63 = vpop.permute.xlu1 %1809 }
 0x30b   :  { %1664 = vmatpush.bf16.msrb.mxu1 %v1618_v48  ;;  %v1796_v50 = vpop.permute.xlu2 %1795  ;;  %v1837_v14 = vsel %vm108_vm5, %v1816_v36, %v8831_v43 }
 0x30e   :  { %1506 = vmatpush.bf16.msrb.mxu0 %v8476_v20  ;;  %6449 = vmatmul.msk.bf16.gmra.mxu2 %vm1288_vm13, %v8625_v32 }
 0x30f   :  { %1665 = vmatpush.bf16.msrb.mxu1 %v1617_v56 }
 0x310   :  { %2241 = vrot.lane.b32.xlu0 %v8409_v39, %s7720_s27  ;;  %2231 = vrot.lane.b32.xlu1 %v8357_v37, %s7720_s27 }
 0x311   :  { %2227 = vrot.lane.b32.xlu2 %v8476_v20, %s7720_s27 }
 0x312   :  { %1507 = vmatpush.bf16.msrb.mxu0 %v8468_v18  ;;  %v1808_v32 = vpop.permute.xlu1 %1807 }
 0x313   :  { %1666 = vmatpush.bf16.msrb.mxu1 %v1616_v3 }
 0x315   :  { %1369 = vmatmul.bf16.gmra.mxu0 %v8722_v1  ;;  %v1835_v1 = vsel %vm108_vm5, %v1808_v32, %v8846_v63 }
 0x316   :  { %1705 = vmatpush.bf16.msra.mxu0 %v8669_v62  ;;  %v8866_v62 = vpop.permute.xlu0 %1805  ;;  %1472 = vmatmul.bf16.gmra.mxu1 %v8868_v47 }
 0x317   :  { %1874 = vmatpush.bf16.msra.mxu1 %v1838_v13  ;;  %v6506_v13 = vld [vmem:[%s12090_s4 + $0x78] sm:$0xf] }
 0x318   :  { %2255 = vrot.lane.b32.xlu0 %v8456_v4, %s7720_s27  ;;  %2253 = vrot.lane.b32.xlu1 %v8454_v41, %s7720_s27 }
 0x319   :  { %2223 = vrot.lane.b32.xlu2 %v8468_v18, %s7720_s27 }
 0x31a   :  { %1706 = vmatpush.bf16.msra.mxu0 %v8671_v33  ;;  %v8870_v33 = vpop.permute.xlu2 %2032  ;;  %v1804_v61 = vpop.permute.xlu1 %1803 }
 0x31b   :  { %1875 = vmatpush.bf16.msra.mxu1 %v1837_v14  ;;  %v1624_v14 = vsel %vm91_vm9, %v8780_v52, %v8748_v23  ;;  %v6722_v52 = vld [vmem:[#allocation3 + $0xb0] sm:$0xf] }
 0x31e   :  { %1707 = vmatpush.bf16.msra.mxu0 %v8704_v0  ;;  %v8886_v0 = vpop.permute.xlu0 %1801  ;;  %6469 = vmatmul.msk.bf16.vlgmr.msrb.gmra.mxu2 %vm1288_vm13, %v8701_v44 }
 0x31f   :  { %1876 = vmatpush.bf16.msra.mxu1 %v1836_v19 }
 0x320   :  { %2229 = vrot.lane.b32.xlu0 %v8359_v28, %s7720_s27  ;;  %2221 = vrot.lane.b32.xlu1 %v8478_v21, %s7720_s27 }
 0x321   :  { %2466 = vrot.lane.b32.xlu2 %v8438_v46, %s7719_s22 }
 0x322   :  { %1708 = vmatpush.bf16.msra.mxu0 %v8586_v40  ;;  %v2031_v2 = vpop.permute.xlu2 %2030  ;;  %v1834_v40 = vsel %vm108_vm5, %v1804_v61, %v8866_v62  ;;  %v8911_v25 = vpop.permute.xlu1 %1797 }
 0x323   :  { %1877 = vmatpush.bf16.msra.mxu1 %v1835_v1  ;;  %v1832_v30 = vsel %vm108_vm5, %v1796_v50, %v8911_v25  ;;  %v2052_v57 = vsel %vm125_vm4, %v2031_v2, %v8870_v33 }
 0x325   :  { %1508 = vmatmul.bf16.vlgmr.msrb.gmra.mxu0 %v8777_v31 }
 0x326   :  { %1709 = vmatpush.bf16.msra.mxu0 %v8725_v60  ;;  %v1833_v60 = vsel %vm108_vm5, %v1800_v59, %v8886_v0  ;;  %v8909_v44 = vpop.permute.xlu0 %1823 }
 0x327   :  { %1878 = vmatpush.bf16.msra.mxu1 %v1834_v40 }
 0x328   :  { %2225 = vrot.lane.b32.xlu0 %v8369_v42, %s7720_s27  ;;  %2464 = vrot.lane.b32.xlu1 %v8436_v45, %s7719_s22  ;;  %v6487_v45 = vld [vmem:[%s12090_s4 + $0x60] sm:$0xf] }
 0x329   :  { %2458 = vrot.lane.b32.xlu2 %v8407_v17, %s7719_s22  ;;  %v7520_v17 = vld [vmem:[%s12090_s4 + $0x64] sm:$0xf0] }
 0x32a   :  { %1710 = vmatpush.bf16.msra.mxu0 %v8750_v6  ;;  %v8913_v6 = vor.u32 %v7518_v24, %v6479_v22  ;;  %v8915_v35 = vpop.permute.xlu2 %2020  ;;  %v8929_v31 = vpop.permute.xlu1 %1793 }
 0x32b   :  { %1879 = vmatpush.bf16.msra.mxu1 %v1833_v60 }
 0x32c   :  { %1667 = vmatmul.bf16.vlgmr.msrb.gmra.mxu1 %v8913_v6 }
 0x32e   :  { %1711 = vmatpush.bf16.msra.mxu0 %v8674_v54  ;;  %v1792_v46 = vpop.permute.xlu0 %1791  ;;  %6470 = vmatmul.msk.bf16.gmra.mxu2 %vm1288_vm13, %v8745_v16  ;;  %v8956_v16 = vor.u32 %v7520_v17, %v6487_v45  ;;  %v7563_v45 = vld [vmem:[#allocation3 + $0xb0] sm:$0xf0] }
 0x32f   :  { %1880 = vmatpush.bf16.msra.mxu1 %v1832_v30  ;;  %v1831_v53 = vsel %vm108_vm5, %v1792_v46, %v8929_v31  ;;  %v6716_v46 = vld [vmem:[#allocation3 + $0xb4] sm:$0xf0] }
 0x330   :  { %2462 = vrot.lane.b32.xlu0 %v8424_v49, %s7719_s22  ;;  %2044 = vrot.lane.b32.xlu1 %v8464_v9, %s7721_s28 }
 0x331   :  { %2042 = vrot.lane.b32.xlu2 %v8466_v11, %s7721_s28 }
 0x332   :  { %1712 = vmatpush.bf16.msra.mxu0 %v8707_v55  ;;  %v8931_v54 = vpop.permute.xlu2 %2016 }
 0x333   :  { %1881 = vmatpush.bf16.msra.mxu1 %v1831_v53  ;;  %v7559_v53 = vld [vmem:[#allocation3 + $0x94] sm:$0xf] }
 0x335   :  { %1513 = vmatmul.bf16.gmra.mxu0 %v8828_v38 }
 0x336   :  { %1920 = vmatpush.bf16.msrb.mxu0 %v8728_v34  ;;  %v2035_v55 = vpop.permute.xlu0 %2034  ;;  %v8954_v34 = vpop.permute.xlu1 %2036 }
 0x338   :  { %2460 = vrot.lane.b32.xlu0 %v8426_v27, %s7719_s22  ;;  %2454 = vrot.lane.b32.xlu1 %v8396_v8, %s7719_s22  ;;  %v9002_v8 = vld [vmem:[%s12090_s4 + $0x70] sm:$0x33] }
 0x339   :  { %2456 = vrot.lane.b32.xlu2 %v8409_v39, %s7719_s22  ;;  %v1565_v39 = vunpack.c.l.b16 %v9002_v8 }
 0x33a   :  { %1921 = vmatpush.bf16.msrb.mxu0 %v8831_v43  ;;  %v8960_v49 = vpop.permute.xlu2 %2038 }
 0x33c   :  { %1672 = vmatmul.bf16.gmra.mxu1 %v8956_v16 }
 0x33e   :  { %1922 = vmatpush.bf16.msrb.mxu0 %v8753_v7  ;;  %v2053_v7 = vsel %vm125_vm4, %v2035_v55, %v8954_v34  ;;  %v8989_v38 = vpop.permute.xlu0 %2024  ;;  %v8991_v43 = vpop.permute.xlu1 %2028  ;;  %6471 = vmatmul.msk.bf16.gmra.mxu2 %vm1288_vm13, %v8808_v51  ;;  %v7562_v55 = vld [vmem:[#allocation3 + $0xac] sm:$0xf] }
 0x33f   :  { %2089 = vmatpush.bf16.msrb.mxu1 %v2053_v7  ;;  %v6714_v7 = vld [vmem:[#allocation3 + $0xa8] sm:$0xf] }
 0x340   :  { %2450 = vrot.lane.b32.xlu0 %v8382_v15, %s7719_s22  ;;  %2452 = vrot.lane.b32.xlu1 %v8398_v29, %s7719_s22  ;;  %v9030_v15 = vpack.c.b16 %v1565_v39, %v1565_v39 }
 0x341   :  { %2470 = vrot.lane.b32.xlu2 %v8456_v4, %s7719_s22 }
 0x342   :  { %1923 = vmatpush.bf16.msrb.mxu0 %v8846_v63  ;;  %v8995_v27 = vpop.permute.xlu2 %2006 }
 0x343   :  { %2090 = vmatpush.bf16.msrb.mxu1 %v2052_v57 }
 0x345   :  { %1518 = vmatmul.bf16.gmra.mxu0 %v8868_v47 }
 0x346   :  { %1924 = vmatpush.bf16.msrb.mxu0 %v8866_v62  ;;  %v2023_v51 = vpop.permute.xlu0 %2022  ;;  %v2027_v58 = vpop.permute.xlu1 %2026 }
 0x347   :  { %v2051_v29 = vsel %vm125_vm4, %v2027_v58, %v8991_v43  ;;  %v2050_v4 = vsel %vm125_vm4, %v2023_v51, %v8989_v38  ;;  %v7524_v58 = vld [vmem:[%s12090_s4 + $0x8c] sm:$0xf0] }
 0x348   :  { %2091 = vmatpush.bf16.msrb.mxu1 %v2051_v29  ;;  %2446 = vrot.lane.b32.xlu0 %v8357_v37, %s7719_s22  ;;  %v7517_v37 = vld [vmem:[%s12090_s4 + $0x54] sm:$0xf] }
 0x349   :  { %2448 = vrot.lane.b32.xlu1 %v8380_v10, %s7719_s22  ;;  %2444 = vrot.lane.b32.xlu2 %v8359_v28, %s7719_s22  ;;  %v6481_v10 = vld [vmem:[%s12090_s4 + $0x58] sm:$0xf0] }
 0x34a   :  { %1925 = vmatpush.bf16.msrb.mxu0 %v8886_v0  ;;  %v9032_v48 = vpop.permute.xlu2 %2249  ;;  %v6484_v28 = vor.u32 %v7517_v37, %v6481_v10  ;;  %v9082_v0 = vor.u32 %v7522_v12, %v6506_v13  ;;  %v7560_v37 = vld [vmem:[#allocation3 + $0x98] sm:$0xf0] }
 0x34c   :  { %1677 = vmatmul.bf16.gmra.mxu1 %v9030_v15 }
 0x34d   :  { %2092 = vmatpush.bf16.msrb.mxu1 %v2050_v4 }
 0x34e   :  { %1926 = vmatpush.bf16.msrb.mxu0 %v8911_v25  ;;  %v1615_v59 = vpop.permute.xlu0 %1614  ;;  %v1613_v56 = vpop.permute.xlu1 %1612 }
 0x34f   :  { %v1625_v36 = vsel %vm91_vm9, %v1613_v56, %v1615_v59  ;;  %v1657_v3 = vsel %vm1298_vm12, %v1615_v59, 0  ;;  %vm916_vm9 = vcmask 253952  }
 0x350   :  { %v1654_v50 = vsel %vm1298_vm12, %v1625_v36, 0  ;;  %1734 = vmatpush.bf16.msra.mxu2 %v1657_v3  ;;  %2468 = vrot.lane.b32.xlu0 %v8454_v41, %s7719_s22  ;;  %v9071_v32 = vpop.f32.mrf.mxu3  ;;  %917 = vst.msk [vmem:[#allocation3 + $0xec] sm:$0x1] %vm916_vm9, %v12098_v5  ;;  %vm6165_vm9 = vcmask 90112  }
 0x351   :  { %1688 = vmatpush.bf16.msrb.mxu3 %v1654_v50  ;;  %v1337_v62 = vpop.f32.mrf.mxu2  ;;  %2442 = vrot.lane.b32.xlu1 %v8476_v20, %s7719_s22 }
 0x352   :  { %1927 = vmatpush.bf16.msrb.mxu0 %v8929_v31  ;;  %v9049_v63 = vpop.permute.xlu2 %2239  ;;  %v1314_v47 = vpop.f32.mrf.mxu0  ;;  %2440 = vrot.lane.b32.xlu2 %v8369_v42, %s7719_s22  ;;  %v7564_v42 = vld [vmem:[#allocation3 + $0xb8] sm:$0xf0] }
 0x353   :  { %v9080_v1 = vadd.f32 %v1337_v62, %v1314_v47  ;;  %v1319_v61 = vpop.f32.mrf.mxu1  ;;  %v9093_v40 = vor.u32 %v7564_v42, %v6722_v52  ;;  %v6489_v31 = vld [vmem:[%s12090_s4 + $0x68] sm:$0xf0]  ;;  %v6710_v62 = vld [vmem:[#allocation3 + $0x98] sm:$0xf]  ;;  %v7561_v47 = vld [vmem:[#allocation3 + $0xa0] sm:$0xf0] }
 0x354   :  { %1735 = vmatpush.bf16.msra.mxu2 %v8748_v23  ;;  %v7556_v52 = vld [vmem:[#allocation3 + $0x7c] sm:$0xf] }
 0x355   :  { %1689 = vmatpush.bf16.msrb.mxu3 %v1624_v14  ;;  %1713 = vmatmul.bf16.vlgmr.msra.gmra.mxu0 %v8913_v6 }
 0x356   :  { %v2019_v41 = vpop.permute.xlu0 %2018  ;;  %v9078_v19 = vpop.permute.xlu1 %2040  ;;  %2135 = vmatpush.bf16.msra.mxu0 %v8954_v34  ;;  %v9120_v34 = vor.u32 %v7562_v55, %v6716_v46  ;;  %v7558_v55 = vld [vmem:[#allocation3 + $0x88] sm:$0xf0] }
 0x357   :  { %6496 = vmatmul.msk.bf16.vlgmr.msra.gmra.mxu2 %vm1288_vm13, %v6484_v28  ;;  %v2049_v20 = vsel %vm125_vm4, %v2019_v41, %v8915_v35  ;;  %v1566_v41 = vunpack.c.h.b16 %v9002_v8  ;;  %v7557_v8 = vld [vmem:[#allocation3 + $0x80] sm:$0xf0] }
 0x358   :  { %6493 = vmatmul.msk.bf16.vlgmr.msrb.gmra.mxu3 %vm1288_vm13, %v6484_v28  ;;  %2093 = vmatpush.bf16.msrb.mxu1 %v2049_v20  ;;  %v1349_v24 = vpop.f32.mrf.mxu3 }
 0x359   :  { %2436 = vrot.lane.b32.xlu0 %v8478_v21, %s7719_s22  ;;  %v9099_v22 = vpop.f32.mrf.mxu2  ;;  %2438 = vrot.lane.b32.xlu1 %v8468_v18, %s7719_s22  ;;  %v7519_v18 = vld [vmem:[%s12090_s4 + $0x64] sm:$0xf]  ;;  %v9180_v24 = vor.u32 %v7561_v47, %v6710_v62 }
 0x35a   :  { %v9085_v23 = vpop.permute.xlu2 %1829  ;;  %2136 = vmatpush.bf16.msra.mxu0 %v8870_v33  ;;  %2867 = vrot.lane.b32.xlu2 %v9093_v40, %s7718_s21  ;;  %v6704_v33 = vld [vmem:[#allocation3 + $0x9c] sm:$0xf0]  ;;  %v6492_v57 = vor.u32 %v7519_v18, %v6489_v31  ;;  %v9154_v10 = vpop.f32.mrf.mxu0 }
 0x35b   :  { %v1872_v2 = vsel %vm1298_vm12, %v9085_v23, 0  ;;  %v1321_v30 = vpop.f32.mrf.mxu1  ;;  %v9117_v17 = vor.u32 %v7559_v53, %v6704_v33  ;;  %v1572_v33 = vpack.c.b16 %v1566_v41, %v1566_v41 }
 0x35c   :  { %1949 = vmatpush.bf16.msrb.mxu2 %v1872_v2  ;;  %1882 = vmatmul.bf16.vlgmr.msra.gmra.mxu1 %v9082_v0  ;;  %v6692_v2 = vld [vmem:[#allocation3 + $0x84] sm:$0xf0] }
 0x35e   :  { %v2013_v60 = vpop.permute.xlu0 %2012  ;;  %v2015_v25 = vpop.permute.xlu1 %2014  ;;  %2137 = vmatpush.bf16.msra.mxu0 %v8991_v43  ;;  %v9124_v43 = vor.u32 %v7563_v45, %v6714_v7  ;;  %v6698_v45 = vld [vmem:[#allocation3 + $0x80] sm:$0xf] }
 0x35f   :  { %v2048_v21 = vsel %vm125_vm4, %v2015_v25, %v8931_v54  ;;  %v6690_v25 = vld [vmem:[#allocation3 + $0x78] sm:$0xf] }
 0x360   :  { %1950 = vmatpush.bf16.msrb.mxu2 %v8804_v26  ;;  %2094 = vmatpush.bf16.msrb.mxu1 %v2048_v21  ;;  %v9126_v51 = vpop.f32.mrf.mxu3  ;;  %v9182_v21 = vor.u32 %v7556_v52, %v6692_v2 }
 0x361   :  { %2859 = vrot.lane.b32.xlu0 %v9117_v17, %s7718_s21  ;;  %v1342_v39 = vpop.f32.mrf.mxu2  ;;  %2865 = vrot.lane.b32.xlu1 %v9120_v34, %s7718_s21 }
 0x362   :  { %v9107_v6 = vpop.permute.xlu2 %2237  ;;  %2138 = vmatpush.bf16.msra.mxu0 %v8989_v38  ;;  %v6514_v38 = vld [vmem:[%s12090_s4 + $0x88] sm:$0xf]  ;;  %v9136_v29 = vadd.f32 %v1342_v39, %v1319_v61  ;;  %2863 = vrot.lane.b32.xlu2 %v9124_v43, %s7718_s21  ;;  %v6680_v39 = vld [vmem:[#allocation3 + $0x6c] sm:$0xf0] }
 0x363   :  { %v9142_v59 = vor.u32 %v7524_v58, %v6514_v38  ;;  %v9150_v50 = vpop.f32.mrf.mxu1 }
 0x364   :  { %v9221_v47 = vadd.f32 %v9071_v32, %v9150_v50  ;;  %v6686_v32 = vld [vmem:[#allocation3 + $0x68] sm:$0xf]  ;;  %v7555_v50 = vld [vmem:[#allocation3 + $0x70] sm:$0xf0] }
 0x365   :  { %1718 = vmatmul.bf16.gmra.mxu0 %v8956_v16  ;;  %v6702_v16 = vld [vmem:[#allocation3 + $0x90] sm:$0xf] }
 0x366   :  { %v2009_v4 = vpop.permute.xlu0 %2008  ;;  %2139 = vmatpush.bf16.msra.mxu0 %v8915_v35  ;;  %v2011_v56 = vpop.permute.xlu1 %2010  ;;  %v9158_v35 = vor.u32 %v7560_v37, %v6702_v16  ;;  %v7547_v37 = vld [vmem:[#allocation3 + $0x34] sm:$0xf] }
 0x367   :  { %6497 = vmatmul.msk.bf16.gmra.mxu2 %vm1288_vm13, %v6492_v57  ;;  %v2047_v3 = vsel %vm125_vm4, %v2011_v56, %v2013_v60  ;;  %v2046_v28 = vsel %vm125_vm4, %v8995_v27, %v2009_v4  ;;  %v7553_v56 = vld [vmem:[#allocation3 + $0x64] sm:$0xf] }
 0x368   :  { %6494 = vmatmul.msk.bf16.gmra.mxu3 %vm1288_vm13, %v6492_v57  ;;  %2095 = vmatpush.bf16.msrb.mxu1 %v2047_v3  ;;  %v9166_v14 = vpop.f32.mrf.mxu3  ;;  %v9213_v3 = vor.u32 %v7558_v55, %v6698_v45 }
 0x369   :  { %2259 = vrot.lane.b32.xlu0 %v8464_v9, %s7720_s27  ;;  %v1344_v13 = vpop.f32.mrf.mxu2  ;;  %2257 = vrot.lane.b32.xlu1 %v8466_v11, %s7720_s27 }
 0x36a   :  { %v9145_v36 = vpop.permute.xlu2 %2233  ;;  %2140 = vmatpush.bf16.msra.mxu0 %v8931_v54  ;;  %v9164_v12 = vadd.f32 %v1344_v13, %v1321_v30  ;;  %2857 = vrot.lane.b32.xlu2 %v9158_v35, %s7718_s21  ;;  %v9187_v30 = vld [vmem:[%s12090_s4 + $0x98] sm:$0x33]  ;;  %v6656_v13 = vld [vmem:[#allocation3 + $0x3c] sm:$0xf0] }
 0x36b   :  { %v1326_v61 = vpop.f32.mrf.mxu1  ;;  %v1780_v18 = vunpack.c.l.b16 %v9187_v30 }
 0x36c   :  { %1887 = vmatmul.bf16.gmra.mxu1 %v9142_v59 }
 0x36d   :  { %2096 = vmatpush.bf16.msrb.mxu1 %v2046_v28  ;;  %v9203_v7 = vpack.c.b16 %v1780_v18, %v1780_v18  ;;  %v9216_v28 = vor.u32 %v7553_v56, %v6680_v39  ;;  %v6508_v18 = vld [vmem:[%s12090_s4 + $0x80] sm:$0xf0] }
 0x36e   :  { %v9170_v54 = vpop.permute.xlu0 %2251  ;;  %2141 = vmatpush.bf16.msra.mxu0 %v2013_v60  ;;  %v9173_v27 = vpop.permute.xlu1 %2247 }
 0x36f   :  { %v2268_v20 = vsel %vm142_vm8, %v9032_v48, %v9170_v54  ;;  %v9191_v48 = vor.u32 %v7557_v8, %v6690_v25 }
 0x370   :  { %v9206_v38 = vpop.f32.mrf.mxu3 }
 0x371   :  { %2304 = vmatpush.bf16.msra.mxu1 %v2268_v20  ;;  %2853 = vrot.lane.b32.xlu0 %v9182_v21, %s7718_s21  ;;  %v1383_v46 = vpop.f32.mrf.mxu2  ;;  %v9228_v20 = vor.u32 %v7547_v37, %v6656_v13 }
 0x372   :  { %v9178_v42 = vpop.permute.xlu2 %2227  ;;  %2142 = vmatpush.bf16.msra.mxu0 %v2009_v4  ;;  %v1360_v60 = vpop.f32.mrf.mxu0  ;;  %2861 = vrot.lane.b32.xlu1 %v9180_v24, %s7718_s21 }
 0x373   :  { %v9196_v31 = vadd.f32 %v1383_v46, %v1360_v60  ;;  %2851 = vrot.lane.b32.xlu2 %v9191_v48, %s7718_s21  ;;  %v7521_v46 = vld [vmem:[%s12090_s4 + $0x7c] sm:$0xf] }
 0x375   :  { %1723 = vmatmul.bf16.gmra.mxu0 %v9030_v15  ;;  %v1463_v15 = vpop.f32.mrf.mxu1 }
 0x376   :  { %v9201_v53 = vpop.permute.xlu0 %2243  ;;  %v2246_v57 = vpop.permute.xlu1 %2245  ;;  %v1464_v16 = vadd.f32 %v1463_v15, %v9080_v1  ;;  %v6511_v15 = vor.u32 %v7521_v46, %v6508_v18 }
 0x377   :  { %6498 = vmatmul.msk.bf16.gmra.mxu2 %vm1288_vm13, %v1572_v33  ;;  %v2267_v4 = vsel %vm142_vm8, %v2246_v57, %v9173_v27 }
 0x378   :  { %6495 = vmatmul.msk.bf16.gmra.mxu3 %vm1288_vm13, %v1572_v33  ;;  %2305 = vmatpush.bf16.msra.mxu1 %v2267_v4  ;;  %v9224_v41 = vadd.f32 %v9126_v51, %v1464_v16  ;;  %v1340_v51 = vadd.f32 %v9099_v22, %v9154_v10  ;;  %v6668_v33 = vld [vmem:[#allocation3 + $0x54] sm:$0xf0]  ;;  %v7550_v22 = vld [vmem:[#allocation3 + $0x4c] sm:$0xf]  ;;  %v9251_v10 = vor.u32 %v7555_v50, %v6686_v32  ;;  %v9255_v57 = vpop.f32.mrf.mxu3  ;;  %v7565_v4 = vld [vmem:[#allocation3 + $0xc4] sm:$0xf] }
 0x379   :  { %2847 = vrot.lane.b32.xlu0 %v9216_v28, %s7718_s21  ;;  %v1385_v52 = vpop.f32.mrf.mxu2  ;;  %v9257_v39 = vor.u32 %v7550_v22, %v6668_v33  ;;  %v1839_v16 = vsel %vm108_vm5, %v8909_v44, %v8804_v26  ;;  %v6674_v32 = vld [vmem:[#allocation3 + $0x50] sm:$0xf]  ;;  %v7526_v44 = vld [vmem:[%s12090_s4 + $0xa4] sm:$0xf0] }
 0x37a   :  { %v9208_v58 = vpop.permute.xlu2 %2223  ;;  %v1362_v62 = vpop.f32.mrf.mxu0  ;;  %2855 = vrot.lane.b32.xlu1 %v9213_v3, %s7718_s21  ;;  %v6533_v26 = vld [vmem:[%s12090_s4 + $0xa0] sm:$0xf] }
 0x37b   :  { %v9232_v1 = vadd.f32 %v1385_v52, %v1362_v62  ;;  %2835 = vrot.lane.b32.xlu2 %v9228_v20, %s7718_s21  ;;  %v6746_v52 = vld [vmem:[#allocation3 + $0xe0] sm:$0xf] }
 0x37c   :  { %1892 = vmatmul.bf16.gmra.mxu1 %v9203_v7 }
 0x37d   :  { %v1465_v45 = vpop.f32.mrf.mxu1 }
 0x37e   :  { %v1828_v61 = vpop.permute.xlu0 %1827  ;;  %v9240_v25 = vpop.permute.xlu1 %2235  ;;  %v9253_v55 = vadd.f32 %v1465_v45, %v1340_v51  ;;  %v7552_v51 = vld [vmem:[#allocation3 + $0x58] sm:$0xf0] }
 0x37f   :  { %v1840_v2 = vsel %vm108_vm5, %v1828_v61, %v9085_v23  ;;  %v6728_v23 = vld [vmem:[#allocation3 + $0xcc] sm:$0xf0]  ;;  %v7570_v61 = vld [vmem:[#allocation3 + $0xe8] sm:$0x10]  ;;  %v9292_v45 = vor.u32 %v7552_v51, %v6674_v32  ;;  %v6644_v51 = vld [vmem:[#allocation3 + $0x24] sm:$0xf0] }
 0x380   :  { %v1869_v8 = vsel %vm1298_vm12, %v1840_v2, 0  ;;  %v9261_v37 = vor.u32 %v7565_v4, %v6728_v23  ;;  %v9290_v46 = vor.u32 %v7570_v61, %v6746_v52  ;;  %v1496_v22 = vpop.f32.mrf.mxu3  ;;  %v2265_v23 = vsel %vm142_vm8, %v9107_v6, %v9049_v63  ;;  %v7554_v32 = vld [vmem:[#allocation3 + $0x68] sm:$0xf0] }
 0x381   :  { %1903 = vmatpush.bf16.msra.mxu3 %v1869_v8  ;;  %2841 = vrot.lane.b32.xlu0 %v9257_v39, %s7718_s21  ;;  %v1388_v13 = vpop.f32.mrf.mxu2  ;;  %vm3895_vm5 = vcmask 523264  }
 0x382   :  { %v9243_v60 = vpop.permute.xlu2 %2466  ;;  %v1365_v56 = vpop.f32.mrf.mxu0  ;;  %2849 = vrot.lane.b32.xlu1 %v9251_v10, %s7718_s21 }
 0x383   :  { %v9268_v62 = vadd.f32 %v1388_v13, %v1365_v56  ;;  %2871 = vrot.lane.b32.xlu2 %v9261_v37, %s7718_s21  ;;  %v2264_v13 = vsel %vm142_vm8, %v9145_v36, %v9240_v25 }
 0x385   :  { %1904 = vmatpush.bf16.msra.mxu3 %v1839_v16  ;;  %1928 = vmatmul.bf16.vlgmr.msrb.gmra.mxu0 %v9082_v0  ;;  %v9285_v0 = vor.u32 %v7526_v44, %v6533_v26  ;;  %v1468_v18 = vpop.f32.mrf.mxu1  ;;  %v6662_v16 = vld [vmem:[#allocation3 + $0x38] sm:$0xf]  ;;  %v6678_v44 = vld [vmem:[#allocation3 + $0x60] sm:$0xf] }
 0x386   :  { %v2242_v50 = vpop.permute.xlu0 %2241  ;;  %2350 = vmatpush.bf16.msrb.mxu0 %v9170_v54  ;;  %v9280_v2 = vpop.permute.xlu1 %2231  ;;  %v1469_v54 = vadd.f32 %v1468_v18, %v9136_v29  ;;  %v9332_v36 = vor.u32 %v7554_v32, %v6678_v44  ;;  %v7551_v32 = vld [vmem:[#allocation3 + $0x50] sm:$0xf0] }
 0x387   :  { %6523 = vmatmul.msk.bf16.vlgmr.msrb.gmra.mxu2 %vm1288_vm13, %v6511_v15  ;;  %v2266_v33 = vsel %vm142_vm8, %v2242_v50, %v9201_v53 }
 0x388   :  { %6520 = vmatmul.msk.bf16.vlgmr.msra.gmra.mxu3 %vm1288_vm13, %v6511_v15  ;;  %2306 = vmatpush.bf16.msra.mxu1 %v2266_v33  ;;  %v9301_v15 = vadd.f32 %v9206_v38, %v1469_v54  ;;  %v1498_v26 = vpop.f32.mrf.mxu3  ;;  %v7544_v33 = vld [vmem:[#allocation3 + $0x1c] sm:$0xf] }
 0x389   :  { %2879 = vrot.lane.b32.xlu0 %v9290_v46, %s7718_s21  ;;  %v1390_v56 = vpop.f32.mrf.mxu2  ;;  %v6666_v26 = vld [vmem:[#allocation3 + $0x48] sm:$0xf] }
 0x38a   :  { %v9287_v8 = vpop.permute.xlu2 %2458  ;;  %2351 = vmatpush.bf16.msrb.mxu0 %v9173_v27  ;;  %v1367_v4 = vpop.f32.mrf.mxu0  ;;  %2843 = vrot.lane.b32.xlu1 %v9292_v45, %s7718_s21  ;;  %v7549_v27 = vld [vmem:[#allocation3 + $0x40] sm:$0xf0] }
 0x38b   :  { %v9307_v29 = vadd.f32 %v1390_v56, %v1367_v4  ;;  %2474 = vrot.lane.b32.xlu2 %v8464_v9, %s7719_s22  ;;  %v9321_v61 = vor.u32 %v7549_v27, %v6662_v16  ;;  %v7523_v9 = vld [vmem:[%s12090_s4 + $0x8c] sm:$0xf] }
 0x38c   :  { %2097 = vmatmul.bf16.vlgmr.msrb.gmra.mxu1 %v9285_v0 }
 0x38d   :  { %2307 = vmatpush.bf16.msra.mxu1 %v2265_v23  ;;  %v9329_v50 = vpop.f32.mrf.mxu1  ;;  %v9336_v23 = vor.u32 %v7544_v33, %v6644_v51  ;;  %v9362_v33 = vor.u32 %v7551_v32, %v6666_v26  ;;  %v7545_v26 = vld [vmem:[#allocation3 + $0x20] sm:$0xf0] }
 0x38e   :  { %v9311_v6 = vpop.permute.xlu0 %2255  ;;  %2352 = vmatpush.bf16.msrb.mxu0 %v9201_v53  ;;  %v9314_v38 = vpop.permute.xlu1 %2253  ;;  %v6516_v53 = vld [vmem:[%s12090_s4 + $0x90] sm:$0xf0] }
 0x38f   :  { %v6519_v18 = vor.u32 %v7523_v9, %v6516_v53  ;;  %v6541_v9 = vld [vmem:[%s12090_s4 + $0xb0] sm:$0xf]  ;;  %v6632_v53 = vld [vmem:[#allocation3 + $0xc] sm:$0xf0] }
 0x391   :  { %2308 = vmatpush.bf16.msra.mxu1 %v2264_v13  ;;  %2837 = vrot.lane.b32.xlu0 %v9321_v61, %s7718_s21  ;;  %v1393_v4 = vpop.f32.mrf.mxu2 }
 0x392   :  { %v9319_v52 = vpop.permute.xlu2 %2042  ;;  %2353 = vmatpush.bf16.msrb.mxu0 %v9049_v63  ;;  %v1370_v54 = vpop.f32.mrf.mxu0  ;;  %2845 = vrot.lane.b32.xlu1 %v9332_v36, %s7718_s21 }
 0x393   :  { %v9340_v56 = vadd.f32 %v1393_v4, %v1370_v54  ;;  %2829 = vrot.lane.b32.xlu2 %v9336_v23, %s7718_s21 }
 0x395   :  { %1933 = vmatmul.bf16.gmra.mxu0 %v9142_v59  ;;  %v1473_v59 = vpop.f32.mrf.mxu1 }
 0x396   :  { %v2230_v63 = vpop.permute.xlu0 %2229  ;;  %2354 = vmatpush.bf16.msrb.mxu0 %v9240_v25  ;;  %v2222_v16 = vpop.permute.xlu1 %2221  ;;  %v7528_v25 = vld [vmem:[%s12090_s4 + $0xb4] sm:$0xf0]  ;;  %v1474_v51 = vadd.f32 %v1473_v59, %v9221_v47 }
 0x397   :  { %6524 = vmatmul.msk.bf16.gmra.mxu2 %vm1288_vm13, %v6519_v18  ;;  %v2263_v27 = vsel %vm142_vm8, %v2230_v63, %v9280_v2  ;;  %v9359_v44 = vor.u32 %v7528_v25, %v6541_v9  ;;  %v6734_v47 = vld [vmem:[#allocation3 + $0xc8] sm:$0xf]  ;;  %v7567_v9 = vld [vmem:[#allocation3 + $0xd0] sm:$0xf0]  ;;  %v6654_v25 = vld [vmem:[#allocation3 + $0x30] sm:$0xf]  ;;  %v2261_v5 = vsel %vm142_vm8, %v2222_v16, %v9208_v58 }
 0x398   :  { %6521 = vmatmul.msk.bf16.gmra.mxu3 %vm1288_vm13, %v6519_v18  ;;  %2309 = vmatpush.bf16.msra.mxu1 %v2263_v27  ;;  %v7541_v18 = vld [vmem:[#allocation3 + $0x4] sm:$0xf]  ;;  %v9364_v4 = vadd.f32 %v1496_v22, %v1474_v51  ;;  %v1781_v22 = vunpack.c.h.b16 %v9187_v30  ;;  %v6642_v30 = vld [vmem:[#allocation3 + $0x18] sm:$0xf] }
 0x399   :  { %2472 = vrot.lane.b32.xlu0 %v8466_v11, %s7719_s22  ;;  %v9368_v63 = vor.u32 %v7541_v18, %v6632_v53  ;;  %v1395_v27 = vpop.f32.mrf.mxu2  ;;  %v9381_v53 = vor.u32 %v7567_v9, %v6734_v47  ;;  %v7548_v18 = vld [vmem:[#allocation3 + $0x38] sm:$0xf0]  ;;  %v9392_v47 = vor.u32 %v7545_v26, %v6642_v30  ;;  %v6726_v30 = vld [vmem:[#allocation3 + $0xc0] sm:$0xf] }
 0x39a   :  { %v9349_v13 = vpop.permute.xlu2 %2456  ;;  %2355 = vmatpush.bf16.msrb.mxu0 %v9280_v2  ;;  %v1372_v54 = vpop.f32.mrf.mxu0  ;;  %12104 = vst [vmem:[#allocation5_spill] sm:$0xff] %v9364_v4  ;;  %2839 = vrot.lane.b32.xlu1 %v9362_v33, %s7718_s21  ;;  %v9384_v27 = vor.u32 %v7548_v18, %v6654_v25 }
 0x39b   :  { %2823 = vrot.lane.b32.xlu2 %v9368_v63, %s7718_s21  ;;  %v1787_v54 = vpack.c.b16 %v1781_v22, %v1781_v22  ;;  %v6650_v22 = vld [vmem:[#allocation3 + $0x20] sm:$0xf] }
 0x39c   :  { %2102 = vmatmul.bf16.gmra.mxu1 %v9359_v44 }
 0x39d   :  { %v1475_v51 = vpop.f32.mrf.mxu1 }
 0x39e   :  { %v2226_v2 = vpop.permute.xlu0 %2225  ;;  %2356 = vmatpush.bf16.msrb.mxu0 %v9178_v42  ;;  %v2465_v32 = vpop.permute.xlu1 %2464  ;;  %v7566_v51 = vld [vmem:[#allocation3 + $0xc8] sm:$0xf0] }
 0x39f   :  { %v2262_v11 = vsel %vm142_vm8, %v2226_v2, %v9178_v42  ;;  %v2483_v42 = vsel %vm159_vm3, %v2465_v32, %v9243_v60 }
 0x3a0   :  { %2310 = vmatpush.bf16.msra.mxu1 %v2262_v11  ;;  %v7546_v11 = vld [vmem:[#allocation3 + $0x28] sm:$0xf0] }
 0x3a1   :  { %2873 = vrot.lane.b32.xlu0 %v9381_v53, %s7718_s21  ;;  %v1532_v2 = vpop.f32.mrf.mxu2  ;;  %v9416_v25 = vor.u32 %v7546_v11, %v6650_v22  ;;  %v2054_v22 = vsel %vm125_vm4, %v8960_v49, %v9078_v19  ;;  %v6638_v11 = vld [vmem:[#allocation3 + $0x8] sm:$0xf]  ;;  %v7525_v49 = vld [vmem:[%s12090_s4 + $0xa4] sm:$0xf] }
 0x3a2   :  { %v9379_v59 = vpop.permute.xlu2 %2470  ;;  %2357 = vmatpush.bf16.msrb.mxu0 %v9208_v58  ;;  %v1509_v4 = vpop.f32.mrf.mxu0  ;;  %2833 = vrot.lane.b32.xlu1 %v9384_v27, %s7718_s21 }
 0x3a3   :  { %v1510_v9 = vadd.f32 %v1509_v4, %v9196_v31  ;;  %2827 = vrot.lane.b32.xlu2 %v9392_v47, %s7718_s21 }
 0x3a4   :  { %2311 = vmatpush.bf16.msra.mxu1 %v2261_v5  ;;  %v9408_v5 = vld [vmem:[%s12090_s4 + $0xc0] sm:$0x33] }
 0x3a5   :  { %1938 = vmatmul.bf16.gmra.mxu0 %v9203_v7  ;;  %v9402_v16 = vadd.f32 %v1532_v2, %v1510_v9  ;;  %v1995_v26 = vunpack.c.l.b16 %v9408_v5  ;;  %v9422_v9 = vor.u32 %v7566_v51, %v6726_v30 }
 0x3a6   :  { %v9400_v58 = vpop.permute.xlu0 %2462  ;;  %v2045_v32 = vpop.permute.xlu1 %2044 }
 0x3a7   :  { %6525 = vmatmul.msk.bf16.gmra.mxu2 %vm1288_vm13, %v1787_v54  ;;  %v2055_v31 = vsel %vm125_vm4, %v9319_v52, %v2045_v32  ;;  %v2087_v7 = vsel %vm1298_vm12, %v2045_v32, 0  ;;  %v7543_v32 = vld [vmem:[#allocation3 + $0x10] sm:$0xf0]  ;;  %vm3602_vm4 = vcmask 453632  }
 0x3a8   :  { %2519 = vmatpush.bf16.msrb.mxu1 %v2483_v42  ;;  %6522 = vmatmul.msk.bf16.gmra.mxu3 %vm1288_vm13, %v1787_v54  ;;  %v2084_v18 = vsel %vm1298_vm12, %v2055_v31, 0  ;;  %v9420_v42 = vpack.c.b16 %v1995_v26, %v1995_v26 }
 0x3a9   :  { %2164 = vmatpush.bf16.msra.mxu2 %v2087_v7  ;;  %2118 = vmatpush.bf16.msrb.mxu3 %v2084_v18  ;;  %v1534_v2 = vpop.f32.mrf.mxu2  ;;  %v9442_v18 = vor.u32 %v7543_v32, %v6638_v11  ;;  %v7542_v32 = vld [vmem:[#allocation3 + $0x8] sm:$0xf0] }
 0x3aa   :  { %v9412_v4 = vpop.permute.xlu2 %2444  ;;  %v1511_v52 = vpop.f32.mrf.mxu0  ;;  %2831 = vrot.lane.b32.xlu0 %v9416_v25, %s7718_s21  ;;  %2869 = vrot.lane.b32.xlu1 %v9422_v9, %s7718_s21 }
 0x3ab   :  { %v1512_v54 = vadd.f32 %v1511_v52, %v9232_v1  ;;  %3112 = vrot.lane.b32.xlu2 %v9093_v40, %s7726_s15  ;;  %v2481_v40 = vsel %vm159_vm3, %v9349_v13, %v9287_v8 }
 0x3ac   :  { %2107 = vmatmul.bf16.gmra.mxu1 %v9420_v42 }
 0x3ad   :  { %2165 = vmatpush.bf16.msra.mxu2 %v9078_v19  ;;  %2119 = vmatpush.bf16.msrb.mxu3 %v2054_v22  ;;  %v9436_v1 = vadd.f32 %v1534_v2, %v1512_v54  ;;  %v6535_v19 = vld [vmem:[%s12090_s4 + $0xa8] sm:$0xf0] }
 0x3ae   :  { %v2461_v31 = vpop.permute.xlu0 %2460  ;;  %v2455_v7 = vpop.permute.xlu1 %2454  ;;  %v6538_v30 = vor.u32 %v7525_v49, %v6535_v19  ;;  %v6740_v19 = vld [vmem:[#allocation3 + $0xe4] sm:$0x10] }
 0x3af   :  { %v2482_v51 = vsel %vm159_vm3, %v2461_v31, %v9400_v58 }
 0x3b0   :  { %2520 = vmatpush.bf16.msrb.mxu1 %v2482_v51 }
 0x3b1   :  { %v1537_v2 = vpop.f32.mrf.mxu2 }
 0x3b2   :  { %v9440_v26 = vpop.permute.xlu2 %2440  ;;  %v1514_v52 = vpop.f32.mrf.mxu0  ;;  %2825 = vrot.lane.b32.xlu0 %v9442_v18, %s7718_s21  ;;  %3110 = vrot.lane.b32.xlu1 %v9120_v34, %s7726_s15 }
 0x3b3   :  { %v1515_v54 = vadd.f32 %v1514_v52, %v9268_v62  ;;  %3108 = vrot.lane.b32.xlu2 %v9124_v43, %s7726_s15  ;;  %v6560_v43 = vld [vmem:[%s12090_s4 + $0xc8] sm:$0xf]  ;;  %v7530_v62 = vld [vmem:[%s12090_s4 + $0xcc] sm:$0xf0] }
 0x3b4   :  { %2521 = vmatpush.bf16.msrb.mxu1 %v2481_v40  ;;  %v9475_v51 = vor.u32 %v7530_v62, %v6560_v43  ;;  %v6543_v62 = vld [vmem:[%s12090_s4 + $0xb8] sm:$0xf0] }
 0x3b5   :  { %2143 = vmatmul.bf16.vlgmr.msra.gmra.mxu0 %v9285_v0  ;;  %v9461_v11 = vadd.f32 %v1537_v2, %v1515_v54  ;;  %v7568_v0 = vld [vmem:[#allocation3 + $0xdc] sm:$0xf]  ;;  %v9484_v2 = vpop.f32.mrf.mxu1 }
 0x3b6   :  { %v2451_v22 = vpop.permute.xlu0 %2450  ;;  %2565 = vmatpush.bf16.msra.mxu0 %v9243_v60  ;;  %v2453_v13 = vpop.permute.xlu1 %2452  ;;  %v6630_v60 = vld [vmem:[#allocation3] sm:$0xf] }
 0x3b7   :  { %6550 = vmatmul.msk.bf16.vlgmr.msra.gmra.mxu2 %vm1288_vm13, %v6538_v30  ;;  %v2480_v34 = vsel %vm159_vm3, %v2453_v13, %v2455_v7  ;;  %v9477_v49 = vor.u32 %v7542_v32, %v6630_v60 }
 0x3b8   :  { %6547 = vmatmul.msk.bf16.vlgmr.msrb.gmra.mxu3 %vm1288_vm13, %v6538_v30  ;;  %2522 = vmatpush.bf16.msrb.mxu1 %v2480_v34  ;;  %v6743_v30 = vor.u32 %v7568_v0, %v6740_v19 }
 0x3b9   :  { %v1539_v54 = vpop.f32.mrf.mxu2 }
 0x3ba   :  { %v9465_v31 = vpop.permute.xlu2 %2867  ;;  %2566 = vmatpush.bf16.msra.mxu0 %v9400_v58  ;;  %v1516_v40 = vpop.f32.mrf.mxu0  ;;  %2821 = vrot.lane.b32.xlu0 %v9477_v49, %s7718_s21 }
 0x3bb   :  { %v1517_v52 = vadd.f32 %v1516_v40, %v9307_v29  ;;  %3106 = vrot.lane.b32.xlu1 %v9180_v24, %s7726_s15  ;;  %2877 = vrot.lane.b32.xlu2 %v6743_v30, %s7718_s21  ;;  %v7527_v29 = vld [vmem:[%s12090_s4 + $0xb4] sm:$0xf] }
 0x3bc   :  { %2312 = vmatmul.bf16.vlgmr.msra.gmra.mxu1 %v9475_v51  ;;  %v6546_v24 = vor.u32 %v7527_v29, %v6543_v62 }
 0x3bd   :  { %v9489_v58 = vadd.f32 %v1539_v54, %v1517_v52  ;;  %v9504_v40 = vpop.f32.mrf.mxu1  ;;  %v6738_v52 = vld [vmem:[#allocation3 + $0xd8] sm:$0xf]  ;;  %v7569_v54 = vld [vmem:[#allocation3 + $0xe0] sm:$0x10] }
 0x3be   :  { %v2447_v13 = vpop.permute.xlu0 %2446  ;;  %2567 = vmatpush.bf16.msra.mxu0 %v9287_v8  ;;  %v2449_v32 = vpop.permute.xlu1 %2448 }
 0x3bf   :  { %v2479_v43 = vsel %vm159_vm3, %v2449_v32, %v2451_v22  ;;  %v2478_v8 = vsel %vm159_vm3, %v9412_v4, %v2447_v13 }
 0x3c0   :  { %2523 = vmatpush.bf16.msrb.mxu1 %v2479_v43  ;;  %v1996_v43 = vunpack.c.h.b16 %v9408_v5  ;;  %v6568_v5 = vld [vmem:[%s12090_s4 + $0xd8] sm:$0xf] }
 0x3c1   :  { %v1542_v19 = vpop.f32.mrf.mxu2 }
 0x3c2   :  { %v2864_v34 = vpop.permute.xlu2 %2863  ;;  %2568 = vmatpush.bf16.msra.mxu0 %v2455_v7  ;;  %v1519_v60 = vpop.f32.mrf.mxu0  ;;  %3104 = vrot.lane.b32.xlu0 %v9117_v17, %s7726_s15 }
 0x3c3   :  { %v1520_v0 = vadd.f32 %v1519_v60, %v9340_v56  ;;  %3100 = vrot.lane.b32.xlu1 %v9213_v3, %s7726_s15  ;;  %3102 = vrot.lane.b32.xlu2 %v9158_v35, %s7726_s15  ;;  %v9519_v35 = vor.u32 %v7569_v54, %v6738_v52 }
 0x3c4   :  { %2524 = vmatpush.bf16.msrb.mxu1 %v2478_v8  ;;  %v7532_v8 = vld [vmem:[%s12090_s4 + $0xdc] sm:$0xf0] }
 0x3c5   :  { %2148 = vmatmul.bf16.gmra.mxu0 %v9359_v44  ;;  %v9513_v17 = vadd.f32 %v1542_v19, %v1520_v0  ;;  %v9523_v32 = vpop.f32.mrf.mxu1 }
 0x3c6   :  { %v9511_v7 = vpop.permute.xlu0 %2468  ;;  %2569 = vmatpush.bf16.msra.mxu0 %v2451_v22  ;;  %v2443_v4 = vpop.permute.xlu1 %2442 }
 0x3c7   :  { %6551 = vmatmul.msk.bf16.gmra.mxu2 %vm1288_vm13, %v6546_v24  ;;  %v2477_v3 = vsel %vm159_vm3, %v9440_v26, %v2443_v4 }
 0x3c8   :  { %6548 = vmatmul.msk.bf16.gmra.mxu3 %vm1288_vm13, %v6546_v24  ;;  %2525 = vmatpush.bf16.msrb.mxu1 %v2477_v3 }
 0x3c9   :  { %v1544_v22 = vpop.f32.mrf.mxu2 }
 0x3ca   :  { %v2858_v56 = vpop.permute.xlu2 %2857  ;;  %2570 = vmatpush.bf16.msra.mxu0 %v2447_v13  ;;  %v1521_v44 = vpop.f32.mrf.mxu0  ;;  %3098 = vrot.lane.b32.xlu0 %v9182_v21, %s7726_s15  ;;  %v2002_v21 = vpack.c.b16 %v1996_v43, %v1996_v43 }
 0x3cb   :  { %2875 = vrot.lane.b32.xlu1 %v9519_v35, %s7718_s21  ;;  %3096 = vrot.lane.b32.xlu2 %v9191_v48, %s7726_s15 }
 0x3cd   :  { %v9535_v60 = vpop.f32.mrf.mxu1 }
 0x3ce   :  { %v2437_v26 = vpop.permute.xlu0 %2436  ;;  %2571 = vmatpush.bf16.msra.mxu0 %v2443_v4  ;;  %v2439_v13 = vpop.permute.xlu1 %2438 }
 0x3cf   :  { %v2476_v62 = vsel %vm159_vm3, %v2437_v26, %v2439_v13 }
 0x3d0   :  { %2526 = vmatpush.bf16.msrb.mxu1 %v2476_v62 }
 0x3d2   :  { %v9530_v29 = vpop.permute.xlu2 %2851  ;;  %2572 = vmatpush.bf16.msra.mxu0 %v2439_v13  ;;  %v1714_v24 = vpop.f32.mrf.mxu0  ;;  %3092 = vrot.lane.b32.xlu0 %v9216_v28, %s7726_s15 }
 0x3d3   :  { %3094 = vrot.lane.b32.xlu1 %v9251_v10, %s7726_s15  ;;  %3122 = vrot.lane.b32.xlu2 %v6743_v30, %s7726_s15  ;;  %v9552_v30 = vor.u32 %v7532_v8, %v6568_v5 }
 0x3d5   :  { %2153 = vmatmul.bf16.gmra.mxu0 %v9420_v42  ;;  %2317 = vmatmul.bf16.gmra.mxu1 %v9552_v30  ;;  %v9559_v44 = vpop.f32.mrf.mxu1 }
 0x3d6   :  { %v2860_v48 = vpop.permute.xlu0 %2859  ;;  %v2866_v0 = vpop.permute.xlu1 %2865 }
 0x3d7   :  { %6552 = vmatmul.msk.bf16.gmra.mxu2 %vm1288_vm13, %v2002_v21  ;;  %v2895_v10 = vsel %vm188_vm6, %v2864_v34, %v2866_v0  ;;  %v2893_v54 = vsel %vm188_vm6, %v2858_v56, %v2860_v48 }
 0x3d8   :  { %6549 = vmatmul.msk.bf16.gmra.mxu3 %vm1288_vm13, %v2002_v21  ;;  %2934 = vmatpush.bf16.msra.mxu1 %v2895_v10 }
 0x3da   :  { %v9548_v28 = vpop.permute.xlu2 %2835  ;;  %v1737_v42 = vpop.f32.mrf.mxu2  ;;  %3086 = vrot.lane.b32.xlu0 %v9257_v39, %s7726_s15 }
 0x3db   :  { %v1738_v19 = vadd.f32 %v1737_v42, %v1714_v24  ;;  %v1691_v4 = vpop.f32.mrf.mxu3  ;;  %v1716_v3 = vpop.f32.mrf.mxu0  ;;  %3088 = vrot.lane.b32.xlu1 %v9292_v45, %s7726_s15  ;;  %3080 = vrot.lane.b32.xlu2 %v9228_v20, %s7726_s15  ;;  %v7529_v45 = vld [vmem:[%s12090_s4 + $0xcc] sm:$0xf]  ;;  %v1489_v24 = vadd.f32 %v9166_v14, %v9253_v55 }
 0x3dc   :  { %v1692_v52 = vadd.f32 %v1691_v4, %v9484_v2  ;;  %2935 = vmatpush.bf16.msra.mxu1 %v2893_v54  ;;  %v9591_v42 = vld [vmem:[%s12090_s4 + $0xe8] sm:$0x33] }
 0x3dd   :  { %v9562_v34 = vadd.f32 %v1738_v19, %v9402_v16  ;;  %v1680_v10 = vpop.f32.mrf.mxu1  ;;  %v2210_v14 = vunpack.c.l.b16 %v9591_v42 }
 0x3de   :  { %v9567_v22 = vadd.f32 %v1692_v52, %v9224_v41  ;;  %v2260_v2 = vpop.permute.xlu0 %2259  ;;  %v2258_v26 = vpop.permute.xlu1 %2257  ;;  %v6562_v41 = vld [vmem:[%s12090_s4 + $0xd0] sm:$0xf0] }
 0x3df   :  { %v2302_v39 = vsel %vm1298_vm12, %v2260_v2, 0  ;;  %v2270_v56 = vsel %vm142_vm8, %v2258_v26, %v2260_v2  ;;  %v6565_v8 = vor.u32 %v7529_v45, %v6562_v41 }
 0x3e0   :  { %2379 = vmatpush.bf16.msrb.mxu2 %v2302_v39  ;;  %v2299_v16 = vsel %vm1298_vm12, %v2270_v56, 0 }
 0x3e1   :  { %2333 = vmatpush.bf16.msra.mxu3 %v2299_v16 }
 0x3e2   :  { %v9573_v43 = vpop.permute.xlu2 %2871  ;;  %v1739_v20 = vpop.f32.mrf.mxu2  ;;  %3124 = vrot.lane.b32.xlu0 %v9290_v46, %s7726_s15  ;;  %v2896_v46 = vsel %vm188_vm6, %v2866_v0, %v9465_v31 }
 0x3e3   :  { %v1740_v13 = vadd.f32 %v1739_v20, %v1716_v3  ;;  %v1693_v62 = vpop.f32.mrf.mxu3  ;;  %v1719_v21 = vpop.f32.mrf.mxu0  ;;  %3090 = vrot.lane.b32.xlu1 %v9332_v36, %s7726_s15  ;;  %3116 = vrot.lane.b32.xlu2 %v9261_v37, %s7726_s15 }
 0x3e4   :  { %v1694_v5 = vadd.f32 %v1693_v62, %v9504_v40  ;;  %2380 = vmatpush.bf16.msrb.mxu2 %v9311_v6 }
 0x3e5   :  { %v9594_v19 = vadd.f32 %v1740_v13, %v9436_v1  ;;  %2358 = vmatmul.bf16.vlgmr.msrb.gmra.mxu0 %v9475_v51  ;;  %v2269_v1 = vsel %vm142_vm8, %v9314_v38, %v9311_v6  ;;  %v9617_v51 = vpack.c.b16 %v2210_v14, %v2210_v14  ;;  %vm6141_vm8 = vcmask 7168  }
 0x3e6   :  { %v9599_v55 = vadd.f32 %v1694_v5, %v1489_v24  ;;  %v2854_v40 = vpop.permute.xlu0 %2853  ;;  %2980 = vmatpush.bf16.msrb.mxu0 %v2896_v46  ;;  %2334 = vmatpush.bf16.msra.mxu3 %v2269_v1  ;;  %v2862_v36 = vpop.permute.xlu1 %2861  ;;  %v12105_v1 = vld [vmem:[#allocation5_spill] sm:$0xff] }
 0x3e7   :  { %v2891_v4 = vsel %vm188_vm6, %v9530_v29, %v2854_v40  ;;  %6577 = vmatmul.msk.bf16.vlgmr.msrb.gmra.mxu2 %vm1288_vm13, %v6565_v8  ;;  %v2894_v37 = vsel %vm188_vm6, %v2860_v48, %v2862_v36  ;;  %2322 = vmatmul.bf16.gmra.mxu1 %v9617_v51  ;;  %v9624_v48 = vpop.f32.mrf.mxu1 }
 0x3e8   :  { %2936 = vmatpush.bf16.msra.mxu1 %v2891_v4 }
 0x3e9   :  { %6574 = vmatmul.msk.bf16.vlgmr.msra.gmra.mxu3 %vm1288_vm13, %v6565_v8 }
 0x3ea   :  { %v9611_v3 = vpop.permute.xlu2 %2474  ;;  %v1742_v6 = vpop.f32.mrf.mxu2  ;;  %2981 = vmatpush.bf16.msrb.mxu0 %v2894_v37  ;;  %3082 = vrot.lane.b32.xlu0 %v9321_v61, %s7726_s15  ;;  %v1471_v61 = vadd.f32 %v9329_v50, %v9164_v12 }
 0x3eb   :  { %v2517_v31 = vsel %vm1298_vm12, %v9611_v3, 0  ;;  %v1743_v38 = vadd.f32 %v1742_v6, %v1719_v21  ;;  %v1696_v0 = vpop.f32.mrf.mxu3  ;;  %v1721_v29 = vpop.f32.mrf.mxu0  ;;  %3084 = vrot.lane.b32.xlu1 %v9362_v33, %s7726_s15  ;;  %3074 = vrot.lane.b32.xlu2 %v9336_v23, %s7726_s15  ;;  %v6570_v23 = vld [vmem:[%s12090_s4 + $0xe0] sm:$0xf0] }
 0x3ec   :  { %2594 = vmatpush.bf16.msra.mxu2 %v2517_v31  ;;  %v1697_v52 = vadd.f32 %v1696_v0, %v9523_v32  ;;  %v1494_v41 = vadd.f32 %v9255_v57, %v1471_v61 }
 0x3ed   :  { %v9627_v54 = vadd.f32 %v1743_v38, %v9461_v11 }
 0x3ee   :  { %v9632_v2 = vadd.f32 %v1697_v52, %v9301_v15  ;;  %v9637_v32 = vpop.permute.xlu0 %2847  ;;  %v2856_v26 = vpop.permute.xlu1 %2855  ;;  %v7531_v15 = vld [vmem:[%s12090_s4 + $0xdc] sm:$0xf] }
 0x3ef   :  { %v2892_v11 = vsel %vm188_vm6, %v2854_v40, %v2856_v26  ;;  %v6573_v50 = vor.u32 %v7531_v15, %v6570_v23  ;;  %v9654_v20 = vpop.f32.mrf.mxu1 }
 0x3f0   :  { %2595 = vmatpush.bf16.msra.mxu2 %v9379_v59  ;;  %2982 = vmatpush.bf16.msrb.mxu0 %v2892_v11  ;;  %v3281_v11 = vld [vmem:[%s12091_s5] sm:$0xff] }
 0x3f2   :  { %v9641_v39 = vpop.permute.xlu2 %2829  ;;  %v1744_v33 = vpop.f32.mrf.mxu2  ;;  %3118 = vrot.lane.b32.xlu0 %v9381_v53, %s7726_s15  ;;  %v6587_v53 = vld [vmem:[%s12090_s4 + $0xf0] sm:$0xf] }
 0x3f3   :  { %v1745_v56 = vadd.f32 %v1744_v33, %v1721_v29  ;;  %v1698_v16 = vpop.f32.mrf.mxu3  ;;  %v1724_v45 = vpop.f32.mrf.mxu0  ;;  %3120 = vrot.lane.b32.xlu1 %v9519_v35, %s7726_s15  ;;  %3068 = vrot.lane.b32.xlu2 %v9368_v63, %s7726_s15  ;;  %v7536_v29 = vld [vmem:[%s12090_s4 + $0x104] sm:$0xf0]  ;;  %v3285_v33 = vld [vmem:[%s12091_s5 + $0x20] sm:$0xf] }
 0x3f4   :  { %v1699_v12 = vadd.f32 %v1698_v16, %v9535_v60 }
 0x3f5   :  { %v9657_v13 = vadd.f32 %v1745_v56, %v9489_v58  ;;  %2363 = vmatmul.bf16.gmra.mxu0 %v9552_v30  ;;  %v7534_v58 = vld [vmem:[%s12090_s4 + $0xf4] sm:$0xf0] }
 0x3f6   :  { %v9661_v62 = vadd.f32 %v1699_v12, %v1494_v41  ;;  %v9665_v57 = vpop.permute.xlu0 %2841  ;;  %v2850_v60 = vpop.permute.xlu1 %2849  ;;  %v9679_v35 = vor.u32 %v7534_v58, %v6587_v53 }
 0x3f7   :  { %6578 = vmatmul.msk.bf16.gmra.mxu2 %vm1288_vm13, %v6573_v50  ;;  %v2890_v63 = vsel %vm188_vm6, %v9637_v32, %v2850_v60  ;;  %v9686_v14 = vpop.f32.mrf.mxu1 }
 0x3f8   :  { %2983 = vmatpush.bf16.msrb.mxu0 %v2890_v63  ;;  %2527 = vmatmul.bf16.vlgmr.msrb.gmra.mxu1 %v9679_v35  ;;  %v3284_v63 = vld [vmem:[%s12091_s5 + $0x18] sm:$0xff] }
 0x3f9   :  { %6575 = vmatmul.msk.bf16.gmra.mxu3 %vm1288_vm13, %v6573_v50 }
 0x3fa   :  { %v9674_v21 = vpop.permute.xlu2 %2823  ;;  %v1747_v30 = vpop.f32.mrf.mxu2  ;;  %3076 = vrot.lane.b32.xlu0 %v9416_v25, %s7726_s15 }
 0x3fb   :  { %v1748_v24 = vadd.f32 %v1747_v30, %v1724_v45  ;;  %v1701_v5 = vpop.f32.mrf.mxu3  ;;  %v1726_v8 = vpop.f32.mrf.mxu0  ;;  %3078 = vrot.lane.b32.xlu1 %v9384_v27, %s7726_s15  ;;  %3072 = vrot.lane.b32.xlu2 %v9392_v47, %s7726_s15  ;;  %v3282_v27 = vld [vmem:[%s12091_s5 + $0x8] sm:$0xff] }
 0x3fc   :  { %v1702_v10 = vadd.f32 %v1701_v5, %v9559_v44  ;;  %v2484_v8 = vsel %vm159_vm3, %v9511_v7, %v9379_v59 }
 0x3fd   :  { %v9689_v46 = vadd.f32 %v1748_v24, %v9513_v17  ;;  %v2211_v17 = vunpack.c.h.b16 %v9591_v42  ;;  %v6595_v42 = vld [vmem:[%s12090_s4 + $0x100] sm:$0xf] }
 0x3fe   :  { %v9694_v40 = vadd.f32 %v1702_v10, %v12105_v1  ;;  %v9698_v36 = vpop.permute.xlu0 %2879  ;;  %v2844_v44 = vpop.permute.xlu1 %2843 }
 0x3ff   :  { %v2888_v25 = vsel %vm188_vm6, %v9665_v57, %v2844_v44  ;;  %v2217_v47 = vpack.c.b16 %v2211_v17, %v2211_v17  ;;  %v9710_v38 = vpop.f32.mrf.mxu1  ;;  %v9775_v44 = vld [vmem:[%s12090_s4 + $0x110] sm:$0x33] }
 0x400   :  { %2984 = vmatpush.bf16.msrb.mxu0 %v2888_v25  ;;  %v2425_v17 = vunpack.c.l.b16 %v9775_v44 }
 0x402   :  { %v9700_v4 = vpop.permute.xlu2 %2827  ;;  %v1749_v37 = vpop.f32.mrf.mxu2  ;;  %3070 = vrot.lane.b32.xlu0 %v9442_v18, %s7726_s15 }
 0x403   :  { %v1703_v31 = vpop.f32.mrf.mxu3  ;;  %v1929_v6 = vpop.f32.mrf.mxu0  ;;  %3114 = vrot.lane.b32.xlu1 %v9422_v9, %s7726_s15  ;;  %3293 = vperm.xlu2 %7715, %v3282_v27   ;;  %v9793_v27 = vpack.c.b16 %v2425_v17, %v2425_v17 }
 0x405   :  { %2368 = vmatmul.bf16.gmra.mxu0 %v9617_v51  ;;  %v9728_v51 = vor.u32 %v7536_v29, %v6595_v42 }
 0x406   :  { %v2838_v0 = vpop.permute.xlu0 %2837  ;;  %v2846_v52 = vpop.permute.xlu1 %2845 }
 0x407   :  { %v2886_v18 = vsel %vm188_vm6, %v9548_v28, %v2838_v0  ;;  %6579 = vmatmul.msk.bf16.gmra.mxu2 %vm1288_vm13, %v2217_v47  ;;  %v2889_v9 = vsel %vm188_vm6, %v2846_v52, %v9637_v32  ;;  %v9741_v16 = vpop.f32.mrf.mxu1 }
 0x408   :  { %2985 = vmatpush.bf16.msrb.mxu0 %v2886_v18  ;;  %2937 = vmatpush.bf16.msra.mxu1 %v2889_v9 }
 0x409   :  { %6576 = vmatmul.msk.bf16.gmra.mxu3 %vm1288_vm13, %v2217_v47  ;;  %2532 = vmatmul.bf16.gmra.mxu1 %v9728_v51 }
 0x40a   :  { %v9723_v26 = vpop.permute.xlu2 %3112  ;;  %v1952_v61 = vpop.f32.mrf.mxu2  ;;  %3066 = vrot.lane.b32.xlu0 %v9477_v49, %s7726_s15 }
 0x40b   :  { %v1953_v15 = vadd.f32 %v1952_v61, %v1929_v6  ;;  %v1906_v23 = vpop.f32.mrf.mxu3  ;;  %v1931_v56 = vpop.f32.mrf.mxu0  ;;  %3288 = vperm.xlu1 %7717, %v3281_v11   ;;  %3308 = vperm.xlu2 %7715, %v3285_v33  }
 0x40c   :  { %v1907_v32 = vadd.f32 %v1906_v23, %v9624_v48 }
 0x40d   :  { %v9744_v45 = vadd.f32 %v1953_v15, %v9562_v34  ;;  %v3283_v34 = vld [vmem:[%s12091_s5 + $0x10] sm:$0xff]  ;;  %s7730_s5 = smov 88  }
 0x40e   :  { %v9747_v41 = vadd.f32 %v1907_v32, %v9567_v22  ;;  %v2473_v12 = vpop.permute.xlu0 %2472  ;;  %v2840_v53 = vpop.permute.xlu1 %2839  ;;  %v7533_v22 = vld [vmem:[%s12090_s4 + $0xf4] sm:$0xf] }
 0x40f   :  { %v2485_v50 = vsel %vm159_vm3, %v2473_v12, %v9611_v3  ;;  %v2887_v49 = vsel %vm188_vm6, %v2840_v53, %v9665_v57  ;;  %v6589_v3 = vld [vmem:[%s12090_s4 + $0xf8] sm:$0xf0]  ;;  %v1895_v1 = vpop.f32.mrf.mxu1 }
 0x410   :  { %v2514_v48 = vsel %vm1298_vm12, %v2485_v50, 0  ;;  %2938 = vmatpush.bf16.msra.mxu1 %v2887_v49  ;;  %v6592_v10 = vor.u32 %v7533_v22, %v6589_v3 }
 0x411   :  { %2548 = vmatpush.bf16.msrb.mxu3 %v2514_v48 }
 0x412   :  { %v9752_v60 = vpop.permute.xlu2 %3108  ;;  %v1954_v58 = vpop.f32.mrf.mxu2  ;;  %3298 = vperm.xlu0 %7716, %v3283_v34  }
 0x413   :  { %v1955_v57 = vadd.f32 %v1954_v58, %v1931_v56  ;;  %v1908_v30 = vpop.f32.mrf.mxu3  ;;  %v1934_v24 = vpop.f32.mrf.mxu0  ;;  %3303 = vperm.xlu1 %7717, %v3284_v63  }
 0x414   :  { %v1909_v5 = vadd.f32 %v1908_v30, %v9654_v20  ;;  %v7538_v30 = vld [vmem:[%s12090_s4 + $0x11c] sm:$0xf0] }
 0x415   :  { %v9778_v25 = vadd.f32 %v1955_v57, %v9594_v19  ;;  %2549 = vmatpush.bf16.msrb.mxu3 %v2484_v8  ;;  %2573 = vmatmul.bf16.vlgmr.msra.gmra.mxu0 %v9679_v35 }
 0x416   :  { %v9782_v20 = vadd.f32 %v1909_v5, %v9599_v55  ;;  %v2874_v37 = vpop.permute.xlu0 %2873  ;;  %v2834_v59 = vpop.permute.xlu1 %2833 }
 0x417   :  { %6604 = vmatmul.msk.bf16.vlgmr.msra.gmra.mxu2 %vm1288_vm13, %v6592_v10  ;;  %v2885_v31 = vsel %vm188_vm6, %v2834_v59, %v9548_v28  ;;  %v9802_v42 = vpop.f32.mrf.mxu1  ;;  %v2898_v18 = vsel %vm188_vm6, %v9573_v43, %v2874_v37 }
 0x418   :  { %2939 = vmatpush.bf16.msra.mxu1 %v2885_v31 }
 0x419   :  { %6601 = vmatmul.msk.bf16.vlgmr.msrb.gmra.mxu3 %vm1288_vm13, %v6592_v10  ;;  %2537 = vmatmul.bf16.gmra.mxu1 %v9793_v27 }
 0x41a   :  { %v9785_v7 = vpop.permute.xlu2 %2877  ;;  %v1957_v35 = vpop.f32.mrf.mxu2 }
 0x41b   :  { %v2900_v19 = vsel %vm188_vm6, %v9785_v7, %v9698_v36  ;;  %v1958_v6 = vadd.f32 %v1957_v35, %v1934_v24  ;;  %v1911_v47 = vpop.f32.mrf.mxu3  ;;  %v1936_v0 = vpop.f32.mrf.mxu0  ;;  %v2883_v36 = vsel %vm188_vm6, %v9700_v4, %v9641_v39 }
 0x41c   :  { %v2932_v55 = vsel %vm1298_vm12, %v2900_v19, 0  ;;  %v1912_v28 = vadd.f32 %v1911_v47, %v9686_v14  ;;  %2940 = vmatpush.bf16.msra.mxu1 %v2883_v36 }
 0x41d   :  { %3009 = vmatpush.bf16.msrb.mxu2 %v2932_v55  ;;  %v9805_v29 = vadd.f32 %v1958_v6, %v9627_v54  ;;  %v7535_v54 = vld [vmem:[%s12090_s4 + $0x104] sm:$0xf] }
 0x41e   :  { %v9808_v52 = vadd.f32 %v1912_v28, %v9632_v2  ;;  %v2832_v9 = vpop.permute.xlu0 %2831  ;;  %v9812_v61 = vpop.permute.xlu1 %2869  ;;  %v6597_v2 = vld [vmem:[%s12090_s4 + $0x108] sm:$0xf0] }
 0x41f   :  { %v2884_v14 = vsel %vm188_vm6, %v9641_v39, %v2832_v9  ;;  %v6600_v56 = vor.u32 %v7535_v54, %v6597_v2  ;;  %v9823_v32 = vpop.f32.mrf.mxu1  ;;  %v6622_v9 = vld [vmem:[%s12090_s4 + $0x128] sm:$0xf] }
 0x420   :  { %2986 = vmatpush.bf16.msrb.mxu0 %v2884_v14  ;;  %v7540_v14 = vld [vmem:[%s12090_s4 + $0x12c] sm:$0xf0] }
 0x421   :  { %3010 = vmatpush.bf16.msrb.mxu2 %v2898_v18 }
 0x422   :  { %v1959_v4 = vpop.f32.mrf.mxu2  ;;  %v3103_v49 = vpop.permute.xlu2 %3102 }
 0x423   :  { %v1960_v11 = vadd.f32 %v1959_v4, %v1936_v0  ;;  %v1913_v15 = vpop.f32.mrf.mxu3  ;;  %v1939_v23 = vpop.f32.mrf.mxu0  ;;  %v7537_v4 = vld [vmem:[%s12090_s4 + $0x11c] sm:$0xf] }
 0x424   :  { %v1914_v33 = vadd.f32 %v1913_v15, %v9710_v38  ;;  %v6623_v15 = vor.u32 %v7540_v14, %v6622_v9 }
 0x425   :  { %v9826_v39 = vadd.f32 %v1960_v11, %v9657_v13  ;;  %2578 = vmatmul.bf16.gmra.mxu0 %v9728_v51  ;;  %v6616_v11 = vld [vmem:[%s12090_s4 + $0x120] sm:$0xf0] }
 0x426   :  { %v9829_v12 = vadd.f32 %v1914_v33, %v9661_v62  ;;  %v2826_v50 = vpop.permute.xlu0 %2825  ;;  %v3111_v53 = vpop.permute.xlu1 %3110 }
 0x427   :  { %v2882_v48 = vsel %vm188_vm6, %v9674_v21, %v2826_v50  ;;  %6605 = vmatmul.msk.bf16.gmra.mxu2 %vm1288_vm13, %v6600_v56  ;;  %v3141_v38 = vsel %vm217_vm10, %v3111_v53, %v9723_v26  ;;  %v9839_v3 = vpop.f32.mrf.mxu1  ;;  %v6614_v26 = vld [vmem:[%s12090_s4 + $0x118] sm:$0xf] }
 0x428   :  { %2987 = vmatpush.bf16.msrb.mxu0 %v2882_v48  ;;  %v6615_v5 = vor.u32 %v7538_v30, %v6614_v26 }
 0x429   :  { %6602 = vmatmul.msk.bf16.gmra.mxu3 %vm1288_vm13, %v6600_v56 }
 0x42a   :  { %v1962_v13 = vpop.f32.mrf.mxu2  ;;  %v3097_v17 = vpop.permute.xlu2 %3096 }
 0x42b   :  { %v1963_v62 = vadd.f32 %v1962_v13, %v1939_v23  ;;  %v1916_v34 = vpop.f32.mrf.mxu3  ;;  %v1941_v22 = vpop.f32.mrf.mxu0 }
 0x42c   :  { %3225 = vmatpush.bf16.msra.mxu0 %v3141_v38  ;;  %v1917_v51 = vadd.f32 %v1916_v34, %v9741_v16 }
 0x42d   :  { %v9842_v58 = vadd.f32 %v1963_v62, %v9689_v46  ;;  %v3140_v46 = vsel %vm217_vm10, %v9752_v60, %v3111_v53  ;;  %v6619_v53 = vor.u32 %v7537_v4, %v6616_v11 }
 0x42e   :  { %v9845_v63 = vadd.f32 %v1917_v51, %v9694_v40  ;;  %v2822_v57 = vpop.permute.xlu0 %2821  ;;  %v3107_v24 = vpop.permute.xlu1 %3106  ;;  %v2426_v40 = vunpack.c.h.b16 %v9775_v44 }
 0x42f   :  { %v2881_v16 = vsel %vm188_vm6, %v2822_v57, %v9674_v21  ;;  %v9858_v59 = vpop.f32.mrf.mxu1 }
 0x430   :  { %2941 = vmatpush.bf16.msra.mxu1 %v2881_v16  ;;  %v2432_v37 = vpack.c.b16 %v2426_v40, %v2426_v40 }
 0x432   :  { %v1964_v8 = vpop.f32.mrf.mxu2  ;;  %v9871_v28 = vpop.permute.xlu2 %3122 }
 0x433   :  { %v1918_v10 = vpop.f32.mrf.mxu3  ;;  %v2144_v1 = vpop.f32.mrf.mxu0  ;;  %2942 = vmatmul.bf16.vlgmr.msra.gmra.mxu1 %v6615_v5  ;;  %v7539_v8 = vld [vmem:[%s12090_s4 + $0x12c] sm:$0xf] }
 0x434   :  { %3179 = vmatpush.bf16.msrb.mxu1 %v3140_v46 }
 0x435   :  { %2583 = vmatmul.bf16.gmra.mxu0 %v9793_v27 }
 0x436   :  { %v3105_v31 = vpop.permute.xlu0 %3104  ;;  %v3101_v21 = vpop.permute.xlu1 %3100 }
 0x437   :  { %v3138_v19 = vsel %vm217_vm10, %v3103_v49, %v3105_v31  ;;  %v3139_v60 = vsel %vm217_vm10, %v3105_v31, %v3107_v24  ;;  %6606 = vmatmul.msk.bf16.gmra.mxu2 %vm1288_vm13, %v2432_v37  ;;  %v9866_v0 = vpop.f32.mrf.mxu1  ;;  %v2897_v49 = vsel %vm188_vm6, %v9812_v61, %v9573_v43  ;;  %v6611_v43 = vld [vmem:[%s12090_s4 + $0x138] sm:$0x33] }
 0x438   :  { %3180 = vmatpush.bf16.msrb.mxu1 %v3138_v19  ;;  %3226 = vmatpush.bf16.msra.mxu0 %v3139_v60  ;;  %v2680_v24 = vunpack.c.l.b16 %v6611_v43 }
 0x439   :  { %6603 = vmatmul.msk.bf16.gmra.mxu3 %vm1288_vm13, %v2432_v37 }
 0x43a   :  { %v2167_v44 = vpop.f32.mrf.mxu2  ;;  %v9903_v22 = vpop.permute.xlu2 %3080  ;;  %v2686_v10 = vpack.c.b16 %v2680_v24, %v2680_v24 }
 0x43b   :  { %v2168_v55 = vadd.f32 %v2167_v44, %v2144_v1  ;;  %v2121_v35 = vpop.f32.mrf.mxu3  ;;  %v2146_v6 = vpop.f32.mrf.mxu0 }
 0x43c   :  { %v2122_v47 = vadd.f32 %v2121_v35, %v9802_v42 }
 0x43d   :  { %v9869_v27 = vadd.f32 %v2168_v55, %v9744_v45 }
 0x43e   :  { %v9874_v36 = vadd.f32 %v2122_v47, %v9747_v41  ;;  %v3099_v18 = vpop.permute.xlu0 %3098  ;;  %v2876_v42 = vpop.permute.xlu1 %2875 }
 0x43f   :  { %v3136_v54 = vsel %vm217_vm10, %v3097_v17, %v3099_v18  ;;  %v3137_v45 = vsel %vm217_vm10, %v3099_v18, %v3101_v21  ;;  %v2899_v2 = vsel %vm188_vm6, %v2876_v42, %v9785_v7  ;;  %v2110_v48 = vpop.f32.mrf.mxu1  ;;  %vm5439_vm6 = vcmask 285696  }
 0x440   :  { %3181 = vmatpush.bf16.msrb.mxu1 %v3136_v54  ;;  %3227 = vmatpush.bf16.msra.mxu0 %v3137_v45  ;;  %v2929_v41 = vsel %vm1298_vm12, %v2899_v2, 0 }
 0x441   :  { %2963 = vmatpush.bf16.msra.mxu3 %v2929_v41 }
 0x442   :  { %v2169_v23 = vpop.f32.mrf.mxu2 }
 0x443   :  { %v2170_v33 = vadd.f32 %v2169_v23, %v2146_v6  ;;  %v2123_v56 = vpop.f32.mrf.mxu3  ;;  %v2149_v50 = vpop.f32.mrf.mxu0  ;;  %2947 = vmatmul.bf16.gmra.mxu1 %v6623_v15  ;;  %v2681_v23 = vunpack.c.h.b16 %v6611_v43 }
 0x444   :  { %v2124_v7 = vadd.f32 %v2123_v56, %v9823_v32 }
 0x445   :  { %v9895_v38 = vadd.f32 %v2170_v33, %v9778_v25  ;;  %2964 = vmatpush.bf16.msra.mxu3 %v2897_v49  ;;  %2988 = vmatmul.bf16.vlgmr.msrb.gmra.mxu0 %v6615_v5 }
 0x446   :  { %v9901_v13 = vadd.f32 %v2124_v7, %v9782_v20  ;;  %v3093_v62 = vpop.permute.xlu0 %3092  ;;  %v3095_v34 = vpop.permute.xlu1 %3094 }
 0x447   :  { %6751 = vmatmul.msk.bf16.vlgmr.msrb.gmra.mxu2 %vm1288_vm13, %v6619_v53  ;;  %v3135_v32 = vsel %vm217_vm10, %v3093_v62, %v3095_v34  ;;  %v9912_v26 = vpop.f32.mrf.mxu1 }
 0x448   :  { %3228 = vmatpush.bf16.msra.mxu0 %v3135_v32 }
 0x449   :  { %6748 = vmatmul.msk.bf16.vlgmr.msra.gmra.mxu3 %vm1288_vm13, %v6619_v53 }
 0x44a   :  { %v2172_v25 = vpop.f32.mrf.mxu2 }
 0x44b   :  { %v2173_v20 = vadd.f32 %v2172_v25, %v2149_v50  ;;  %v2126_v61 = vpop.f32.mrf.mxu3  ;;  %v2151_v51 = vpop.f32.mrf.mxu0  ;;  %v2687_v50 = vpack.c.b16 %v2681_v23, %v2681_v23 }
 0x44c   :  { %v2127_v57 = vadd.f32 %v2126_v61, %v9839_v3  ;;  %v6624_v3 = vld [vmem:[%s12090_s4 + $0x130] sm:$0xf0] }
 0x44d   :  { %v9915_v30 = vadd.f32 %v2173_v20, %v9805_v29  ;;  %v9927_v29 = vpop.permute.xlu2 %3116  ;;  %v6627_v21 = vor.u32 %v7539_v8, %v6624_v3 }
 0x44e   :  { %v9918_v16 = vadd.f32 %v2127_v57, %v9808_v52  ;;  %v3087_v46 = vpop.permute.xlu0 %3086  ;;  %v3089_v40 = vpop.permute.xlu1 %3088 }
 0x44f   :  { %v3133_v5 = vsel %vm217_vm10, %v3087_v46, %v3089_v40  ;;  %v9930_v19 = vpop.f32.mrf.mxu1 }
 0x450   :  { %3229 = vmatpush.bf16.msra.mxu0 %v3133_v5 }
 0x452   :  { %v2174_v1 = vpop.f32.mrf.mxu2 }
 0x453   :  { %v2175_v17 = vadd.f32 %v2174_v1, %v2151_v51  ;;  %v2128_v52 = vpop.f32.mrf.mxu3  ;;  %v2154_v37 = vpop.f32.mrf.mxu0  ;;  %2952 = vmatmul.bf16.gmra.mxu1 %v2686_v10  ;;  %v7572_v1 = vld [vmem:[%s12090_s4 + $0x144] sm:$0xf0] }
 0x454   :  { %v2129_v31 = vadd.f32 %v2128_v52, %v9858_v59 }
 0x455   :  { %v9933_v60 = vadd.f32 %v2175_v17, %v9826_v39  ;;  %2993 = vmatmul.bf16.gmra.mxu0 %v6623_v15  ;;  %v3075_v54 = vpop.permute.xlu2 %3074 }
 0x456   :  { %v9936_v44 = vadd.f32 %v2129_v31, %v9829_v12  ;;  %v3125_v55 = vpop.permute.xlu0 %3124  ;;  %v3091_v6 = vpop.permute.xlu1 %3090 }
 0x457   :  { %v3145_v35 = vsel %vm217_vm10, %v9871_v28, %v3125_v55  ;;  %6752 = vmatmul.msk.bf16.gmra.mxu2 %vm1288_vm13, %v6627_v21  ;;  %v3134_v59 = vsel %vm217_vm10, %v3091_v6, %v3093_v62  ;;  %v9945_v42 = vpop.f32.mrf.mxu1 }
 0x458   :  { %v3177_v47 = vsel %vm1298_vm12, %v3145_v35, 0  ;;  %3182 = vmatpush.bf16.msrb.mxu1 %v3134_v59 }
 0x459   :  { %3254 = vmatpush.bf16.msra.mxu2 %v3177_v47  ;;  %6749 = vmatmul.msk.bf16.gmra.mxu3 %vm1288_vm13, %v6627_v21 }
 0x45a   :  { %v2177_v39 = vpop.f32.mrf.mxu2 }
 0x45b   :  { %v2178_v18 = vadd.f32 %v2177_v39, %v2154_v37  ;;  %v2131_v12 = vpop.f32.mrf.mxu3  ;;  %v2156_v9 = vpop.f32.mrf.mxu0 }
 0x45c   :  { %v2132_v14 = vadd.f32 %v2131_v12, %v9866_v0 }
 0x45d   :  { %v9948_v45 = vadd.f32 %v2178_v18, %v9842_v58 }
 0x45e   :  { %v9951_v2 = vadd.f32 %v2132_v14, %v9845_v63  ;;  %v3083_v41 = vpop.permute.xlu0 %3082  ;;  %v3085_v4 = vpop.permute.xlu1 %3084 }
 0x45f   :  { %v3131_v11 = vsel %vm217_vm10, %v9903_v22, %v3083_v41  ;;  %v3132_v15 = vsel %vm217_vm10, %v3085_v4, %v3087_v46  ;;  %v9956_v7 = vpop.f32.mrf.mxu1  ;;  %v3069_v63 = vpop.permute.xlu2 %3068  ;;  %v7573_v41 = vld [vmem:[%s12090_s4 + $0x154] sm:$0xf]  ;;  %v6771_v4 = vld [vmem:[%s12090_s4 + $0x158] sm:$0xf0] }
 0x460   :  { %3230 = vmatpush.bf16.msra.mxu0 %v3131_v11  ;;  %3183 = vmatpush.bf16.msrb.mxu1 %v3132_v15  ;;  %v6774_v15 = vor.u32 %v7573_v41, %v6771_v4 }
 0x462   :  { %v2179_v0 = vpop.f32.mrf.mxu2 }
 0x463   :  { %v2133_v33 = vpop.f32.mrf.mxu3  ;;  %v2359_v56 = vpop.f32.mrf.mxu0 }
 0x465   :  { %2998 = vmatmul.bf16.gmra.mxu0 %v2686_v10 }
 0x466   :  { %v3119_v58 = vpop.permute.xlu0 %3118  ;;  %v3121_v53 = vpop.permute.xlu1 %3120 }
 0x467   :  { %v3143_v48 = vsel %vm217_vm10, %v9927_v29, %v3119_v58  ;;  %v3144_v49 = vsel %vm217_vm10, %v3121_v53, %v9871_v28  ;;  %6753 = vmatmul.msk.bf16.gmra.mxu2 %vm1288_vm13, %v2687_v50  ;;  %v9967_v43 = vpop.f32.mrf.mxu1  ;;  %v3073_v5 = vpop.permute.xlu2 %3072 }
 0x468   :  { %v3174_v62 = vsel %vm1298_vm12, %v3144_v49, 0  ;;  %3255 = vmatpush.bf16.msra.mxu2 %v3143_v48  ;;  %v6758_v48 = vld [vmem:[%s12090_s4 + $0x160] sm:$0x33]  ;;  %vm6157_vm12 = vcmask 72704  }
 0x469   :  { %6750 = vmatmul.msk.bf16.gmra.mxu3 %vm1288_vm13, %v2687_v50 }
 0x46a   :  { %3208 = vmatpush.bf16.msrb.mxu3 %v3174_v62  ;;  %v2382_v34 = vpop.f32.mrf.mxu2 }
 0x46b   :  { %v9965_v32 = vpop.f32.mrf.mxu0  ;;  %v2383_v25 = vadd.f32 %v2382_v34, %v2359_v56 }
 0x46c   :  { %v2336_v20 = vpop.f32.mrf.mxu3 }
 0x46d   :  { %v9970_v61 = vadd.f32 %v2383_v25, %v9869_v27  ;;  %v2337_v28 = vadd.f32 %v2336_v20, %v9912_v26  ;;  %v7571_v27 = vld [vmem:[%s12090_s4 + $0x144] sm:$0xf]  ;;  %v6763_v26 = vld [vmem:[%s12090_s4 + $0x148] sm:$0xf0]  ;;  %v3056_v25 = vunpack.c.h.b16 %v6758_v48 }
 0x46e   :  { %v3077_v51 = vpop.permute.xlu0 %3076  ;;  %v3079_v57 = vpop.permute.xlu1 %3078  ;;  %v6766_v10 = vor.u32 %v7571_v27, %v6763_v26 }
 0x46f   :  { %v3129_v24 = vsel %vm217_vm10, %v3075_v54, %v3077_v51  ;;  %v9975_v46 = vadd.f32 %v2337_v28, %v9874_v36  ;;  %v3130_v40 = vsel %vm217_vm10, %v3079_v57, %v9903_v22  ;;  %v3128_v36 = vsel %vm217_vm10, %v3073_v5, %v3075_v54  ;;  %v6761_v22 = vld [vmem:[%s12090_s4 + $0x140] sm:$0xf]  ;;  %v2325_v17 = vpop.f32.mrf.mxu1 }
 0x470   :  { %3231 = vmatpush.bf16.msra.mxu0 %v3129_v24  ;;  %3184 = vmatpush.bf16.msrb.mxu1 %v3130_v40  ;;  %v6762_v55 = vor.u32 %v7572_v1, %v6761_v22  ;;  %v3055_v51 = vunpack.c.l.b16 %v6758_v48  ;;  %v3062_v57 = vpack.c.b16 %v3056_v25, %v3056_v25 }
 0x472   :  { %v9985_v8 = vpop.f32.mrf.mxu2  ;;  %v3061_v5 = vpack.c.b16 %v3055_v51, %v3055_v51  ;;  %v7589_v51 = vld [vmem:[%s12092_s6 + $0x74] sm:$0xf] }
 0x473   :  { %v2364_v3 = vpop.f32.mrf.mxu0 }
 0x474   :  { %v9994_v52 = vpop.f32.mrf.mxu3  ;;  %3185 = vmatpush.bf16.msrb.mxu1 %v3128_v36 }
 0x476   :  { %v3071_v37 = vpop.permute.xlu0 %3070  ;;  %v3115_v31 = vpop.permute.xlu1 %3114 }
 0x477   :  { %v3127_v21 = vsel %vm217_vm10, %v3069_v63, %v3071_v37  ;;  %6778 = vmatmul.msk.bf16.vlgmr.msra.gmra.mxu2 %vm1288_vm13, %v6766_v10  ;;  %v3142_v35 = vsel %vm217_vm10, %v3115_v31, %v9927_v29  ;;  %v2528_v39 = vpop.f32.mrf.mxu1 }
 0x478   :  { %3232 = vmatpush.bf16.msra.mxu0 %v3127_v21  ;;  %3209 = vmatpush.bf16.msrb.mxu3 %v3142_v35 }
 0x47a   :  { %v2387_v6 = vpop.f32.mrf.mxu2 }
 0x47b   :  { %3233 = vmatmul.bf16.vlgmr.msra.gmra.mxu0 %v6762_v55  ;;  %v10000_v47 = vpop.f32.mrf.mxu0  ;;  %v2388_v59 = vadd.f32 %v2387_v6, %v2364_v3  ;;  %6775 = vmatmul.msk.bf16.vlgmr.msrb.gmra.mxu3 %vm1288_vm13, %v6766_v10 }
 0x47c   :  { %v2341_v18 = vpop.f32.mrf.mxu3 }
 0x47d   :  { %v2401_v12 = vadd.f32 %v2388_v59, %v9915_v30  ;;  %v2342_v9 = vadd.f32 %v2341_v18, %v9945_v42  ;;  %v6769_v42 = vld [vmem:[%s12090_s4 + $0x150] sm:$0xf] }
 0x47e   :  { %v3067_v14 = vpop.permute.xlu0 %3066 }
 0x47f   :  { %v3126_v54 = vsel %vm217_vm10, %v3067_v14, %v3069_v63  ;;  %v2400_v29 = vadd.f32 %v2342_v9, %v9918_v16  ;;  %v7574_v16 = vld [vmem:[%s12090_s4 + $0x154] sm:$0xf0]  ;;  %v10021_v23 = vpop.f32.mrf.mxu1  ;;  %vm6143_vm10 = vcmask 15360  }
 0x480   :  { %3186 = vmatpush.bf16.msrb.mxu1 %v3126_v54  ;;  %v6770_v33 = vor.u32 %v7574_v16, %v6769_v42 }
 0x482   :  { %v10013_v11 = vpop.f32.mrf.mxu2 }
 0x483   :  { %3187 = vmatmul.bf16.vlgmr.msrb.gmra.mxu1 %v6762_v55  ;;  %v2369_v30 = vpop.f32.mrf.mxu0 }
 0x484   :  { %v10023_v0 = vpop.f32.mrf.mxu3 }
 0x487   :  { %6779 = vmatmul.msk.bf16.gmra.mxu2 %vm1288_vm13, %v6774_v15  ;;  %v2533_v63 = vpop.f32.mrf.mxu1 }
 0x48a   :  { %v2392_v56 = vpop.f32.mrf.mxu2 }
 0x48b   :  { %3238 = vmatmul.bf16.gmra.mxu0 %v6770_v33  ;;  %v2371_v50 = vpop.f32.mrf.mxu0  ;;  %v2393_v58 = vadd.f32 %v2392_v56, %v2369_v30  ;;  %6776 = vmatmul.msk.bf16.gmra.mxu3 %vm1288_vm13, %v6774_v15 }
 0x48c   :  { %v2346_v53 = vpop.f32.mrf.mxu3 }
 0x48d   :  { %v2405_v49 = vadd.f32 %v2393_v58, %v9948_v45  ;;  %v2347_v62 = vadd.f32 %v2346_v53, %v9967_v43 }
 0x48f   :  { %v2404_v34 = vadd.f32 %v2347_v62, %v9951_v2  ;;  %v10033_v24 = vpop.f32.mrf.mxu1 }
 0x492   :  { %v2394_v20 = vpop.f32.mrf.mxu2 }
 0x493   :  { %3192 = vmatmul.bf16.gmra.mxu1 %v6770_v33  ;;  %v2574_v28 = vpop.f32.mrf.mxu0  ;;  %v6839_v20 = vld [vmem:[%s12092_s6 + $0x70] sm:$0xf] }
 0x494   :  { %v2348_v40 = vpop.f32.mrf.mxu3 }
 0x495   :  { %v6841_v40 = vld [vmem:[%s12092_s6 + $0x78] sm:$0xf0] }
 0x497   :  { %6780 = vmatmul.msk.bf16.gmra.mxu2 %vm1288_vm13, %v3062_v57  ;;  %v2538_v2 = vpop.f32.mrf.mxu1 }
 0x49a   :  { %v2597_v27 = vpop.f32.mrf.mxu2 }
 0x49b   :  { %3243 = vmatmul.bf16.gmra.mxu0 %v3061_v5  ;;  %v10036_v26 = vpop.f32.mrf.mxu0  ;;  %v2598_v45 = vadd.f32 %v2597_v27, %v2574_v28  ;;  %6777 = vmatmul.msk.bf16.gmra.mxu3 %vm1288_vm13, %v3062_v57  ;;  %v7590_v28 = vld [vmem:[%s12092_s6 + $0x74] sm:$0xf0]  ;;  %vm6159_vm13 = vcmask 80896  }
 0x49c   :  { %v2551_v43 = vpop.f32.mrf.mxu3  ;;  %v6840_v57 = vor.u32 %v7590_v28, %v6839_v20  ;;  %v7602_v27 = vld [vmem:[%s12092_s6 + $0xd4] sm:$0xf0]  ;;  %v7585_v28 = vld [vmem:[%s12092_s6 + $0x54] sm:$0xf] }
 0x49d   :  { %v10040_v3 = vadd.f32 %v2598_v45, %v9970_v61  ;;  %v2552_v36 = vadd.f32 %v2551_v43, %v2528_v39  ;;  %v7586_v20 = vld [vmem:[%s12092_s6 + $0x54] sm:$0xf0] }
 0x49e   :  { %3505 = vmatpush.bf16.msra.mxu1 %v6840_v57  ;;  %v6825_v57 = vld [vmem:[%s12092_s6 + $0x58] sm:$0xf0] }
 0x49f   :  { %v2611_v10 = vadd.f32 %v2552_v36, %v9975_v46  ;;  %v2540_v17 = vpop.f32.mrf.mxu1  ;;  %v7601_v36 = vld [vmem:[%s12092_s6 + $0xd4] sm:$0xf] }
 0x4a2   :  { %v10043_v22 = vpop.f32.mrf.mxu2 }
 0x4a3   :  { %3197 = vmatmul.bf16.gmra.mxu1 %v3061_v5  ;;  %v2579_v1 = vpop.f32.mrf.mxu0  ;;  %v6887_v5 = vld [vmem:[%s12092_s6 + $0xd0] sm:$0xf] }
 0x4a4   :  { %v10045_v37 = vpop.f32.mrf.mxu3  ;;  %v6888_v43 = vor.u32 %v7602_v27, %v6887_v5  ;;  %v6828_v5 = vor.u32 %v7585_v28, %v6825_v57  ;;  %v6871_v27 = vld [vmem:[%s12092_s6 + $0xb0] sm:$0xf]  ;;  %v7582_v28 = vld [vmem:[%s12092_s6 + $0x34] sm:$0xf0] }
 0x4a6   :  { %3530 = vmatpush.bf16.msra.mxu3 %v6888_v43  ;;  %v7597_v43 = vld [vmem:[%s12092_s6 + $0xb4] sm:$0xf] }
 0x4aa   :  { %v2602_v31 = vpop.f32.mrf.mxu2 }
 0x4ab   :  { %v10047_v21 = vpop.f32.mrf.mxu0  ;;  %v2603_v55 = vadd.f32 %v2602_v31, %v2579_v1  ;;  %v6831_v1 = vld [vmem:[%s12092_s6 + $0x60] sm:$0xf]  ;;  %v7588_v31 = vld [vmem:[%s12092_s6 + $0x64] sm:$0xf0] }
 0x4ac   :  { %v2556_v35 = vpop.f32.mrf.mxu3 }
 0x4ad   :  { %v10049_v6 = vadd.f32 %v2603_v55, %v2401_v12  ;;  %v2557_v59 = vadd.f32 %v2556_v35, %v2533_v63  ;;  %v7587_v55 = vld [vmem:[%s12092_s6 + $0x64] sm:$0xf]  ;;  %v6833_v35 = vld [vmem:[%s12092_s6 + $0x68] sm:$0xf0] }
 0x4af   :  { %v10051_v61 = vadd.f32 %v2557_v59, %v2400_v29  ;;  %v6832_v59 = vor.u32 %v7588_v31, %v6831_v1  ;;  %v6873_v1 = vld [vmem:[%s12092_s6 + $0xb8] sm:$0xf0]  ;;  %v6815_v31 = vld [vmem:[%s12092_s6 + $0x40] sm:$0xf] }
 0x4b0   :  { %v2943_v39 = vpop.f32.mrf.mxu1 }
 0x4b1   :  { %3506 = vmatpush.bf16.msra.mxu1 %v6832_v59 }
 0x4b2   :  { %v10053_v18 = vpop.f32.mrf.mxu2 }
 0x4b3   :  { %v2584_v46 = vpop.f32.mrf.mxu0 }
 0x4b4   :  { %v10055_v9 = vpop.f32.mrf.mxu3 }
 0x4b8   :  { %v10057_v14 = vpop.f32.mrf.mxu1 }
 0x4ba   :  { %v2607_v54 = vpop.f32.mrf.mxu2 }
 0x4bb   :  { %v2586_v41 = vpop.f32.mrf.mxu0  ;;  %v2608_v4 = vadd.f32 %v2607_v54, %v2584_v46  ;;  %v6879_v46 = vld [vmem:[%s12092_s6 + $0xc0] sm:$0xf]  ;;  %v7600_v54 = vld [vmem:[%s12092_s6 + $0xc4] sm:$0xf0] }
 0x4bc   :  { %v2561_v30 = vpop.f32.mrf.mxu3  ;;  %v7599_v41 = vld [vmem:[%s12092_s6 + $0xc4] sm:$0xf] }
 0x4bd   :  { %v10059_v15 = vadd.f32 %v2608_v4, %v2405_v49  ;;  %v2562_v42 = vadd.f32 %v2561_v30, %v2538_v2  ;;  %v6844_v2 = vor.u32 %v7589_v51, %v6841_v40  ;;  %v6880_v30 = vor.u32 %v7600_v54, %v6879_v46  ;;  %v6863_v54 = vld [vmem:[%s12092_s6 + $0xa0] sm:$0xf] }
 0x4bf   :  { %v10061_v12 = vadd.f32 %v2562_v42, %v2404_v34  ;;  %3551 = vmatpush.bf16.msrb.mxu0 %v6844_v2  ;;  %v6881_v42 = vld [vmem:[%s12092_s6 + $0xc8] sm:$0xf0]  ;;  %3531 = vmatpush.bf16.msra.mxu3 %v6880_v30  ;;  %v7598_v2 = vld [vmem:[%s12092_s6 + $0xb4] sm:$0xf0] }
 0x4c0   :  { %v2948_v16 = vpop.f32.mrf.mxu1  ;;  %v6865_v30 = vld [vmem:[%s12092_s6 + $0xa8] sm:$0xf0] }
 0x4c2   :  { %v2609_v29 = vpop.f32.mrf.mxu2 }
 0x4c3   :  { %v10063_v33 = vpop.f32.mrf.mxu0  ;;  %v6884_v29 = vor.u32 %v7599_v41, %v6881_v42  ;;  %v7596_v41 = vld [vmem:[%s12092_s6 + $0xa4] sm:$0xf0] }
 0x4c4   :  { %v2563_v56 = vpop.f32.mrf.mxu3 }
 0x4c8   :  { %v10065_v50 = vpop.f32.mrf.mxu1 }
 0x4ca   :  { %v10067_v58 = vpop.f32.mrf.mxu2 }
 0x4cb   :  { %v10069_v63 = vpop.f32.mrf.mxu0 }
 0x4cc   :  { %v2966_v53 = vpop.f32.mrf.mxu3 }
 0x4cd   :  { %v2967_v48 = vadd.f32 %v2966_v53, %v2943_v39  ;;  %v6836_v39 = vor.u32 %v7587_v55, %v6833_v35  ;;  %v7584_v55 = vld [vmem:[%s12092_s6 + $0x44] sm:$0xf0] }
 0x4ce   :  { %v6816_v59 = vor.u32 %v7584_v55, %v6815_v31  ;;  %v6799_v31 = vld [vmem:[%s12092_s6 + $0x20] sm:$0xf]  ;;  %v7580_v55 = vld [vmem:[%s12092_s6 + $0x24] sm:$0xf0] }
 0x4cf   :  { %v10071_v62 = vadd.f32 %v2967_v48, %v2611_v10  ;;  %v6889_v10 = vld [vmem:[%s12092_s6 + $0xd8] sm:$0xf0]  ;;  %3552 = vmatpush.bf16.msrb.mxu0 %v6836_v39  ;;  %v6823_v48 = vld [vmem:[%s12092_s6 + $0x50] sm:$0xf]  ;;  %v6817_v39 = vld [vmem:[%s12092_s6 + $0x48] sm:$0xf0] }
 0x4d0   :  { %v10073_v49 = vpop.f32.mrf.mxu1  ;;  %v6892_v17 = vor.u32 %v7601_v36, %v6889_v10  ;;  %v6824_v51 = vor.u32 %v7586_v20, %v6823_v48  ;;  %v6872_v10 = vor.u32 %v7598_v2, %v6871_v27  ;;  %v6807_v20 = vld [vmem:[%s12092_s6 + $0x30] sm:$0xf] }
 0x4d1   :  { %v6808_v57 = vor.u32 %v7582_v28, %v6807_v20  ;;  %v6855_v2 = vld [vmem:[%s12092_s6 + $0x90] sm:$0xf] }
 0x4d2   :  { %v10075_v25 = vpop.f32.mrf.mxu2  ;;  %3576 = vmatpush.bf16.msrb.mxu2 %v6892_v17  ;;  %3507 = vmatpush.bf16.msra.mxu1 %v6824_v51  ;;  %v6876_v17 = vor.u32 %v7597_v43, %v6873_v1  ;;  %v7581_v51 = vld [vmem:[%s12092_s6 + $0x34] sm:$0xf]  ;;  %v7594_v43 = vld [vmem:[%s12092_s6 + $0x94] sm:$0xf0]  ;;  %v6857_v1 = vld [vmem:[%s12092_s6 + $0x98] sm:$0xf0] }
 0x4d3   :  { %v10077_v34 = vpop.f32.mrf.mxu0  ;;  %3553 = vmatpush.bf16.msrb.mxu0 %v6828_v5  ;;  %3532 = vmatpush.bf16.msra.mxu3 %v6872_v10  ;;  %v6856_v10 = vor.u32 %v7594_v43, %v6855_v2  ;;  %v6793_v2 = vld [vmem:[%s12092_s6 + $0x18] sm:$0xf0] }
 0x4d4   :  { %v10097_v45 = vpop.f32.mrf.mxu3 }
 0x4d6   :  { %3577 = vmatpush.bf16.msrb.mxu2 %v6884_v29  ;;  %3508 = vmatpush.bf16.msra.mxu1 %v6816_v59  ;;  %v6800_v59 = vor.u32 %v7580_v55, %v6799_v31  ;;  %v7575_v31 = vld [vmem:[%s12092_s6 + $0x4] sm:$0xf] }
 0x4d8   :  { %v2955_v4 = vpop.f32.mrf.mxu1 }
 0x4d9   :  { %v6864_v4 = vor.u32 %v7596_v41, %v6863_v54  ;;  %v6847_v54 = vld [vmem:[%s12092_s6 + $0x80] sm:$0xf]  ;;  %v7592_v41 = vld [vmem:[%s12092_s6 + $0x84] sm:$0xf0] }
 0x4da   :  { %v10129_v56 = vpop.f32.mrf.mxu2  ;;  %3578 = vmatpush.bf16.msrb.mxu2 %v6876_v17  ;;  %3509 = vmatpush.bf16.msra.mxu1 %v6808_v57  ;;  %v7578_v57 = vld [vmem:[%s12092_s6 + $0x14] sm:$0xf0] }
 0x4db   :  { %v10131_v53 = vpop.f32.mrf.mxu0  ;;  %3533 = vmatpush.bf16.msra.mxu3 %v6864_v4  ;;  %v6848_v4 = vor.u32 %v7592_v41, %v6847_v54 }
 0x4dc   :  { %v2971_v40 = vpop.f32.mrf.mxu3 }
 0x4dd   :  { %v2972_v36 = vadd.f32 %v2971_v40, %v2948_v16  ;;  %v7583_v16 = vld [vmem:[%s12092_s6 + $0x44] sm:$0xf]  ;;  %v6809_v40 = vld [vmem:[%s12092_s6 + $0x38] sm:$0xf0] }
 0x4de   :  { %v6820_v46 = vor.u32 %v7583_v16, %v6817_v39  ;;  %v6812_v27 = vor.u32 %v7581_v51, %v6809_v40  ;;  %v7579_v16 = vld [vmem:[%s12092_s6 + $0x24] sm:$0xf]  ;;  %v6801_v39 = vld [vmem:[%s12092_s6 + $0x28] sm:$0xf0]  ;;  %3510 = vmatpush.bf16.msra.mxu1 %v6800_v59  ;;  %v6791_v51 = vld [vmem:[%s12092_s6 + $0x10] sm:$0xf] }
 0x4df   :  { %v10167_v35 = vadd.f32 %v2972_v36, %v10051_v61  ;;  %v7595_v61 = vld [vmem:[%s12092_s6 + $0xa4] sm:$0xf]  ;;  %v7593_v36 = vld [vmem:[%s12092_s6 + $0x94] sm:$0xf]  ;;  %3534 = vmatpush.bf16.msra.mxu3 %v6856_v10 }
 0x4e0   :  { %3554 = vmatpush.bf16.msrb.mxu0 %v6820_v46  ;;  %v6868_v48 = vor.u32 %v7595_v61, %v6865_v30  ;;  %v6860_v17 = vor.u32 %v7593_v36, %v6857_v1  ;;  %v6804_v46 = vor.u32 %v7579_v16, %v6801_v39  ;;  %v7591_v61 = vld [vmem:[%s12092_s6 + $0x84] sm:$0xf]  ;;  %v6849_v30 = vld [vmem:[%s12092_s6 + $0x88] sm:$0xf0]  ;;  %v7577_v40 = vld [vmem:[%s12092_s6 + $0x14] sm:$0xf] }
 0x4e1   :  { %v6852_v28 = vor.u32 %v7591_v61, %v6849_v30  ;;  %v6796_v36 = vor.u32 %v7577_v40, %v6793_v2  ;;  %v6783_v1 = vld [vmem:[%s12092_s6] sm:$0xf]  ;;  %v2385_v61 = vadd.f32 %v9985_v8, %v9965_v32  ;;  %v2554_v8 = vadd.f32 %v10045_v37, %v10021_v23 }
 0x4e2   :  { %v10184_v42 = vpop.f32.mrf.mxu2  ;;  %3579 = vmatpush.bf16.msrb.mxu2 %v6868_v48 }
 0x4e3   :  { %v10186_v29 = vpop.f32.mrf.mxu0  ;;  %3535 = vmatpush.bf16.msra.mxu3 %v6848_v4  ;;  %v2600_v4 = vadd.f32 %v10043_v22, %v10036_v26 }
 0x4e4   :  { %v10200_v5 = vpop.f32.mrf.mxu3  ;;  %3555 = vmatpush.bf16.msrb.mxu0 %v6812_v27  ;;  %v6792_v27 = vor.u32 %v7578_v57, %v6791_v51 }
 0x4e6   :  { %3580 = vmatpush.bf16.msrb.mxu2 %v6860_v17  ;;  %3511 = vmatpush.bf16.msra.mxu1 %v6792_v27  ;;  %v7576_v17 = vld [vmem:[%s12092_s6 + $0x4] sm:$0xf0]  ;;  %v2339_v27 = vadd.f32 %v9994_v52, %v9930_v19 }
 0x4e7   :  { %v6784_v16 = vor.u32 %v7576_v17, %v6783_v1 }
 0x4e8   :  { %3556 = vmatpush.bf16.msrb.mxu0 %v6804_v46 }
 0x4ea   :  { %v10238_v48 = vpop.f32.mrf.mxu2  ;;  %3581 = vmatpush.bf16.msrb.mxu2 %v6852_v28  ;;  %3512 = vmatpush.bf16.msra.mxu1 %v6784_v16  ;;  %v3015_v28 = vadd.f32 %v10075_v25, %v10069_v63  ;;  %v2969_v63 = vadd.f32 %v10097_v45, %v10057_v14  ;;  %v2390_v14 = vadd.f32 %v10013_v11, %v10000_v47 }
 0x4eb   :  { %v3001_v20 = vpop.f32.mrf.mxu0 }
 0x4ec   :  { %v2976_v43 = vpop.f32.mrf.mxu3  ;;  %3557 = vmatpush.bf16.msrb.mxu0 %v6796_v36  ;;  %v2399_v20 = vadd.f32 %v2385_v61, %v9895_v38  ;;  %v2398_v38 = vadd.f32 %v2339_v27, %v9901_v13  ;;  %v2403_v61 = vadd.f32 %v2390_v14, %v9933_v60 }
 0x4ed   :  { %v2977_v10 = vadd.f32 %v2976_v43, %v10073_v49  ;;  %v6785_v49 = vld [vmem:[%s12092_s6 + $0x8] sm:$0xf0]  ;;  %v3294_v43 = vpop.permute.xlu2 %3293  ;;  %s7728_s6 = smov 72  }
 0x4ee   :  { %v6788_v59 = vor.u32 %v7575_v31, %v6785_v49  ;;  %v2614_v2 = vadd.f32 %v2600_v4, %v2399_v20  ;;  %v2613_v19 = vadd.f32 %v2554_v8, %v2398_v38  ;;  %v3020_v4 = vadd.f32 %v10184_v42, %v10131_v53 }
 0x4ef   :  { %v10263_v55 = vadd.f32 %v2977_v10, %v10061_v12  ;;  %v3013_v12 = vadd.f32 %v10067_v58, %v10063_v33  ;;  %v3289_v10 = vpop.permute.xlu1 %3288  ;;  %v2974_v42 = vadd.f32 %v10200_v5, %v10065_v50  ;;  %v3023_v50 = vadd.f32 %v10238_v48, %v10186_v29 }
 0x4f0   :  { %3558 = vmatpush.bf16.msrb.mxu0 %v6788_v59  ;;  %v3029_v22 = vadd.f32 %v3015_v28, %v2614_v2  ;;  %v3028_v23 = vadd.f32 %v2969_v63, %v2613_v19 }
 0x4f1   :  { %v3027_v32 = vadd.f32 %v3013_v12, %v10040_v3 }
 0x4f2   :  { %v3024_v39 = vpop.f32.mrf.mxu2 }
 0x4f4   :  { %v2978_v46 = vpop.f32.mrf.mxu3 }
 0x4f5   :  { %v2605_v46 = vadd.f32 %v10053_v18, %v10047_v21  ;;  %v2559_v18 = vadd.f32 %v10055_v9, %v10033_v24 }
 0x4f7   :  { %v2618_v20 = vadd.f32 %v2605_v46, %v2403_v61 }
 0x4f8   :  { %v3234_v54 = vpop.f32.mrf.mxu0 }
 0x4fa   :  { %v3257_v41 = vpop.f32.mrf.mxu2 }
 0x4fb   :  { %v3258_v51 = vadd.f32 %v3257_v41, %v3234_v54  ;;  %v3018_v54 = vadd.f32 %v10129_v56, %v10077_v34  ;;  %v3033_v56 = vadd.f32 %v3020_v4, %v2618_v20 }
 0x4fd   :  { %v3272_v33 = vadd.f32 %v3258_v51, %v3027_v32  ;;  %v3031_v21 = vadd.f32 %v3018_v54, %v10049_v6 }
 0x4fe   :  { %v3211_v30 = vpop.f32.mrf.mxu3 }
 0x4ff   :  { %v3312_v1 = vadd.f32 %v3289_v10, %v3272_v33 }
 0x500   :  { %v3188_v57 = vpop.f32.mrf.mxu1  ;;  %v3236_v40 = vpop.f32.mrf.mxu0 }
 0x501   :  { %v3212_v25 = vadd.f32 %v3211_v30, %v3188_v57  ;;  %v2344_v30 = vadd.f32 %v10023_v0, %v9956_v7  ;;  %v3299_v57 = vpop.permute.xlu0 %3298  ;;  %v3304_v0 = vpop.permute.xlu1 %3303 }
 0x502   :  { %v3259_v26 = vpop.f32.mrf.mxu2 }
 0x503   :  { %v3260_v58 = vadd.f32 %v3259_v26, %v3236_v40  ;;  %v3271_v37 = vadd.f32 %v3212_v25, %v10071_v62  ;;  %v2402_v53 = vadd.f32 %v2344_v30, %v9936_v44 }
 0x505   :  { %v3274_v36 = vadd.f32 %v3260_v58, %v3029_v22  ;;  %v3311_v45 = vadd.f32 %v3289_v10, %v3271_v37  ;;  %v2617_v40 = vadd.f32 %v2559_v18, %v2402_v53  ;;  %v12106_v37 = vmov 0  }
 0x506   :  { %v3213_v52 = vpop.f32.mrf.mxu3  ;;  %3603 = vst.msk [vmem:[#allocation4] sm:$0xf] %vm3602_vm4, %v12106_v37 }
 0x507   :  { %v3314_v3 = vadd.f32 %v3294_v43, %v3274_v36  ;;  %v3032_v24 = vadd.f32 %v2974_v42, %v2617_v40  ;;  %3604 = vst.msk [vmem:[#allocation4 + $0x4] sm:$0xf] %vm3602_vm4, %v12106_v37 }
 0x508   :  { %v3190_v17 = vpop.f32.mrf.mxu1  ;;  %v3239_v31 = vpop.f32.mrf.mxu0  ;;  %3605 = vst.msk [vmem:[#allocation4 + $0x8] sm:$0xf] %vm3602_vm4, %v12106_v37 }
 0x509   :  { %v3214_v16 = vadd.f32 %v3213_v52, %v3190_v17  ;;  %v3322_v49 = vpack.c.bf16 %v3314_v3, %v3312_v1  ;;  %v3309_v1 = vpop.permute.xlu2 %3308  ;;  %3606 = vst.msk [vmem:[#allocation4 + $0xc] sm:$0xf] %vm3602_vm4, %v12106_v37 }
 0x50a   :  { %v3262_v13 = vpop.f32.mrf.mxu2  ;;  %3607 = vst.msk [vmem:[#allocation4 + $0x10] sm:$0xf] %vm3602_vm4, %v12106_v37 }
 0x50b   :  { %v3273_v59 = vadd.f32 %v3214_v16, %v3028_v23  ;;  %6893 = vmatmul.msk.bf16.vlgmr.msra.gmra.mxu3 %vm159_vm3, %v3322_v49  ;;  %6896 = vmatmul.msk.bf16.vlgmr.msrb.gmra.mxu2 %vm159_vm3, %v3322_v49  ;;  %v3263_v47 = vadd.f32 %v3262_v13, %v3239_v31  ;;  %3608 = vst.msk [vmem:[#allocation4 + $0x14] sm:$0xf] %vm3602_vm4, %v12106_v37 }
 0x50c   :  { %3609 = vst.msk [vmem:[#allocation4 + $0x18] sm:$0xf] %vm3602_vm4, %v12106_v37 }
 0x50d   :  { %v3313_v39 = vadd.f32 %v3294_v43, %v3273_v59  ;;  %v3276_v60 = vadd.f32 %v3263_v47, %v3031_v21  ;;  %v3035_v43 = vadd.f32 %v3023_v50, %v10059_v15  ;;  %3610 = vst.msk [vmem:[#allocation4 + $0x1c] sm:$0xf] %vm3602_vm4, %v12106_v37 }
 0x50e   :  { %v3216_v41 = vpop.f32.mrf.mxu3  ;;  %3611 = vst.msk [vmem:[#allocation4 + $0x20] sm:$0xf] %vm3602_vm4, %v12106_v37 }
 0x50f   :  { %v3321_v62 = vpack.c.bf16 %v3313_v39, %v3311_v45  ;;  %v3316_v2 = vadd.f32 %v3299_v57, %v3276_v60  ;;  %3612 = vst.msk [vmem:[#allocation4 + $0x24] sm:$0xf] %vm3602_vm4, %v12106_v37 }
 0x510   :  { %v3193_v11 = vpop.f32.mrf.mxu1  ;;  %v3241_v12 = vpop.f32.mrf.mxu0  ;;  %3613 = vst.msk [vmem:[#allocation4 + $0x28] sm:$0xf] %vm3602_vm4, %v12106_v37 }
 0x511   :  { %3513 = vmatmul.bf16.vlgmr.msra.gmra.mxu1 %v3321_v62  ;;  %3559 = vmatmul.bf16.vlgmr.msrb.gmra.mxu0 %v3321_v62  ;;  %v3217_v51 = vadd.f32 %v3216_v41, %v3193_v11  ;;  %3614 = vst.msk [vmem:[#allocation4 + $0x2c] sm:$0xf] %vm3602_vm4, %v12106_v37 }
 0x512   :  { %v3264_v34 = vpop.f32.mrf.mxu2  ;;  %3615 = vst.msk [vmem:[#allocation4 + $0x30] sm:$0xf] %vm3602_vm4, %v12106_v37 }
 0x513   :  { %v3265_v28 = vadd.f32 %v3264_v34, %v3241_v12  ;;  %v3275_v9 = vadd.f32 %v3217_v51, %v10167_v35  ;;  %3616 = vst.msk [vmem:[#allocation4 + $0x34] sm:$0xf] %vm3602_vm4, %v12106_v37 }
 0x514   :  { %3617 = vst.msk [vmem:[#allocation4 + $0x38] sm:$0xf] %vm3602_vm4, %v12106_v37 }
 0x515   :  { %v3278_v7 = vadd.f32 %v3265_v28, %v3033_v56  ;;  %v3315_v5 = vadd.f32 %v3299_v57, %v3275_v9  ;;  %3618 = vst.msk [vmem:[#allocation4 + $0x3c] sm:$0xf] %vm3602_vm4, %v12106_v37 }
 0x516   :  { %v3218_v27 = vpop.f32.mrf.mxu3  ;;  %3619 = vst.msk [vmem:[#allocation4 + $0x40] sm:$0xf] %vm3602_vm4, %v12106_v37 }
 0x517   :  { %v3318_v6 = vadd.f32 %v3304_v0, %v3278_v7  ;;  %3620 = vst.msk [vmem:[#allocation4 + $0x44] sm:$0xf] %vm3602_vm4, %v12106_v37 }
 0x518   :  { %v3195_v32 = vpop.f32.mrf.mxu1  ;;  %v3244_v8 = vpop.f32.mrf.mxu0  ;;  %3621 = vst.msk [vmem:[#allocation4 + $0x48] sm:$0xf] %vm3602_vm4, %v12106_v37 }
 0x519   :  { %v3219_v26 = vadd.f32 %v3218_v27, %v3195_v32  ;;  %v3324_v22 = vpack.c.bf16 %v3318_v6, %v3316_v2  ;;  %3622 = vst.msk [vmem:[#allocation4 + $0x4c] sm:$0xf] %vm3602_vm4, %v12106_v37 }
 0x51a   :  { %v3267_v44 = vpop.f32.mrf.mxu2  ;;  %3623 = vst.msk [vmem:[#allocation4 + $0x50] sm:$0xf] %vm3602_vm4, %v12106_v37 }
 0x51b   :  { %v3277_v33 = vadd.f32 %v3219_v26, %v3032_v24  ;;  %6894 = vmatmul.msk.bf16.gmra.mxu3 %vm159_vm3, %v3324_v22  ;;  %6897 = vmatmul.msk.bf16.gmra.mxu2 %vm159_vm3, %v3324_v22  ;;  %v3268_v38 = vadd.f32 %v3267_v44, %v3244_v8  ;;  %3624 = vst.msk [vmem:[#allocation4 + $0x54] sm:$0xf] %vm3602_vm4, %v12106_v37 }
 0x51c   :  { %3625 = vst.msk [vmem:[#allocation4 + $0x58] sm:$0xf] %vm3602_vm4, %v12106_v37 }
 0x51d   :  { %v3317_v58 = vadd.f32 %v3304_v0, %v3277_v33  ;;  %v3280_v10 = vadd.f32 %v3268_v38, %v3035_v43  ;;  %3626 = vst.msk [vmem:[#allocation4 + $0x5c] sm:$0xf] %vm3602_vm4, %v12106_v37 }
 0x51e   :  { %v3221_v63 = vpop.f32.mrf.mxu3 }
 0x51f   :  { %v3323_v25 = vpack.c.bf16 %v3317_v58, %v3315_v5  ;;  %v3320_v29 = vadd.f32 %v3309_v1, %v3280_v10 }
 0x520   :  { %v3198_v36 = vpop.f32.mrf.mxu1  ;;  %v3246_v35 = vpop.f32.mrf.mxu0 }
 0x521   :  { %3518 = vmatmul.bf16.gmra.mxu1 %v3323_v25  ;;  %3564 = vmatmul.bf16.gmra.mxu0 %v3323_v25  ;;  %v3222_v19 = vadd.f32 %v3221_v63, %v3198_v36  ;;  %v3326_v31 = vpack.c.bf16 %v3320_v29, %v3320_v29 }
 0x522   :  { %v3269_v52 = vpop.f32.mrf.mxu2 }
 0x523   :  { %v3279_v48 = vadd.f32 %v3222_v19, %v10263_v55 }
 0x525   :  { %v3319_v23 = vadd.f32 %v3309_v1, %v3279_v48 }
 0x526   :  { %v3223_v3 = vpop.f32.mrf.mxu3 }
 0x527   :  { %v3325_v15 = vpack.c.bf16 %v3319_v23, %v3319_v23 }
 0x528   :  { %v3200_v17 = vpop.f32.mrf.mxu1 }
 0x52b   :  { %6895 = vmatmul.msk.bf16.gmra.mxu3 %vm159_vm3, %v3326_v31  ;;  %6898 = vmatmul.msk.bf16.gmra.mxu2 %vm159_vm3, %v3326_v31  ;;  %vm3631_vm3 = vcmask 451584  }
 0x531   :  { %3523 = vmatmul.bf16.gmra.mxu1 %v3325_v15  ;;  %3569 = vmatmul.bf16.gmra.mxu0 %v3325_v15 }
 0x58e   :  { %v3514_v55 = vpop.f32.mrf.mxu1  ;;  %v3560_v16 = vpop.f32.mrf.mxu0 }
 0x58f   :  { %v3537_v49 = vpop.f32.mrf.mxu3  ;;  %v3583_v59 = vpop.f32.mrf.mxu2 }
 0x590   :  { %v3538_v13 = vadd.f32 %v3537_v49, %v3514_v55  ;;  %v3584_v14 = vadd.f32 %v3583_v59, %v3560_v16 }
 0x592   :  { %v3597_v45 = vpack.c.bf16 %v3584_v14, %v3538_v13 }
 0x594   :  { %3627 = vst.msk [vmem:[#allocation4] sm:$0xf] %vm3602_vm4, %v3597_v45  ;;  %3638 = vrot.lane.b32.xlu0 %v3597_v45, %s7728_s6 }
 0x596   :  { %v3516_v39 = vpop.f32.mrf.mxu1  ;;  %v3562_v46 = vpop.f32.mrf.mxu0 }
 0x597   :  { %v3539_v54 = vpop.f32.mrf.mxu3  ;;  %v3585_v62 = vpop.f32.mrf.mxu2 }
 0x598   :  { %v3540_v41 = vadd.f32 %v3539_v54, %v3516_v39  ;;  %v3586_v61 = vadd.f32 %v3585_v62, %v3562_v46 }
 0x59a   :  { %v3598_v4 = vpack.c.bf16 %v3586_v61, %v3540_v41  ;;  %v7616_v41 = vld [vmem:[#allocation4 + $0x28] sm:$0xf0] }
 0x59c   :  { %3628 = vst.msk [vmem:[#allocation4 + $0x4] sm:$0xf] %vm3602_vm4, %v3598_v4  ;;  %3640 = vrot.lane.b32.xlu1 %v3598_v4, %s7728_s6 }
 0x59e   :  { %v3519_v47 = vpop.f32.mrf.mxu1  ;;  %v3565_v11 = vpop.f32.mrf.mxu0 }
 0x59f   :  { %v3542_v12 = vpop.f32.mrf.mxu3  ;;  %v3588_v30 = vpop.f32.mrf.mxu2 }
 0x5a0   :  { %v3543_v20 = vadd.f32 %v3542_v12, %v3519_v47  ;;  %v3589_v21 = vadd.f32 %v3588_v30, %v3565_v11 }
 0x5a2   :  { %v3599_v18 = vpack.c.bf16 %v3589_v21, %v3543_v20 }
 0x5a3   :  { %v10383_v33 = vld [vmem:[#allocation4] sm:$0xff] }
 0x5a4   :  { %3629 = vst.msk [vmem:[#allocation4 + $0x8] sm:$0xf] %vm3602_vm4, %v3599_v18  ;;  %3658 = vrot.lane.b32.xlu1 %v3597_v45, %s7729_s24  ;;  %3642 = vrot.lane.b32.xlu2 %v3599_v18, %s7728_s6 }
 0x5a6   :  { %v3521_v34 = vpop.f32.mrf.mxu1  ;;  %v3567_v56 = vpop.f32.mrf.mxu0 }
 0x5a7   :  { %v3544_v60 = vpop.f32.mrf.mxu3  ;;  %v3590_v28 = vpop.f32.mrf.mxu2 }
 0x5a8   :  { %v3545_v53 = vadd.f32 %v3544_v60, %v3521_v34  ;;  %v3591_v42 = vadd.f32 %v3590_v28, %v3567_v56  ;;  %v7619_v34 = vld [vmem:[#allocation4 + $0x40] sm:$0xf0]  ;;  %v7622_v28 = vld [vmem:[#allocation4 + $0x58] sm:$0xf0] }
 0x5aa   :  { %v3600_v51 = vpack.c.bf16 %v3591_v42, %v3545_v53 }
 0x5ac   :  { %3630 = vst.msk [vmem:[#allocation4 + $0xc] sm:$0xf] %vm3602_vm4, %v3600_v51  ;;  %3693 = vrot.lane.b32.xlu1 %v3599_v18, %s7730_s5  ;;  %3662 = vrot.lane.b32.xlu2 %v3599_v18, %s7729_s24 }
 0x5ad   :  { %3644 = vrot.lane.b32.xlu0 %v3600_v51, %s7728_s6 }
 0x5ae   :  { %v3524_v57 = vpop.f32.mrf.mxu1  ;;  %v3570_v7 = vpop.f32.mrf.mxu0 }
 0x5af   :  { %v3547_v0 = vpop.f32.mrf.mxu3  ;;  %v3593_v40 = vpop.f32.mrf.mxu2 }
 0x5b0   :  { %v3548_v27 = vadd.f32 %v3547_v0, %v3524_v57  ;;  %v3594_v2 = vadd.f32 %v3593_v40, %v3570_v7 }
 0x5b2   :  { %v3601_v6 = vpack.c.bf16 %v3594_v2, %v3548_v27 }
 0x5b3   :  { %v10376_v26 = vld [vmem:[#allocation4 + $0x8] sm:$0xff] }
 0x5b4   :  { %3632 = vst.msk [vmem:[#allocation4 + $0x10] sm:$0x3] %vm3631_vm3, %v3601_v6  ;;  %3660 = vrot.lane.b32.xlu2 %v3598_v4, %s7729_s24  ;;  %3646 = vrot.lane.b32.xlu1 %v3601_v6, %s7728_s6 }
 0x5b5   :  { %3664 = vrot.lane.b32.xlu0 %v3600_v51, %s7729_s24 }
 0x5b6   :  { %v3526_v32 = vpop.f32.mrf.mxu1  ;;  %v3572_v8 = vpop.f32.mrf.mxu0 }
 0x5b7   :  { %v3549_v24 = vpop.f32.mrf.mxu3  ;;  %v3595_v9 = vpop.f32.mrf.mxu2 }
 0x5bb   :  { %v10381_v22 = vld [vmem:[#allocation4 + $0x10] sm:$0xff] }
 0x5bc   :  { %3695 = vrot.lane.b32.xlu2 %v3600_v51, %s7730_s5  ;;  %3691 = vrot.lane.b32.xlu1 %v3598_v4, %s7730_s5 }
 0x5bd   :  { %3697 = vrot.lane.b32.xlu0 %v3601_v6, %s7730_s5 }
 0x5c4   :  { %3666 = vrot.lane.b32.xlu2 %v3601_v6, %s7729_s24  ;;  %3861 = vrot.lane.b32.xlu1 %v10376_v26, %s7725_s12 }
 0x5c5   :  { %3689 = vrot.lane.b32.xlu0 %v3597_v45, %s7730_s5 }
 0x5cc   :  { %3863 = vrot.lane.b32.xlu2 %v10381_v22, %s7725_s12 }
 0x5cd   :  { %3859 = vrot.lane.b32.xlu0 %v10383_v33, %s7725_s12 }
 0x5fe   :  { %v3643_v44 = vpop.permute.xlu2 %3642 }
 0x5ff   :  { %3655 = vst.msk [vmem:[#allocation4 + $0x20] sm:$0xf] %vm3602_vm4, %v3643_v44 }
 0x606   :  { %v3639_v50 = vpop.permute.xlu0 %3638  ;;  %v3663_v5 = vpop.permute.xlu2 %3662  ;;  %v6958_v14 = vld [vmem:[#allocation4 + $0x20] sm:$0xf] }
 0x607   :  { %3653 = vst.msk [vmem:[#allocation4 + $0x18] sm:$0xf] %vm3602_vm4, %v3639_v50  ;;  %v3670_v58 = vrot.slane %v3663_v5, 4 }
 0x609   :  { %v3676_v38 = vsel %vm563_vm11, %v3663_v5, %v3670_v58 }
 0x60a   :  { %3686 = vst.msk [vmem:[#allocation4 + $0x38] sm:$0xf] %vm3602_vm4, %v3676_v38 }
 0x60e   :  { %v3641_v63 = vpop.permute.xlu1 %3640  ;;  %v3661_v25 = vpop.permute.xlu2 %3660  ;;  %v6954_v35 = vld [vmem:[#allocation4 + $0x18] sm:$0xf] }
 0x60f   :  { %3654 = vst.msk [vmem:[#allocation4 + $0x1c] sm:$0xf] %vm3602_vm4, %v3641_v63  ;;  %v3669_v43 = vrot.slane %v3661_v25, 4  ;;  %v7603_v63 = vld [vmem:[%s12093_s7 + $0x4] sm:$0xf] }
 0x611   :  { %v3675_v36 = vsel %vm563_vm11, %v3661_v25, %v3669_v43  ;;  %v6970_v20 = vld [vmem:[#allocation4 + $0x38] sm:$0xf]  ;;  %v6997_v25 = vld [vmem:[%s12093_s7 + $0x8] sm:$0xf0] }
 0x612   :  { %3685 = vst.msk [vmem:[#allocation4 + $0x34] sm:$0xf] %vm3602_vm4, %v3675_v36  ;;  %v7000_v43 = vor.u32 %v7603_v63, %v6997_v25  ;;  %v7627_v25 = vld [vmem:[%s12093_s7 + $0x6c] sm:$0xf] }
 0x616   :  { %v7614_v10 = vld [vmem:[#allocation4 + $0x18] sm:$0xf0]  ;;  %v3659_v19 = vpop.permute.xlu1 %3658  ;;  %v3696_v52 = vpop.permute.xlu2 %3695 }
 0x617   :  { %v10396_v1 = vor.u32 %v7614_v10, %v6954_v35  ;;  %v3668_v29 = vrot.slane %v3659_v19, 4  ;;  %v3702_v48 = vrot.slane %v3696_v52, 4  ;;  %v6995_v35 = vld [vmem:[%s12093_s7] sm:$0xf]  ;;  %v7604_v10 = vld [vmem:[%s12093_s7 + $0x4] sm:$0xf0] }
 0x619   :  { %v3674_v3 = vsel %vm563_vm11, %v3659_v19, %v3668_v29  ;;  %3712 = vst.msk [vmem:[#allocation4 + $0x54] sm:$0xf] %vm3602_vm4, %v3702_v48  ;;  %3865 = vrot.lane.b32.xlu0 %v10396_v1, %s7725_s12  ;;  %v7617_v55 = vld [vmem:[#allocation4 + $0x30] sm:$0xf0]  ;;  %v6996_v19 = vor.u32 %v7604_v10, %v6995_v35  ;;  %v7610_v35 = vld [vmem:[%s12093_s7 + $0x34] sm:$0xf0] }
 0x61a   :  { %3684 = vst.msk [vmem:[#allocation4 + $0x30] sm:$0xf] %vm3602_vm4, %v3674_v3 }
 0x61e   :  { %v3694_v17 = vpop.permute.xlu1 %3693  ;;  %v3667_v31 = vpop.permute.xlu2 %3666 }
 0x61f   :  { %v3701_v23 = vrot.slane %v3694_v17, 4  ;;  %v3645_v15 = vpop.permute.xlu0 %3644  ;;  %v3672_v37 = vrot.slane %v3667_v31, 4  ;;  %v7605_v17 = vld [vmem:[%s12093_s7 + $0x14] sm:$0xf] }
 0x620   :  { %3656 = vst.msk [vmem:[#allocation4 + $0x24] sm:$0xf] %vm3602_vm4, %v3645_v15  ;;  %v7621_v7 = vld [vmem:[#allocation4 + $0x50] sm:$0xf0] }
 0x621   :  { %v6966_v16 = vld [vmem:[#allocation4 + $0x30] sm:$0xf]  ;;  %3711 = vst.msk [vmem:[#allocation4 + $0x50] sm:$0xf] %vm3602_vm4, %v3701_v23  ;;  %v3678_v49 = vsel %vm563_vm11, %v3667_v31, %v3672_v37  ;;  %v7005_v31 = vld [vmem:[%s12093_s7 + $0x18] sm:$0xf0] }
 0x622   :  { %v10406_v59 = vor.u32 %v7617_v55, %v6966_v16  ;;  %3688 = vst.msk [vmem:[#allocation4 + $0x40] sm:$0x3] %vm3631_vm3, %v3678_v49  ;;  %v7008_v23 = vor.u32 %v7605_v17, %v7005_v31  ;;  %v7623_v55 = vld [vmem:[%s12093_s7 + $0x4c] sm:$0xf]  ;;  %v6912_v16 = vld [vmem:[%s12093_s7 + $0x50] sm:$0xf0] }
 0x623   :  { %v7003_v49 = vld [vmem:[%s12093_s7 + $0x10] sm:$0xf]  ;;  %v3722_v31 = vld [vmem:[%s12093_s7 + $0x40] sm:$0xff] }
 0x624   :  { %3871 = vrot.lane.b32.xlu0 %v10406_v59, %s7725_s12  ;;  %v7628_v17 = vld [vmem:[%s12093_s7 + $0x6c] sm:$0xf0] }
 0x626   :  { %v3647_v13 = vpop.permute.xlu1 %3646  ;;  %v10503_v32 = vpop.permute.xlu2 %3863 }
 0x627   :  { %v7615_v45 = vld [vmem:[#allocation4 + $0x20] sm:$0xf0]  ;;  %v3665_v39 = vpop.permute.xlu0 %3664  ;;  %3657 = vst.msk [vmem:[#allocation4 + $0x28] sm:$0x3] %vm3631_vm3, %v3647_v13  ;;  %v7606_v13 = vld [vmem:[%s12093_s7 + $0x14] sm:$0xf0] }
 0x628   :  { %v10412_v46 = vor.u32 %v7615_v45, %v6958_v14  ;;  %v3671_v54 = vrot.slane %v3665_v39, 4  ;;  %v6982_v42 = vld [vmem:[#allocation4 + $0x50] sm:$0xf]  ;;  %v7004_v14 = vor.u32 %v7606_v13, %v7003_v49  ;;  %v6915_v45 = vor.u32 %v7623_v55, %v6912_v16  ;;  %v7629_v13 = vld [vmem:[%s12093_s7 + $0x7c] sm:$0xf] }
 0x629   :  { %v6974_v56 = vld [vmem:[#allocation4 + $0x40] sm:$0xf]  ;;  %v10437_v40 = vor.u32 %v7621_v7, %v6982_v42  ;;  %v7608_v42 = vld [vmem:[%s12093_s7 + $0x24] sm:$0xf0]  ;;  %v4003_v55 = vunpack.c.h.b16 %v3722_v31 }
 0x62a   :  { %v3677_v62 = vsel %vm563_vm11, %v3665_v39, %v3671_v54  ;;  %3867 = vrot.lane.b32.xlu1 %v10412_v46, %s7725_s12  ;;  %v10429_v60 = vor.u32 %v7619_v34, %v6974_v56  ;;  %v7625_v56 = vld [vmem:[%s12093_s7 + $0x5c] sm:$0xf]  ;;  %vm6145_vm11 = vcmask 23552  }
 0x62b   :  { %3687 = vst.msk [vmem:[#allocation4 + $0x3c] sm:$0xf] %vm3602_vm4, %v3677_v62 }
 0x62e   :  { %v6962_v61 = vld [vmem:[#allocation4 + $0x28] sm:$0xf]  ;;  %v3692_v4 = vpop.permute.xlu1 %3691 }
 0x62f   :  { %v10418_v47 = vor.u32 %v7616_v41, %v6962_v61  ;;  %v3698_v11 = vpop.permute.xlu0 %3697  ;;  %v3700_v12 = vrot.slane %v3692_v4, 4  ;;  %v6910_v41 = vld [vmem:[%s12093_s7 + $0x48] sm:$0xf]  ;;  %v7624_v61 = vld [vmem:[%s12093_s7 + $0x4c] sm:$0xf0] }
 0x630   :  { %v3703_v30 = vrot.slane %v3698_v11, 4  ;;  %v6911_v11 = vor.u32 %v7624_v61, %v6910_v41 }
 0x631   :  { %3710 = vst.msk [vmem:[#allocation4 + $0x4c] sm:$0xf] %vm3602_vm4, %v3700_v12  ;;  %3869 = vrot.lane.b32.xlu2 %v10418_v47, %s7725_s12  ;;  %v7607_v12 = vld [vmem:[%s12093_s7 + $0x24] sm:$0xf] }
 0x632   :  { %v7618_v21 = vld [vmem:[#allocation4 + $0x38] sm:$0xf0]  ;;  %3713 = vst.msk [vmem:[#allocation4 + $0x58] sm:$0x3] %vm3631_vm3, %v3703_v30  ;;  %v7013_v30 = vld [vmem:[%s12093_s7 + $0x28] sm:$0xf0] }
 0x633   :  { %v10424_v18 = vor.u32 %v7618_v21, %v6970_v20  ;;  %v7016_v20 = vor.u32 %v7607_v12, %v7013_v30  ;;  %v7630_v12 = vld [vmem:[%s12093_s7 + $0x7c] sm:$0xf0] }
 0x635   :  { %3873 = vrot.lane.b32.xlu1 %v10424_v18, %s7725_s12  ;;  %4046 = vmatpush.bf16.msra.mxu0 %v10424_v18 }
 0x636   :  { %v10521_v9 = vpop.permute.xlu1 %3861 }
 0x637   :  { %v3690_v53 = vpop.permute.xlu0 %3689 }
 0x638   :  { %v3699_v51 = vrot.slane %v3690_v53, 4  ;;  %v7620_v27 = vld [vmem:[#allocation4 + $0x48] sm:$0xf0]  ;;  %v7011_v53 = vld [vmem:[%s12093_s7 + $0x20] sm:$0xf] }
 0x639   :  { %v6986_v57 = vld [vmem:[#allocation4 + $0x58] sm:$0xf]  ;;  %4047 = vmatpush.bf16.msra.mxu0 %v10406_v59  ;;  %3875 = vrot.lane.b32.xlu2 %v10429_v60, %s7725_s12 }
 0x63a   :  { %v10434_v0 = vor.u32 %v7622_v28, %v6986_v57  ;;  %3709 = vst.msk [vmem:[#allocation4 + $0x48] sm:$0xf] %vm3602_vm4, %v3699_v51  ;;  %v6920_v28 = vld [vmem:[%s12093_s7 + $0x60] sm:$0xf0]  ;;  %v7012_v51 = vor.u32 %v7608_v42, %v7011_v53 }
 0x63b   :  { %v6923_v57 = vor.u32 %v7625_v56, %v6920_v28 }
 0x63c   :  { %4083 = vmatpush.bf16.msra.mxu2 %v10434_v0 }
 0x63d   :  { %4048 = vmatpush.bf16.msra.mxu0 %v10418_v47  ;;  %3879 = vrot.lane.b32.xlu1 %v10437_v40, %s7725_s12 }
 0x63f   :  { %v10525_v44 = vpop.permute.xlu0 %3859 }
 0x640   :  { %4084 = vmatpush.bf16.msra.mxu2 %v10437_v40 }
 0x641   :  { %v6978_v2 = vld [vmem:[#allocation4 + $0x48] sm:$0xf]  ;;  %4049 = vmatpush.bf16.msra.mxu0 %v10412_v46  ;;  %3881 = vrot.lane.b32.xlu2 %v10434_v0, %s7725_s12 }
 0x642   :  { %v10447_v6 = vor.u32 %v7620_v27, %v6978_v2 }
 0x644   :  { %3877 = vrot.lane.b32.xlu0 %v10447_v6, %s7725_s12  ;;  %4085 = vmatpush.bf16.msra.mxu2 %v10447_v6  ;;  %s7731_s12 = smov 121  }
 0x645   :  { %4050 = vmatpush.bf16.msra.mxu0 %v10396_v1  ;;  %4166 = vrot.lane.b32.xlu1 %v10376_v26, %s7724_s30 }
 0x648   :  { %4086 = vmatpush.bf16.msra.mxu2 %v10429_v60 }
 0x649   :  { %4051 = vmatpush.bf16.msra.mxu0 %v10381_v22  ;;  %4168 = vrot.lane.b32.xlu2 %v10381_v22, %s7724_s30 }
 0x64b   :  { %7025 = vmatmul.msk.bf16.vlgmr.msra.gmra.mxu2 %vm3895_vm5, %v7000_v43  ;;  %v6928_v43 = vld [vmem:[%s12093_s7 + $0x70] sm:$0xf0] }
 0x64c   :  { %4164 = vrot.lane.b32.xlu0 %v10383_v33, %s7724_s30 }
 0x64d   :  { %4052 = vmatpush.bf16.msra.mxu0 %v10376_v26  ;;  %4172 = vrot.lane.b32.xlu1 %v10412_v46, %s7724_s30 }
 0x651   :  { %4053 = vmatpush.bf16.msra.mxu0 %v10383_v33  ;;  %4174 = vrot.lane.b32.xlu2 %v10418_v47, %s7724_s30 }
 0x654   :  { %4170 = vrot.lane.b32.xlu0 %v10396_v1, %s7724_s30  ;;  %4054 = vmatmul.bf16.vlgmr.msra.gmra.mxu0 %v6996_v19  ;;  %v6931_v19 = vor.u32 %v7627_v25, %v6928_v43  ;;  %v7642_v25 = vld [vmem:[%s12093_s7 + $0xec] sm:$0xf0] }
 0x655   :  { %4178 = vrot.lane.b32.xlu1 %v10424_v18, %s7724_s30 }
 0x659   :  { %4186 = vrot.lane.b32.xlu2 %v10434_v0, %s7724_s30 }
 0x65b   :  { %7026 = vmatmul.msk.bf16.gmra.mxu2 %vm3895_vm5, %v7008_v23 }
 0x65c   :  { %4176 = vrot.lane.b32.xlu0 %v10406_v59, %s7724_s30 }
 0x65d   :  { %4184 = vrot.lane.b32.xlu1 %v10437_v40, %s7724_s30 }
 0x661   :  { %4346 = vrot.lane.b32.xlu2 %v10381_v22, %s7731_s12 }
 0x664   :  { %4182 = vrot.lane.b32.xlu0 %v10447_v6, %s7724_s30  ;;  %4059 = vmatmul.bf16.gmra.mxu0 %v7004_v14  ;;  %v6936_v14 = vld [vmem:[%s12093_s7 + $0x80] sm:$0xf0] }
 0x665   :  { %4344 = vrot.lane.b32.xlu1 %v10376_v26, %s7731_s12 }
 0x669   :  { %4352 = vrot.lane.b32.xlu2 %v10418_v47, %s7731_s12 }
 0x66b   :  { %7027 = vmatmul.msk.bf16.gmra.mxu2 %vm3895_vm5, %v7016_v20 }
 0x66c   :  { %4342 = vrot.lane.b32.xlu0 %v10383_v33, %s7731_s12 }
 0x66d   :  { %4350 = vrot.lane.b32.xlu1 %v10412_v46, %s7731_s12 }
 0x671   :  { %4364 = vrot.lane.b32.xlu2 %v10434_v0, %s7731_s12 }
 0x674   :  { %4348 = vrot.lane.b32.xlu0 %v10396_v1, %s7731_s12  ;;  %4064 = vmatmul.bf16.gmra.mxu0 %v7012_v51 }
 0x675   :  { %4356 = vrot.lane.b32.xlu1 %v10424_v18, %s7731_s12 }
 0x679   :  { %4180 = vrot.lane.b32.xlu2 %v10429_v60, %s7724_s30  ;;  %s7733_s30 = smov 119  }
 0x67c   :  { %4354 = vrot.lane.b32.xlu0 %v10406_v59, %s7731_s12 }
 0x67d   :  { %4362 = vrot.lane.b32.xlu1 %v10437_v40, %s7731_s12 }
 0x681   :  { %4524 = vrot.lane.b32.xlu2 %v10381_v22, %s7732_s25 }
 0x684   :  { %4360 = vrot.lane.b32.xlu0 %v10447_v6, %s7731_s12 }
 0x685   :  { %4522 = vrot.lane.b32.xlu1 %v10376_v26, %s7732_s25 }
 0x689   :  { %4530 = vrot.lane.b32.xlu2 %v10418_v47, %s7732_s25 }
 0x68b   :  { %v3870_v8 = vpop.permute.xlu2 %3869  ;;  %v3866_v58 = vpop.permute.xlu0 %3865 }
 0x68c   :  { %4520 = vrot.lane.b32.xlu0 %v10383_v33, %s7732_s25 }
 0x68d   :  { %4528 = vrot.lane.b32.xlu1 %v10412_v46, %s7732_s25 }
 0x691   :  { %4542 = vrot.lane.b32.xlu2 %v10434_v0, %s7732_s25 }
 0x693   :  { %v3876_v24 = vpop.permute.xlu2 %3875 }
 0x694   :  { %4526 = vrot.lane.b32.xlu0 %v10396_v1, %s7732_s25 }
 0x695   :  { %4534 = vrot.lane.b32.xlu1 %v10424_v18, %s7732_s25 }
 0x696   :  { %v3872_v52 = vpop.permute.xlu0 %3871 }
 0x699   :  { %4702 = vrot.lane.b32.xlu2 %v10381_v22, %s7733_s30 }
 0x69b   :  { %v3882_v50 = vpop.permute.xlu2 %3881 }
 0x69c   :  { %4532 = vrot.lane.b32.xlu0 %v10406_v59, %s7732_s25  ;;  %3948 = vmatpush.bf16.msrb.mxu3 %v3882_v50  ;;  %v3868_v5 = vpop.permute.xlu1 %3867  ;;  %v7021_v50 = vld [vmem:[%s12093_s7 + $0x38] sm:$0xf0] }
 0x69d   :  { %4540 = vrot.lane.b32.xlu1 %v10437_v40, %s7732_s25 }
 0x6a1   :  { %4708 = vrot.lane.b32.xlu2 %v10418_v47, %s7733_s30 }
 0x6a3   :  { %v10533_v38 = vpop.permute.xlu2 %4168 }
 0x6a4   :  { %4538 = vrot.lane.b32.xlu0 %v10447_v6, %s7732_s25 }
 0x6a5   :  { %4700 = vrot.lane.b32.xlu1 %v10376_v26, %s7733_s30 }
 0x6a7   :  { %v3874_v36 = vpop.permute.xlu1 %3873 }
 0x6a8   :  { %3911 = vmatpush.bf16.msrb.mxu1 %v3874_v36  ;;  %v7019_v36 = vld [vmem:[%s12093_s7 + $0x30] sm:$0xf] }
 0x6a9   :  { %4720 = vrot.lane.b32.xlu2 %v10434_v0, %s7733_s30  ;;  %v7020_v10 = vor.u32 %v7610_v35, %v7019_v36 }
 0x6ab   :  { %v10554_v29 = vpop.permute.xlu2 %4174  ;;  %4069 = vmatmul.bf16.gmra.mxu0 %v7020_v10  ;;  %v7639_v10 = vld [vmem:[%s12093_s7 + $0xdc] sm:$0xf] }
 0x6ac   :  { %4698 = vrot.lane.b32.xlu0 %v10383_v33, %s7733_s30  ;;  %3912 = vmatpush.bf16.msrb.mxu1 %v3872_v52 }
 0x6ad   :  { %4706 = vrot.lane.b32.xlu1 %v10412_v46, %s7733_s30 }
 0x6af   :  { %v3880_v48 = vpop.permute.xlu1 %3879 }
 0x6b0   :  { %3913 = vmatpush.bf16.msrb.mxu1 %v3870_v8  ;;  %3949 = vmatpush.bf16.msrb.mxu3 %v3880_v48  ;;  %v7626_v8 = vld [vmem:[%s12093_s7 + $0x5c] sm:$0xf0] }
 0x6b1   :  { %4880 = vrot.lane.b32.xlu2 %v10381_v22, %s7734_s16 }
 0x6b3   :  { %v4187_v3 = vpop.permute.xlu2 %4186 }
 0x6b4   :  { %4704 = vrot.lane.b32.xlu0 %v10396_v1, %s7733_s30  ;;  %3914 = vmatpush.bf16.msrb.mxu1 %v3868_v5 }
 0x6b5   :  { %4712 = vrot.lane.b32.xlu1 %v10424_v18, %s7733_s30 }
 0x6b6   :  { %v3878_v15 = vpop.permute.xlu0 %3877 }
 0x6b7   :  { %v10572_v37 = vpop.permute.xlu1 %4166  ;;  %3950 = vmatpush.bf16.msrb.mxu3 %v3878_v15 }
 0x6b8   :  { %3915 = vmatpush.bf16.msrb.mxu1 %v3866_v58 }
 0x6b9   :  { %4886 = vrot.lane.b32.xlu2 %v10418_v47, %s7734_s16 }
 0x6bb   :  { %3951 = vmatpush.bf16.msrb.mxu3 %v3876_v24  ;;  %v10589_v39 = vpop.permute.xlu2 %4346 }
 0x6bc   :  { %4710 = vrot.lane.b32.xlu0 %v10406_v59, %s7733_s30  ;;  %3916 = vmatpush.bf16.msrb.mxu1 %v10503_v32  ;;  %v6918_v32 = vld [vmem:[%s12093_s7 + $0x58] sm:$0xf] }
 0x6bd   :  { %4718 = vrot.lane.b32.xlu1 %v10437_v40, %s7733_s30 }
 0x6be   :  { %v10596_v54 = vpop.permute.xlu0 %4164  ;;  %6988 = vmatmul.msk.bf16.vlgmr.msrb.gmra.mxu3 %vm3895_vm5, %v6915_v45  ;;  %v4002_v45 = vunpack.c.l.b16 %v3722_v31  ;;  %v5363_v31 = vld [vmem:[%s12094_s8 + $0x28] sm:$0xff] }
 0x6bf   :  { %4252 = vmatpush.bf16.msra.mxu3 %v4187_v3  ;;  %v4173_v62 = vpop.permute.xlu1 %4172  ;;  %v6926_v3 = vld [vmem:[%s12093_s7 + $0x68] sm:$0xf] }
 0x6c0   :  { %3917 = vmatpush.bf16.msrb.mxu1 %v10521_v9  ;;  %v6919_v9 = vor.u32 %v7626_v8, %v6918_v32  ;;  %v6927_v15 = vor.u32 %v7628_v17, %v6926_v3  ;;  %v7043_v8 = vld [vmem:[%s12093_s7 + $0x98] sm:$0xf0] }
 0x6c1   :  { %4358 = vrot.lane.b32.xlu2 %v10429_v60, %s7731_s12 }
 0x6c3   :  { %v10608_v4 = vpop.permute.xlu2 %4352 }
 0x6c4   :  { %4716 = vrot.lane.b32.xlu0 %v10447_v6, %s7733_s30  ;;  %3918 = vmatpush.bf16.msrb.mxu1 %v10525_v44  ;;  %v7609_v44 = vld [vmem:[%s12093_s7 + $0x34] sm:$0xf] }
 0x6c5   :  { %4878 = vrot.lane.b32.xlu1 %v10376_v26, %s7734_s16  ;;  %v7024_v5 = vor.u32 %v7609_v44, %v7021_v50 }
 0x6c6   :  { %v4171_v21 = vpop.permute.xlu0 %4170 }
 0x6c7   :  { %v4179_v34 = vpop.permute.xlu1 %4178  ;;  %3919 = vmatmul.bf16.vlgmr.msrb.gmra.mxu1 %v6911_v11  ;;  %7028 = vmatmul.msk.bf16.gmra.mxu2 %vm3895_vm5, %v7024_v5  ;;  %v6934_v11 = vld [vmem:[%s12093_s7 + $0x78] sm:$0xf]  ;;  %v7041_v5 = vld [vmem:[%s12093_s7 + $0x90] sm:$0xf] }
 0x6c8   :  { %4215 = vmatpush.bf16.msra.mxu1 %v4179_v34  ;;  %v6935_v20 = vor.u32 %v7630_v12, %v6934_v11  ;;  %v5362_v11 = vld [vmem:[%s12094_s8 + $0x20] sm:$0xff] }
 0x6c9   :  { %4536 = vrot.lane.b32.xlu2 %v10429_v60, %s7732_s25 }
 0x6cb   :  { %v4365_v7 = vpop.permute.xlu2 %4364 }
 0x6cc   :  { %4876 = vrot.lane.b32.xlu0 %v10383_v33, %s7734_s16  ;;  %4430 = vmatpush.bf16.msrb.mxu2 %v4365_v7  ;;  %v7087_v7 = vld [vmem:[%s12093_s7 + $0xd8] sm:$0xf] }
 0x6cd   :  { %4884 = vrot.lane.b32.xlu1 %v10412_v46, %s7734_s16 }
 0x6ce   :  { %v4177_v27 = vpop.permute.xlu0 %4176  ;;  %6989 = vmatmul.msk.bf16.gmra.mxu3 %vm3895_vm5, %v6923_v57 }
 0x6cf   :  { %v4185_v2 = vpop.permute.xlu1 %4184  ;;  %4216 = vmatpush.bf16.msra.mxu1 %v4177_v27 }
 0x6d0   :  { %4253 = vmatpush.bf16.msra.mxu3 %v4185_v2 }
 0x6d1   :  { %4898 = vrot.lane.b32.xlu2 %v10434_v0, %s7734_s16 }
 0x6d3   :  { %4217 = vmatpush.bf16.msra.mxu1 %v10554_v29  ;;  %v4181_v24 = vpop.permute.xlu2 %4180 }
 0x6d4   :  { %4882 = vrot.lane.b32.xlu0 %v10396_v1, %s7734_s16 }
 0x6d5   :  { %4890 = vrot.lane.b32.xlu1 %v10424_v18, %s7734_s16 }
 0x6d6   :  { %v4183_v58 = vpop.permute.xlu0 %4182 }
 0x6d7   :  { %v10660_v63 = vpop.permute.xlu1 %4344  ;;  %3924 = vmatmul.bf16.gmra.mxu1 %v6919_v9  ;;  %4254 = vmatpush.bf16.msra.mxu3 %v4183_v58  ;;  %v7632_v58 = vld [vmem:[%s12093_s7 + $0x94] sm:$0xf0] }
 0x6d8   :  { %4218 = vmatpush.bf16.msra.mxu1 %v4173_v62  ;;  %v6939_v62 = vor.u32 %v7629_v13, %v6936_v14  ;;  %v5366_v13 = vld [vmem:[%s12094_s8 + $0x40] sm:$0xff] }
 0x6d9   :  { %5058 = vrot.lane.b32.xlu2 %v10381_v22, %s7735_s14 }
 0x6db   :  { %4255 = vmatpush.bf16.msra.mxu3 %v4181_v24  ;;  %v10677_v52 = vpop.permute.xlu2 %4524 }
 0x6dc   :  { %4219 = vmatpush.bf16.msra.mxu1 %v4171_v21  ;;  %4888 = vrot.lane.b32.xlu0 %v10406_v59, %s7734_s16  ;;  %v6907_v21 = vld [vmem:[%s12093_s7 + $0x88] sm:$0xff] }
 0x6dd   :  { %4896 = vrot.lane.b32.xlu1 %v10437_v40, %s7734_s16  ;;  %v3783_v56 = vunpack.c.h.b16 %v6907_v21  ;;  %v3782_v51 = vunpack.c.l.b16 %v6907_v21 }
 0x6de   :  { %v10683_v29 = vpop.permute.xlu0 %4342  ;;  %6990 = vmatmul.msk.bf16.gmra.mxu3 %vm3895_vm5, %v6931_v19  ;;  %v7089_v19 = vld [vmem:[%s12093_s7 + $0xe0] sm:$0xf0] }
 0x6df   :  { %v4351_v48 = vpop.permute.xlu1 %4350  ;;  %v3792_v57 = vpack.c.b16 %v3782_v51, %v3782_v51  ;;  %v7092_v3 = vor.u32 %v7639_v10, %v7089_v19  ;;  %v5361_v51 = vld [vmem:[%s12094_s8 + $0x18] sm:$0xff] }
 0x6e0   :  { %4220 = vmatpush.bf16.msra.mxu1 %v10533_v38  ;;  %v4013_v38 = vpack.c.b16 %v4003_v55, %v4003_v55 }
 0x6e1   :  { %5064 = vrot.lane.b32.xlu2 %v10418_v47, %s7735_s14 }
 0x6e2   :  { %7029 = vmatmul.msk.bf16.gmra.mxu2 %vm3895_vm5, %v4013_v38 }
 0x6e3   :  { %v10698_v23 = vpop.permute.xlu2 %4530 }
 0x6e4   :  { %4221 = vmatpush.bf16.msra.mxu1 %v10572_v37  ;;  %4894 = vrot.lane.b32.xlu0 %v10447_v6, %s7734_s16  ;;  %v4012_v37 = vpack.c.b16 %v4002_v45, %v4002_v45 }
 0x6e5   :  { %5056 = vrot.lane.b32.xlu1 %v10376_v26, %s7735_s14 }
 0x6e6   :  { %v4349_v16 = vpop.permute.xlu0 %4348  ;;  %4074 = vmatmul.bf16.gmra.mxu0 %v4012_v37  ;;  %v7059_v37 = vld [vmem:[%s12093_s7 + $0xb8] sm:$0xf0] }
 0x6e7   :  { %v4357_v49 = vpop.permute.xlu1 %4356  ;;  %3929 = vmatmul.bf16.gmra.mxu1 %v6927_v15  ;;  %v5359_v15 = vld [vmem:[%s12094_s8 + $0x8] sm:$0xff] }
 0x6e8   :  { %4222 = vmatpush.bf16.msra.mxu1 %v10596_v54  ;;  %4393 = vmatpush.bf16.msrb.mxu0 %v4357_v49 }
 0x6e9   :  { %5076 = vrot.lane.b32.xlu2 %v10434_v0, %s7735_s14 }
 0x6eb   :  { %v4543_v41 = vpop.permute.xlu2 %4542 }
 0x6ec   :  { %5054 = vrot.lane.b32.xlu0 %v10383_v33, %s7735_s14  ;;  %4608 = vmatpush.bf16.msrb.mxu3 %v4543_v41  ;;  %v5358_v41 = vld [vmem:[%s12094_s8] sm:$0xff] }
 0x6ed   :  { %5062 = vrot.lane.b32.xlu1 %v10412_v46, %s7735_s14 }
 0x6ee   :  { %v4355_v61 = vpop.permute.xlu0 %4354  ;;  %6991 = vmatmul.msk.bf16.gmra.mxu3 %vm3895_vm5, %v6939_v62  ;;  %v10859_v62 = vpop.f32.mrf.mxu0 }
 0x6ef   :  { %4394 = vmatpush.bf16.msrb.mxu0 %v4355_v61  ;;  %v4363_v54 = vpop.permute.xlu1 %4362  ;;  %v7641_v61 = vld [vmem:[%s12093_s7 + $0xec] sm:$0xf] }
 0x6f0   :  { %4431 = vmatpush.bf16.msrb.mxu2 %v4363_v54  ;;  %v7097_v54 = vld [vmem:[%s12093_s7 + $0xf0] sm:$0xf0] }
 0x6f1   :  { %5236 = vrot.lane.b32.xlu2 %v10381_v22, %s7723_s29  ;;  %v3793_v22 = vpack.c.b16 %v3783_v56, %v3783_v56 }
 0x6f3   :  { %4395 = vmatpush.bf16.msrb.mxu0 %v10608_v4  ;;  %v10729_v30 = vpop.permute.xlu2 %4702 }
 0x6f4   :  { %5060 = vrot.lane.b32.xlu0 %v10396_v1, %s7735_s14 }
 0x6f5   :  { %5068 = vrot.lane.b32.xlu1 %v10424_v18, %s7735_s14 }
 0x6f6   :  { %v4361_v34 = vpop.permute.xlu0 %4360 }
 0x6f7   :  { %v10738_v28 = vpop.permute.xlu1 %4522  ;;  %3934 = vmatmul.bf16.gmra.mxu1 %v6935_v20  ;;  %4396 = vmatpush.bf16.msrb.mxu0 %v4351_v48  ;;  %v10873_v20 = vpop.f32.mrf.mxu2 }
 0x6f8   :  { %4432 = vmatpush.bf16.msrb.mxu2 %v4361_v34  ;;  %v7100_v34 = vor.u32 %v7641_v61, %v7097_v54 }
 0x6f9   :  { %5242 = vrot.lane.b32.xlu2 %v10418_v47, %s7723_s29 }
 0x6fb   :  { %4397 = vmatpush.bf16.msrb.mxu0 %v4349_v16  ;;  %v10742_v4 = vpop.permute.xlu2 %4708  ;;  %v7644_v16 = vld [vmem:[%s12093_s7 + $0xfc] sm:$0xf0] }
 0x6fc   :  { %5066 = vrot.lane.b32.xlu0 %v10406_v59, %s7735_s14 }
 0x6fd   :  { %5074 = vrot.lane.b32.xlu1 %v10437_v40, %s7735_s14 }
 0x6fe   :  { %v10748_v53 = vpop.permute.xlu0 %4520  ;;  %6992 = vmatmul.msk.bf16.gmra.mxu3 %vm3895_vm5, %v3793_v22  ;;  %v7057_v22 = vld [vmem:[%s12093_s7 + $0xb0] sm:$0xf] }
 0x6ff   :  { %v4529_v42 = vpop.permute.xlu1 %4528  ;;  %4398 = vmatpush.bf16.msrb.mxu0 %v10589_v39  ;;  %v7640_v39 = vld [vmem:[%s12093_s7 + $0xdc] sm:$0xf0] }
 0x700   :  { %v7088_v2 = vor.u32 %v7640_v39, %v7087_v7 }
 0x701   :  { %5254 = vrot.lane.b32.xlu2 %v10434_v0, %s7723_s29  ;;  %v5360_v0 = vld [vmem:[%s12094_s8 + $0x10] sm:$0xff] }
 0x703   :  { %4399 = vmatpush.bf16.msrb.mxu0 %v10660_v63  ;;  %v4721_v47 = vpop.permute.xlu2 %4720  ;;  %v7095_v63 = vld [vmem:[%s12093_s7 + $0xe8] sm:$0xf] }
 0x704   :  { %5072 = vrot.lane.b32.xlu0 %v10447_v6, %s7735_s14  ;;  %v7096_v36 = vor.u32 %v7642_v25, %v7095_v63 }
 0x705   :  { %5234 = vrot.lane.b32.xlu1 %v10376_v26, %s7723_s29  ;;  %v7631_v26 = vld [vmem:[%s12093_s7 + $0x94] sm:$0xf] }
 0x706   :  { %v4527_v27 = vpop.permute.xlu0 %4526  ;;  %v7046_v24 = vor.u32 %v7631_v26, %v7043_v8  ;;  %v7067_v8 = vld [vmem:[%s12093_s7 + $0xc8] sm:$0xf0] }
 0x707   :  { %v4535_v32 = vpop.permute.xlu1 %4534  ;;  %3939 = vmatmul.bf16.gmra.mxu1 %v3792_v57  ;;  %4400 = vmatpush.bf16.msrb.mxu0 %v10683_v29  ;;  %v10893_v57 = vpop.f32.mrf.mxu2 }
 0x708   :  { %4571 = vmatpush.bf16.msrb.mxu1 %v4535_v32 }
 0x709   :  { %5379 = vperm.xlu2 %7715, %v5360_v0   ;;  %v7646_v0 = vld [vmem:[%s12093_s7 + $0x10c] sm:$0xf0] }
 0x70a   :  { %4401 = vmatmul.bf16.vlgmr.msrb.gmra.mxu0 %v7088_v2 }
 0x70b   :  { %v10775_v9 = vpop.permute.xlu2 %4880 }
 0x70c   :  { %5232 = vrot.lane.b32.xlu0 %v10383_v33, %s7723_s29 }
 0x70d   :  { %5240 = vrot.lane.b32.xlu1 %v10412_v46, %s7723_s29  ;;  %v7042_v46 = vor.u32 %v7632_v58, %v7041_v5  ;;  %v7105_v5 = vld [vmem:[%s12093_s7 + $0x100] sm:$0xf0] }
 0x70e   :  { %v4533_v44 = vpop.permute.xlu0 %4532  ;;  %7071 = vmatmul.msk.bf16.vlgmr.msra.gmra.mxu3 %vm3895_vm5, %v7046_v24 }
 0x70f   :  { %v4541_v50 = vpop.permute.xlu1 %4540  ;;  %4572 = vmatpush.bf16.msrb.mxu1 %v4533_v44  ;;  %v5364_v44 = vld [vmem:[%s12094_s8 + $0x30] sm:$0xff] }
 0x710   :  { %4609 = vmatpush.bf16.msrb.mxu3 %v4541_v50  ;;  %v7643_v50 = vld [vmem:[%s12093_s7 + $0xfc] sm:$0xf] }
 0x711   :  { %4714 = vrot.lane.b32.xlu2 %v10429_v60, %s7733_s30 }
 0x713   :  { %4573 = vmatpush.bf16.msrb.mxu1 %v10698_v23  ;;  %v10791_v33 = vpop.permute.xlu2 %4886 }
 0x714   :  { %5238 = vrot.lane.b32.xlu0 %v10396_v1, %s7723_s29  ;;  %v7633_v1 = vld [vmem:[%s12093_s7 + $0xa4] sm:$0xf] }
 0x715   :  { %5246 = vrot.lane.b32.xlu1 %v10424_v18, %s7723_s29  ;;  %v7051_v18 = vld [vmem:[%s12093_s7 + $0xa8] sm:$0xf0] }
 0x716   :  { %v4539_v43 = vpop.permute.xlu0 %4538  ;;  %v7054_v29 = vor.u32 %v7633_v1, %v7051_v18  ;;  %v7638_v1 = vld [vmem:[%s12093_s7 + $0xc4] sm:$0xf0] }
 0x717   :  { %v10803_v35 = vpop.permute.xlu1 %4700  ;;  %4223 = vmatmul.bf16.vlgmr.msra.gmra.mxu1 %v7042_v46  ;;  %4610 = vmatpush.bf16.msrb.mxu3 %v4539_v43  ;;  %v10925_v46 = vpop.f32.mrf.mxu2 }
 0x718   :  { %4574 = vmatpush.bf16.msrb.mxu1 %v4529_v42  ;;  %v10883_v42 = vpop.f32.mrf.mxu0 }
 0x719   :  { %4892 = vrot.lane.b32.xlu2 %v10429_v60, %s7734_s16 }
 0x71a   :  { %4406 = vmatmul.bf16.gmra.mxu0 %v7096_v36  ;;  %v7065_v36 = vld [vmem:[%s12093_s7 + $0xc0] sm:$0xf] }
 0x71b   :  { %v4359_v48 = vpop.permute.xlu2 %4358 }
 0x71c   :  { %4575 = vmatpush.bf16.msrb.mxu1 %v4527_v27  ;;  %5244 = vrot.lane.b32.xlu0 %v10406_v59, %s7723_s29  ;;  %v7049_v59 = vld [vmem:[%s12093_s7 + $0xa0] sm:$0xf]  ;;  %v7111_v27 = vld [vmem:[%s12093_s7 + $0x108] sm:$0xf] }
 0x71d   :  { %5252 = vrot.lane.b32.xlu1 %v10437_v40, %s7723_s29  ;;  %4433 = vmatpush.bf16.msrb.mxu2 %v4359_v48  ;;  %v7634_v40 = vld [vmem:[%s12093_s7 + $0xa4] sm:$0xf0]  ;;  %v7112_v32 = vor.u32 %v7646_v0, %v7111_v27  ;;  %v7038_v48 = vld [vmem:[%s12093_s7 + $0xd0] sm:$0xff]  ;;  %v7135_v0 = vld [vmem:[%s12093_s7 + $0x128] sm:$0xf0] }
 0x71e   :  { %v10823_v17 = vpop.permute.xlu0 %4698  ;;  %7072 = vmatmul.msk.bf16.gmra.mxu3 %vm3895_vm5, %v7054_v29  ;;  %v7050_v38 = vor.u32 %v7634_v40, %v7049_v59 }
 0x71f   :  { %v4707_v23 = vpop.permute.xlu1 %4706  ;;  %v10942_v19 = vpop.f32.mrf.mxu2 }
 0x720   :  { %4576 = vmatpush.bf16.msrb.mxu1 %v10677_v52  ;;  %7117 = vmatmul.msk.bf16.vlgmr.msrb.gmra.mxu2 %vm3895_vm5, %v7092_v3  ;;  %v7103_v52 = vld [vmem:[%s12093_s7 + $0xf8] sm:$0xf]  ;;  %v10912_v24 = vpop.f32.mrf.mxu0 }
 0x721   :  { %4786 = vmatpush.bf16.msra.mxu2 %v4721_v47  ;;  %5394 = vperm.xlu2 %7715, %v5363_v31   ;;  %v7104_v14 = vor.u32 %v7644_v16, %v7103_v52  ;;  %v5365_v47 = vld [vmem:[%s12094_s8 + $0x38] sm:$0xff] }
 0x722   :  { %v7084_v3 = vld [vmem:[%s12093_s7 + $0x118] sm:$0xff] }
 0x723   :  { %v4537_v55 = vpop.permute.xlu2 %4536 }
 0x724   :  { %4577 = vmatpush.bf16.msrb.mxu1 %v10738_v28  ;;  %5250 = vrot.lane.b32.xlu0 %v10447_v6, %s7723_s29  ;;  %v7635_v6 = vld [vmem:[%s12093_s7 + $0xb4] sm:$0xf] }
 0x725   :  { %5374 = vperm.xlu1 %7717, %v5359_v15   ;;  %4611 = vmatpush.bf16.msrb.mxu3 %v4537_v55  ;;  %v7062_v12 = vor.u32 %v7635_v6, %v7059_v37  ;;  %v4148_v15 = vunpack.c.h.b16 %v7038_v48 }
 0x726   :  { %v4705_v49 = vpop.permute.xlu0 %4704 }
 0x727   :  { %v4713_v45 = vpop.permute.xlu1 %4712  ;;  %4228 = vmatmul.bf16.gmra.mxu1 %v7050_v38 }
 0x728   :  { %4578 = vmatpush.bf16.msrb.mxu1 %v10748_v53  ;;  %4749 = vmatpush.bf16.msra.mxu0 %v4713_v45  ;;  %v7636_v53 = vld [vmem:[%s12093_s7 + $0xb4] sm:$0xf0]  ;;  %v10940_v18 = vpop.f32.mrf.mxu0  ;;  %v4158_v45 = vpack.c.b16 %v4148_v15, %v4148_v15  ;;  %v7658_v15 = vld [vmem:[%s12093_s7 + $0x17c] sm:$0xf0] }
 0x729   :  { %5409 = vperm.xlu2 %7715, %v5366_v13   ;;  %v7058_v39 = vor.u32 %v7636_v53, %v7057_v22  ;;  %v7113_v13 = vld [vmem:[%s12093_s7 + $0x110] sm:$0xf0]  ;;  %v7179_v53 = vld [vmem:[%s12093_s7 + $0x168] sm:$0xf] }
 0x72a   :  { %4411 = vmatmul.bf16.gmra.mxu0 %v7104_v14 }
 0x72b   :  { %v4899_v21 = vpop.permute.xlu2 %4898 }
 0x72c   :  { %5369 = vperm.xlu0 %7716, %v5358_v41   ;;  %4964 = vmatpush.bf16.msra.mxu3 %v4899_v21 }
 0x72d   :  { %5389 = vperm.xlu1 %7717, %v5362_v11   ;;  %v4147_v11 = vunpack.c.l.b16 %v7038_v48 }
 0x72e   :  { %v4711_v56 = vpop.permute.xlu0 %4710  ;;  %7073 = vmatmul.msk.bf16.gmra.mxu3 %vm3895_vm5, %v7062_v12 }
 0x72f   :  { %v4719_v28 = vpop.permute.xlu1 %4718  ;;  %4750 = vmatpush.bf16.msra.mxu0 %v4711_v56  ;;  %v4157_v56 = vpack.c.b16 %v4147_v11, %v4147_v11 }
 0x730   :  { %7118 = vmatmul.msk.bf16.gmra.mxu2 %vm3895_vm5, %v7100_v34  ;;  %v10955_v52 = vpop.f32.mrf.mxu0 }
 0x731   :  { %4787 = vmatpush.bf16.msra.mxu2 %v4719_v28  ;;  %5070 = vrot.lane.b32.xlu2 %v10429_v60, %s7735_s14 }
 0x733   :  { %4751 = vmatpush.bf16.msra.mxu0 %v10742_v4  ;;  %v10896_v7 = vpop.permute.xlu2 %5058  ;;  %v7637_v4 = vld [vmem:[%s12093_s7 + $0xc4] sm:$0xf] }
 0x734   :  { %5384 = vperm.xlu0 %7716, %v5361_v51   ;;  %v7070_v58 = vor.u32 %v7637_v4, %v7067_v8  ;;  %v7656_v51 = vld [vmem:[%s12093_s7 + $0x16c] sm:$0xf0] }
 0x735   :  { %5404 = vperm.xlu1 %7717, %v5365_v47  }
 0x736   :  { %v4717_v2 = vpop.permute.xlu0 %4716 }
 0x737   :  { %v10904_v26 = vpop.permute.xlu1 %4878  ;;  %4233 = vmatmul.bf16.gmra.mxu1 %v7058_v39  ;;  %4752 = vmatpush.bf16.msra.mxu0 %v4707_v23  ;;  %v4325_v23 = vunpack.c.l.b16 %v7084_v3  ;;  %v7180_v39 = vor.u32 %v7656_v51, %v7179_v53  ;;  %v7650_v53 = vld [vmem:[%s12093_s7 + $0x134] sm:$0xf0] }
 0x738   :  { %4788 = vmatpush.bf16.msra.mxu2 %v4717_v2  ;;  %v10974_v12 = vpop.f32.mrf.mxu0 }
 0x739   :  { %5248 = vrot.lane.b32.xlu2 %v10429_v60, %s7723_s29  ;;  %v7108_v60 = vor.u32 %v7643_v50, %v7105_v5  ;;  %v4335_v55 = vpack.c.b16 %v4325_v23, %v4325_v23 }
 0x73a   :  { %4416 = vmatmul.bf16.gmra.mxu0 %v7112_v32  ;;  %v4326_v32 = vunpack.c.h.b16 %v7084_v3 }
 0x73b   :  { %4753 = vmatpush.bf16.msra.mxu0 %v4705_v49  ;;  %v10927_v63 = vpop.permute.xlu2 %5064  ;;  %v7645_v49 = vld [vmem:[%s12093_s7 + $0x10c] sm:$0xf] }
 0x73c   :  { %5399 = vperm.xlu0 %7716, %v5364_v44  }
 0x73e   :  { %v10929_v25 = vpop.permute.xlu0 %4876  ;;  %7074 = vmatmul.msk.bf16.gmra.mxu3 %vm3895_vm5, %v7070_v58 }
 0x73f   :  { %v4885_v43 = vpop.permute.xlu1 %4884  ;;  %4754 = vmatpush.bf16.msra.mxu0 %v10729_v30  ;;  %v7066_v30 = vor.u32 %v7638_v1, %v7065_v36  ;;  %v4336_v36 = vpack.c.b16 %v4326_v32, %v4326_v32  ;;  %v7195_v32 = vld [vmem:[%s12093_s7 + $0x188] sm:$0xf] }
 0x740   :  { %7119 = vmatmul.msk.bf16.gmra.mxu2 %vm3895_vm5, %v7108_v60  ;;  %v10996_v4 = vpop.f32.mrf.mxu0 }
 0x741   :  { %v3953_v10 = vpop.f32.mrf.mxu3 }
 0x743   :  { %4755 = vmatpush.bf16.msra.mxu0 %v10803_v35  ;;  %v10945_v29 = vpop.permute.xlu2 %5076 }
 0x744   :  { %v3920_v31 = vpop.f32.mrf.mxu1 }
 0x745   :  { %v3954_v59 = vadd.f32 %v3953_v10, %v3920_v31  ;;  %v7648_v10 = vld [vmem:[%s12093_s7 + $0x124] sm:$0xf0] }
 0x746   :  { %v4883_v40 = vpop.permute.xlu0 %4882 }
 0x747   :  { %v4891_v38 = vpop.permute.xlu1 %4890  ;;  %4238 = vmatmul.bf16.gmra.mxu1 %v7066_v30  ;;  %4756 = vmatpush.bf16.msra.mxu0 %v10823_v17  ;;  %v4056_v35 = vadd.f32 %v10859_v62, %v3954_v59  ;;  %v10966_v17 = vpop.f32.mrf.mxu2  ;;  %v7116_v62 = vor.u32 %v7645_v49, %v7113_v13 }
 0x748   :  { %4927 = vmatpush.bf16.msra.mxu1 %v4891_v38  ;;  %v11018_v30 = vpop.f32.mrf.mxu0 }
 0x749   :  { %v3955_v16 = vpop.f32.mrf.mxu3  ;;  %v10964_v14 = vadd.f32 %v10873_v20, %v4056_v35 }
 0x74a   :  { %4421 = vmatmul.bf16.gmra.mxu0 %v4335_v55 }
 0x74b   :  { %v10968_v6 = vpop.permute.xlu2 %5236 }
 0x74c   :  { %v3922_v37 = vpop.f32.mrf.mxu1 }
 0x74d   :  { %v10970_v41 = vadd.f32 %v3955_v16, %v3922_v37  ;;  %v7649_v16 = vld [vmem:[%s12093_s7 + $0x134] sm:$0xf]  ;;  %v7655_v37 = vld [vmem:[%s12093_s7 + $0x16c] sm:$0xf] }
 0x74e   :  { %v4889_v61 = vpop.permute.xlu0 %4888  ;;  %7075 = vmatmul.msk.bf16.gmra.mxu3 %vm3895_vm5, %v4158_v45 }
 0x74f   :  { %v4897_v54 = vpop.permute.xlu1 %4896  ;;  %4928 = vmatpush.bf16.msra.mxu1 %v4889_v61  ;;  %v10976_v21 = vpop.f32.mrf.mxu2 }
 0x750   :  { %7120 = vmatmul.msk.bf16.gmra.mxu2 %vm3895_vm5, %v7116_v62  ;;  %4965 = vmatpush.bf16.msra.mxu3 %v4897_v54  ;;  %v7181_v62 = vld [vmem:[%s12093_s7 + $0x170] sm:$0xf0] }
 0x751   :  { %v3958_v20 = vpop.f32.mrf.mxu3 }
 0x753   :  { %4929 = vmatpush.bf16.msra.mxu1 %v10791_v33  ;;  %v10979_v34 = vpop.permute.xlu2 %5242  ;;  %v7647_v33 = vld [vmem:[%s12093_s7 + $0x124] sm:$0xf] }
 0x754   :  { %v3925_v28 = vpop.f32.mrf.mxu1  ;;  %v7138_v50 = vor.u32 %v7647_v33, %v7135_v0 }
 0x755   :  { %v3959_v22 = vadd.f32 %v3958_v20, %v3925_v28 }
 0x756   :  { %v4895_v47 = vpop.permute.xlu0 %4894 }
 0x757   :  { %v10987_v27 = vpop.permute.xlu1 %5056  ;;  %4243 = vmatmul.bf16.gmra.mxu1 %v4157_v56  ;;  %4966 = vmatpush.bf16.msra.mxu3 %v4895_v47  ;;  %v4061_v2 = vadd.f32 %v10912_v24, %v3959_v22  ;;  %v11003_v58 = vpop.f32.mrf.mxu2 }
 0x758   :  { %4930 = vmatpush.bf16.msra.mxu1 %v4885_v43 }
 0x759   :  { %v3960_v8 = vpop.f32.mrf.mxu3  ;;  %v10999_v44 = vadd.f32 %v10925_v46, %v4061_v2  ;;  %v7133_v46 = vld [vmem:[%s12093_s7 + $0x120] sm:$0xf] }
 0x75a   :  { %4757 = vmatmul.bf16.vlgmr.msra.gmra.mxu0 %v7180_v39  ;;  %v7134_v31 = vor.u32 %v7648_v10, %v7133_v46 }
 0x75b   :  { %v11001_v5 = vpop.permute.xlu2 %5254 }
 0x75c   :  { %4931 = vmatpush.bf16.msra.mxu1 %v4883_v40  ;;  %v3927_v60 = vpop.f32.mrf.mxu1  ;;  %v7187_v40 = vld [vmem:[%s12093_s7 + $0x178] sm:$0xf] }
 0x75d   :  { %v11005_v1 = vadd.f32 %v3960_v8, %v3927_v60  ;;  %v7188_v38 = vor.u32 %v7658_v15, %v7187_v40  ;;  %v7660_v8 = vld [vmem:[%s12093_s7 + $0x18c] sm:$0xf0] }
 0x75e   :  { %v11007_v24 = vpop.permute.xlu0 %5054  ;;  %7163 = vmatmul.msk.bf16.vlgmr.msrb.gmra.mxu3 %vm3895_vm5, %v7138_v50  ;;  %v7196_v60 = vor.u32 %v7660_v8, %v7195_v32  ;;  %v7654_v32 = vld [vmem:[%s12093_s7 + $0x154] sm:$0xf0] }
 0x75f   :  { %v5063_v43 = vpop.permute.xlu1 %5062  ;;  %v11022_v23 = vpop.f32.mrf.mxu2 }
 0x760   :  { %4932 = vmatpush.bf16.msra.mxu1 %v10775_v9  ;;  %7121 = vmatmul.msk.bf16.gmra.mxu2 %vm3895_vm5, %v4336_v36 }
 0x761   :  { %v3963_v48 = vpop.f32.mrf.mxu3 }
 0x763   :  { %v11020_v3 = vpop.permute.xlu2 %5379  ;;  %v11039_v13 = vpop.f32.mrf.mxu0 }
 0x764   :  { %4933 = vmatpush.bf16.msra.mxu1 %v10904_v26  ;;  %v3930_v9 = vpop.f32.mrf.mxu1  ;;  %v7143_v26 = vld [vmem:[%s12093_s7 + $0x138] sm:$0xf0] }
 0x765   :  { %v3964_v59 = vadd.f32 %v3963_v48, %v3930_v9  ;;  %v7146_v54 = vor.u32 %v7649_v16, %v7143_v26  ;;  %v7657_v48 = vld [vmem:[%s12093_s7 + $0x17c] sm:$0xf] }
 0x766   :  { %v5061_v55 = vpop.permute.xlu0 %5060 }
 0x767   :  { %v5069_v35 = vpop.permute.xlu1 %5068  ;;  %4579 = vmatmul.bf16.vlgmr.msrb.gmra.mxu1 %v7134_v31  ;;  %v4066_v49 = vadd.f32 %v10955_v52, %v3964_v59  ;;  %v11050_v20 = vpop.f32.mrf.mxu2 }
 0x768   :  { %4934 = vmatpush.bf16.msra.mxu1 %v10929_v25  ;;  %5105 = vmatpush.bf16.msrb.mxu0 %v5069_v35  ;;  %v7184_v25 = vor.u32 %v7655_v37, %v7181_v62  ;;  %v7662_v62 = vld [vmem:[%s12093_s7 + $0x19c] sm:$0xf0] }
 0x769   :  { %v3965_v45 = vpop.f32.mrf.mxu3  ;;  %v11048_v61 = vadd.f32 %v10966_v17, %v4066_v49  ;;  %v7141_v17 = vld [vmem:[%s12093_s7 + $0x130] sm:$0xf] }
 0x76a   :  { %4762 = vmatmul.bf16.gmra.mxu0 %v7188_v38  ;;  %v7142_v39 = vor.u32 %v7650_v53, %v7141_v17  ;;  %v7659_v53 = vld [vmem:[%s12093_s7 + $0x18c] sm:$0xf] }
 0x76b   :  { %v4715_v52 = vpop.permute.xlu2 %4714  ;;  %v4077_v51 = vpop.f32.mrf.mxu0 }
 0x76c   :  { %v3932_v11 = vpop.f32.mrf.mxu1  ;;  %4789 = vmatpush.bf16.msra.mxu2 %v4715_v52 }
 0x76d   :  { %v11052_v56 = vadd.f32 %v3965_v45, %v3932_v11 }
 0x76e   :  { %v5067_v28 = vpop.permute.xlu0 %5066  ;;  %7164 = vmatmul.msk.bf16.gmra.mxu3 %vm3895_vm5, %v7146_v54 }
 0x76f   :  { %v5075_v22 = vpop.permute.xlu1 %5074  ;;  %5106 = vmatpush.bf16.msrb.mxu0 %v5067_v28  ;;  %v4110_v0 = vpop.f32.mrf.mxu2 }
 0x770   :  { %5142 = vmatpush.bf16.msrb.mxu2 %v10945_v29 }
 0x771   :  { %7209 = vmatmul.msk.bf16.vlgmr.msra.gmra.mxu2 %vm3895_vm5, %v7184_v25  ;;  %v3968_v47 = vpop.f32.mrf.mxu3  ;;  %v7159_v25 = vld [vmem:[%s12093_s7 + $0x158] sm:$0xf0] }
 0x773   :  { %5107 = vmatpush.bf16.msrb.mxu0 %v10927_v63  ;;  %v4893_v29 = vpop.permute.xlu2 %4892  ;;  %v7651_v63 = vld [vmem:[%s12093_s7 + $0x144] sm:$0xf] }
 0x774   :  { %5143 = vmatpush.bf16.msrb.mxu2 %v5075_v22  ;;  %v3935_v33 = vpop.f32.mrf.mxu1  ;;  %4967 = vmatpush.bf16.msra.mxu3 %v4893_v29 }
 0x775   :  { %v3969_v2 = vadd.f32 %v3968_v47, %v3935_v33 }
 0x776   :  { %v5073_v50 = vpop.permute.xlu0 %5072 }
 0x777   :  { %v11071_v36 = vpop.permute.xlu1 %5234  ;;  %4584 = vmatmul.bf16.gmra.mxu1 %v7142_v39  ;;  %5108 = vmatpush.bf16.msrb.mxu0 %v5063_v43  ;;  %v4071_v46 = vadd.f32 %v10996_v4, %v3969_v2  ;;  %v7189_v43 = vld [vmem:[%s12093_s7 + $0x180] sm:$0xf0] }
 0x778   :  { %5320 = vmatpush.bf16.msrb.mxu3 %v11001_v5  ;;  %v7151_v5 = vld [vmem:[%s12093_s7 + $0x148] sm:$0xf0]  ;;  %5144 = vmatpush.bf16.msrb.mxu2 %v5073_v50  ;;  %v7192_v4 = vor.u32 %v7657_v48, %v7189_v43 }
 0x779   :  { %v3970_v10 = vpop.f32.mrf.mxu3  ;;  %v11087_v31 = vadd.f32 %v11003_v58, %v4071_v46  ;;  %v7154_v9 = vor.u32 %v7651_v63, %v7151_v5  ;;  %v7149_v58 = vld [vmem:[%s12093_s7 + $0x140] sm:$0xf]  ;;  %v7176_v63 = vld [vmem:[%s12093_s7 + $0x1a8] sm:$0xff] }
 0x77a   :  { %4767 = vmatmul.bf16.gmra.mxu0 %v7196_v60  ;;  %v7130_v60 = vld [vmem:[%s12093_s7 + $0x160] sm:$0xff]  ;;  %v4681_v46 = vunpack.c.l.b16 %v7176_v63 }
 0x77b   :  { %5109 = vmatpush.bf16.msrb.mxu0 %v5061_v55  ;;  %v11089_v59 = vpop.permute.xlu2 %5394  ;;  %v7652_v55 = vld [vmem:[%s12093_s7 + $0x144] sm:$0xf0]  ;;  %v4504_v43 = vunpack.c.h.b16 %v7130_v60 }
 0x77c   :  { %v3937_v40 = vpop.f32.mrf.mxu1  ;;  %v7150_v49 = vor.u32 %v7652_v55, %v7149_v58  ;;  %v7661_v55 = vld [vmem:[%s12093_s7 + $0x19c] sm:$0xf] }
 0x77d   :  { %v11091_v15 = vadd.f32 %v3970_v10, %v3937_v40 }
 0x77e   :  { %v11093_v38 = vpop.permute.xlu0 %5232  ;;  %7165 = vmatmul.msk.bf16.gmra.mxu3 %vm3895_vm5, %v7154_v9  ;;  %v4691_v9 = vpack.c.b16 %v4681_v46, %v4681_v46 }
 0x77f   :  { %v5241_v35 = vpop.permute.xlu1 %5240  ;;  %5110 = vmatpush.bf16.msrb.mxu0 %v10896_v7  ;;  %v7203_v7 = vld [vmem:[%s12093_s7 + $0x198] sm:$0xf] }
 0x780   :  { %v7204_v52 = vor.u32 %v7662_v62, %v7203_v7 }
 0x781   :  { %7210 = vmatmul.msk.bf16.gmra.mxu2 %vm3895_vm5, %v7192_v4  ;;  %v3973_v16 = vpop.f32.mrf.mxu3  ;;  %v4058_v4 = vadd.f32 %v10883_v42, %v10970_v41  ;;  %v4503_v41 = vunpack.c.l.b16 %v7130_v60 }
 0x783   :  { %5111 = vmatpush.bf16.msrb.mxu0 %v10987_v27  ;;  %v11105_v26 = vpop.permute.xlu2 %5409  ;;  %v7653_v27 = vld [vmem:[%s12093_s7 + $0x154] sm:$0xf] }
 0x784   :  { %v3940_v45 = vpop.f32.mrf.mxu1  ;;  %v7162_v47 = vor.u32 %v7653_v27, %v7159_v25  ;;  %v4513_v27 = vpack.c.b16 %v4503_v41, %v4503_v41 }
 0x785   :  { %v3974_v37 = vadd.f32 %v3973_v16, %v3940_v45  ;;  %v7205_v16 = vld [vmem:[%s12093_s7 + $0x1a0] sm:$0xf0]  ;;  %v4514_v45 = vpack.c.b16 %v4504_v43, %v4504_v43  ;;  %v7279_v43 = vld [vmem:[%s12093_s7 + $0x208] sm:$0xf] }
 0x786   :  { %v5239_v54 = vpop.permute.xlu0 %5238 }
 0x787   :  { %v5247_v11 = vpop.permute.xlu1 %5246  ;;  %4589 = vmatmul.bf16.gmra.mxu1 %v7150_v49  ;;  %5112 = vmatpush.bf16.msrb.mxu0 %v11007_v24  ;;  %v4076_v28 = vadd.f32 %v11039_v13, %v3974_v37  ;;  %v4402_v22 = vpop.f32.mrf.mxu0  ;;  %v7197_v24 = vld [vmem:[%s12093_s7 + $0x190] sm:$0xf0]  ;;  %v7208_v37 = vor.u32 %v7661_v55, %v7205_v16  ;;  %v7235_v55 = vld [vmem:[%s12093_s7 + $0x1c8] sm:$0xf0] }
 0x788   :  { %5283 = vmatpush.bf16.msrb.mxu1 %v5247_v11  ;;  %v7200_v13 = vor.u32 %v7659_v53, %v7197_v24 }
 0x789   :  { %v3975_v17 = vpop.f32.mrf.mxu3  ;;  %v11128_v51 = vadd.f32 %v11050_v20, %v4076_v28  ;;  %v7157_v20 = vld [vmem:[%s12093_s7 + $0x150] sm:$0xf] }
 0x78a   :  { %4772 = vmatmul.bf16.gmra.mxu0 %v7204_v52  ;;  %v7158_v50 = vor.u32 %v7654_v32, %v7157_v20  ;;  %v7672_v17 = vld [vmem:[%s12093_s7 + $0x1fc] sm:$0xf0] }
 0x78b   :  { %v5071_v29 = vpop.permute.xlu2 %5070 }
 0x78c   :  { %v3942_v39 = vpop.f32.mrf.mxu1  ;;  %5145 = vmatpush.bf16.msrb.mxu2 %v5071_v29  ;;  %v4682_v29 = vunpack.c.h.b16 %v7176_v63 }
 0x78d   :  { %v4063_v39 = vadd.f32 %v10940_v18, %v11005_v1  ;;  %v7225_v18 = vld [vmem:[%s12093_s7 + $0x1b0] sm:$0xf]  ;;  %v7664_v1 = vld [vmem:[%s12093_s7 + $0x1b4] sm:$0xf0] }
 0x78e   :  { %v5245_v33 = vpop.permute.xlu0 %5244  ;;  %7166 = vmatmul.msk.bf16.gmra.mxu3 %vm3895_vm5, %v7162_v47  ;;  %v4692_v32 = vpack.c.b16 %v4682_v29, %v4682_v29 }
 0x78f   :  { %v5253_v0 = vpop.permute.xlu1 %5252  ;;  %5284 = vmatpush.bf16.msrb.mxu1 %v5245_v33  ;;  %v11131_v2 = vpop.f32.mrf.mxu0 }
 0x790   :  { %5321 = vmatpush.bf16.msrb.mxu3 %v5253_v0 }
 0x791   :  { %7211 = vmatmul.msk.bf16.gmra.mxu2 %vm3895_vm5, %v7200_v13  ;;  %v4257_v8 = vpop.f32.mrf.mxu3 }
 0x793   :  { %5285 = vmatpush.bf16.msrb.mxu1 %v10979_v34  ;;  %v5249_v49 = vpop.permute.xlu2 %5248 }
 0x794   :  { %v4224_v5 = vpop.f32.mrf.mxu1 }
 0x795   :  { %v4258_v10 = vadd.f32 %v4257_v8, %v4224_v5  ;;  %v4096_v8 = vadd.f32 %v10942_v19, %v4063_v39  ;;  %v7226_v19 = vor.u32 %v7664_v1, %v7225_v18 }
 0x796   :  { %v5251_v48 = vpop.permute.xlu0 %5250 }
 0x797   :  { %v4281_v40 = vadd.f32 %v4258_v10, %v10964_v14  ;;  %4594 = vmatmul.bf16.gmra.mxu1 %v7158_v50  ;;  %5322 = vmatpush.bf16.msrb.mxu3 %v5251_v48  ;;  %v4407_v34 = vpop.f32.mrf.mxu0 }
 0x798   :  { %5286 = vmatpush.bf16.msrb.mxu1 %v5241_v35  ;;  %v4091_v35 = vadd.f32 %v10893_v57, %v4058_v4  ;;  %v7271_v57 = vld [vmem:[%s12093_s7 + $0x1f8] sm:$0xf] }
 0x799   :  { %v4259_v58 = vpop.f32.mrf.mxu3 }
 0x79a   :  { %4777 = vmatmul.bf16.gmra.mxu0 %v4691_v9  ;;  %v7674_v9 = vld [vmem:[%s12093_s7 + $0x20c] sm:$0xf0] }
 0x79b   :  { %5323 = vmatpush.bf16.msrb.mxu3 %v5249_v49  ;;  %v7280_v4 = vor.u32 %v7674_v9, %v7279_v43  ;;  %v4068_v49 = vadd.f32 %v10974_v12, %v11052_v56 }
 0x79c   :  { %5287 = vmatpush.bf16.msrb.mxu1 %v5239_v54  ;;  %v4226_v14 = vpop.f32.mrf.mxu1 }
 0x79d   :  { %v4260_v7 = vadd.f32 %v4259_v58, %v4226_v14  ;;  %v7671_v14 = vld [vmem:[%s12093_s7 + $0x1fc] sm:$0xf] }
 0x79e   :  { %7167 = vmatmul.msk.bf16.gmra.mxu3 %vm3895_vm5, %v4514_v45 }
 0x79f   :  { %v4282_v42 = vadd.f32 %v4260_v7, %v4091_v35  ;;  %v4409_v62 = vpop.f32.mrf.mxu0 }
 0x7a0   :  { %5288 = vmatpush.bf16.msrb.mxu1 %v10968_v6  ;;  %v7272_v6 = vor.u32 %v7672_v17, %v7271_v57 }
 0x7a1   :  { %7212 = vmatmul.msk.bf16.gmra.mxu2 %vm3895_vm5, %v7208_v37  ;;  %v4262_v52 = vpop.f32.mrf.mxu3 }
 0x7a3   :  { %v4435_v11 = vpop.f32.mrf.mxu2 }
 0x7a4   :  { %v4436_v25 = vadd.f32 %v4435_v11, %v4402_v22  ;;  %5289 = vmatpush.bf16.msrb.mxu1 %v11071_v36  ;;  %v4229_v54 = vpop.f32.mrf.mxu1  ;;  %v7663_v36 = vld [vmem:[%s12093_s7 + $0x1b4] sm:$0xf]  ;;  %v7227_v22 = vld [vmem:[%s12093_s7 + $0x1b8] sm:$0xf0] }
 0x7a5   :  { %v4263_v28 = vadd.f32 %v4262_v52, %v4229_v54  ;;  %v7230_v33 = vor.u32 %v7663_v36, %v7227_v22  ;;  %v4101_v52 = vadd.f32 %v10976_v21, %v4068_v49  ;;  %v7676_v36 = vld [vmem:[%s12093_s7 + $0x21c] sm:$0xf0] }
 0x7a6   :  { %v11167_v53 = vadd.f32 %v4436_v25, %v4281_v40  ;;  %v7233_v25 = vld [vmem:[%s12093_s7 + $0x1c0] sm:$0xf] }
 0x7a7   :  { %v4283_v24 = vadd.f32 %v4263_v28, %v10999_v44  ;;  %4599 = vmatmul.bf16.gmra.mxu1 %v4513_v27  ;;  %v4412_v47 = vpop.f32.mrf.mxu0 }
 0x7a8   :  { %5290 = vmatpush.bf16.msrb.mxu1 %v11093_v38 }
 0x7a9   :  { %v4264_v13 = vpop.f32.mrf.mxu3 }
 0x7aa   :  { %5113 = vmatmul.bf16.vlgmr.msrb.gmra.mxu0 %v7272_v6 }
 0x7ab   :  { %v4437_v44 = vpop.f32.mrf.mxu2 }
 0x7ac   :  { %v4438_v0 = vadd.f32 %v4437_v44, %v11131_v2  ;;  %v4231_v20 = vpop.f32.mrf.mxu1  ;;  %v4073_v44 = vadd.f32 %v11018_v30, %v11091_v15 }
 0x7ad   :  { %v4265_v50 = vadd.f32 %v4264_v13, %v4231_v20  ;;  %v7243_v13 = vld [vmem:[%s12093_s7 + $0x1d8] sm:$0xf0]  ;;  %v7673_v20 = vld [vmem:[%s12093_s7 + $0x20c] sm:$0xf] }
 0x7ae   :  { %v11181_v60 = vadd.f32 %v4438_v0, %v4282_v42  ;;  %7255 = vmatmul.msk.bf16.vlgmr.msra.gmra.mxu3 %vm3895_vm5, %v7230_v33  ;;  %v4106_v1 = vadd.f32 %v11022_v23, %v4073_v44 }
 0x7af   :  { %v4284_v38 = vadd.f32 %v4265_v50, %v4096_v8  ;;  %v4414_v63 = vpop.f32.mrf.mxu0 }
 0x7b1   :  { %7213 = vmatmul.msk.bf16.gmra.mxu2 %vm3895_vm5, %v4692_v32  ;;  %v4267_v2 = vpop.f32.mrf.mxu3 }
 0x7b3   :  { %v4440_v5 = vpop.f32.mrf.mxu2 }
 0x7b4   :  { %v4441_v46 = vadd.f32 %v4440_v5, %v4407_v34  ;;  %v4234_v10 = vpop.f32.mrf.mxu1  ;;  %v7665_v34 = vld [vmem:[%s12093_s7 + $0x1c4] sm:$0xf] }
 0x7b5   :  { %v4268_v48 = vadd.f32 %v4267_v2, %v4234_v10  ;;  %v7238_v37 = vor.u32 %v7665_v34, %v7235_v55 }
 0x7b6   :  { %v11197_v40 = vadd.f32 %v4441_v46, %v4283_v24  ;;  %v7287_v24 = vld [vmem:[%s12093_s7 + $0x218] sm:$0xf] }
 0x7b7   :  { %v4285_v58 = vadd.f32 %v4268_v48, %v11048_v61  ;;  %4935 = vmatmul.bf16.vlgmr.msra.gmra.mxu1 %v7226_v19  ;;  %v4417_v16 = vpop.f32.mrf.mxu0  ;;  %v7273_v61 = vld [vmem:[%s12093_s7 + $0x200] sm:$0xf0]  ;;  %v7288_v29 = vor.u32 %v7676_v36, %v7287_v24  ;;  %v7241_v19 = vld [vmem:[%s12093_s7 + $0x1d0] sm:$0xf] }
 0x7b8   :  { %v7276_v41 = vor.u32 %v7671_v14, %v7273_v61 }
 0x7b9   :  { %v4269_v45 = vpop.f32.mrf.mxu3 }
 0x7ba   :  { %5118 = vmatmul.bf16.gmra.mxu0 %v7280_v4  ;;  %v7295_v4 = vld [vmem:[%s12093_s7 + $0x228] sm:$0xf] }
 0x7bb   :  { %v4442_v35 = vpop.f32.mrf.mxu2 }
 0x7bc   :  { %v4443_v7 = vadd.f32 %v4442_v35, %v4409_v62  ;;  %v4236_v42 = vpop.f32.mrf.mxu1  ;;  %v7666_v62 = vld [vmem:[%s12093_s7 + $0x1c4] sm:$0xf0]  ;;  %v7289_v35 = vld [vmem:[%s12093_s7 + $0x220] sm:$0xf0] }
 0x7bd   :  { %v4270_v11 = vadd.f32 %v4269_v45, %v4236_v42  ;;  %v7234_v21 = vor.u32 %v7666_v62, %v7233_v25  ;;  %v7251_v45 = vld [vmem:[%s12093_s7 + $0x1e8] sm:$0xf0]  ;;  %v7249_v25 = vld [vmem:[%s12093_s7 + $0x1e0] sm:$0xf]  ;;  %v7670_v62 = vld [vmem:[%s12093_s7 + $0x1e4] sm:$0xf0] }
 0x7be   :  { %v11215_v27 = vadd.f32 %v4443_v7, %v4284_v38  ;;  %7256 = vmatmul.msk.bf16.gmra.mxu3 %vm3895_vm5, %v7238_v37  ;;  %v7675_v37 = vld [vmem:[%s12093_s7 + $0x21c] sm:$0xf] }
 0x7bf   :  { %v4286_v12 = vadd.f32 %v4270_v11, %v4101_v52  ;;  %v4419_v56 = vpop.f32.mrf.mxu0  ;;  %v7292_v52 = vor.u32 %v7675_v37, %v7289_v35  ;;  %v7317_v35 = vld [vmem:[%s12093_s7 + $0x240] sm:$0xf] }
 0x7c1   :  { %7301 = vmatmul.msk.bf16.vlgmr.msrb.gmra.mxu2 %vm3895_vm5, %v7276_v41  ;;  %v4272_v54 = vpop.f32.mrf.mxu3 }
 0x7c3   :  { %v4445_v28 = vpop.f32.mrf.mxu2 }
 0x7c4   :  { %v4446_v57 = vadd.f32 %v4445_v28, %v4412_v47  ;;  %v4239_v17 = vpop.f32.mrf.mxu1  ;;  %v7667_v47 = vld [vmem:[%s12093_s7 + $0x1d4] sm:$0xf] }
 0x7c5   :  { %v4273_v6 = vadd.f32 %v4272_v54, %v4239_v17  ;;  %v7246_v32 = vor.u32 %v7667_v47, %v7243_v13 }
 0x7c6   :  { %v11231_v22 = vadd.f32 %v4446_v57, %v4285_v58  ;;  %v7678_v58 = vld [vmem:[%s12093_s7 + $0x22c] sm:$0xf0]  ;;  %v7268_v57 = vld [vmem:[%s12093_s7 + $0x238] sm:$0xff] }
 0x7c7   :  { %v4287_v39 = vadd.f32 %v4273_v6, %v11087_v31  ;;  %4940 = vmatmul.bf16.gmra.mxu1 %v7234_v21  ;;  %v4422_v33 = vpop.f32.mrf.mxu0  ;;  %v7281_v31 = vld [vmem:[%s12093_s7 + $0x210] sm:$0xf0]  ;;  %v7296_v55 = vor.u32 %v7678_v58, %v7295_v4  ;;  %v5037_v24 = vunpack.c.l.b16 %v7268_v57 }
 0x7c8   :  { %v7284_v18 = vor.u32 %v7673_v20, %v7281_v31  ;;  %v7222_v21 = vld [vmem:[%s12093_s7 + $0x1f0] sm:$0xff]  ;;  %v7677_v20 = vld [vmem:[%s12093_s7 + $0x22c] sm:$0xf] }
 0x7c9   :  { %v4274_v0 = vpop.f32.mrf.mxu3  ;;  %v5047_v47 = vpack.c.b16 %v5037_v24, %v5037_v24 }
 0x7ca   :  { %5123 = vmatmul.bf16.gmra.mxu0 %v7288_v29 }
 0x7cb   :  { %v4447_v8 = vpop.f32.mrf.mxu2 }
 0x7cc   :  { %v4448_v50 = vadd.f32 %v4447_v8, %v4414_v63  ;;  %v4241_v38 = vpop.f32.mrf.mxu1  ;;  %v7668_v63 = vld [vmem:[%s12093_s7 + $0x1d4] sm:$0xf0] }
 0x7cd   :  { %v4275_v2 = vadd.f32 %v4274_v0, %v4241_v38  ;;  %v7242_v23 = vor.u32 %v7668_v63, %v7241_v19 }
 0x7ce   :  { %v11249_v5 = vadd.f32 %v4448_v50, %v4286_v12  ;;  %7257 = vmatmul.msk.bf16.gmra.mxu3 %vm3895_vm5, %v7246_v32 }
 0x7cf   :  { %v4288_v30 = vadd.f32 %v4275_v2, %v4106_v1  ;;  %v4424_v15 = vpop.f32.mrf.mxu0 }
 0x7d1   :  { %7302 = vmatmul.msk.bf16.gmra.mxu2 %vm3895_vm5, %v7284_v18  ;;  %v4277_v46 = vpop.f32.mrf.mxu3  ;;  %v4859_v18 = vunpack.c.l.b16 %v7222_v21 }
 0x7d3   :  { %v4450_v10 = vpop.f32.mrf.mxu2  ;;  %v4869_v15 = vpack.c.b16 %v4859_v18, %v4859_v18 }
 0x7d4   :  { %v4451_v48 = vadd.f32 %v4450_v10, %v4417_v16  ;;  %v4244_v43 = vpop.f32.mrf.mxu1  ;;  %v7669_v16 = vld [vmem:[%s12093_s7 + $0x1e4] sm:$0xf] }
 0x7d5   :  { %v4278_v9 = vadd.f32 %v4277_v46, %v4244_v43 }
 0x7d6   :  { %v11265_v34 = vadd.f32 %v4451_v48, %v4287_v39  ;;  %v4860_v39 = vunpack.c.h.b16 %v7222_v21  ;;  %v7679_v48 = vld [vmem:[%s12093_s7 + $0x244] sm:$0xf] }
 0x7d7   :  { %v4289_v49 = vadd.f32 %v4278_v9, %v11128_v51  ;;  %4945 = vmatmul.bf16.gmra.mxu1 %v7242_v23  ;;  %v4758_v14 = vpop.f32.mrf.mxu0  ;;  %v7254_v51 = vor.u32 %v7669_v16, %v7251_v45  ;;  %v5038_v9 = vunpack.c.h.b16 %v7268_v57 }
 0x7d8   :  { %v4870_v31 = vpack.c.b16 %v4860_v39, %v4860_v39 }
 0x7d9   :  { %v4279_v61 = vpop.f32.mrf.mxu3  ;;  %v5048_v45 = vpack.c.b16 %v5038_v9, %v5038_v9 }
 0x7da   :  { %5128 = vmatmul.bf16.gmra.mxu0 %v7296_v55 }
 0x7db   :  { %v4452_v7 = vpop.f32.mrf.mxu2 }
 0x7dc   :  { %v4453_v42 = vadd.f32 %v4452_v7, %v4419_v56  ;;  %v4246_v41 = vpop.f32.mrf.mxu1  ;;  %v7250_v56 = vor.u32 %v7670_v62, %v7249_v25 }
 0x7de   :  { %v11280_v11 = vadd.f32 %v4453_v42, %v4288_v30  ;;  %7258 = vmatmul.msk.bf16.gmra.mxu3 %vm3895_vm5, %v7254_v51  ;;  %v7680_v51 = vld [vmem:[%s12093_s7 + $0x244] sm:$0xf0] }
 0x7df   :  { %v4760_v12 = vpop.f32.mrf.mxu0  ;;  %v7318_v41 = vor.u32 %v7680_v51, %v7317_v35 }
 0x7e1   :  { %7303 = vmatmul.msk.bf16.gmra.mxu2 %vm3895_vm5, %v7292_v52  ;;  %v4613_v54 = vpop.f32.mrf.mxu3 }
 0x7e3   :  { %v4455_v28 = vpop.f32.mrf.mxu2 }
 0x7e4   :  { %v4456_v17 = vadd.f32 %v4455_v28, %v4422_v33  ;;  %v4580_v6 = vpop.f32.mrf.mxu1  ;;  %v7297_v33 = vld [vmem:[%s12093_s7 + $0x230] sm:$0xf0]  ;;  %v7327_v28 = vld [vmem:[%s12093_s7 + $0x258] sm:$0xf0] }
 0x7e5   :  { %v4614_v36 = vadd.f32 %v4613_v54, %v4580_v6  ;;  %v7300_v50 = vor.u32 %v7677_v20, %v7297_v33  ;;  %v7681_v54 = vld [vmem:[%s12093_s7 + $0x254] sm:$0xf] }
 0x7e6   :  { %v11296_v29 = vadd.f32 %v4456_v17, %v4289_v49  ;;  %v7330_v57 = vor.u32 %v7681_v54, %v7327_v28  ;;  %v7314_v28 = vld [vmem:[%s12093_s7 + $0x280] sm:$0xff] }
 0x7e7   :  { %v4637_v13 = vadd.f32 %v4614_v36, %v11167_v53  ;;  %4950 = vmatmul.bf16.gmra.mxu1 %v7250_v56  ;;  %v4763_v44 = vpop.f32.mrf.mxu0 }
 0x7e9   :  { %v4615_v0 = vpop.f32.mrf.mxu3 }
 0x7ea   :  { %5133 = vmatmul.bf16.gmra.mxu0 %v5047_v47 }
 0x7eb   :  { %v4457_v32 = vpop.f32.mrf.mxu2 }
 0x7ec   :  { %v4582_v8 = vpop.f32.mrf.mxu1 }
 0x7ed   :  { %v4616_v38 = vadd.f32 %v4615_v0, %v4582_v8 }
 0x7ee   :  { %7259 = vmatmul.msk.bf16.gmra.mxu3 %vm3895_vm5, %v4870_v31 }
 0x7ef   :  { %v4638_v53 = vadd.f32 %v4616_v38, %v11181_v60  ;;  %v4765_v1 = vpop.f32.mrf.mxu0  ;;  %v7319_v60 = vld [vmem:[%s12093_s7 + $0x248] sm:$0xf0] }
 0x7f0   :  { %v7322_v58 = vor.u32 %v7679_v48, %v7319_v60  ;;  %v7333_v48 = vld [vmem:[%s12093_s7 + $0x260] sm:$0xf]  ;;  %v7684_v60 = vld [vmem:[%s12093_s7 + $0x264] sm:$0xf0] }
 0x7f1   :  { %7304 = vmatmul.msk.bf16.gmra.mxu2 %vm3895_vm5, %v7300_v50  ;;  %v4618_v2 = vpop.f32.mrf.mxu3 }
 0x7f4   :  { %v4791_v30 = vpop.f32.mrf.mxu2  ;;  %v4585_v63 = vpop.f32.mrf.mxu1 }
 0x7f5   :  { %v4792_v19 = vadd.f32 %v4791_v30, %v4758_v14  ;;  %v4619_v46 = vadd.f32 %v4618_v2, %v4585_v63 }
 0x7f7   :  { %v11308_v10 = vadd.f32 %v4792_v19, %v4637_v13  ;;  %v4639_v23 = vadd.f32 %v4619_v46, %v11197_v40  ;;  %4955 = vmatmul.bf16.gmra.mxu1 %v4869_v15  ;;  %v4768_v43 = vpop.f32.mrf.mxu0  ;;  %v7325_v13 = vld [vmem:[%s12093_s7 + $0x250] sm:$0xf] }
 0x7f9   :  { %v4620_v4 = vpop.f32.mrf.mxu3 }
 0x7fc   :  { %v4793_v55 = vpop.f32.mrf.mxu2  ;;  %v4587_v16 = vpop.f32.mrf.mxu1 }
 0x7fd   :  { %v4794_v49 = vadd.f32 %v4793_v55, %v4760_v12  ;;  %v4621_v14 = vadd.f32 %v4620_v4, %v4587_v16  ;;  %v7334_v4 = vor.u32 %v7684_v60, %v7333_v48 }
 0x7fe   :  { %7347 = vmatmul.msk.bf16.vlgmr.msrb.gmra.mxu3 %vm3895_vm5, %v7322_v58 }
 0x7ff   :  { %v11317_v61 = vadd.f32 %v4794_v49, %v4638_v53  ;;  %v4640_v40 = vadd.f32 %v4621_v14, %v11215_v27  ;;  %v4770_v37 = vpop.f32.mrf.mxu0  ;;  %v7335_v53 = vld [vmem:[%s12093_s7 + $0x268] sm:$0xf0]  ;;  %v7343_v14 = vld [vmem:[%s12093_s7 + $0x278] sm:$0xf0] }
 0x801   :  { %7305 = vmatmul.msk.bf16.gmra.mxu2 %vm3895_vm5, %v5048_v45  ;;  %v4623_v7 = vpop.f32.mrf.mxu3 }
 0x804   :  { %v4796_v42 = vpop.f32.mrf.mxu2  ;;  %v4590_v12 = vpop.f32.mrf.mxu1 }
 0x805   :  { %v4797_v52 = vadd.f32 %v4796_v42, %v4763_v44  ;;  %v4624_v25 = vadd.f32 %v4623_v7, %v4590_v12  ;;  %v7682_v44 = vld [vmem:[%s12093_s7 + $0x254] sm:$0xf0] }
 0x806   :  { %v7326_v33 = vor.u32 %v7682_v44, %v7325_v13  ;;  %v7686_v12 = vld [vmem:[%s12093_s7 + $0x274] sm:$0xf0] }
 0x807   :  { %v11328_v62 = vadd.f32 %v4797_v52, %v4639_v23  ;;  %v4641_v27 = vadd.f32 %v4624_v25, %v11231_v22  ;;  %5291 = vmatmul.bf16.vlgmr.msrb.gmra.mxu1 %v7318_v41  ;;  %v4773_v56 = vpop.f32.mrf.mxu0  ;;  %v7341_v52 = vld [vmem:[%s12093_s7 + $0x270] sm:$0xf] }
 0x808   :  { %v7342_v54 = vor.u32 %v7686_v12, %v7341_v52 }
 0x809   :  { %v4625_v21 = vpop.f32.mrf.mxu3 }
 0x80c   :  { %v4798_v17 = vpop.f32.mrf.mxu2  ;;  %v4592_v24 = vpop.f32.mrf.mxu1 }
 0x80d   :  { %v4799_v6 = vadd.f32 %v4798_v17, %v4765_v1  ;;  %v4626_v36 = vadd.f32 %v4625_v21, %v4592_v24 }
 0x80e   :  { %7348 = vmatmul.msk.bf16.gmra.mxu3 %vm3895_vm5, %v7330_v57 }
 0x80f   :  { %v11337_v39 = vadd.f32 %v4799_v6, %v4640_v40  ;;  %v4642_v22 = vadd.f32 %v4626_v36, %v11249_v5  ;;  %v4775_v47 = vpop.f32.mrf.mxu0  ;;  %v7683_v5 = vld [vmem:[%s12093_s7 + $0x264] sm:$0xf]  ;;  %v5216_v6 = vunpack.c.h.b16 %v7314_v28 }
 0x810   :  { %v7338_v2 = vor.u32 %v7683_v5, %v7335_v53 }
 0x811   :  { %v4628_v0 = vpop.f32.mrf.mxu3 }
 0x814   :  { %v4801_v20 = vpop.f32.mrf.mxu2  ;;  %v4595_v32 = vpop.f32.mrf.mxu1 }
 0x815   :  { %v4802_v31 = vadd.f32 %v4801_v20, %v4768_v43  ;;  %v4629_v8 = vadd.f32 %v4628_v0, %v4595_v32 }
 0x817   :  { %v11347_v50 = vadd.f32 %v4802_v31, %v4641_v27  ;;  %v4643_v38 = vadd.f32 %v4629_v8, %v11265_v34  ;;  %5296 = vmatmul.bf16.gmra.mxu1 %v7326_v33  ;;  %v4778_v18 = vpop.f32.mrf.mxu0  ;;  %v5215_v33 = vunpack.c.l.b16 %v7314_v28 }
 0x819   :  { %v4630_v1 = vpop.f32.mrf.mxu3 }
 0x81c   :  { %v4803_v30 = vpop.f32.mrf.mxu2  ;;  %v4597_v19 = vpop.f32.mrf.mxu1 }
 0x81d   :  { %v4804_v15 = vadd.f32 %v4803_v30, %v4770_v37  ;;  %v4631_v63 = vadd.f32 %v4630_v1, %v4597_v19 }
 0x81e   :  { %7349 = vmatmul.msk.bf16.gmra.mxu3 %vm3895_vm5, %v7338_v2 }
 0x81f   :  { %v11356_v46 = vadd.f32 %v4804_v15, %v4642_v22  ;;  %v4644_v34 = vadd.f32 %v4631_v63, %v11280_v11  ;;  %v4780_v23 = vpop.f32.mrf.mxu0  ;;  %v7685_v11 = vld [vmem:[%s12093_s7 + $0x274] sm:$0xf] }
 0x820   :  { %v7346_v35 = vor.u32 %v7685_v11, %v7343_v14 }
 0x821   :  { %v4633_v43 = vpop.f32.mrf.mxu3 }
 0x824   :  { %v4806_v9 = vpop.f32.mrf.mxu2  ;;  %v4600_v55 = vpop.f32.mrf.mxu1 }
 0x825   :  { %v4807_v58 = vadd.f32 %v4806_v9, %v4773_v56  ;;  %v4634_v49 = vadd.f32 %v4633_v43, %v4600_v55 }
 0x827   :  { %v11366_v16 = vadd.f32 %v4807_v58, %v4643_v38  ;;  %v4645_v45 = vadd.f32 %v4634_v49, %v11296_v29  ;;  %5301 = vmatmul.bf16.gmra.mxu1 %v7334_v4  ;;  %v5114_v40 = vpop.f32.mrf.mxu0  ;;  %v5225_v38 = vpack.c.b16 %v5215_v33, %v5215_v33 }
 0x829   :  { %v4635_v37 = vpop.f32.mrf.mxu3 }
 0x82c   :  { %v4808_v51 = vpop.f32.mrf.mxu2  ;;  %v4602_v42 = vpop.f32.mrf.mxu1 }
 0x82d   :  { %v4809_v7 = vadd.f32 %v4808_v51, %v4775_v47  ;;  %v5226_v47 = vpack.c.b16 %v5216_v6, %v5216_v6 }
 0x82e   :  { %7350 = vmatmul.msk.bf16.gmra.mxu3 %vm3895_vm5, %v7346_v35 }
 0x82f   :  { %v11375_v41 = vadd.f32 %v4809_v7, %v4644_v34  ;;  %v5116_v29 = vpop.f32.mrf.mxu0 }
 0x831   :  { %v4969_v25 = vpop.f32.mrf.mxu3 }
 0x834   :  { %v4811_v27 = vpop.f32.mrf.mxu2  ;;  %v4936_v21 = vpop.f32.mrf.mxu1 }
 0x835   :  { %v4812_v56 = vadd.f32 %v4811_v27, %v4778_v18  ;;  %v4970_v57 = vadd.f32 %v4969_v25, %v4936_v21 }
 0x837   :  { %v11387_v17 = vadd.f32 %v4812_v56, %v4645_v45  ;;  %v4993_v24 = vadd.f32 %v4970_v57, %v11308_v10  ;;  %5306 = vmatmul.bf16.gmra.mxu1 %v7342_v54  ;;  %v5119_v36 = vpop.f32.mrf.mxu0 }
 0x839   :  { %v4971_v22 = vpop.f32.mrf.mxu3 }
 0x83c   :  { %v4813_v13 = vpop.f32.mrf.mxu2  ;;  %v4938_v44 = vpop.f32.mrf.mxu1 }
 0x83d   :  { %v4972_v0 = vadd.f32 %v4971_v22, %v4938_v44 }
 0x83e   :  { %7351 = vmatmul.msk.bf16.gmra.mxu3 %vm3895_vm5, %v5226_v47 }
 0x83f   :  { %v4994_v20 = vadd.f32 %v4972_v0, %v11317_v61  ;;  %v5121_v31 = vpop.f32.mrf.mxu0 }
 0x841   :  { %v4974_v32 = vpop.f32.mrf.mxu3 }
 0x844   :  { %v5147_v8 = vpop.f32.mrf.mxu2  ;;  %v4941_v53 = vpop.f32.mrf.mxu1 }
 0x845   :  { %v5148_v5 = vadd.f32 %v5147_v8, %v5114_v40  ;;  %v4975_v18 = vadd.f32 %v4974_v32, %v4941_v53 }
 0x847   :  { %v11392_v10 = vadd.f32 %v5148_v5, %v4993_v24  ;;  %v4995_v1 = vadd.f32 %v4975_v18, %v11328_v62  ;;  %5311 = vmatmul.bf16.gmra.mxu1 %v5225_v38  ;;  %v5124_v2 = vpop.f32.mrf.mxu0 }
 0x849   :  { %v4976_v30 = vpop.f32.mrf.mxu3 }
 0x84c   :  { %v5149_v15 = vpop.f32.mrf.mxu2  ;;  %v4943_v63 = vpop.f32.mrf.mxu1 }
 0x84d   :  { %v5150_v19 = vadd.f32 %v5149_v15, %v5116_v29  ;;  %v4977_v34 = vadd.f32 %v4976_v30, %v4943_v63  ;;  %v5370_v30 = vpop.permute.xlu0 %5369  ;;  %v7352_v15 = vld [vmem:[%s12095_s9 + $0x48] sm:$0xff] }
 0x84f   :  { %v11395_v61 = vadd.f32 %v5150_v19, %v4994_v20  ;;  %v4996_v23 = vadd.f32 %v4977_v34, %v11337_v39  ;;  %v5126_v48 = vpop.f32.mrf.mxu0  ;;  %v5421_v19 = vld [vmem:[%s12095_s9] sm:$0xff] }
 0x851   :  { %v4979_v60 = vpop.f32.mrf.mxu3 }
 0x854   :  { %v5152_v43 = vpop.f32.mrf.mxu2  ;;  %v4946_v4 = vpop.f32.mrf.mxu1 }
 0x855   :  { %v5153_v9 = vadd.f32 %v5152_v43, %v5119_v36  ;;  %v4980_v58 = vadd.f32 %v4979_v60, %v4946_v4 }
 0x857   :  { %v11398_v55 = vadd.f32 %v5153_v9, %v4995_v1  ;;  %v4997_v62 = vadd.f32 %v4980_v58, %v11347_v50  ;;  %v5129_v49 = vpop.f32.mrf.mxu0 }
 0x859   :  { %v4981_v45 = vpop.f32.mrf.mxu3 }
 0x85c   :  { %v5154_v11 = vpop.f32.mrf.mxu2  ;;  %v4948_v40 = vpop.f32.mrf.mxu1 }
 0x85d   :  { %v5155_v14 = vadd.f32 %v5154_v11, %v5121_v31  ;;  %v4982_v37 = vadd.f32 %v4981_v45, %v4948_v40  ;;  %v5375_v11 = vpop.permute.xlu1 %5374  ;;  %v7353_v40 = vld [vmem:[%s12095_s9 + $0x50] sm:$0xff] }
 0x85f   :  { %v11401_v35 = vadd.f32 %v5155_v14, %v4996_v23  ;;  %v4998_v39 = vadd.f32 %v4982_v37, %v11356_v46  ;;  %v5131_v51 = vpop.f32.mrf.mxu0  ;;  %v5422_v14 = vld [vmem:[%s12095_s9 + $0x8] sm:$0xff] }
 0x861   :  { %v4984_v7 = vpop.f32.mrf.mxu3 }
 0x864   :  { %v5157_v42 = vpop.f32.mrf.mxu2  ;;  %v4951_v52 = vpop.f32.mrf.mxu1 }
 0x865   :  { %v5158_v29 = vadd.f32 %v5157_v42, %v5124_v2  ;;  %v4985_v12 = vadd.f32 %v4984_v7, %v4951_v52 }
 0x867   :  { %v11404_v25 = vadd.f32 %v5158_v29, %v4997_v62  ;;  %v4999_v50 = vadd.f32 %v4985_v12, %v11366_v16  ;;  %v5134_v27 = vpop.f32.mrf.mxu0 }
 0x869   :  { %v4986_v54 = vpop.f32.mrf.mxu3 }
 0x86c   :  { %v5159_v28 = vpop.f32.mrf.mxu2  ;;  %v4953_v21 = vpop.f32.mrf.mxu1 }
 0x86d   :  { %v5160_v56 = vadd.f32 %v5159_v28, %v5126_v48  ;;  %v4987_v57 = vadd.f32 %v4986_v54, %v4953_v21  ;;  %v7362_v28 = vld [vmem:[%s12095_s9 + $0x98] sm:$0xff] }
 0x86f   :  { %v11407_v6 = vadd.f32 %v5160_v56, %v4998_v39  ;;  %v5000_v46 = vadd.f32 %v4987_v57, %v11375_v41  ;;  %v5136_v24 = vpop.f32.mrf.mxu0  ;;  %v7354_v56 = vld [vmem:[%s12095_s9 + $0x58] sm:$0xff] }
 0x871   :  { %v4989_v36 = vpop.f32.mrf.mxu3 }
 0x874   :  { %v5162_v22 = vpop.f32.mrf.mxu2  ;;  %v4956_v13 = vpop.f32.mrf.mxu1 }
 0x875   :  { %v5163_v47 = vadd.f32 %v5162_v22, %v5129_v49  ;;  %v4990_v44 = vadd.f32 %v4989_v36, %v4956_v13  ;;  %v7361_v49 = vld [vmem:[%s12095_s9 + $0x90] sm:$0xff] }
 0x877   :  { %v11410_v0 = vadd.f32 %v5163_v47, %v4999_v50  ;;  %v5001_v16 = vadd.f32 %v4990_v44, %v11387_v17  ;;  %v7442_v17 = vld [vmem:[%s12095_s9 + $0x318] sm:$0xff] }
 0x879   :  { %v4991_v20 = vpop.f32.mrf.mxu3 }
 0x87c   :  { %v5164_v33 = vpop.f32.mrf.mxu2  ;;  %v4958_v32 = vpop.f32.mrf.mxu1 }
 0x87d   :  { %v5165_v31 = vadd.f32 %v5164_v33, %v5131_v51  ;;  %v7371_v33 = vld [vmem:[%s12095_s9 + $0xe0] sm:$0xff] }
 0x87f   :  { %v11413_v8 = vadd.f32 %v5165_v31, %v5000_v46 }
 0x881   :  { %v5325_v38 = vpop.f32.mrf.mxu3 }
 0x884   :  { %v5167_v5 = vpop.f32.mrf.mxu2  ;;  %v5292_v41 = vpop.f32.mrf.mxu1 }
 0x885   :  { %v5168_v53 = vadd.f32 %v5167_v5, %v5134_v27  ;;  %v5326_v18 = vadd.f32 %v5325_v38, %v5292_v41  ;;  %v7370_v27 = vld [vmem:[%s12095_s9 + $0xd8] sm:$0xff] }
 0x887   :  { %v11415_v1 = vadd.f32 %v5168_v53, %v5001_v16  ;;  %v5349_v2 = vadd.f32 %v5326_v18, %v11392_v10  ;;  %v7379_v16 = vld [vmem:[%s12095_s9 + $0x120] sm:$0xff] }
 0x889   :  { %v11427_v63 = vadd.f32 %v5370_v30, %v5349_v2  ;;  %v5327_v34 = vpop.f32.mrf.mxu3  ;;  %v7372_v30 = vld [vmem:[%s12095_s9 + $0xe8] sm:$0xff] }
 0x88b   :  { %v6091_v23 = vmul.f32 %v7442_v17, %v11427_v63  ;;  %v5491_v10 = vmul.f32 %v7352_v15, %v11427_v63  ;;  %v5430_v48 = vmul.f32 %v5421_v19, %v11427_v63  ;;  %v5551_v51 = vmul.f32 %v7361_v49, %v11427_v63  ;;  %v7388_v17 = vld [vmem:[%s12095_s9 + $0x168] sm:$0xff]  ;;  %v7397_v49 = vld [vmem:[%s12095_s9 + $0x1b0] sm:$0xff] }
 0x88c   :  { %v5169_v60 = vpop.f32.mrf.mxu2  ;;  %v5294_v43 = vpop.f32.mrf.mxu1  ;;  %v5611_v46 = vmul.f32 %v7370_v27, %v11427_v63  ;;  %v5671_v38 = vmul.f32 %v7379_v16, %v11427_v63  ;;  %v7380_v19 = vld [vmem:[%s12095_s9 + $0x128] sm:$0xff] }
 0x88d   :  { %v5328_v9 = vadd.f32 %v5327_v34, %v5294_v43  ;;  %v6100_v4 = vsel %vm5439_vm6, %v6091_v23, 0.0  ;;  %v5500_v58 = vsel %vm5439_vm6, %v5491_v10, 0.0  ;;  %v5440_v62 = vsel %vm5439_vm6, %v5430_v48, 0.0 }
 0x88e   :  { %6101 = vadd.xlane.f32.xlu1 %v6100_v4  ;;  %5501 = vadd.xlane.f32.xlu2 %v5500_v58  ;;  %v5560_v12 = vsel %vm5439_vm6, %v5551_v51, 0.0  ;;  %v5620_v13 = vsel %vm5439_vm6, %v5611_v46, 0.0  ;;  %v5680_v2 = vsel %vm5439_vm6, %v5671_v38, 0.0  ;;  %v5731_v10 = vmul.f32 %v7388_v17, %v11427_v63  ;;  %v7408_v17 = vld [vmem:[%s12095_s9 + $0x208] sm:$0xff] }
 0x88f   :  { %v5350_v45 = vadd.f32 %v5328_v9, %v11395_v61  ;;  %5441 = vadd.xlane.f32.xlu0 %v5440_v62  ;;  %v7381_v62 = vld [vmem:[%s12095_s9 + $0x130] sm:$0xff] }
 0x890   :  { %v5740_v4 = vsel %vm5439_vm6, %v5731_v10, 0.0 }
 0x891   :  { %v11445_v37 = vadd.f32 %v5375_v11, %v5350_v45  ;;  %v5330_v39 = vpop.f32.mrf.mxu3  ;;  %v7389_v11 = vld [vmem:[%s12095_s9 + $0x170] sm:$0xff] }
 0x893   :  { %v5431_v7 = vmul.f32 %v5422_v14, %v11445_v37  ;;  %v5492_v42 = vmul.f32 %v7353_v40, %v11445_v37  ;;  %v5552_v24 = vmul.f32 %v7362_v28, %v11445_v37  ;;  %v5612_v5 = vmul.f32 %v7371_v33, %v11445_v37  ;;  %v7407_v33 = vld [vmem:[%s12095_s9 + $0x200] sm:$0xff] }
 0x894   :  { %v5297_v61 = vpop.f32.mrf.mxu1  ;;  %v5672_v48 = vmul.f32 %v7380_v19, %v11445_v37  ;;  %v5732_v51 = vmul.f32 %v7389_v11, %v11445_v37  ;;  %v7424_v19 = vld [vmem:[%s12095_s9 + $0x288] sm:$0xff]  ;;  %v7425_v11 = vld [vmem:[%s12095_s9 + $0x290] sm:$0xff] }
 0x895   :  { %v5331_v29 = vadd.f32 %v5330_v39, %v5297_v61  ;;  %v5443_v52 = vsel %vm5439_vm6, %v5431_v7, 0.0  ;;  %v5503_v50 = vsel %vm5439_vm6, %v5492_v42, 0.0  ;;  %v5563_v44 = vsel %vm5439_vm6, %v5552_v24, 0.0 }
 0x896   :  { %5444 = vadd.xlane.f32.xlu1 %v5443_v52  ;;  %5561 = vadd.xlane.f32.xlu2 %v5560_v12  ;;  %v5683_v58 = vsel %vm5439_vm6, %v5672_v48, 0.0  ;;  %v5791_v39 = vmul.f32 %v7397_v49, %v11427_v63  ;;  %v5743_v52 = vsel %vm5439_vm6, %v5732_v51, 0.0  ;;  %v7390_v12 = vld [vmem:[%s12095_s9 + $0x178] sm:$0xff]  ;;  %v5971_v48 = vmul.f32 %v7424_v19, %v11427_v63  ;;  %v7433_v49 = vld [vmem:[%s12095_s9 + $0x2d0] sm:$0xff]  ;;  %v7356_v19 = vld [vmem:[%s12095_s9 + $0x68] sm:$0xff] }
 0x897   :  { %v5351_v54 = vadd.f32 %v5331_v29, %v11398_v55  ;;  %5504 = vadd.xlane.f32.xlu0 %v5503_v50  ;;  %v7406_v50 = vld [vmem:[%s12095_s9 + $0x1f8] sm:$0xff] }
 0x898   :  { %v5800_v29 = vsel %vm5439_vm6, %v5791_v39, 0.0  ;;  %v5851_v24 = vmul.f32 %v7406_v50, %v11427_v63  ;;  %v5972_v39 = vmul.f32 %v7425_v11, %v11445_v37 }
 0x899   :  { %v11464_v21 = vadd.f32 %v11020_v3, %v5351_v54  ;;  %v5332_v57 = vpop.f32.mrf.mxu3  ;;  %v7363_v3 = vld [vmem:[%s12095_s9 + $0xa0] sm:$0xff]  ;;  %v7398_v54 = vld [vmem:[%s12095_s9 + $0x1b8] sm:$0xff] }
 0x89b   :  { %v5493_v36 = vmul.f32 %v7354_v56, %v11464_v21  ;;  %v5553_v32 = vmul.f32 %v7363_v3, %v11464_v21  ;;  %v5613_v23 = vmul.f32 %v7372_v30, %v11464_v21  ;;  %v5673_v40 = vmul.f32 %v7381_v62, %v11464_v21  ;;  %v7415_v3 = vld [vmem:[%s12095_s9 + $0x240] sm:$0xff]  ;;  %v7417_v62 = vld [vmem:[%s12095_s9 + $0x250] sm:$0xff] }
 0x89c   :  { %v5299_v55 = vpop.f32.mrf.mxu1  ;;  %v5733_v46 = vmul.f32 %v7390_v12, %v11464_v21  ;;  %v5853_v10 = vmul.f32 %v7408_v17, %v11464_v21  ;;  %v7355_v17 = vld [vmem:[%s12095_s9 + $0x60] sm:$0xff] }
 0x89d   :  { %v5333_v22 = vadd.f32 %v5332_v57, %v5299_v55  ;;  %v5506_v47 = vsel %vm5439_vm6, %v5493_v36, 0.0  ;;  %v5566_v18 = vsel %vm5439_vm6, %v5553_v32, 0.0  ;;  %v5626_v9 = vsel %vm5439_vm6, %v5613_v23, 0.0  ;;  %v7416_v23 = vld [vmem:[%s12095_s9 + $0x248] sm:$0xff] }
 0x89e   :  { %5507 = vadd.xlane.f32.xlu1 %v5506_v47  ;;  %5621 = vadd.xlane.f32.xlu2 %v5620_v13  ;;  %v5686_v61 = vsel %vm5439_vm6, %v5673_v40, 0.0  ;;  %v5792_v36 = vmul.f32 %v7398_v54, %v11445_v37  ;;  %v5746_v47 = vsel %vm5439_vm6, %v5733_v46, 0.0  ;;  %v6031_v40 = vmul.f32 %v7433_v49, %v11427_v63  ;;  %v7427_v46 = vld [vmem:[%s12095_s9 + $0x2a0] sm:$0xff] }
 0x89f   :  { %v11479_v20 = vadd.f32 %v5333_v22, %v11401_v35  ;;  %5564 = vadd.xlane.f32.xlu0 %v5563_v44  ;;  %v5623_v35 = vsel %vm5439_vm6, %v5612_v5, 0.0  ;;  %v7399_v44 = vld [vmem:[%s12095_s9 + $0x1c0] sm:$0xff] }
 0x8a0   :  { %v5803_v13 = vsel %vm5439_vm6, %v5792_v36, 0.0  ;;  %v5793_v5 = vmul.f32 %v7399_v44, %v11464_v21  ;;  %v7444_v44 = vld [vmem:[%s12095_s9 + $0x328] sm:$0xff] }
 0x8a1   :  { %v5335_v31 = vpop.f32.mrf.mxu3 }
 0x8a4   :  { %v5302_v53 = vpop.f32.mrf.mxu1 }
 0x8a5   :  { %v5336_v41 = vadd.f32 %v5335_v31, %v5302_v53  ;;  %v5911_v53 = vmul.f32 %v7415_v3, %v11427_v63  ;;  %v7434_v63 = vld [vmem:[%s12095_s9 + $0x2d8] sm:$0xff]  ;;  %v6093_v3 = vmul.f32 %v7444_v44, %v11464_v21 }
 0x8a6   :  { %5567 = vadd.xlane.f32.xlu1 %v5566_v18  ;;  %5681 = vadd.xlane.f32.xlu2 %v5680_v2  ;;  %v6032_v50 = vmul.f32 %v7434_v63, %v11445_v37  ;;  %v7374_v63 = vld [vmem:[%s12095_s9 + $0xf8] sm:$0xff] }
 0x8a7   :  { %v11497_v15 = vadd.f32 %v5336_v41, %v11404_v25  ;;  %5624 = vadd.xlane.f32.xlu0 %v5623_v35  ;;  %v11507_v25 = vpop.permute.xlu0 %5384  ;;  %v5852_v41 = vmul.f32 %v7407_v33, %v11445_v37  ;;  %v5806_v35 = vsel %vm5439_vm6, %v5793_v5, 0.0 }
 0x8a9   :  { %v5337_v34 = vpop.f32.mrf.mxu3  ;;  %v5863_v30 = vsel %vm5439_vm6, %v5852_v41, 0.0 }
 0x8ac   :  { %v5304_v60 = vpop.f32.mrf.mxu1 }
 0x8ad   :  { %v5338_v43 = vadd.f32 %v5337_v34, %v5304_v60 }
 0x8ae   :  { %5627 = vadd.xlane.f32.xlu1 %v5626_v9  ;;  %5741 = vadd.xlane.f32.xlu2 %v5740_v4  ;;  %v5866_v4 = vsel %vm5439_vm6, %v5853_v10, 0.0 }
 0x8af   :  { %v11517_v45 = vadd.f32 %v5338_v43, %v11407_v6  ;;  %5684 = vadd.xlane.f32.xlu0 %v5683_v58  ;;  %v11527_v6 = vpop.permute.xlu1 %5389  ;;  %v5400_v28 = vpop.permute.xlu0 %5399  ;;  %v5912_v43 = vmul.f32 %v7416_v23, %v11445_v37  ;;  %v5980_v58 = vsel %vm5439_vm6, %v5971_v48, 0.0 }
 0x8b1   :  { %v5340_v14 = vpop.f32.mrf.mxu3  ;;  %v11651_v33 = vadd.f32 %v11089_v59, %v11517_v45  ;;  %v5425_v59 = vld [vmem:[%s12095_s9 + $0x20] sm:$0xff] }
 0x8b4   :  { %v5307_v7 = vpop.f32.mrf.mxu1 }
 0x8b5   :  { %v5341_v42 = vadd.f32 %v5340_v14, %v5307_v7  ;;  %v5913_v14 = vmul.f32 %v7417_v62, %v11464_v21  ;;  %v6040_v7 = vsel %vm5439_vm6, %v6031_v40, 0.0 }
 0x8b6   :  { %5687 = vadd.xlane.f32.xlu1 %v5686_v61  ;;  %5801 = vadd.xlane.f32.xlu2 %v5800_v29  ;;  %v7426_v61 = vld [vmem:[%s12095_s9 + $0x298] sm:$0xff]  ;;  %v7443_v29 = vld [vmem:[%s12095_s9 + $0x320] sm:$0xff] }
 0x8b7   :  { %v5355_v27 = vadd.f32 %v5341_v42, %v11410_v0  ;;  %5744 = vadd.xlane.f32.xlu0 %v5743_v52  ;;  %v5860_v0 = vsel %vm5439_vm6, %v5851_v24, 0.0  ;;  %v5405_v31 = vpop.permute.xlu1 %5404  ;;  %v5926_v51 = vsel %vm5439_vm6, %v5913_v14, 0.0  ;;  %v5983_v42 = vsel %vm5439_vm6, %v5972_v39, 0.0 }
 0x8b8   :  { %v5973_v52 = vmul.f32 %v7426_v61, %v11464_v21  ;;  %v6092_v12 = vmul.f32 %v7443_v29, %v11445_v37  ;;  %v5423_v37 = vld [vmem:[%s12095_s9 + $0x10] sm:$0xff]  ;;  %v7375_v61 = vld [vmem:[%s12095_s9 + $0x100] sm:$0xff] }
 0x8b9   :  { %v11540_v56 = vadd.f32 %v5400_v28, %v5355_v27  ;;  %v5342_v57 = vpop.f32.mrf.mxu3  ;;  %v11613_v27 = vadd.f32 %v11507_v25, %v11479_v20  ;;  %v7435_v20 = vld [vmem:[%s12095_s9 + $0x2e0] sm:$0xff]  ;;  %v5432_v24 = vmul.f32 %v5423_v37, %v11464_v21  ;;  %v7373_v29 = vld [vmem:[%s12095_s9 + $0xf0] sm:$0xff] }
 0x8ba   :  { %v5986_v54 = vsel %vm5439_vm6, %v5973_v52, 0.0  ;;  %v6103_v28 = vsel %vm5439_vm6, %v6092_v12, 0.0  ;;  %v6033_v36 = vmul.f32 %v7435_v20, %v11464_v21  ;;  %v5424_v21 = vld [vmem:[%s12095_s9 + $0x18] sm:$0xff] }
 0x8bb   :  { %v5974_v25 = vmul.f32 %v7427_v46, %v11613_v27  ;;  %v5433_v41 = vmul.f32 %v5424_v21, %v11613_v27  ;;  %v5494_v10 = vmul.f32 %v7355_v17, %v11613_v27  ;;  %v7393_v21 = vld [vmem:[%s12095_s9 + $0x190] sm:$0xff] }
 0x8bc   :  { %v5309_v55 = vpop.f32.mrf.mxu1 }
 0x8bd   :  { %v5343_v22 = vadd.f32 %v5342_v57, %v5309_v55  ;;  %v6043_v57 = vsel %vm5439_vm6, %v6032_v50, 0.0  ;;  %v11632_v55 = vadd.f32 %v11527_v6, %v11497_v15  ;;  %v7436_v15 = vld [vmem:[%s12095_s9 + $0x2e8] sm:$0xff]  ;;  %v5616_v50 = vmul.f32 %v7375_v61, %v11651_v33  ;;  %v7411_v61 = vld [vmem:[%s12095_s9 + $0x220] sm:$0xff] }
 0x8be   :  { %5747 = vadd.xlane.f32.xlu1 %v5746_v47  ;;  %5861 = vadd.xlane.f32.xlu2 %v5860_v0  ;;  %v5446_v47 = vsel %vm5439_vm6, %v5432_v24, 0.0  ;;  %v6046_v0 = vsel %vm5439_vm6, %v6033_v36, 0.0  ;;  %v7384_v36 = vld [vmem:[%s12095_s9 + $0x148] sm:$0xff] }
 0x8bf   :  { %v5356_v16 = vadd.f32 %v5343_v22, %v11413_v8  ;;  %5804 = vadd.xlane.f32.xlu0 %v5803_v13  ;;  %v5920_v8 = vsel %vm5439_vm6, %v5911_v53, 0.0  ;;  %v5989_v22 = vsel %vm5439_vm6, %v5974_v25, 0.0  ;;  %v7428_v13 = vld [vmem:[%s12095_s9 + $0x2a8] sm:$0xff]  ;;  %v5495_v48 = vmul.f32 %v7356_v19, %v11632_v55 }
 0x8c0   :  { %v5975_v6 = vmul.f32 %v7428_v13, %v11632_v55  ;;  %v5426_v53 = vld [vmem:[%s12095_s9 + $0x28] sm:$0xff]  ;;  %v5615_v46 = vmul.f32 %v7374_v63, %v11632_v55  ;;  %v5635_v20 = vsel %vm5439_vm6, %v5616_v50, 0.0  ;;  %v5676_v44 = vmul.f32 %v7384_v36, %v11651_v33  ;;  %v7410_v63 = vld [vmem:[%s12095_s9 + $0x218] sm:$0xff] }
 0x8c1   :  { %v11558_v32 = vadd.f32 %v5405_v31, %v5356_v16  ;;  %v5345_v38 = vpop.f32.mrf.mxu3  ;;  %v6034_v16 = vmul.f32 %v7436_v15, %v11613_v27  ;;  %v5435_v45 = vmul.f32 %v5426_v53, %v11651_v33  ;;  %v5856_v50 = vmul.f32 %v7411_v61, %v11651_v33 }
 0x8c2   :  { %v5992_v31 = vsel %vm5439_vm6, %v5975_v6, 0.0  ;;  %v5632_v24 = vsel %vm5439_vm6, %v5615_v46, 0.0 }
 0x8c3   :  { %v6049_v5 = vsel %vm5439_vm6, %v6034_v16, 0.0 }
 0x8c4   :  { %v5312_v18 = vpop.f32.mrf.mxu1 }
 0x8c5   :  { %v5346_v2 = vadd.f32 %v5345_v38, %v5312_v18  ;;  %v6106_v38 = vsel %vm5439_vm6, %v6093_v3, 0.0  ;;  %v5434_v18 = vmul.f32 %v5425_v59, %v11632_v55  ;;  %v7391_v59 = vld [vmem:[%s12095_s9 + $0x180] sm:$0xff] }
 0x8c6   :  { %5807 = vadd.xlane.f32.xlu1 %v5806_v35  ;;  %5921 = vadd.xlane.f32.xlu2 %v5920_v8  ;;  %v5449_v35 = vsel %vm5439_vm6, %v5433_v41, 0.0 }
 0x8c7   :  { %v11573_v34 = vadd.f32 %v5346_v2, %v11415_v1  ;;  %5864 = vadd.xlane.f32.xlu0 %v5863_v30  ;;  %v5923_v1 = vsel %vm5439_vm6, %v5912_v43, 0.0  ;;  %v5455_v2 = vsel %vm5439_vm6, %v5435_v45, 0.0  ;;  %v5452_v8 = vsel %vm5439_vm6, %v5434_v18, 0.0  ;;  %v7357_v30 = vld [vmem:[%s12095_s9 + $0x70] sm:$0xff]  ;;  %v7392_v45 = vld [vmem:[%s12095_s9 + $0x188] sm:$0xff] }
 0x8c8   :  { %v5496_v23 = vmul.f32 %v7357_v30, %v11651_v33  ;;  %v5509_v43 = vsel %vm5439_vm6, %v5494_v10, 0.0  ;;  %v5735_v17 = vmul.f32 %v7392_v45, %v11632_v55  ;;  %v7429_v45 = vld [vmem:[%s12095_s9 + $0x2b0] sm:$0xff] }
 0x8c9   :  { %v5347_v60 = vpop.f32.mrf.mxu3 }
 0x8ca   :  { %v5515_v60 = vsel %vm5439_vm6, %v5496_v23, 0.0 }
 0x8cc   :  { %v5314_v9 = vpop.f32.mrf.mxu1 }
 0x8cd   :  { %v5512_v9 = vsel %vm5439_vm6, %v5495_v48, 0.0  ;;  %v5752_v48 = vsel %vm5439_vm6, %v5735_v17, 0.0 }
 0x8ce   :  { %5867 = vadd.xlane.f32.xlu1 %v5866_v4  ;;  %5981 = vadd.xlane.f32.xlu2 %v5980_v58  ;;  %v7366_v4 = vld [vmem:[%s12095_s9 + $0xb8] sm:$0xff]  ;;  %v7364_v58 = vld [vmem:[%s12095_s9 + $0xa8] sm:$0xff] }
 0x8cf   :  { %5924 = vadd.xlane.f32.xlu0 %v5923_v1  ;;  %v7365_v1 = vld [vmem:[%s12095_s9 + $0xb0] sm:$0xff]  ;;  %v5556_v11 = vmul.f32 %v7366_v4, %v11651_v33  ;;  %v5554_v14 = vmul.f32 %v7364_v58, %v11613_v27 }
 0x8d0   :  { %v5555_v39 = vmul.f32 %v7365_v1, %v11632_v55 }
 0x8d6   :  { %5927 = vadd.xlane.f32.xlu1 %v5926_v51  ;;  %6041 = vadd.xlane.f32.xlu2 %v6040_v7  ;;  %v5575_v51 = vsel %vm5439_vm6, %v5556_v11, 0.0  ;;  %v5569_v7 = vsel %vm5439_vm6, %v5554_v14, 0.0 }
 0x8d7   :  { %5984 = vadd.xlane.f32.xlu0 %v5983_v42  ;;  %v5572_v42 = vsel %vm5439_vm6, %v5555_v39, 0.0 }
 0x8de   :  { %5987 = vadd.xlane.f32.xlu1 %v5986_v54  ;;  %6104 = vadd.xlane.f32.xlu2 %v6103_v28  ;;  %v5614_v54 = vmul.f32 %v7373_v29, %v11613_v27  ;;  %v7409_v29 = vld [vmem:[%s12095_s9 + $0x210] sm:$0xff] }
 0x8df   :  { %6044 = vadd.xlane.f32.xlu0 %v6043_v57 }
 0x8e0   :  { %v5629_v25 = vsel %vm5439_vm6, %v5614_v54, 0.0  ;;  %v5854_v54 = vmul.f32 %v7409_v29, %v11613_v27 }
 0x8e6   :  { %5990 = vadd.xlane.f32.xlu1 %v5989_v22  ;;  %5447 = vadd.xlane.f32.xlu2 %v5446_v47  ;;  %v7382_v22 = vld [vmem:[%s12095_s9 + $0x138] sm:$0xff]  ;;  %v7383_v47 = vld [vmem:[%s12095_s9 + $0x140] sm:$0xff] }
 0x8e7   :  { %6047 = vadd.xlane.f32.xlu0 %v6046_v0  ;;  %v5674_v15 = vmul.f32 %v7382_v22, %v11613_v27  ;;  %v5675_v16 = vmul.f32 %v7383_v47, %v11632_v55  ;;  %v7420_v22 = vld [vmem:[%s12095_s9 + $0x268] sm:$0xff]  ;;  %v7418_v47 = vld [vmem:[%s12095_s9 + $0x258] sm:$0xff] }
 0x8e9   :  { %v5692_v53 = vsel %vm5439_vm6, %v5675_v16, 0.0 }
 0x8ee   :  { %5993 = vadd.xlane.f32.xlu1 %v5992_v31  ;;  %6107 = vadd.xlane.f32.xlu2 %v6106_v38  ;;  %v5695_v38 = vsel %vm5439_vm6, %v5676_v44, 0.0 }
 0x8ef   :  { %6050 = vadd.xlane.f32.xlu0 %v6049_v5  ;;  %v5689_v5 = vsel %vm5439_vm6, %v5674_v15, 0.0  ;;  %v5916_v15 = vmul.f32 %v7420_v22, %v11651_v33  ;;  %v11855_v22 = vadd.f32 %v11105_v26, %v11573_v34  ;;  %v5428_v26 = vld [vmem:[%s12095_s9 + $0x38] sm:$0xff] }
 0x8f6   :  { %5456 = vadd.xlane.f32.xlu1 %v5455_v2  ;;  %5450 = vadd.xlane.f32.xlu2 %v5449_v35  ;;  %v5736_v2 = vmul.f32 %v7393_v21, %v11651_v33  ;;  %v5734_v35 = vmul.f32 %v7391_v59, %v11613_v27 }
 0x8f7   :  { %5453 = vadd.xlane.f32.xlu0 %v5452_v8 }
 0x8f8   :  { %v5755_v23 = vsel %vm5439_vm6, %v5736_v2, 0.0  ;;  %v5749_v10 = vsel %vm5439_vm6, %v5734_v35, 0.0 }
 0x8fe   :  { %5516 = vadd.xlane.f32.xlu1 %v5515_v60  ;;  %5510 = vadd.xlane.f32.xlu2 %v5509_v43  ;;  %v7402_v60 = vld [vmem:[%s12095_s9 + $0x1d8] sm:$0xff]  ;;  %v7400_v43 = vld [vmem:[%s12095_s9 + $0x1c8] sm:$0xff] }
 0x8ff   :  { %5513 = vadd.xlane.f32.xlu0 %v5512_v9  ;;  %v7401_v9 = vld [vmem:[%s12095_s9 + $0x1d0] sm:$0xff]  ;;  %v5796_v1 = vmul.f32 %v7402_v60, %v11651_v33 }
 0x901   :  { %v11695_v62 = vpop.xlane.xlu1 %6101  ;;  %v5502_v49 = vpop.xlane.xlu2 %5501 }
 0x902   :  { %v5442_v40 = vpop.xlane.xlu0 %5441 }
 0x906   :  { %5576 = vadd.xlane.f32.xlu1 %v5575_v51  ;;  %5570 = vadd.xlane.f32.xlu2 %v5569_v7  ;;  %v5815_v51 = vsel %vm5439_vm6, %v5796_v1, 0.0 }
 0x907   :  { %5573 = vadd.xlane.f32.xlu0 %v5572_v42 }
 0x909   :  { %v5445_v52 = vpop.xlane.xlu1 %5444  ;;  %v5562_v12 = vpop.xlane.xlu2 %5561 }
 0x90a   :  { %v11714_v28 = vadd.f32 %v5445_v52, %v5442_v40  ;;  %v5505_v57 = vpop.xlane.xlu0 %5504  ;;  %v5795_v40 = vmul.f32 %v7401_v9, %v11632_v55 }
 0x90b   :  { %v5527_v37 = vadd.f32 %v5505_v57, %v5502_v49  ;;  %v5794_v49 = vmul.f32 %v7400_v43, %v11613_v27 }
 0x90c   :  { %v5812_v42 = vsel %vm5439_vm6, %v5795_v40, 0.0 }
 0x90d   :  { %v5809_v7 = vsel %vm5439_vm6, %v5794_v49, 0.0 }
 0x90e   :  { %5636 = vadd.xlane.f32.xlu1 %v5635_v20  ;;  %5630 = vadd.xlane.f32.xlu2 %v5629_v25  ;;  %v5875_v25 = vsel %vm5439_vm6, %v5856_v50, 0.0 }
 0x90f   :  { %5633 = vadd.xlane.f32.xlu0 %v5632_v24  ;;  %v5869_v24 = vsel %vm5439_vm6, %v5854_v54, 0.0 }
 0x911   :  { %v5508_v0 = vpop.xlane.xlu1 %5507  ;;  %v5622_v13 = vpop.xlane.xlu2 %5621 }
 0x912   :  { %v11731_v6 = vadd.f32 %v5527_v37, %v5508_v0  ;;  %v5565_v3 = vpop.xlane.xlu0 %5564  ;;  %v5855_v37 = vmul.f32 %v7410_v63, %v11632_v55  ;;  %v7419_v0 = vld [vmem:[%s12095_s9 + $0x260] sm:$0xff] }
 0x913   :  { %v5587_v31 = vadd.f32 %v5565_v3, %v5562_v12  ;;  %v5914_v3 = vmul.f32 %v7418_v47, %v11613_v27 }
 0x914   :  { %v5872_v36 = vsel %vm5439_vm6, %v5855_v37, 0.0 }
 0x915   :  { %v5929_v21 = vsel %vm5439_vm6, %v5914_v3, 0.0 }
 0x916   :  { %5696 = vadd.xlane.f32.xlu1 %v5695_v38  ;;  %5690 = vadd.xlane.f32.xlu2 %v5689_v5  ;;  %v5915_v38 = vmul.f32 %v7419_v0, %v11632_v55 }
 0x917   :  { %5693 = vadd.xlane.f32.xlu0 %v5692_v53  ;;  %v5935_v53 = vsel %vm5439_vm6, %v5916_v15, 0.0 }
 0x918   :  { %v5932_v59 = vsel %vm5439_vm6, %v5915_v38, 0.0 }
 0x919   :  { %v5568_v41 = vpop.xlane.xlu1 %5567  ;;  %v5682_v18 = vpop.xlane.xlu2 %5681 }
 0x91a   :  { %v11748_v8 = vadd.f32 %v5587_v31, %v5568_v41  ;;  %v5625_v30 = vpop.xlane.xlu0 %5624  ;;  %v7445_v41 = vld [vmem:[%s12095_s9 + $0x330] sm:$0xff] }
 0x91b   :  { %v5647_v19 = vadd.f32 %v5625_v30, %v5622_v13  ;;  %v5976_v30 = vmul.f32 %v7429_v45, %v11651_v33  ;;  %v6094_v17 = vmul.f32 %v7445_v41, %v11613_v27  ;;  %v7446_v27 = vld [vmem:[%s12095_s9 + $0x338] sm:$0xff] }
 0x91c   :  { %v6095_v40 = vmul.f32 %v7446_v27, %v11632_v55 }
 0x91d   :  { %v5995_v60 = vsel %vm5439_vm6, %v5976_v30, 0.0  ;;  %v6109_v43 = vsel %vm5439_vm6, %v6094_v17, 0.0 }
 0x91e   :  { %5756 = vadd.xlane.f32.xlu1 %v5755_v23  ;;  %5750 = vadd.xlane.f32.xlu2 %v5749_v10  ;;  %v6112_v29 = vsel %vm5439_vm6, %v6095_v40, 0.0 }
 0x91f   :  { %5753 = vadd.xlane.f32.xlu0 %v5752_v48 }
 0x921   :  { %v5628_v4 = vpop.xlane.xlu1 %5627  ;;  %v5742_v58 = vpop.xlane.xlu2 %5741 }
 0x922   :  { %v11765_v11 = vadd.f32 %v5647_v19, %v5628_v4  ;;  %v5685_v14 = vpop.xlane.xlu0 %5684  ;;  %v7430_v4 = vld [vmem:[%s12095_s9 + $0x2b8] sm:$0xff] }
 0x923   :  { %v5707_v39 = vadd.f32 %v5685_v14, %v5682_v18  ;;  %v7437_v18 = vld [vmem:[%s12095_s9 + $0x2f0] sm:$0xff]  ;;  %v5977_v14 = vmul.f32 %v7430_v4, %v11540_v56 }
 0x924   :  { %v6035_v10 = vmul.f32 %v7437_v18, %v11632_v55  ;;  %v7447_v55 = vld [vmem:[%s12095_s9 + $0x340] sm:$0xff]  ;;  %v7360_v18 = vld [vmem:[%s12095_s9 + $0x88] sm:$0xff] }
 0x925   :  { %v5998_v61 = vsel %vm5439_vm6, %v5977_v14, 0.0  ;;  %v6096_v37 = vmul.f32 %v7447_v55, %v11651_v33  ;;  %v7368_v14 = vld [vmem:[%s12095_s9 + $0xc8] sm:$0xff] }
 0x926   :  { %5816 = vadd.xlane.f32.xlu1 %v5815_v51  ;;  %5810 = vadd.xlane.f32.xlu2 %v5809_v7  ;;  %v6052_v9 = vsel %vm5439_vm6, %v6035_v10, 0.0  ;;  %v5558_v55 = vmul.f32 %v7368_v14, %v11558_v32 }
 0x927   :  { %5813 = vadd.xlane.f32.xlu0 %v5812_v42  ;;  %v6115_v0 = vsel %vm5439_vm6, %v6096_v37, 0.0  ;;  %v7376_v37 = vld [vmem:[%s12095_s9 + $0x108] sm:$0xff] }
 0x929   :  { %v5688_v52 = vpop.xlane.xlu1 %5687  ;;  %v5802_v12 = vpop.xlane.xlu2 %5801 }
 0x92a   :  { %v11782_v57 = vadd.f32 %v5707_v39, %v5688_v52  ;;  %v5745_v46 = vpop.xlane.xlu0 %5744  ;;  %v7431_v52 = vld [vmem:[%s12095_s9 + $0x2c0] sm:$0xff] }
 0x92b   :  { %v5767_v20 = vadd.f32 %v5745_v46, %v5742_v58  ;;  %v7438_v58 = vld [vmem:[%s12095_s9 + $0x2f8] sm:$0xff]  ;;  %v5978_v46 = vmul.f32 %v7431_v52, %v11558_v32 }
 0x92c   :  { %v6036_v7 = vmul.f32 %v7438_v58, %v11651_v33  ;;  %v5429_v33 = vld [vmem:[%s12095_s9 + $0x40] sm:$0xff] }
 0x92d   :  { %v6001_v47 = vsel %vm5439_vm6, %v5978_v46, 0.0  ;;  %v5438_v3 = vmul.f32 %v5429_v33, %v11855_v22  ;;  %v7378_v46 = vld [vmem:[%s12095_s9 + $0x118] sm:$0xff] }
 0x92e   :  { %5876 = vadd.xlane.f32.xlu1 %v5875_v25  ;;  %5870 = vadd.xlane.f32.xlu2 %v5869_v24  ;;  %v6055_v63 = vsel %vm5439_vm6, %v6036_v7, 0.0 }
 0x92f   :  { %5873 = vadd.xlane.f32.xlu0 %v5872_v36 }
 0x931   :  { %v5748_v13 = vpop.xlane.xlu1 %5747  ;;  %v5862_v44 = vpop.xlane.xlu2 %5861 }
 0x932   :  { %v11799_v16 = vadd.f32 %v5767_v20, %v5748_v13  ;;  %v5805_v31 = vpop.xlane.xlu0 %5804 }
 0x933   :  { %v5827_v5 = vadd.f32 %v5805_v31, %v5802_v12  ;;  %v7439_v12 = vld [vmem:[%s12095_s9 + $0x300] sm:$0xff] }
 0x934   :  { %v6037_v24 = vmul.f32 %v7439_v12, %v11540_v56 }
 0x936   :  { %5936 = vadd.xlane.f32.xlu1 %v5935_v53  ;;  %5930 = vadd.xlane.f32.xlu2 %v5929_v21  ;;  %v6058_v13 = vsel %vm5439_vm6, %v6037_v24, 0.0  ;;  %v5437_v53 = vmul.f32 %v5428_v26, %v11558_v32 }
 0x937   :  { %5933 = vadd.xlane.f32.xlu0 %v5932_v59  ;;  %v5464_v59 = vsel %vm5439_vm6, %v5438_v3, 0.0 }
 0x938   :  { %v5461_v41 = vsel %vm5439_vm6, %v5437_v53, 0.0  ;;  %v7386_v53 = vld [vmem:[%s12095_s9 + $0x158] sm:$0xff] }
 0x939   :  { %v5808_v2 = vpop.xlane.xlu1 %5807  ;;  %v5922_v35 = vpop.xlane.xlu2 %5921 }
 0x93a   :  { %v11816_v19 = vadd.f32 %v5827_v5, %v5808_v2  ;;  %v5865_v23 = vpop.xlane.xlu0 %5864  ;;  %v7358_v2 = vld [vmem:[%s12095_s9 + $0x78] sm:$0xff] }
 0x93b   :  { %v5887_v48 = vadd.f32 %v5865_v23, %v5862_v44  ;;  %v5427_v44 = vld [vmem:[%s12095_s9 + $0x30] sm:$0xff]  ;;  %v5499_v23 = vmul.f32 %v7360_v18, %v11855_v22  ;;  %v5497_v10 = vmul.f32 %v7358_v2, %v11540_v56 }
 0x93c   :  { %v5436_v31 = vmul.f32 %v5427_v44, %v11540_v56 }
 0x93d   :  { %v5524_v27 = vsel %vm5439_vm6, %v5499_v23, 0.0  ;;  %v5518_v58 = vsel %vm5439_vm6, %v5497_v10, 0.0 }
 0x93e   :  { %5996 = vadd.xlane.f32.xlu1 %v5995_v60  ;;  %6110 = vadd.xlane.f32.xlu2 %v6109_v43  ;;  %v5458_v45 = vsel %vm5439_vm6, %v5436_v31, 0.0  ;;  %v7387_v31 = vld [vmem:[%s12095_s9 + $0x160] sm:$0xff] }
 0x93f   :  { %6053 = vadd.xlane.f32.xlu0 %v6052_v9 }
 0x941   :  { %v5868_v1 = vpop.xlane.xlu1 %5867  ;;  %v5982_v49 = vpop.xlane.xlu2 %5981 }
 0x942   :  { %v11833_v39 = vadd.f32 %v5887_v48, %v5868_v1  ;;  %v5925_v51 = vpop.xlane.xlu0 %5924 }
 0x943   :  { %v5947_v42 = vadd.f32 %v5925_v51, %v5922_v35  ;;  %v7359_v35 = vld [vmem:[%s12095_s9 + $0x80] sm:$0xff] }
 0x944   :  { %v5498_v9 = vmul.f32 %v7359_v35, %v11558_v32  ;;  %v5678_v35 = vmul.f32 %v7386_v53, %v11558_v32 }
 0x946   :  { %5999 = vadd.xlane.f32.xlu1 %v5998_v61  ;;  %6113 = vadd.xlane.f32.xlu2 %v6112_v29  ;;  %v5521_v1 = vsel %vm5439_vm6, %v5498_v9, 0.0  ;;  %v5701_v10 = vsel %vm5439_vm6, %v5678_v35, 0.0  ;;  %v7422_v35 = vld [vmem:[%s12095_s9 + $0x278] sm:$0xff] }
 0x947   :  { %6056 = vadd.xlane.f32.xlu0 %v6055_v63 }
 0x949   :  { %v5928_v50 = vpop.xlane.xlu1 %5927  ;;  %v6042_v54 = vpop.xlane.xlu2 %6041 }
 0x94a   :  { %v11850_v20 = vadd.f32 %v5947_v42, %v5928_v50  ;;  %v5985_v25 = vpop.xlane.xlu0 %5984 }
 0x94b   :  { %v6007_v36 = vadd.f32 %v5985_v25, %v5982_v49  ;;  %v7369_v49 = vld [vmem:[%s12095_s9 + $0xd0] sm:$0xff] }
 0x94c   :  { %v5559_v42 = vmul.f32 %v7369_v49, %v11855_v22  ;;  %v7377_v25 = vld [vmem:[%s12095_s9 + $0x110] sm:$0xff] }
 0x94d   :  { %v5618_v44 = vmul.f32 %v7377_v25, %v11558_v32 }
 0x94e   :  { %6002 = vadd.xlane.f32.xlu1 %v6001_v47  ;;  %6116 = vadd.xlane.f32.xlu2 %v6115_v0  ;;  %v5584_v50 = vsel %vm5439_vm6, %v5559_v42, 0.0  ;;  %v5619_v47 = vmul.f32 %v7378_v46, %v11855_v22  ;;  %v5617_v0 = vmul.f32 %v7376_v37, %v11540_v56  ;;  %v7405_v42 = vld [vmem:[%s12095_s9 + $0x1f0] sm:$0xff] }
 0x94f   :  { %6059 = vadd.xlane.f32.xlu0 %v6058_v13  ;;  %v5641_v3 = vsel %vm5439_vm6, %v5618_v44, 0.0  ;;  %v7413_v44 = vld [vmem:[%s12095_s9 + $0x230] sm:$0xff] }
 0x950   :  { %v5858_v53 = vmul.f32 %v7413_v44, %v11558_v32 }
 0x951   :  { %v5988_v34 = vpop.xlane.xlu1 %5987  ;;  %v6105_v15 = vpop.xlane.xlu2 %6104 }
 0x952   :  { %v6008_v38 = vadd.f32 %v6007_v36, %v5988_v34  ;;  %v6045_v5 = vpop.xlane.xlu0 %6044  ;;  %v6127_v40 = vadd.f32 %v6105_v15, %v11695_v62  ;;  %v5581_v62 = vsel %vm5439_vm6, %v5558_v55, 0.0  ;;  %v5644_v34 = vsel %vm5439_vm6, %v5619_v47, 0.0 }
 0x953   :  { %v6067_v21 = vadd.f32 %v6045_v5, %v6042_v54  ;;  %v5638_v15 = vsel %vm5439_vm6, %v5617_v0, 0.0 }
 0x956   :  { %5465 = vadd.xlane.f32.xlu1 %v5464_v59  ;;  %5459 = vadd.xlane.f32.xlu2 %v5458_v45  ;;  %v5679_v45 = vmul.f32 %v7387_v31, %v11855_v22 }
 0x957   :  { %5462 = vadd.xlane.f32.xlu0 %v5461_v41 }
 0x959   :  { %v5991_v30 = vpop.xlane.xlu1 %5990  ;;  %v5448_v17 = vpop.xlane.xlu2 %5447 }
 0x95a   :  { %v6009_v48 = vadd.f32 %v6008_v38, %v5991_v30  ;;  %v5468_v60 = vadd.f32 %v11714_v28, %v5448_v17  ;;  %v6048_v43 = vpop.xlane.xlu0 %6047  ;;  %v7367_v28 = vld [vmem:[%s12095_s9 + $0xc0] sm:$0xff]  ;;  %v7385_v38 = vld [vmem:[%s12095_s9 + $0x150] sm:$0xff]  ;;  %v5704_v17 = vsel %vm5439_vm6, %v5679_v45, 0.0 }
 0x95b   :  { %v6068_v4 = vadd.f32 %v6067_v21, %v6048_v43  ;;  %v5557_v61 = vmul.f32 %v7367_v28, %v11540_v56  ;;  %v5677_v41 = vmul.f32 %v7385_v38, %v11540_v56  ;;  %v7395_v43 = vld [vmem:[%s12095_s9 + $0x1a0] sm:$0xff] }
 0x95c   :  { %v5738_v28 = vmul.f32 %v7395_v43, %v11558_v32  ;;  %v5918_v43 = vmul.f32 %v7422_v35, %v11558_v32 }
 0x95d   :  { %v5578_v54 = vsel %vm5439_vm6, %v5557_v61, 0.0  ;;  %v5698_v23 = vsel %vm5439_vm6, %v5677_v41, 0.0  ;;  %v5881_v41 = vsel %vm5439_vm6, %v5858_v53, 0.0 }
 0x95e   :  { %5525 = vadd.xlane.f32.xlu1 %v5524_v27  ;;  %5519 = vadd.xlane.f32.xlu2 %v5518_v58 }
 0x95f   :  { %5522 = vadd.xlane.f32.xlu0 %v5521_v1 }
 0x961   :  { %v5994_v51 = vpop.xlane.xlu1 %5993  ;;  %v6108_v7 = vpop.xlane.xlu2 %6107 }
 0x962   :  { %v11903_v29 = vadd.f32 %v6009_v48, %v5994_v51  ;;  %v11905_v63 = vadd.f32 %v6127_v40, %v6108_v7  ;;  %v6051_v52 = vpop.xlane.xlu0 %6050  ;;  %v7396_v48 = vld [vmem:[%s12095_s9 + $0x1a8] sm:$0xff]  ;;  %v5761_v7 = vsel %vm5439_vm6, %v5738_v28, 0.0 }
 0x963   :  { %v11908_v12 = vadd.f32 %v6068_v4, %v6051_v52  ;;  %v5739_v27 = vmul.f32 %v7396_v48, %v11855_v22  ;;  %v7404_v52 = vld [vmem:[%s12095_s9 + $0x1e8] sm:$0xff] }
 0x964   :  { %v5798_v25 = vmul.f32 %v7404_v52, %v11558_v32  ;;  %v7440_v28 = vld [vmem:[%s12095_s9 + $0x308] sm:$0xff] }
 0x965   :  { %v5764_v40 = vsel %vm5439_vm6, %v5739_v27, 0.0  ;;  %v6038_v52 = vmul.f32 %v7440_v28, %v11558_v32 }
 0x966   :  { %5585 = vadd.xlane.f32.xlu1 %v5584_v50  ;;  %5579 = vadd.xlane.f32.xlu2 %v5578_v54  ;;  %v5799_v54 = vmul.f32 %v7405_v42, %v11855_v22  ;;  %v5821_v0 = vsel %vm5439_vm6, %v5798_v25, 0.0 }
 0x967   :  { %5582 = vadd.xlane.f32.xlu0 %v5581_v62 }
 0x969   :  { %v5457_v24 = vpop.xlane.xlu1 %5456  ;;  %v5451_v36 = vpop.xlane.xlu2 %5450 }
 0x96a   :  { %v5469_v13 = vadd.f32 %v5468_v60, %v5451_v36  ;;  %v5454_v33 = vpop.xlane.xlu0 %5453  ;;  %v5824_v36 = vsel %vm5439_vm6, %v5799_v54, 0.0 }
 0x96c   :  { %v5470_v26 = vadd.f32 %v5469_v13, %v5454_v33  ;;  %v7414_v13 = vld [vmem:[%s12095_s9 + $0x238] sm:$0xff] }
 0x96e   :  { %5645 = vadd.xlane.f32.xlu1 %v5644_v34  ;;  %5639 = vadd.xlane.f32.xlu2 %v5638_v15  ;;  %v11934_v5 = vadd.f32 %v5470_v26, %v5457_v24  ;;  %v5859_v15 = vmul.f32 %v7414_v13, %v11855_v22 }
 0x96f   :  { %5642 = vadd.xlane.f32.xlu0 %v5641_v3 }
 0x971   :  { %v5517_v21 = vpop.xlane.xlu1 %5516  ;;  %v5511_v59 = vpop.xlane.xlu2 %5510 }
 0x972   :  { %v5529_v18 = vadd.f32 %v11731_v6, %v5511_v59  ;;  %v5514_v2 = vpop.xlane.xlu0 %5513  ;;  %v7394_v6 = vld [vmem:[%s12095_s9 + $0x198] sm:$0xff]  ;;  %v5884_v59 = vsel %vm5439_vm6, %v5859_v15, 0.0 }
 0x973   :  { %v5737_v58 = vmul.f32 %v7394_v6, %v11540_v56 }
 0x974   :  { %v5530_v30 = vadd.f32 %v5529_v18, %v5514_v2  ;;  %v7423_v18 = vld [vmem:[%s12095_s9 + $0x280] sm:$0xff] }
 0x975   :  { %v5758_v51 = vsel %vm5439_vm6, %v5737_v58, 0.0  ;;  %v5941_v58 = vsel %vm5439_vm6, %v5918_v43, 0.0 }
 0x976   :  { %5705 = vadd.xlane.f32.xlu1 %v5704_v17  ;;  %5699 = vadd.xlane.f32.xlu2 %v5698_v23  ;;  %v11952_v60 = vadd.f32 %v5530_v30, %v5517_v21  ;;  %v5919_v23 = vmul.f32 %v7423_v18, %v11855_v22 }
 0x977   :  { %5702 = vadd.xlane.f32.xlu0 %v5701_v10 }
 0x979   :  { %v5577_v9 = vpop.xlane.xlu1 %5576  ;;  %v5571_v4 = vpop.xlane.xlu2 %5570 }
 0x97a   :  { %v5589_v1 = vadd.f32 %v11748_v8, %v5571_v4  ;;  %v5574_v49 = vpop.xlane.xlu0 %5573  ;;  %v7403_v8 = vld [vmem:[%s12095_s9 + $0x1e0] sm:$0xff]  ;;  %v5944_v4 = vsel %vm5439_vm6, %v5919_v23, 0.0 }
 0x97b   :  { %v5797_v62 = vmul.f32 %v7403_v8, %v11540_v56 }
 0x97c   :  { %v5590_v14 = vadd.f32 %v5589_v1, %v5574_v49  ;;  %v7432_v1 = vld [vmem:[%s12095_s9 + $0x2c8] sm:$0xff] }
 0x97d   :  { %v5818_v47 = vsel %vm5439_vm6, %v5797_v62, 0.0  ;;  %v6061_v62 = vsel %vm5439_vm6, %v6038_v52, 0.0 }
 0x97e   :  { %5765 = vadd.xlane.f32.xlu1 %v5764_v40  ;;  %5759 = vadd.xlane.f32.xlu2 %v5758_v51  ;;  %v11970_v61 = vadd.f32 %v5590_v14, %v5577_v9  ;;  %v5979_v51 = vmul.f32 %v7432_v1, %v11855_v22 }
 0x97f   :  { %5762 = vadd.xlane.f32.xlu0 %v5761_v7 }
 0x981   :  { %v5637_v55 = vpop.xlane.xlu1 %5636  ;;  %v5631_v50 = vpop.xlane.xlu2 %5630 }
 0x982   :  { %v5649_v46 = vadd.f32 %v11765_v11, %v5631_v50  ;;  %v5634_v37 = vpop.xlane.xlu0 %5633  ;;  %v7412_v11 = vld [vmem:[%s12095_s9 + $0x228] sm:$0xff]  ;;  %v6004_v50 = vsel %vm5439_vm6, %v5979_v51, 0.0 }
 0x983   :  { %v5857_v3 = vmul.f32 %v7412_v11, %v11540_v56 }
 0x984   :  { %v5650_v24 = vadd.f32 %v5649_v46, %v5634_v37  ;;  %v7450_v46 = vld [vmem:[%s12095_s9 + $0x358] sm:$0xff]  ;;  %v7441_v37 = vld [vmem:[%s12095_s9 + $0x310] sm:$0xff] }
 0x985   :  { %v5878_v45 = vsel %vm5439_vm6, %v5857_v3, 0.0  ;;  %v6039_v11 = vmul.f32 %v7441_v37, %v11855_v22 }
 0x986   :  { %5825 = vadd.xlane.f32.xlu1 %v5824_v36  ;;  %5819 = vadd.xlane.f32.xlu2 %v5818_v47  ;;  %v11988_v33 = vadd.f32 %v5650_v24, %v5637_v55  ;;  %v6099_v36 = vmul.f32 %v7450_v46, %v11855_v22 }
 0x987   :  { %5822 = vadd.xlane.f32.xlu0 %v5821_v0  ;;  %v6064_v15 = vsel %vm5439_vm6, %v6039_v11, 0.0 }
 0x989   :  { %v5697_v26 = vpop.xlane.xlu1 %5696  ;;  %v5691_v34 = vpop.xlane.xlu2 %5690 }
 0x98a   :  { %v5709_v31 = vadd.f32 %v11782_v57, %v5691_v34  ;;  %v5694_v38 = vpop.xlane.xlu0 %5693  ;;  %v7421_v57 = vld [vmem:[%s12095_s9 + $0x270] sm:$0xff] }
 0x98b   :  { %v5917_v10 = vmul.f32 %v7421_v57, %v11540_v56 }
 0x98c   :  { %v5710_v21 = vadd.f32 %v5709_v31, %v5694_v38 }
 0x98d   :  { %v5938_v27 = vsel %vm5439_vm6, %v5917_v10, 0.0 }
 0x98e   :  { %5885 = vadd.xlane.f32.xlu1 %v5884_v59  ;;  %5879 = vadd.xlane.f32.xlu2 %v5878_v45  ;;  %v12006_v2 = vadd.f32 %v5710_v21, %v5697_v26  ;;  %v6124_v26 = vsel %vm5439_vm6, %v6099_v36, 0.0 }
 0x98f   :  { %5882 = vadd.xlane.f32.xlu0 %v5881_v41 }
 0x991   :  { %v5757_v30 = vpop.xlane.xlu1 %5756  ;;  %v5751_v17 = vpop.xlane.xlu2 %5750 }
 0x992   :  { %v5769_v48 = vadd.f32 %v11799_v16, %v5751_v17  ;;  %v5754_v6 = vpop.xlane.xlu0 %5753  ;;  %v7448_v16 = vld [vmem:[%s12095_s9 + $0x348] sm:$0xff] }
 0x993   :  { %v6097_v7 = vmul.f32 %v7448_v16, %v11540_v56  ;;  %v7449_v56 = vld [vmem:[%s12095_s9 + $0x350] sm:$0xff] }
 0x994   :  { %v5770_v9 = vadd.f32 %v5769_v48, %v5754_v6  ;;  %v6098_v47 = vmul.f32 %v7449_v56, %v11558_v32 }
 0x995   :  { %v6118_v54 = vsel %vm5439_vm6, %v6097_v7, 0.0 }
 0x996   :  { %5945 = vadd.xlane.f32.xlu1 %v5944_v4  ;;  %5939 = vadd.xlane.f32.xlu2 %v5938_v27  ;;  %v12024_v49 = vadd.f32 %v5770_v9, %v5757_v30  ;;  %v6121_v34 = vsel %vm5439_vm6, %v6098_v47, 0.0 }
 0x997   :  { %5942 = vadd.xlane.f32.xlu0 %v5941_v58 }
 0x999   :  { %v5817_v14 = vpop.xlane.xlu1 %5816  ;;  %v5811_v40 = vpop.xlane.xlu2 %5810 }
 0x99a   :  { %v5829_v42 = vadd.f32 %v11816_v19, %v5811_v40  ;;  %v5814_v8 = vpop.xlane.xlu0 %5813 }
 0x99c   :  { %v5830_v55 = vadd.f32 %v5829_v42, %v5814_v8 }
 0x99e   :  { %6005 = vadd.xlane.f32.xlu1 %v6004_v50  ;;  %6119 = vadd.xlane.f32.xlu2 %v6118_v54  ;;  %v12042_v19 = vadd.f32 %v5830_v55, %v5817_v14 }
 0x99f   :  { %6062 = vadd.xlane.f32.xlu0 %v6061_v62 }
 0x9a1   :  { %v5877_v25 = vpop.xlane.xlu1 %5876  ;;  %v5871_v24 = vpop.xlane.xlu2 %5870 }
 0x9a2   :  { %v5889_v0 = vadd.f32 %v11833_v39, %v5871_v24  ;;  %v5874_v13 = vpop.xlane.xlu0 %5873 }
 0x9a4   :  { %v5890_v44 = vadd.f32 %v5889_v0, %v5874_v13 }
 0x9a6   :  { %6125 = vadd.xlane.f32.xlu1 %v6124_v26  ;;  %6122 = vadd.xlane.f32.xlu2 %v6121_v34  ;;  %v12054_v3 = vadd.f32 %v5890_v44, %v5877_v25 }
 0x9a7   :  { %6065 = vadd.xlane.f32.xlu0 %v6064_v15 }
 0x9a9   :  { %v5937_v31 = vpop.xlane.xlu1 %5936  ;;  %v5931_v38 = vpop.xlane.xlu2 %5930 }
 0x9aa   :  { %v5949_v32 = vadd.f32 %v11850_v20, %v5931_v38  ;;  %v5934_v39 = vpop.xlane.xlu0 %5933 }
 0x9ac   :  { %v5950_v53 = vadd.f32 %v5949_v32, %v5934_v39 }
 0x9ae   :  { %v12057_v21 = vadd.f32 %v5950_v53, %v5937_v31 }
 0x9b1   :  { %v5997_v22 = vpop.xlane.xlu1 %5996  ;;  %v6111_v59 = vpop.xlane.xlu2 %6110 }
 0x9b2   :  { %v6011_v45 = vadd.f32 %v11903_v29, %v5997_v22  ;;  %v6129_v41 = vadd.f32 %v11905_v63, %v6111_v59  ;;  %v6054_v18 = vpop.xlane.xlu0 %6053 }
 0x9b3   :  { %v6070_v57 = vadd.f32 %v11908_v12, %v6054_v18 }
 0x9b9   :  { %v6000_v35 = vpop.xlane.xlu1 %5999  ;;  %v6114_v30 = vpop.xlane.xlu2 %6113 }
 0x9ba   :  { %v6012_v17 = vadd.f32 %v6011_v45, %v6000_v35  ;;  %v6130_v23 = vadd.f32 %v6129_v41, %v6114_v30  ;;  %v6057_v10 = vpop.xlane.xlu0 %6056 }
 0x9bb   :  { %v6071_v48 = vadd.f32 %v6070_v57, %v6057_v10 }
 0x9c1   :  { %v6003_v20 = vpop.xlane.xlu1 %6002  ;;  %v6117_v6 = vpop.xlane.xlu2 %6116 }
 0x9c2   :  { %v12062_v43 = vadd.f32 %v6012_v17, %v6003_v20  ;;  %v12064_v9 = vadd.f32 %v6130_v23, %v6117_v6  ;;  %v6060_v4 = vpop.xlane.xlu0 %6059 }
 0x9c3   :  { %v12066_v27 = vadd.f32 %v6071_v48, %v6060_v4 }
 0x9c9   :  { %v5466_v29 = vpop.xlane.xlu1 %5465  ;;  %v5460_v63 = vpop.xlane.xlu2 %5459 }
 0x9ca   :  { %v5472_v58 = vadd.f32 %v11934_v5, %v5460_v63  ;;  %v5463_v12 = vpop.xlane.xlu0 %5462 }
 0x9cc   :  { %v5473_v1 = vadd.f32 %v5472_v58, %v5463_v12 }
 0x9ce   :  { %v5474_v16 = vadd.f32 %v5473_v1, %v5466_v29 }
 0x9d0   :  { %v5475_v28 = vrot.slane %v5474_v16, 4 }
 0x9d1   :  { %v5526_v14 = vpop.xlane.xlu1 %5525  ;;  %v5520_v40 = vpop.xlane.xlu2 %5519 }
 0x9d2   :  { %v5476_v51 = vadd.f32 %v5475_v28, %v5474_v16  ;;  %v5532_v7 = vadd.f32 %v11952_v60, %v5520_v40  ;;  %v5523_v42 = vpop.xlane.xlu0 %5522 }
 0x9d4   :  { %v5533_v8 = vadd.f32 %v5532_v7, %v5523_v42  ;;  %v5477_v52 = vrot.slane %v5476_v51, 2 }
 0x9d6   :  { %v5534_v55 = vadd.f32 %v5533_v8, %v5526_v14  ;;  %v5478_v46 = vadd.f32 %v5477_v52, %v5476_v51 }
 0x9d8   :  { %v5535_v50 = vrot.slane %v5534_v55, 4  ;;  %v5479_v36 = vrot.slane %v5478_v46, 1 }
 0x9d9   :  { %v5586_v54 = vpop.xlane.xlu1 %5585  ;;  %v5580_v62 = vpop.xlane.xlu2 %5579 }
 0x9da   :  { %v5536_v56 = vadd.f32 %v5535_v50, %v5534_v55  ;;  %v5592_v5 = vadd.f32 %v11970_v61, %v5580_v62  ;;  %v5583_v37 = vpop.xlane.xlu0 %5582  ;;  %v5480_v26 = vadd.f32 %v5479_v36, %v5478_v46 }
 0x9dc   :  { %v5537_v25 = vrot.slane %v5536_v56, 2  ;;  %v5593_v24 = vadd.f32 %v5592_v5, %v5583_v37 }
 0x9de   :  { %v5538_v47 = vadd.f32 %v5537_v25, %v5536_v56  ;;  %v5594_v0 = vadd.f32 %v5593_v24, %v5586_v54 }
 0x9e0   :  { %v5539_v13 = vrot.slane %v5538_v47, 1  ;;  %v5595_v11 = vrot.slane %v5594_v0, 4 }
 0x9e1   :  { %v5646_v60 = vpop.xlane.xlu1 %5645  ;;  %v5640_v44 = vpop.xlane.xlu2 %5639 }
 0x9e2   :  { %v5540_v34 = vadd.f32 %v5539_v13, %v5538_v47  ;;  %v5596_v15 = vadd.f32 %v5595_v11, %v5594_v0  ;;  %v5652_v31 = vadd.f32 %v11988_v33, %v5640_v44  ;;  %v5643_v38 = vpop.xlane.xlu0 %5642 }
 0x9e4   :  { %v6142_v32 = vsel %vm6141_vm8, %v5480_v26, %v5540_v34  ;;  %v5597_v39 = vrot.slane %v5596_v15, 2  ;;  %v5653_v61 = vadd.f32 %v5652_v31, %v5643_v38 }
 0x9e6   :  { %v5598_v53 = vadd.f32 %v5597_v39, %v5596_v15  ;;  %v5654_v22 = vadd.f32 %v5653_v61, %v5646_v60 }
 0x9e8   :  { %v5599_v59 = vrot.slane %v5598_v53, 1  ;;  %v5655_v45 = vrot.slane %v5654_v22, 4 }
 0x9e9   :  { %v5706_v41 = vpop.xlane.xlu1 %5705  ;;  %v5700_v18 = vpop.xlane.xlu2 %5699 }
 0x9ea   :  { %v5600_v57 = vadd.f32 %v5599_v59, %v5598_v53  ;;  %v5656_v35 = vadd.f32 %v5655_v45, %v5654_v22  ;;  %v5712_v30 = vadd.f32 %v12006_v2, %v5700_v18  ;;  %v5703_v17 = vpop.xlane.xlu0 %5702 }
 0x9ec   :  { %v6144_v23 = vsel %vm6143_vm10, %v6142_v32, %v5600_v57  ;;  %v5657_v10 = vrot.slane %v5656_v35, 2  ;;  %v5713_v48 = vadd.f32 %v5712_v30, %v5703_v17 }
 0x9ee   :  { %v5658_v33 = vadd.f32 %v5657_v10, %v5656_v35  ;;  %v5714_v20 = vadd.f32 %v5713_v48, %v5706_v41 }
 0x9f0   :  { %v5659_v6 = vrot.slane %v5658_v33, 1  ;;  %v5715_v4 = vrot.slane %v5714_v20, 4 }
 0x9f1   :  { %v5766_v29 = vpop.xlane.xlu1 %5765  ;;  %v5760_v63 = vpop.xlane.xlu2 %5759 }
 0x9f2   :  { %v5660_v58 = vadd.f32 %v5659_v6, %v5658_v33  ;;  %v5716_v12 = vadd.f32 %v5715_v4, %v5714_v20  ;;  %v5772_v1 = vadd.f32 %v12024_v49, %v5760_v63  ;;  %v5763_v16 = vpop.xlane.xlu0 %5762 }
 0x9f4   :  { %v6146_v28 = vsel %vm6145_vm11, %v6144_v23, %v5660_v58  ;;  %v5717_v14 = vrot.slane %v5716_v12, 2  ;;  %v5773_v40 = vadd.f32 %v5772_v1, %v5763_v16 }
 0x9f6   :  { %v5718_v2 = vadd.f32 %v5717_v14, %v5716_v12  ;;  %v5774_v51 = vadd.f32 %v5773_v40, %v5766_v29 }
 0x9f8   :  { %v5719_v7 = vrot.slane %v5718_v2, 1  ;;  %v5775_v42 = vrot.slane %v5774_v51, 4 }
 0x9f9   :  { %v5826_v8 = vpop.xlane.xlu1 %5825  ;;  %v5820_v52 = vpop.xlane.xlu2 %5819 }
 0x9fa   :  { %v5720_v55 = vadd.f32 %v5719_v7, %v5718_v2  ;;  %v5776_v50 = vadd.f32 %v5775_v42, %v5774_v51  ;;  %v5832_v54 = vadd.f32 %v12042_v19, %v5820_v52  ;;  %v5823_v62 = vpop.xlane.xlu0 %5822 }
 0x9fc   :  { %v6148_v46 = vsel %vm6147_vm14, %v6146_v28, %v5720_v55  ;;  %v5777_v56 = vrot.slane %v5776_v50, 2  ;;  %v5833_v5 = vadd.f32 %v5832_v54, %v5823_v62 }
 0x9fe   :  { %v5778_v49 = vadd.f32 %v5777_v56, %v5776_v50  ;;  %v5834_v37 = vadd.f32 %v5833_v5, %v5826_v8 }
 0xa00   :  { %v5779_v25 = vrot.slane %v5778_v49, 1  ;;  %v5835_v24 = vrot.slane %v5834_v37, 4 }
 0xa01   :  { %v5886_v36 = vpop.xlane.xlu1 %5885  ;;  %v5880_v47 = vpop.xlane.xlu2 %5879 }
 0xa02   :  { %v5780_v0 = vadd.f32 %v5779_v25, %v5778_v49  ;;  %v5836_v13 = vadd.f32 %v5835_v24, %v5834_v37  ;;  %v5892_v11 = vadd.f32 %v12054_v3, %v5880_v47  ;;  %v5883_v60 = vpop.xlane.xlu0 %5882  ;;  %v6163_v47 = vld [vmem:[%s12096_s10] sm:$0x1] }
 0xa04   :  { %v6150_v44 = vsel %vm6149_vm15, %v6148_v46, %v5780_v0  ;;  %v5837_v26 = vrot.slane %v5836_v13, 2  ;;  %v5893_v34 = vadd.f32 %v5892_v11, %v5883_v60 }
 0xa06   :  { %v5838_v19 = vadd.f32 %v5837_v26, %v5836_v13  ;;  %v5894_v15 = vadd.f32 %v5893_v34, %v5886_v36 }
 0xa08   :  { %v5839_v31 = vrot.slane %v5838_v19, 1  ;;  %v5895_v38 = vrot.slane %v5894_v15, 4 }
 0xa09   :  { %v5946_v32 = vpop.xlane.xlu1 %5945  ;;  %v5940_v39 = vpop.xlane.xlu2 %5939 }
 0xa0a   :  { %v5840_v61 = vadd.f32 %v5839_v31, %v5838_v19  ;;  %v5896_v53 = vadd.f32 %v5895_v38, %v5894_v15  ;;  %v5952_v22 = vadd.f32 %v12057_v21, %v5940_v39  ;;  %v5943_v59 = vpop.xlane.xlu0 %5942 }
 0xa0c   :  { %v6152_v45 = vsel %vm6151_vm0, %v6150_v44, %v5840_v61  ;;  %v5897_v41 = vrot.slane %v5896_v53, 2  ;;  %v5953_v18 = vadd.f32 %v5952_v22, %v5943_v59 }
 0xa0e   :  { %v5898_v3 = vadd.f32 %v5897_v41, %v5896_v53  ;;  %v5954_v57 = vadd.f32 %v5953_v18, %v5946_v32 }
 0xa10   :  { %v5899_v35 = vrot.slane %v5898_v3, 1  ;;  %v5955_v30 = vrot.slane %v5954_v57, 4 }
 0xa11   :  { %v6006_v17 = vpop.xlane.xlu1 %6005  ;;  %v6120_v23 = vpop.xlane.xlu2 %6119 }
 0xa12   :  { %v5900_v10 = vadd.f32 %v5899_v35, %v5898_v3  ;;  %v5956_v48 = vadd.f32 %v5955_v30, %v5954_v57  ;;  %v6014_v33 = vadd.f32 %v12062_v43, %v6006_v17  ;;  %v6063_v20 = vpop.xlane.xlu0 %6062  ;;  %v6132_v1 = vadd.f32 %v12064_v9, %v6120_v23 }
 0xa13   :  { %v6073_v16 = vadd.f32 %v12066_v27, %v6063_v20 }
 0xa14   :  { %v6154_v6 = vsel %vm6153_vm1, %v6152_v45, %v5900_v10  ;;  %v5957_v4 = vrot.slane %v5956_v48, 2  ;;  %v6015_v29 = vrot.slane %v6014_v33, 4 }
 0xa16   :  { %v5958_v21 = vadd.f32 %v5957_v4, %v5956_v48  ;;  %v6016_v63 = vadd.f32 %v6015_v29, %v6014_v33 }
 0xa18   :  { %v5959_v58 = vrot.slane %v5958_v21, 1  ;;  %v6017_v12 = vrot.slane %v6016_v63, 2 }
 0xa19   :  { %v6123_v28 = vpop.xlane.xlu2 %6122  ;;  %v6126_v7 = vpop.xlane.xlu1 %6125 }
 0xa1a   :  { %v5960_v14 = vadd.f32 %v5959_v58, %v5958_v21  ;;  %v6018_v40 = vadd.f32 %v6017_v12, %v6016_v63  ;;  %v6133_v2 = vadd.f32 %v6132_v1, %v6123_v28  ;;  %v6066_v51 = vpop.xlane.xlu0 %6065 }
 0xa1b   :  { %v6074_v43 = vadd.f32 %v6073_v16, %v6066_v51 }
 0xa1c   :  { %v6156_v42 = vsel %vm6155_vm2, %v6154_v6, %v5960_v14  ;;  %v6019_v8 = vrot.slane %v6018_v40, 1  ;;  %v6134_v52 = vadd.f32 %v6133_v2, %v6126_v7 }
 0xa1d   :  { %v6075_v55 = vrot.slane %v6074_v43, 4 }
 0xa1e   :  { %v6020_v50 = vadd.f32 %v6019_v8, %v6018_v40  ;;  %v6135_v54 = vrot.slane %v6134_v52, 4 }
 0xa1f   :  { %v6076_v62 = vadd.f32 %v6075_v55, %v6074_v43 }
 0xa20   :  { %v6158_v46 = vsel %vm6157_vm12, %v6156_v42, %v6020_v50  ;;  %v6136_v9 = vadd.f32 %v6135_v54, %v6134_v52 }
 0xa21   :  { %v6077_v56 = vrot.slane %v6076_v62, 2 }
 0xa22   :  { %v6137_v5 = vrot.slane %v6136_v9, 2 }
 0xa23   :  { %v6078_v27 = vadd.f32 %v6077_v56, %v6076_v62 }
 0xa24   :  { %v6138_v49 = vadd.f32 %v6137_v5, %v6136_v9 }
 0xa25   :  { %v6079_v37 = vrot.slane %v6078_v27, 1 }
 0xa26   :  { %v6139_v25 = vrot.slane %v6138_v49, 1 }
 0xa27   :  { %v6080_v24 = vadd.f32 %v6079_v37, %v6078_v27 }
 0xa28   :  { %v6140_v36 = vadd.f32 %v6139_v25, %v6138_v49 }
 0xa29   :  { %v6160_v0 = vsel %vm6159_vm13, %v6158_v46, %v6080_v24 }
 0xa2a   :  { %v6162_v13 = vsel %vm6161_vm7, %v6160_v0, %v6140_v36 }
 0xa2b   :  { %v6164_v11 = vadd.f32 %v6163_v47, %v6162_v13 }
 0xa2d   :  { %6166 = vst.msk [vmem:[%s12097_s11] sm:$0x1] %vm6165_vm9, %v6164_v11 }

</bundles_post_ra>
